<compile_context>
chip_gen: v6e
topology: v6e:2x2x1
jax: 0.10.0
libtpu: 0.0.40
codegen_flags: <defaults>
</compile_context>

<pallas_src>
import functools

import jax
import jax.numpy as jnp
from jax.experimental import pallas as pl
from jax.experimental.pallas import tpu as pltpu

_LN_EPS = 1e-5                      # torch.nn.LayerNorm default eps
_INV_SQRT2 = 0.7071067811865476


# --------------------------------------------------------------------------- #
# Kernel
# --------------------------------------------------------------------------- #
def _layer_norm_f32(x, gamma_ref, beta_ref):
    """LayerNorm over the last dim, computed in f32 (PyTorch semantics)."""
    xf = x.astype(jnp.float32)
    mean = jnp.mean(xf, axis=-1, keepdims=True)
    var = jnp.mean(jnp.square(xf - mean), axis=-1, keepdims=True)
    inv = jax.lax.rsqrt(var + _LN_EPS)
    return (xf - mean) * inv * gamma_ref[...].astype(jnp.float32) \
        + beta_ref[...].astype(jnp.float32)


def _block_kernel(x_ref, g1_ref, b1_ref, wqkv_ref, wp_ref, bp_ref,
                  g2_ref, b2_ref, w1_ref, fb1_ref, w2_ref, fb2_ref,
                  o_ref, *, num_heads, scale):
    """Entire transformer Block for one image's (N, C) token tile."""
    C = x_ref.shape[-1]
    D = C // num_heads
    x = x_ref[...]
    xf = x.astype(jnp.float32)

    # ---- norm1 + fused q/kv projection (single 3C-wide MXU dot) ----------- #
    ln1 = _layer_norm_f32(xf, g1_ref, b1_ref).astype(x.dtype)
    qkv = jnp.dot(ln1, wqkv_ref[...], preferred_element_type=jnp.float32)
    q, k, v = qkv[:, :C], qkv[:, C:2 * C], qkv[:, 2 * C:]

    # ---- attention: static per-head loop on lane-dense (N, C) tiles ------- #
    # TODO(synk): for production token counts (N in the thousands) this keeps a
    # full (N, N) per-head score matrix in VMEM; restructure as a KV-tiled
    # online-softmax (flash-style) loop before scaling N.
    ctx_parts = []
    for h in range(num_heads):
        sl = slice(h * D, (h + 1) * D)
        qh, kh, vh = q[:, sl], k[:, sl], v[:, sl]
        s = jax.lax.dot_general(qh, kh, (((1,), (1,)), ((), ())),
                                preferred_element_type=jnp.float32) * scale
        s = s - jnp.max(s, axis=-1, keepdims=True)
        p = jnp.exp(s)                                         # attn_drop = 0
        p = p * pl.reciprocal(jnp.sum(p, axis=-1, keepdims=True), approx=True)
        ctx_parts.append(jnp.dot(p, vh, preferred_element_type=jnp.float32))
    ctx = jnp.concatenate(ctx_parts, axis=-1)                  # (N, C)

    # ---- attn.proj + residual 1 (proj_drop / drop_path = identity) -------- #
    proj = jnp.dot(ctx.astype(wp_ref.dtype), wp_ref[...],
                   preferred_element_type=jnp.float32) \
        + bp_ref[...].astype(jnp.float32)
    x1 = xf + proj

    # ---- norm2 + Mlp (fc1 -> erf-GELU -> fc2) + residual 2 ---------------- #
    ln2 = _layer_norm_f32(x1, g2_ref, b2_ref).astype(w1_ref.dtype)
    hdn = jnp.dot(ln2, w1_ref[...], preferred_element_type=jnp.float32) \
        + fb1_ref[...].astype(jnp.float32)
    hdn = 0.5 * hdn * (1.0 + jax.lax.erf(hdn * _INV_SQRT2))    # exact GELU
    y = jnp.dot(hdn.astype(w2_ref.dtype), w2_ref[...],
                preferred_element_type=jnp.float32) \
        + fb2_ref[...].astype(jnp.float32)
    o_ref[...] = (x1 + y).astype(o_ref.dtype)


# --------------------------------------------------------------------------- #
# Wrapper
# --------------------------------------------------------------------------- #
def _const_spec(shape, *, single_buffer):
    """BlockSpec for a tensor that is constant across the grid (weights)."""
    index_map = lambda *_: (0,) * len(shape)
    if single_buffer:
        # Nothing to pipeline -> single buffer halves resident VMEM.
        return pl.BlockSpec(shape, index_map, pipeline_mode=pl.Buffered(1))
    return pl.BlockSpec(shape, index_map)


@functools.partial(
    jax.jit, static_argnames=("H", "W", "num_heads", "single_buffer_weights"))
def block_forward(x, params, *, H, W, num_heads, single_buffer_weights=True):
    """Forward of `Block` for x of shape (B, N, C) with N == H*W, sr_ratio == 1."""
    del H, W  # only needed by the sr_ratio > 1 branch
    # TODO(synk): sr_ratio > 1 (strided Conv2d spatial reduction + LayerNorm
    # before kv) is not implemented; this kernel covers sr_ratio == 1 only.
    B, N, C = x.shape
    assert C % num_heads == 0
    assert N % 8 == 0, "tokens per image must be a multiple of 8 (sublane tile)"
    D = C // num_heads
    scale = float(D) ** -0.5
    hidden = params["w1"].shape[1]
    M = B * N
    itemsize = x.dtype.itemsize

    x2 = x.reshape(M, C)
    # Fuse the q and kv projection weights into one (C, 3C) matrix -> one
    # 384-wide MXU pass and a single lane-dense qkv store.
    wqkv = jnp.concatenate([params["wq"], params["wkv"]], axis=1)

    wspec = functools.partial(_const_spec, single_buffer=single_buffer_weights)
    tok_spec = pl.BlockSpec((N, C), lambda b: (b, 0))

    flops = (2 * M * C * 3 * C                      # qkv projection
             + 4 * B * num_heads * N * N * D        # scores + ctx
             + 2 * M * C * C                        # attn.proj
             + 4 * M * C * hidden)                  # fc1 + fc2
    transcendentals = B * num_heads * N * N + M * hidden
    bytes_accessed = itemsize * (2 * M * C + 3 * C * C + C * C
                                 + 2 * C * hidden + 5 * C + hidden)

    out2 = pl.pallas_call(
        functools.partial(_block_kernel, num_heads=num_heads, scale=scale),
        out_shape=jax.ShapeDtypeStruct((M, C), x.dtype),
        grid_spec=pltpu.PrefetchScalarGridSpec(
            num_scalar_prefetch=0,
            grid=(B,),
            in_specs=[
                tok_spec,                                # x tokens, one image
                wspec((1, C)), wspec((1, C)),            # ln1 gamma / beta
                wspec((C, 3 * C)),                       # fused Wqkv
                wspec((C, C)), wspec((1, C)),            # Wproj, bproj
                wspec((1, C)), wspec((1, C)),            # ln2 gamma / beta
                wspec((C, hidden)), wspec((1, hidden)),  # W1, b1
                wspec((hidden, C)), wspec((1, C)),       # W2, b2
            ],
            out_specs=tok_spec),
        compiler_params=pltpu.CompilerParams(
            dimension_semantics=("parallel",)),
        cost_estimate=pl.CostEstimate(
            flops=flops, transcendentals=transcendentals,
            bytes_accessed=bytes_accessed),
    )(x2, params["ln1_g"], params["ln1_b"], wqkv,
      params["wp"], params["bp"], params["ln2_g"], params["ln2_b"],
      params["w1"], params["b1"], params["w2"], params["b2"])

    return out2.reshape(B, N, C)


# --------------------------------------------------------------------------- #
# Pure-JAX reference (same math as the PyTorch Block with default flags).
# Reference dots use HIGHEST precision explicitly (scoped per-op, not a
# process-global config change).
# --------------------------------------------------------------------------- #
def _reference_block(x, params, num_heads):
    hp = jax.lax.Precision.HIGHEST

    def ln(v, g, b):
        m = v.mean(-1, keepdims=True)
        var = jnp.square(v - m).mean(-1, keepdims=True)
        return (v - m) * jax.lax.rsqrt(var + _LN_EPS) * g + b

    B, N, C = x.shape
    D = C // num_heads
    scale = float(D) ** -0.5
    h1 = ln(x, params["ln1_g"], params["ln1_b"])
    q = jnp.dot(h1, params["wq"], precision=hp)
    q = q.reshape(B, N, num_heads, D).transpose(0, 2, 1, 3)
    kv = jnp.dot(h1, params["wkv"], precision=hp)
    k = kv[..., :C].reshape(B, N, num_heads, D).transpose(0, 2, 1, 3)
    v = kv[..., C:].reshape(B, N, num_heads, D).transpose(0, 2, 1, 3)
    attn = jnp.einsum("bhqd,bhkd->bhqk", q, k, precision=hp) * scale
    attn = jax.nn.softmax(attn, axis=-1)
    ctx = jnp.einsum("bhqk,bhkd->bhqd", attn, v, precision=hp)
    ctx = ctx.transpose(0, 2, 1, 3).reshape(B, N, C)
    x = x + jnp.dot(ctx, params["wp"], precision=hp) + params["bp"]
    h2 = ln(x, params["ln2_g"], params["ln2_b"])
    hh = jnp.dot(h2, params["w1"], precision=hp) + params["b1"]
    hh = 0.5 * hh * (1.0 + jax.lax.erf(hh * _INV_SQRT2))
    return x + jnp.dot(hh, params["w2"], precision=hp) + params["b2"]


if __name__ == "__main__":
    # Small but lane-friendly shapes (feature dims multiples of 128).
    B, Hs, Ws = 2, 8, 8
    N = Hs * Ws                       # 64 tokens per image
    dim, num_heads = 128, 8           # head_dim = 16
    mlp_ratio = 4.0
    hidden = int(dim * mlp_ratio)     # 512

    key = jax.random.PRNGKey(0)
    ks = jax.random.split(key, 13)
    f32 = jnp.float32
    x = jax.random.normal(ks[0], (B, N, dim), dtype=f32)
    # Linear weights stored pre-transposed as (in, out) so kernels do x @ W.
    # qkv_bias=False (module default) -> no q/kv bias.
    params = {
        "ln1_g": 1.0 + 0.1 * jax.random.normal(ks[1], (1, dim), f32),
        "ln1_b": 0.1 * jax.random.normal(ks[2], (1, dim), f32),
        "wq":  jax.random.normal(ks[3], (dim, dim), f32) * 0.05,
        "wkv": jax.random.normal(ks[4], (dim, 2 * dim), f32) * 0.05,
        "wp":  jax.random.normal(ks[5], (dim, dim), f32) * 0.05,
        "bp":  jax.random.normal(ks[6], (1, dim), f32) * 0.05,
        "ln2_g": 1.0 + 0.1 * jax.random.normal(ks[7], (1, dim), f32),
        "ln2_b": 0.1 * jax.random.normal(ks[8], (1, dim), f32),
        "w1":  jax.random.normal(ks[9], (dim, hidden), f32) * 0.05,
        "b1":  jax.random.normal(ks[10], (1, hidden), f32) * 0.05,
        "w2":  jax.random.normal(ks[11], (hidden, dim), f32) * 0.05,
        "b2":  jax.random.normal(ks[12], (1, dim), f32) * 0.05,
    }

    run = functools.partial(block_forward, x, params, H=Hs, W=Ws,
                            num_heads=num_heads)
    try:
        out = jax.block_until_ready(run(single_buffer_weights=True))
    except Exception:
        # Fallback if this JAX/Mosaic build rejects single-buffered BlockSpecs.
        out = jax.block_until_ready(run(single_buffer_weights=False))

    ref = _reference_block(x, params, num_heads)
    assert out.shape == (B, N, dim)
    max_diff = float(jnp.max(jnp.abs(out - ref)))
    # Kernel matmuls run at the hardware-default MXU precision (not forced to
    # HIGHEST) and softmax uses the approx EUP reciprocal, so compare against
    # the HIGHEST-precision f32 reference with a bf16-pass-sized tolerance.
    assert jnp.allclose(out, ref, atol=3e-2, rtol=3e-2), \
        "max abs diff %e" % max_diff
    print("KERNEL_OK")
</pallas_src>

<mosaic_0001>
module attributes {stable_mosaic.version = 11 : i64} {
  func.func @_block_kernel(%arg0: i32, %arg1: memref<64x128xf32, #tpu.memory_space<vmem>>, %arg2: memref<1x128xf32, #tpu.memory_space<vmem>>, %arg3: memref<1x128xf32, #tpu.memory_space<vmem>>, %arg4: memref<128x384xf32, #tpu.memory_space<vmem>>, %arg5: memref<128x128xf32, #tpu.memory_space<vmem>>, %arg6: memref<1x128xf32, #tpu.memory_space<vmem>>, %arg7: memref<1x128xf32, #tpu.memory_space<vmem>>, %arg8: memref<1x128xf32, #tpu.memory_space<vmem>>, %arg9: memref<128x512xf32, #tpu.memory_space<vmem>>, %arg10: memref<1x512xf32, #tpu.memory_space<vmem>>, %arg11: memref<512x128xf32, #tpu.memory_space<vmem>>, %arg12: memref<1x128xf32, #tpu.memory_space<vmem>>, %arg13: memref<64x128xf32, #tpu.memory_space<vmem>>) attributes {dimension_semantics = [#tpu.dimension_semantics<parallel>], iteration_bounds = array<i64: 2>, scalar_prefetch = 0 : i64, scratch_operands = 0 : i64, tpu.core_type = #tpu.core_type<tc>, window_params = [{transform_indices = @transform_0, window_bounds = array<i64: 64, 128>}, {pipeline_mode = #tpu.pipeline_mode<synchronous>, transform_indices = @transform_1, window_bounds = array<i64: 1, 128>}, {pipeline_mode = #tpu.pipeline_mode<synchronous>, transform_indices = @transform_2, window_bounds = array<i64: 1, 128>}, {pipeline_mode = #tpu.pipeline_mode<synchronous>, transform_indices = @transform_3, window_bounds = array<i64: 128, 384>}, {pipeline_mode = #tpu.pipeline_mode<synchronous>, transform_indices = @transform_4, window_bounds = array<i64: 128, 128>}, {pipeline_mode = #tpu.pipeline_mode<synchronous>, transform_indices = @transform_5, window_bounds = array<i64: 1, 128>}, {pipeline_mode = #tpu.pipeline_mode<synchronous>, transform_indices = @transform_6, window_bounds = array<i64: 1, 128>}, {pipeline_mode = #tpu.pipeline_mode<synchronous>, transform_indices = @transform_7, window_bounds = array<i64: 1, 128>}, {pipeline_mode = #tpu.pipeline_mode<synchronous>, transform_indices = @transform_8, window_bounds = array<i64: 128, 512>}, {pipeline_mode = #tpu.pipeline_mode<synchronous>, transform_indices = @transform_9, window_bounds = array<i64: 1, 512>}, {pipeline_mode = #tpu.pipeline_mode<synchronous>, transform_indices = @transform_10, window_bounds = array<i64: 512, 128>}, {pipeline_mode = #tpu.pipeline_mode<synchronous>, transform_indices = @transform_11, window_bounds = array<i64: 1, 128>}, {transform_indices = @transform_12, window_bounds = array<i64: 64, 128>}]} {
    %c0 = arith.constant 0 : index
    %c0_0 = arith.constant 0 : index
    %0 = vector.load %arg1[%c0, %c0_0] : memref<64x128xf32, #tpu.memory_space<vmem>>, vector<64x128xf32>
    %cst = arith.constant dense<0.000000e+00> : vector<64xf32>
    %1 = vector.multi_reduction <add>, %0, %cst [1] : vector<64x128xf32> to vector<64xf32>
    %2 = vector.shape_cast %1 : vector<64xf32> to vector<64x1xf32>
    %cst_1 = arith.constant 1.280000e+02 : f32
    %3 = vector.broadcast %cst_1 : f32 to vector<64x1xf32>
    %4 = arith.divf %2, %3 : vector<64x1xf32>
    %5 = vector.broadcast %4 : vector<64x1xf32> to vector<64x128xf32>
    %6 = arith.subf %0, %5 : vector<64x128xf32>
    %7 = arith.mulf %6, %6 : vector<64x128xf32>
    %cst_2 = arith.constant dense<0.000000e+00> : vector<64xf32>
    %8 = vector.multi_reduction <add>, %7, %cst_2 [1] : vector<64x128xf32> to vector<64xf32>
    %9 = vector.shape_cast %8 : vector<64xf32> to vector<64x1xf32>
    %cst_3 = arith.constant 1.280000e+02 : f32
    %10 = vector.broadcast %cst_3 : f32 to vector<64x1xf32>
    %11 = arith.divf %9, %10 : vector<64x1xf32>
    %cst_4 = arith.constant 9.99999974E-6 : f32
    %12 = vector.broadcast %cst_4 : f32 to vector<64x1xf32>
    %13 = arith.addf %11, %12 : vector<64x1xf32>
    %14 = math.rsqrt %13 : vector<64x1xf32>
    %15 = vector.broadcast %4 : vector<64x1xf32> to vector<64x128xf32>
    %16 = arith.subf %0, %15 : vector<64x128xf32>
    %17 = vector.broadcast %14 : vector<64x1xf32> to vector<64x128xf32>
    %18 = arith.mulf %16, %17 : vector<64x128xf32>
    %c0_5 = arith.constant 0 : index
    %c0_6 = arith.constant 0 : index
    %19 = vector.load %arg2[%c0_5, %c0_6] : memref<1x128xf32, #tpu.memory_space<vmem>>, vector<1x128xf32>
    %20 = vector.broadcast %19 : vector<1x128xf32> to vector<64x128xf32>
    %21 = arith.mulf %18, %20 : vector<64x128xf32>
    %c0_7 = arith.constant 0 : index
    %c0_8 = arith.constant 0 : index
    %22 = vector.load %arg3[%c0_7, %c0_8] : memref<1x128xf32, #tpu.memory_space<vmem>>, vector<1x128xf32>
    %23 = vector.broadcast %22 : vector<1x128xf32> to vector<64x128xf32>
    %24 = arith.addf %21, %23 : vector<64x128xf32>
    %c0_9 = arith.constant 0 : index
    %c0_10 = arith.constant 0 : index
    %25 = vector.load %arg4[%c0_9, %c0_10] : memref<128x384xf32, #tpu.memory_space<vmem>>, vector<128x384xf32>
    %cst_11 = arith.constant dense<0.000000e+00> : vector<64x384xf32>
    %26 = tpu.matmul %24, %25, %cst_11 {dimension_numbers = #tpu.dot_dimension_numbers<[1], [0], [0], [1], [0, 0, 1, 1], [], []>} : vector<64x128xf32>, vector<128x384xf32>, vector<64x384xf32> -> vector<64x384xf32>
    %27 = vector.extract_strided_slice %26 {offsets = [0, 0], sizes = [64, 128], strides = [1, 1]} : vector<64x384xf32> to vector<64x128xf32>
    %28 = vector.extract_strided_slice %26 {offsets = [0, 128], sizes = [64, 128], strides = [1, 1]} : vector<64x384xf32> to vector<64x128xf32>
    %29 = vector.extract_strided_slice %26 {offsets = [0, 256], sizes = [64, 128], strides = [1, 1]} : vector<64x384xf32> to vector<64x128xf32>
    %30 = vector.extract_strided_slice %27 {offsets = [0, 0], sizes = [64, 16], strides = [1, 1]} : vector<64x128xf32> to vector<64x16xf32>
    %31 = vector.extract_strided_slice %28 {offsets = [0, 0], sizes = [64, 16], strides = [1, 1]} : vector<64x128xf32> to vector<64x16xf32>
    %32 = vector.extract_strided_slice %29 {offsets = [0, 0], sizes = [64, 16], strides = [1, 1]} : vector<64x128xf32> to vector<64x16xf32>
    %cst_12 = arith.constant dense<0.000000e+00> : vector<64x64xf32>
    %33 = tpu.matmul %30, %31, %cst_12 {dimension_numbers = #tpu.dot_dimension_numbers<[1], [1], [0], [0], [0, 0, 1, 0], [], []>} : vector<64x16xf32>, vector<64x16xf32>, vector<64x64xf32> -> vector<64x64xf32>
    %cst_13 = arith.constant 2.500000e-01 : f32
    %34 = vector.broadcast %cst_13 : f32 to vector<64x64xf32>
    %35 = arith.mulf %33, %34 : vector<64x64xf32>
    %cst_14 = arith.constant dense<0xFF800000> : vector<64xf32>
    %36 = vector.multi_reduction <maximumf>, %35, %cst_14 [1] : vector<64x64xf32> to vector<64xf32>
    %37 = vector.shape_cast %36 : vector<64xf32> to vector<64x1xf32>
    %38 = vector.broadcast %37 : vector<64x1xf32> to vector<64x64xf32>
    %39 = arith.subf %35, %38 : vector<64x64xf32>
    %40 = math.exp %39 : vector<64x64xf32>
    %cst_15 = arith.constant dense<0.000000e+00> : vector<64xf32>
    %41 = vector.multi_reduction <add>, %40, %cst_15 [1] : vector<64x64xf32> to vector<64xf32>
    %42 = vector.shape_cast %41 : vector<64xf32> to vector<64x1xf32>
    %43 = tpu.reciprocal %42 {approx = true} : vector<64x1xf32> -> vector<64x1xf32>
    %44 = vector.broadcast %43 : vector<64x1xf32> to vector<64x64xf32>
    %45 = arith.mulf %40, %44 : vector<64x64xf32>
    %cst_16 = arith.constant dense<0.000000e+00> : vector<64x16xf32>
    %46 = tpu.matmul %45, %32, %cst_16 {dimension_numbers = #tpu.dot_dimension_numbers<[1], [0], [0], [1], [0, 0, 1, 1], [], []>} : vector<64x64xf32>, vector<64x16xf32>, vector<64x16xf32> -> vector<64x16xf32>
    %47 = vector.extract_strided_slice %27 {offsets = [0, 16], sizes = [64, 16], strides = [1, 1]} : vector<64x128xf32> to vector<64x16xf32>
    %48 = vector.extract_strided_slice %28 {offsets = [0, 16], sizes = [64, 16], strides = [1, 1]} : vector<64x128xf32> to vector<64x16xf32>
    %49 = vector.extract_strided_slice %29 {offsets = [0, 16], sizes = [64, 16], strides = [1, 1]} : vector<64x128xf32> to vector<64x16xf32>
    %cst_17 = arith.constant dense<0.000000e+00> : vector<64x64xf32>
    %50 = tpu.matmul %47, %48, %cst_17 {dimension_numbers = #tpu.dot_dimension_numbers<[1], [1], [0], [0], [0, 0, 1, 0], [], []>} : vector<64x16xf32>, vector<64x16xf32>, vector<64x64xf32> -> vector<64x64xf32>
    %cst_18 = arith.constant 2.500000e-01 : f32
    %51 = vector.broadcast %cst_18 : f32 to vector<64x64xf32>
    %52 = arith.mulf %50, %51 : vector<64x64xf32>
    %cst_19 = arith.constant dense<0xFF800000> : vector<64xf32>
    %53 = vector.multi_reduction <maximumf>, %52, %cst_19 [1] : vector<64x64xf32> to vector<64xf32>
    %54 = vector.shape_cast %53 : vector<64xf32> to vector<64x1xf32>
    %55 = vector.broadcast %54 : vector<64x1xf32> to vector<64x64xf32>
    %56 = arith.subf %52, %55 : vector<64x64xf32>
    %57 = math.exp %56 : vector<64x64xf32>
    %cst_20 = arith.constant dense<0.000000e+00> : vector<64xf32>
    %58 = vector.multi_reduction <add>, %57, %cst_20 [1] : vector<64x64xf32> to vector<64xf32>
    %59 = vector.shape_cast %58 : vector<64xf32> to vector<64x1xf32>
    %60 = tpu.reciprocal %59 {approx = true} : vector<64x1xf32> -> vector<64x1xf32>
    %61 = vector.broadcast %60 : vector<64x1xf32> to vector<64x64xf32>
    %62 = arith.mulf %57, %61 : vector<64x64xf32>
    %cst_21 = arith.constant dense<0.000000e+00> : vector<64x16xf32>
    %63 = tpu.matmul %62, %49, %cst_21 {dimension_numbers = #tpu.dot_dimension_numbers<[1], [0], [0], [1], [0, 0, 1, 1], [], []>} : vector<64x64xf32>, vector<64x16xf32>, vector<64x16xf32> -> vector<64x16xf32>
    %64 = vector.extract_strided_slice %27 {offsets = [0, 32], sizes = [64, 16], strides = [1, 1]} : vector<64x128xf32> to vector<64x16xf32>
    %65 = vector.extract_strided_slice %28 {offsets = [0, 32], sizes = [64, 16], strides = [1, 1]} : vector<64x128xf32> to vector<64x16xf32>
    %66 = vector.extract_strided_slice %29 {offsets = [0, 32], sizes = [64, 16], strides = [1, 1]} : vector<64x128xf32> to vector<64x16xf32>
    %cst_22 = arith.constant dense<0.000000e+00> : vector<64x64xf32>
    %67 = tpu.matmul %64, %65, %cst_22 {dimension_numbers = #tpu.dot_dimension_numbers<[1], [1], [0], [0], [0, 0, 1, 0], [], []>} : vector<64x16xf32>, vector<64x16xf32>, vector<64x64xf32> -> vector<64x64xf32>
    %cst_23 = arith.constant 2.500000e-01 : f32
    %68 = vector.broadcast %cst_23 : f32 to vector<64x64xf32>
    %69 = arith.mulf %67, %68 : vector<64x64xf32>
    %cst_24 = arith.constant dense<0xFF800000> : vector<64xf32>
    %70 = vector.multi_reduction <maximumf>, %69, %cst_24 [1] : vector<64x64xf32> to vector<64xf32>
    %71 = vector.shape_cast %70 : vector<64xf32> to vector<64x1xf32>
    %72 = vector.broadcast %71 : vector<64x1xf32> to vector<64x64xf32>
    %73 = arith.subf %69, %72 : vector<64x64xf32>
    %74 = math.exp %73 : vector<64x64xf32>
    %cst_25 = arith.constant dense<0.000000e+00> : vector<64xf32>
    %75 = vector.multi_reduction <add>, %74, %cst_25 [1] : vector<64x64xf32> to vector<64xf32>
    %76 = vector.shape_cast %75 : vector<64xf32> to vector<64x1xf32>
    %77 = tpu.reciprocal %76 {approx = true} : vector<64x1xf32> -> vector<64x1xf32>
    %78 = vector.broadcast %77 : vector<64x1xf32> to vector<64x64xf32>
    %79 = arith.mulf %74, %78 : vector<64x64xf32>
    %cst_26 = arith.constant dense<0.000000e+00> : vector<64x16xf32>
    %80 = tpu.matmul %79, %66, %cst_26 {dimension_numbers = #tpu.dot_dimension_numbers<[1], [0], [0], [1], [0, 0, 1, 1], [], []>} : vector<64x64xf32>, vector<64x16xf32>, vector<64x16xf32> -> vector<64x16xf32>
    %81 = vector.extract_strided_slice %27 {offsets = [0, 48], sizes = [64, 16], strides = [1, 1]} : vector<64x128xf32> to vector<64x16xf32>
    %82 = vector.extract_strided_slice %28 {offsets = [0, 48], sizes = [64, 16], strides = [1, 1]} : vector<64x128xf32> to vector<64x16xf32>
    %83 = vector.extract_strided_slice %29 {offsets = [0, 48], sizes = [64, 16], strides = [1, 1]} : vector<64x128xf32> to vector<64x16xf32>
    %cst_27 = arith.constant dense<0.000000e+00> : vector<64x64xf32>
    %84 = tpu.matmul %81, %82, %cst_27 {dimension_numbers = #tpu.dot_dimension_numbers<[1], [1], [0], [0], [0, 0, 1, 0], [], []>} : vector<64x16xf32>, vector<64x16xf32>, vector<64x64xf32> -> vector<64x64xf32>
    %cst_28 = arith.constant 2.500000e-01 : f32
    %85 = vector.broadcast %cst_28 : f32 to vector<64x64xf32>
    %86 = arith.mulf %84, %85 : vector<64x64xf32>
    %cst_29 = arith.constant dense<0xFF800000> : vector<64xf32>
    %87 = vector.multi_reduction <maximumf>, %86, %cst_29 [1] : vector<64x64xf32> to vector<64xf32>
    %88 = vector.shape_cast %87 : vector<64xf32> to vector<64x1xf32>
    %89 = vector.broadcast %88 : vector<64x1xf32> to vector<64x64xf32>
    %90 = arith.subf %86, %89 : vector<64x64xf32>
    %91 = math.exp %90 : vector<64x64xf32>
    %cst_30 = arith.constant dense<0.000000e+00> : vector<64xf32>
    %92 = vector.multi_reduction <add>, %91, %cst_30 [1] : vector<64x64xf32> to vector<64xf32>
    %93 = vector.shape_cast %92 : vector<64xf32> to vector<64x1xf32>
    %94 = tpu.reciprocal %93 {approx = true} : vector<64x1xf32> -> vector<64x1xf32>
    %95 = vector.broadcast %94 : vector<64x1xf32> to vector<64x64xf32>
    %96 = arith.mulf %91, %95 : vector<64x64xf32>
    %cst_31 = arith.constant dense<0.000000e+00> : vector<64x16xf32>
    %97 = tpu.matmul %96, %83, %cst_31 {dimension_numbers = #tpu.dot_dimension_numbers<[1], [0], [0], [1], [0, 0, 1, 1], [], []>} : vector<64x64xf32>, vector<64x16xf32>, vector<64x16xf32> -> vector<64x16xf32>
    %98 = vector.extract_strided_slice %27 {offsets = [0, 64], sizes = [64, 16], strides = [1, 1]} : vector<64x128xf32> to vector<64x16xf32>
    %99 = vector.extract_strided_slice %28 {offsets = [0, 64], sizes = [64, 16], strides = [1, 1]} : vector<64x128xf32> to vector<64x16xf32>
    %100 = vector.extract_strided_slice %29 {offsets = [0, 64], sizes = [64, 16], strides = [1, 1]} : vector<64x128xf32> to vector<64x16xf32>
    %cst_32 = arith.constant dense<0.000000e+00> : vector<64x64xf32>
    %101 = tpu.matmul %98, %99, %cst_32 {dimension_numbers = #tpu.dot_dimension_numbers<[1], [1], [0], [0], [0, 0, 1, 0], [], []>} : vector<64x16xf32>, vector<64x16xf32>, vector<64x64xf32> -> vector<64x64xf32>
    %cst_33 = arith.constant 2.500000e-01 : f32
    %102 = vector.broadcast %cst_33 : f32 to vector<64x64xf32>
    %103 = arith.mulf %101, %102 : vector<64x64xf32>
    %cst_34 = arith.constant dense<0xFF800000> : vector<64xf32>
    %104 = vector.multi_reduction <maximumf>, %103, %cst_34 [1] : vector<64x64xf32> to vector<64xf32>
    %105 = vector.shape_cast %104 : vector<64xf32> to vector<64x1xf32>
    %106 = vector.broadcast %105 : vector<64x1xf32> to vector<64x64xf32>
    %107 = arith.subf %103, %106 : vector<64x64xf32>
    %108 = math.exp %107 : vector<64x64xf32>
    %cst_35 = arith.constant dense<0.000000e+00> : vector<64xf32>
    %109 = vector.multi_reduction <add>, %108, %cst_35 [1] : vector<64x64xf32> to vector<64xf32>
    %110 = vector.shape_cast %109 : vector<64xf32> to vector<64x1xf32>
    %111 = tpu.reciprocal %110 {approx = true} : vector<64x1xf32> -> vector<64x1xf32>
    %112 = vector.broadcast %111 : vector<64x1xf32> to vector<64x64xf32>
    %113 = arith.mulf %108, %112 : vector<64x64xf32>
    %cst_36 = arith.constant dense<0.000000e+00> : vector<64x16xf32>
    %114 = tpu.matmul %113, %100, %cst_36 {dimension_numbers = #tpu.dot_dimension_numbers<[1], [0], [0], [1], [0, 0, 1, 1], [], []>} : vector<64x64xf32>, vector<64x16xf32>, vector<64x16xf32> -> vector<64x16xf32>
    %115 = vector.extract_strided_slice %27 {offsets = [0, 80], sizes = [64, 16], strides = [1, 1]} : vector<64x128xf32> to vector<64x16xf32>
    %116 = vector.extract_strided_slice %28 {offsets = [0, 80], sizes = [64, 16], strides = [1, 1]} : vector<64x128xf32> to vector<64x16xf32>
    %117 = vector.extract_strided_slice %29 {offsets = [0, 80], sizes = [64, 16], strides = [1, 1]} : vector<64x128xf32> to vector<64x16xf32>
    %cst_37 = arith.constant dense<0.000000e+00> : vector<64x64xf32>
    %118 = tpu.matmul %115, %116, %cst_37 {dimension_numbers = #tpu.dot_dimension_numbers<[1], [1], [0], [0], [0, 0, 1, 0], [], []>} : vector<64x16xf32>, vector<64x16xf32>, vector<64x64xf32> -> vector<64x64xf32>
    %cst_38 = arith.constant 2.500000e-01 : f32
    %119 = vector.broadcast %cst_38 : f32 to vector<64x64xf32>
    %120 = arith.mulf %118, %119 : vector<64x64xf32>
    %cst_39 = arith.constant dense<0xFF800000> : vector<64xf32>
    %121 = vector.multi_reduction <maximumf>, %120, %cst_39 [1] : vector<64x64xf32> to vector<64xf32>
    %122 = vector.shape_cast %121 : vector<64xf32> to vector<64x1xf32>
    %123 = vector.broadcast %122 : vector<64x1xf32> to vector<64x64xf32>
    %124 = arith.subf %120, %123 : vector<64x64xf32>
    %125 = math.exp %124 : vector<64x64xf32>
    %cst_40 = arith.constant dense<0.000000e+00> : vector<64xf32>
    %126 = vector.multi_reduction <add>, %125, %cst_40 [1] : vector<64x64xf32> to vector<64xf32>
    %127 = vector.shape_cast %126 : vector<64xf32> to vector<64x1xf32>
    %128 = tpu.reciprocal %127 {approx = true} : vector<64x1xf32> -> vector<64x1xf32>
    %129 = vector.broadcast %128 : vector<64x1xf32> to vector<64x64xf32>
    %130 = arith.mulf %125, %129 : vector<64x64xf32>
    %cst_41 = arith.constant dense<0.000000e+00> : vector<64x16xf32>
    %131 = tpu.matmul %130, %117, %cst_41 {dimension_numbers = #tpu.dot_dimension_numbers<[1], [0], [0], [1], [0, 0, 1, 1], [], []>} : vector<64x64xf32>, vector<64x16xf32>, vector<64x16xf32> -> vector<64x16xf32>
    %132 = vector.extract_strided_slice %27 {offsets = [0, 96], sizes = [64, 16], strides = [1, 1]} : vector<64x128xf32> to vector<64x16xf32>
    %133 = vector.extract_strided_slice %28 {offsets = [0, 96], sizes = [64, 16], strides = [1, 1]} : vector<64x128xf32> to vector<64x16xf32>
    %134 = vector.extract_strided_slice %29 {offsets = [0, 96], sizes = [64, 16], strides = [1, 1]} : vector<64x128xf32> to vector<64x16xf32>
    %cst_42 = arith.constant dense<0.000000e+00> : vector<64x64xf32>
    %135 = tpu.matmul %132, %133, %cst_42 {dimension_numbers = #tpu.dot_dimension_numbers<[1], [1], [0], [0], [0, 0, 1, 0], [], []>} : vector<64x16xf32>, vector<64x16xf32>, vector<64x64xf32> -> vector<64x64xf32>
    %cst_43 = arith.constant 2.500000e-01 : f32
    %136 = vector.broadcast %cst_43 : f32 to vector<64x64xf32>
    %137 = arith.mulf %135, %136 : vector<64x64xf32>
    %cst_44 = arith.constant dense<0xFF800000> : vector<64xf32>
    %138 = vector.multi_reduction <maximumf>, %137, %cst_44 [1] : vector<64x64xf32> to vector<64xf32>
    %139 = vector.shape_cast %138 : vector<64xf32> to vector<64x1xf32>
    %140 = vector.broadcast %139 : vector<64x1xf32> to vector<64x64xf32>
    %141 = arith.subf %137, %140 : vector<64x64xf32>
    %142 = math.exp %141 : vector<64x64xf32>
    %cst_45 = arith.constant dense<0.000000e+00> : vector<64xf32>
    %143 = vector.multi_reduction <add>, %142, %cst_45 [1] : vector<64x64xf32> to vector<64xf32>
    %144 = vector.shape_cast %143 : vector<64xf32> to vector<64x1xf32>
    %145 = tpu.reciprocal %144 {approx = true} : vector<64x1xf32> -> vector<64x1xf32>
    %146 = vector.broadcast %145 : vector<64x1xf32> to vector<64x64xf32>
    %147 = arith.mulf %142, %146 : vector<64x64xf32>
    %cst_46 = arith.constant dense<0.000000e+00> : vector<64x16xf32>
    %148 = tpu.matmul %147, %134, %cst_46 {dimension_numbers = #tpu.dot_dimension_numbers<[1], [0], [0], [1], [0, 0, 1, 1], [], []>} : vector<64x64xf32>, vector<64x16xf32>, vector<64x16xf32> -> vector<64x16xf32>
    %149 = vector.extract_strided_slice %27 {offsets = [0, 112], sizes = [64, 16], strides = [1, 1]} : vector<64x128xf32> to vector<64x16xf32>
    %150 = vector.extract_strided_slice %28 {offsets = [0, 112], sizes = [64, 16], strides = [1, 1]} : vector<64x128xf32> to vector<64x16xf32>
    %151 = vector.extract_strided_slice %29 {offsets = [0, 112], sizes = [64, 16], strides = [1, 1]} : vector<64x128xf32> to vector<64x16xf32>
    %cst_47 = arith.constant dense<0.000000e+00> : vector<64x64xf32>
    %152 = tpu.matmul %149, %150, %cst_47 {dimension_numbers = #tpu.dot_dimension_numbers<[1], [1], [0], [0], [0, 0, 1, 0], [], []>} : vector<64x16xf32>, vector<64x16xf32>, vector<64x64xf32> -> vector<64x64xf32>
    %cst_48 = arith.constant 2.500000e-01 : f32
    %153 = vector.broadcast %cst_48 : f32 to vector<64x64xf32>
    %154 = arith.mulf %152, %153 : vector<64x64xf32>
    %cst_49 = arith.constant dense<0xFF800000> : vector<64xf32>
    %155 = vector.multi_reduction <maximumf>, %154, %cst_49 [1] : vector<64x64xf32> to vector<64xf32>
    %156 = vector.shape_cast %155 : vector<64xf32> to vector<64x1xf32>
    %157 = vector.broadcast %156 : vector<64x1xf32> to vector<64x64xf32>
    %158 = arith.subf %154, %157 : vector<64x64xf32>
    %159 = math.exp %158 : vector<64x64xf32>
    %cst_50 = arith.constant dense<0.000000e+00> : vector<64xf32>
    %160 = vector.multi_reduction <add>, %159, %cst_50 [1] : vector<64x64xf32> to vector<64xf32>
    %161 = vector.shape_cast %160 : vector<64xf32> to vector<64x1xf32>
    %162 = tpu.reciprocal %161 {approx = true} : vector<64x1xf32> -> vector<64x1xf32>
    %163 = vector.broadcast %162 : vector<64x1xf32> to vector<64x64xf32>
    %164 = arith.mulf %159, %163 : vector<64x64xf32>
    %cst_51 = arith.constant dense<0.000000e+00> : vector<64x16xf32>
    %165 = tpu.matmul %164, %151, %cst_51 {dimension_numbers = #tpu.dot_dimension_numbers<[1], [0], [0], [1], [0, 0, 1, 1], [], []>} : vector<64x64xf32>, vector<64x16xf32>, vector<64x16xf32> -> vector<64x16xf32>
    %166 = tpu.concatenate %46, %63, %80, %97, %114, %131, %148, %165 in 1 : vector<64x16xf32>, vector<64x16xf32>, vector<64x16xf32>, vector<64x16xf32>, vector<64x16xf32>, vector<64x16xf32>, vector<64x16xf32>, vector<64x16xf32> -> vector<64x128xf32>
    %c0_52 = arith.constant 0 : index
    %c0_53 = arith.constant 0 : index
    %167 = vector.load %arg5[%c0_52, %c0_53] : memref<128x128xf32, #tpu.memory_space<vmem>>, vector<128x128xf32>
    %cst_54 = arith.constant dense<0.000000e+00> : vector<64x128xf32>
    %168 = tpu.matmul %166, %167, %cst_54 {dimension_numbers = #tpu.dot_dimension_numbers<[1], [0], [0], [1], [0, 0, 1, 1], [], []>} : vector<64x128xf32>, vector<128x128xf32>, vector<64x128xf32> -> vector<64x128xf32>
    %c0_55 = arith.constant 0 : index
    %c0_56 = arith.constant 0 : index
    %169 = vector.load %arg6[%c0_55, %c0_56] : memref<1x128xf32, #tpu.memory_space<vmem>>, vector<1x128xf32>
    %170 = vector.broadcast %169 : vector<1x128xf32> to vector<64x128xf32>
    %171 = arith.addf %168, %170 : vector<64x128xf32>
    %172 = arith.addf %0, %171 : vector<64x128xf32>
    %cst_57 = arith.constant dense<0.000000e+00> : vector<64xf32>
    %173 = vector.multi_reduction <add>, %172, %cst_57 [1] : vector<64x128xf32> to vector<64xf32>
    %174 = vector.shape_cast %173 : vector<64xf32> to vector<64x1xf32>
    %cst_58 = arith.constant 1.280000e+02 : f32
    %175 = vector.broadcast %cst_58 : f32 to vector<64x1xf32>
    %176 = arith.divf %174, %175 : vector<64x1xf32>
    %177 = vector.broadcast %176 : vector<64x1xf32> to vector<64x128xf32>
    %178 = arith.subf %172, %177 : vector<64x128xf32>
    %179 = arith.mulf %178, %178 : vector<64x128xf32>
    %cst_59 = arith.constant dense<0.000000e+00> : vector<64xf32>
    %180 = vector.multi_reduction <add>, %179, %cst_59 [1] : vector<64x128xf32> to vector<64xf32>
    %181 = vector.shape_cast %180 : vector<64xf32> to vector<64x1xf32>
    %cst_60 = arith.constant 1.280000e+02 : f32
    %182 = vector.broadcast %cst_60 : f32 to vector<64x1xf32>
    %183 = arith.divf %181, %182 : vector<64x1xf32>
    %cst_61 = arith.constant 9.99999974E-6 : f32
    %184 = vector.broadcast %cst_61 : f32 to vector<64x1xf32>
    %185 = arith.addf %183, %184 : vector<64x1xf32>
    %186 = math.rsqrt %185 : vector<64x1xf32>
    %187 = vector.broadcast %176 : vector<64x1xf32> to vector<64x128xf32>
    %188 = arith.subf %172, %187 : vector<64x128xf32>
    %189 = vector.broadcast %186 : vector<64x1xf32> to vector<64x128xf32>
    %190 = arith.mulf %188, %189 : vector<64x128xf32>
    %c0_62 = arith.constant 0 : index
    %c0_63 = arith.constant 0 : index
    %191 = vector.load %arg7[%c0_62, %c0_63] : memref<1x128xf32, #tpu.memory_space<vmem>>, vector<1x128xf32>
    %192 = vector.broadcast %191 : vector<1x128xf32> to vector<64x128xf32>
    %193 = arith.mulf %190, %192 : vector<64x128xf32>
    %c0_64 = arith.constant 0 : index
    %c0_65 = arith.constant 0 : index
    %194 = vector.load %arg8[%c0_64, %c0_65] : memref<1x128xf32, #tpu.memory_space<vmem>>, vector<1x128xf32>
    %195 = vector.broadcast %194 : vector<1x128xf32> to vector<64x128xf32>
    %196 = arith.addf %193, %195 : vector<64x128xf32>
    %c0_66 = arith.constant 0 : index
    %c0_67 = arith.constant 0 : index
    %197 = vector.load %arg9[%c0_66, %c0_67] : memref<128x512xf32, #tpu.memory_space<vmem>>, vector<128x512xf32>
    %cst_68 = arith.constant dense<0.000000e+00> : vector<64x512xf32>
    %198 = tpu.matmul %196, %197, %cst_68 {dimension_numbers = #tpu.dot_dimension_numbers<[1], [0], [0], [1], [0, 0, 1, 1], [], []>} : vector<64x128xf32>, vector<128x512xf32>, vector<64x512xf32> -> vector<64x512xf32>
    %c0_69 = arith.constant 0 : index
    %c0_70 = arith.constant 0 : index
    %199 = vector.load %arg10[%c0_69, %c0_70] : memref<1x512xf32, #tpu.memory_space<vmem>>, vector<1x512xf32>
    %200 = vector.broadcast %199 : vector<1x512xf32> to vector<64x512xf32>
    %201 = arith.addf %198, %200 : vector<64x512xf32>
    %cst_71 = arith.constant 5.000000e-01 : f32
    %202 = vector.broadcast %cst_71 : f32 to vector<64x512xf32>
    %203 = arith.mulf %202, %201 : vector<64x512xf32>
    %cst_72 = arith.constant 0.707106769 : f32
    %204 = vector.broadcast %cst_72 : f32 to vector<64x512xf32>
    %205 = arith.mulf %201, %204 : vector<64x512xf32>
    %206 = math.erf %205 : vector<64x512xf32>
    %cst_73 = arith.constant 1.000000e+00 : f32
    %207 = vector.broadcast %cst_73 : f32 to vector<64x512xf32>
    %208 = arith.addf %207, %206 : vector<64x512xf32>
    %209 = arith.mulf %203, %208 : vector<64x512xf32>
    %c0_74 = arith.constant 0 : index
    %c0_75 = arith.constant 0 : index
    %210 = vector.load %arg11[%c0_74, %c0_75] : memref<512x128xf32, #tpu.memory_space<vmem>>, vector<512x128xf32>
    %cst_76 = arith.constant dense<0.000000e+00> : vector<64x128xf32>
    %211 = tpu.matmul %209, %210, %cst_76 {dimension_numbers = #tpu.dot_dimension_numbers<[1], [0], [0], [1], [0, 0, 1, 1], [], []>} : vector<64x512xf32>, vector<512x128xf32>, vector<64x128xf32> -> vector<64x128xf32>
    %c0_77 = arith.constant 0 : index
    %c0_78 = arith.constant 0 : index
    %212 = vector.load %arg12[%c0_77, %c0_78] : memref<1x128xf32, #tpu.memory_space<vmem>>, vector<1x128xf32>
    %213 = vector.broadcast %212 : vector<1x128xf32> to vector<64x128xf32>
    %214 = arith.addf %211, %213 : vector<64x128xf32>
    %215 = arith.addf %172, %214 : vector<64x128xf32>
    %c0_79 = arith.constant 0 : index
    %c0_80 = arith.constant 0 : index
    %216 = vector.load %arg13[%c0_79, %c0_80] : memref<64x128xf32, #tpu.memory_space<vmem>>, vector<64x128xf32>
    tpu.vector_store %arg13[%c0_79, %c0_80], %215 {strides = array<i32>} : memref<64x128xf32, #tpu.memory_space<vmem>>, vector<64x128xf32>,
    return
  }
  func.func @transform_0(%arg0: i32) -> (i32, i32) {
    %c0_i32 = arith.constant 0 : i32
    %c0_i32_0 = arith.constant 0 : i32
    return %arg0, %c0_i32 : i32, i32
  }
  func.func @transform_1(%arg0: i32) -> (i32, i32) {
    %c0_i32 = arith.constant 0 : i32
    %c0_i32_0 = arith.constant 0 : i32
    %c0_i32_1 = arith.constant 0 : i32
    return %c0_i32, %c0_i32_0 : i32, i32
  }
  func.func @transform_2(%arg0: i32) -> (i32, i32) {
    %c0_i32 = arith.constant 0 : i32
    %c0_i32_0 = arith.constant 0 : i32
    %c0_i32_1 = arith.constant 0 : i32
    return %c0_i32, %c0_i32_0 : i32, i32
  }
  func.func @transform_3(%arg0: i32) -> (i32, i32) {
    %c0_i32 = arith.constant 0 : i32
    %c0_i32_0 = arith.constant 0 : i32
    %c0_i32_1 = arith.constant 0 : i32
    return %c0_i32, %c0_i32_0 : i32, i32
  }
  func.func @transform_4(%arg0: i32) -> (i32, i32) {
    %c0_i32 = arith.constant 0 : i32
    %c0_i32_0 = arith.constant 0 : i32
    %c0_i32_1 = arith.constant 0 : i32
    return %c0_i32, %c0_i32_0 : i32, i32
  }
  func.func @transform_5(%arg0: i32) -> (i32, i32) {
    %c0_i32 = arith.constant 0 : i32
    %c0_i32_0 = arith.constant 0 : i32
    %c0_i32_1 = arith.constant 0 : i32
    return %c0_i32, %c0_i32_0 : i32, i32
  }
  func.func @transform_6(%arg0: i32) -> (i32, i32) {
    %c0_i32 = arith.constant 0 : i32
    %c0_i32_0 = arith.constant 0 : i32
    %c0_i32_1 = arith.constant 0 : i32
    return %c0_i32, %c0_i32_0 : i32, i32
  }
  func.func @transform_7(%arg0: i32) -> (i32, i32) {
    %c0_i32 = arith.constant 0 : i32
    %c0_i32_0 = arith.constant 0 : i32
    %c0_i32_1 = arith.constant 0 : i32
    return %c0_i32, %c0_i32_0 : i32, i32
  }
  func.func @transform_8(%arg0: i32) -> (i32, i32) {
    %c0_i32 = arith.constant 0 : i32
    %c0_i32_0 = arith.constant 0 : i32
    %c0_i32_1 = arith.constant 0 : i32
    return %c0_i32, %c0_i32_0 : i32, i32
  }
  func.func @transform_9(%arg0: i32) -> (i32, i32) {
    %c0_i32 = arith.constant 0 : i32
    %c0_i32_0 = arith.constant 0 : i32
    %c0_i32_1 = arith.constant 0 : i32
    return %c0_i32, %c0_i32_0 : i32, i32
  }
  func.func @transform_10(%arg0: i32) -> (i32, i32) {
    %c0_i32 = arith.constant 0 : i32
    %c0_i32_0 = arith.constant 0 : i32
    %c0_i32_1 = arith.constant 0 : i32
    return %c0_i32, %c0_i32_0 : i32, i32
  }
  func.func @transform_11(%arg0: i32) -> (i32, i32) {
    %c0_i32 = arith.constant 0 : i32
    %c0_i32_0 = arith.constant 0 : i32
    %c0_i32_1 = arith.constant 0 : i32
    return %c0_i32, %c0_i32_0 : i32, i32
  }
  func.func @transform_12(%arg0: i32) -> (i32, i32) {
    %c0_i32 = arith.constant 0 : i32
    %c0_i32_0 = arith.constant 0 : i32
    return %arg0, %c0_i32 : i32, i32
  }
}

module attributes {stable_mosaic.version = 11 : i64} {
  func.func @_block_kernel(%arg0: i32, %arg1: memref<64x128xf32, #tpu.memory_space<vmem>>, %arg2: memref<1x128xf32, #tpu.memory_space<vmem>>, %arg3: memref<1x128xf32, #tpu.memory_space<vmem>>, %arg4: memref<128x384xf32, #tpu.memory_space<vmem>>, %arg5: memref<128x128xf32, #tpu.memory_space<vmem>>, %arg6: memref<1x128xf32, #tpu.memory_space<vmem>>, %arg7: memref<1x128xf32, #tpu.memory_space<vmem>>, %arg8: memref<1x128xf32, #tpu.memory_space<vmem>>, %arg9: memref<128x512xf32, #tpu.memory_space<vmem>>, %arg10: memref<1x512xf32, #tpu.memory_space<vmem>>, %arg11: memref<512x128xf32, #tpu.memory_space<vmem>>, %arg12: memref<1x128xf32, #tpu.memory_space<vmem>>, %arg13: memref<64x128xf32, #tpu.memory_space<vmem>>) attributes {dimension_semantics = [#tpu.dimension_semantics<parallel>], iteration_bounds = array<i64: 2>, scalar_prefetch = 0 : i64, scratch_operands = 0 : i64, tpu.core_type = #tpu.core_type<tc>, window_params = [{transform_indices = @transform_0, window_bounds = array<i64: 64, 128>}, {pipeline_mode = #tpu.pipeline_mode<synchronous>, transform_indices = @transform_1, window_bounds = array<i64: 1, 128>}, {pipeline_mode = #tpu.pipeline_mode<synchronous>, transform_indices = @transform_2, window_bounds = array<i64: 1, 128>}, {pipeline_mode = #tpu.pipeline_mode<synchronous>, transform_indices = @transform_3, window_bounds = array<i64: 128, 384>}, {pipeline_mode = #tpu.pipeline_mode<synchronous>, transform_indices = @transform_4, window_bounds = array<i64: 128, 128>}, {pipeline_mode = #tpu.pipeline_mode<synchronous>, transform_indices = @transform_5, window_bounds = array<i64: 1, 128>}, {pipeline_mode = #tpu.pipeline_mode<synchronous>, transform_indices = @transform_6, window_bounds = array<i64: 1, 128>}, {pipeline_mode = #tpu.pipeline_mode<synchronous>, transform_indices = @transform_7, window_bounds = array<i64: 1, 128>}, {pipeline_mode = #tpu.pipeline_mode<synchronous>, transform_indices = @transform_8, window_bounds = array<i64: 128, 512>}, {pipeline_mode = #tpu.pipeline_mode<synchronous>, transform_indices = @transform_9, window_bounds = array<i64: 1, 512>}, {pipeline_mode = #tpu.pipeline_mode<synchronous>, transform_indices = @transform_10, window_bounds = array<i64: 512, 128>}, {pipeline_mode = #tpu.pipeline_mode<synchronous>, transform_indices = @transform_11, window_bounds = array<i64: 1, 128>}, {transform_indices = @transform_12, window_bounds = array<i64: 64, 128>}]} {
    %c0 = arith.constant 0 : index
    %c0_0 = arith.constant 0 : index
    %0 = vector.load %arg1[%c0, %c0_0] : memref<64x128xf32, #tpu.memory_space<vmem>>, vector<64x128xf32>
    %cst = arith.constant dense<0.000000e+00> : vector<64xf32>
    %1 = vector.multi_reduction <add>, %0, %cst [1] : vector<64x128xf32> to vector<64xf32>
    %2 = vector.shape_cast %1 : vector<64xf32> to vector<64x1xf32>
    %cst_1 = arith.constant 1.280000e+02 : f32
    %3 = vector.broadcast %cst_1 : f32 to vector<64x1xf32>
    %4 = arith.divf %2, %3 : vector<64x1xf32>
    %5 = vector.broadcast %4 : vector<64x1xf32> to vector<64x128xf32>
    %6 = arith.subf %0, %5 : vector<64x128xf32>
    %7 = arith.mulf %6, %6 : vector<64x128xf32>
    %cst_2 = arith.constant dense<0.000000e+00> : vector<64xf32>
    %8 = vector.multi_reduction <add>, %7, %cst_2 [1] : vector<64x128xf32> to vector<64xf32>
    %9 = vector.shape_cast %8 : vector<64xf32> to vector<64x1xf32>
    %cst_3 = arith.constant 1.280000e+02 : f32
    %10 = vector.broadcast %cst_3 : f32 to vector<64x1xf32>
    %11 = arith.divf %9, %10 : vector<64x1xf32>
    %cst_4 = arith.constant 9.99999974E-6 : f32
    %12 = vector.broadcast %cst_4 : f32 to vector<64x1xf32>
    %13 = arith.addf %11, %12 : vector<64x1xf32>
    %14 = math.rsqrt %13 : vector<64x1xf32>
    %15 = vector.broadcast %4 : vector<64x1xf32> to vector<64x128xf32>
    %16 = arith.subf %0, %15 : vector<64x128xf32>
    %17 = vector.broadcast %14 : vector<64x1xf32> to vector<64x128xf32>
    %18 = arith.mulf %16, %17 : vector<64x128xf32>
    %c0_5 = arith.constant 0 : index
    %c0_6 = arith.constant 0 : index
    %19 = vector.load %arg2[%c0_5, %c0_6] : memref<1x128xf32, #tpu.memory_space<vmem>>, vector<1x128xf32>
    %20 = vector.broadcast %19 : vector<1x128xf32> to vector<64x128xf32>
    %21 = arith.mulf %18, %20 : vector<64x128xf32>
    %c0_7 = arith.constant 0 : index
    %c0_8 = arith.constant 0 : index
    %22 = vector.load %arg3[%c0_7, %c0_8] : memref<1x128xf32, #tpu.memory_space<vmem>>, vector<1x128xf32>
    %23 = vector.broadcast %22 : vector<1x128xf32> to vector<64x128xf32>
    %24 = arith.addf %21, %23 : vector<64x128xf32>
    %c0_9 = arith.constant 0 : index
    %c0_10 = arith.constant 0 : index
    %25 = vector.load %arg4[%c0_9, %c0_10] : memref<128x384xf32, #tpu.memory_space<vmem>>, vector<128x384xf32>
    %cst_11 = arith.constant dense<0.000000e+00> : vector<64x384xf32>
    %26 = tpu.matmul %24, %25, %cst_11 {dimension_numbers = #tpu.dot_dimension_numbers<[1], [0], [0], [1], [0, 0, 1, 1], [], []>} : vector<64x128xf32>, vector<128x384xf32>, vector<64x384xf32> -> vector<64x384xf32>
    %27 = vector.extract_strided_slice %26 {offsets = [0, 0], sizes = [64, 128], strides = [1, 1]} : vector<64x384xf32> to vector<64x128xf32>
    %28 = vector.extract_strided_slice %26 {offsets = [0, 128], sizes = [64, 128], strides = [1, 1]} : vector<64x384xf32> to vector<64x128xf32>
    %29 = vector.extract_strided_slice %26 {offsets = [0, 256], sizes = [64, 128], strides = [1, 1]} : vector<64x384xf32> to vector<64x128xf32>
    %30 = vector.extract_strided_slice %27 {offsets = [0, 0], sizes = [64, 16], strides = [1, 1]} : vector<64x128xf32> to vector<64x16xf32>
    %31 = vector.extract_strided_slice %28 {offsets = [0, 0], sizes = [64, 16], strides = [1, 1]} : vector<64x128xf32> to vector<64x16xf32>
    %32 = vector.extract_strided_slice %29 {offsets = [0, 0], sizes = [64, 16], strides = [1, 1]} : vector<64x128xf32> to vector<64x16xf32>
    %cst_12 = arith.constant dense<0.000000e+00> : vector<64x64xf32>
    %33 = tpu.matmul %30, %31, %cst_12 {dimension_numbers = #tpu.dot_dimension_numbers<[1], [1], [0], [0], [0, 0, 1, 0], [], []>} : vector<64x16xf32>, vector<64x16xf32>, vector<64x64xf32> -> vector<64x64xf32>
    %cst_13 = arith.constant 2.500000e-01 : f32
    %34 = vector.broadcast %cst_13 : f32 to vector<64x64xf32>
    %35 = arith.mulf %33, %34 : vector<64x64xf32>
    %cst_14 = arith.constant dense<0xFF800000> : vector<64xf32>
    %36 = vector.multi_reduction <maximumf>, %35, %cst_14 [1] : vector<64x64xf32> to vector<64xf32>
    %37 = vector.shape_cast %36 : vector<64xf32> to vector<64x1xf32>
    %38 = vector.broadcast %37 : vector<64x1xf32> to vector<64x64xf32>
    %39 = arith.subf %35, %38 : vector<64x64xf32>
    %40 = math.exp %39 : vector<64x64xf32>
    %cst_15 = arith.constant dense<0.000000e+00> : vector<64xf32>
    %41 = vector.multi_reduction <add>, %40, %cst_15 [1] : vector<64x64xf32> to vector<64xf32>
    %42 = vector.shape_cast %41 : vector<64xf32> to vector<64x1xf32>
    %43 = tpu.reciprocal %42 {approx = true} : vector<64x1xf32> -> vector<64x1xf32>
    %44 = vector.broadcast %43 : vector<64x1xf32> to vector<64x64xf32>
    %45 = arith.mulf %40, %44 : vector<64x64xf32>
    %cst_16 = arith.constant dense<0.000000e+00> : vector<64x16xf32>
    %46 = tpu.matmul %45, %32, %cst_16 {dimension_numbers = #tpu.dot_dimension_numbers<[1], [0], [0], [1], [0, 0, 1, 1], [], []>} : vector<64x64xf32>, vector<64x16xf32>, vector<64x16xf32> -> vector<64x16xf32>
    %47 = vector.extract_strided_slice %27 {offsets = [0, 16], sizes = [64, 16], strides = [1, 1]} : vector<64x128xf32> to vector<64x16xf32>
    %48 = vector.extract_strided_slice %28 {offsets = [0, 16], sizes = [64, 16], strides = [1, 1]} : vector<64x128xf32> to vector<64x16xf32>
    %49 = vector.extract_strided_slice %29 {offsets = [0, 16], sizes = [64, 16], strides = [1, 1]} : vector<64x128xf32> to vector<64x16xf32>
    %cst_17 = arith.constant dense<0.000000e+00> : vector<64x64xf32>
    %50 = tpu.matmul %47, %48, %cst_17 {dimension_numbers = #tpu.dot_dimension_numbers<[1], [1], [0], [0], [0, 0, 1, 0], [], []>} : vector<64x16xf32>, vector<64x16xf32>, vector<64x64xf32> -> vector<64x64xf32>
    %cst_18 = arith.constant 2.500000e-01 : f32
    %51 = vector.broadcast %cst_18 : f32 to vector<64x64xf32>
    %52 = arith.mulf %50, %51 : vector<64x64xf32>
    %cst_19 = arith.constant dense<0xFF800000> : vector<64xf32>
    %53 = vector.multi_reduction <maximumf>, %52, %cst_19 [1] : vector<64x64xf32> to vector<64xf32>
    %54 = vector.shape_cast %53 : vector<64xf32> to vector<64x1xf32>
    %55 = vector.broadcast %54 : vector<64x1xf32> to vector<64x64xf32>
    %56 = arith.subf %52, %55 : vector<64x64xf32>
    %57 = math.exp %56 : vector<64x64xf32>
    %cst_20 = arith.constant dense<0.000000e+00> : vector<64xf32>
    %58 = vector.multi_reduction <add>, %57, %cst_20 [1] : vector<64x64xf32> to vector<64xf32>
    %59 = vector.shape_cast %58 : vector<64xf32> to vector<64x1xf32>
    %60 = tpu.reciprocal %59 {approx = true} : vector<64x1xf32> -> vector<64x1xf32>
    %61 = vector.broadcast %60 : vector<64x1xf32> to vector<64x64xf32>
    %62 = arith.mulf %57, %61 : vector<64x64xf32>
    %cst_21 = arith.constant dense<0.000000e+00> : vector<64x16xf32>
    %63 = tpu.matmul %62, %49, %cst_21 {dimension_numbers = #tpu.dot_dimension_numbers<[1], [0], [0], [1], [0, 0, 1, 1], [], []>} : vector<64x64xf32>, vector<64x16xf32>, vector<64x16xf32> -> vector<64x16xf32>
    %64 = vector.extract_strided_slice %27 {offsets = [0, 32], sizes = [64, 16], strides = [1, 1]} : vector<64x128xf32> to vector<64x16xf32>
    %65 = vector.extract_strided_slice %28 {offsets = [0, 32], sizes = [64, 16], strides = [1, 1]} : vector<64x128xf32> to vector<64x16xf32>
    %66 = vector.extract_strided_slice %29 {offsets = [0, 32], sizes = [64, 16], strides = [1, 1]} : vector<64x128xf32> to vector<64x16xf32>
    %cst_22 = arith.constant dense<0.000000e+00> : vector<64x64xf32>
    %67 = tpu.matmul %64, %65, %cst_22 {dimension_numbers = #tpu.dot_dimension_numbers<[1], [1], [0], [0], [0, 0, 1, 0], [], []>} : vector<64x16xf32>, vector<64x16xf32>, vector<64x64xf32> -> vector<64x64xf32>
    %cst_23 = arith.constant 2.500000e-01 : f32
    %68 = vector.broadcast %cst_23 : f32 to vector<64x64xf32>
    %69 = arith.mulf %67, %68 : vector<64x64xf32>
    %cst_24 = arith.constant dense<0xFF800000> : vector<64xf32>
    %70 = vector.multi_reduction <maximumf>, %69, %cst_24 [1] : vector<64x64xf32> to vector<64xf32>
    %71 = vector.shape_cast %70 : vector<64xf32> to vector<64x1xf32>
    %72 = vector.broadcast %71 : vector<64x1xf32> to vector<64x64xf32>
    %73 = arith.subf %69, %72 : vector<64x64xf32>
    %74 = math.exp %73 : vector<64x64xf32>
    %cst_25 = arith.constant dense<0.000000e+00> : vector<64xf32>
    %75 = vector.multi_reduction <add>, %74, %cst_25 [1] : vector<64x64xf32> to vector<64xf32>
    %76 = vector.shape_cast %75 : vector<64xf32> to vector<64x1xf32>
    %77 = tpu.reciprocal %76 {approx = true} : vector<64x1xf32> -> vector<64x1xf32>
    %78 = vector.broadcast %77 : vector<64x1xf32> to vector<64x64xf32>
    %79 = arith.mulf %74, %78 : vector<64x64xf32>
    %cst_26 = arith.constant dense<0.000000e+00> : vector<64x16xf32>
    %80 = tpu.matmul %79, %66, %cst_26 {dimension_numbers = #tpu.dot_dimension_numbers<[1], [0], [0], [1], [0, 0, 1, 1], [], []>} : vector<64x64xf32>, vector<64x16xf32>, vector<64x16xf32> -> vector<64x16xf32>
    %81 = vector.extract_strided_slice %27 {offsets = [0, 48], sizes = [64, 16], strides = [1, 1]} : vector<64x128xf32> to vector<64x16xf32>
    %82 = vector.extract_strided_slice %28 {offsets = [0, 48], sizes = [64, 16], strides = [1, 1]} : vector<64x128xf32> to vector<64x16xf32>
    %83 = vector.extract_strided_slice %29 {offsets = [0, 48], sizes = [64, 16], strides = [1, 1]} : vector<64x128xf32> to vector<64x16xf32>
    %cst_27 = arith.constant dense<0.000000e+00> : vector<64x64xf32>
    %84 = tpu.matmul %81, %82, %cst_27 {dimension_numbers = #tpu.dot_dimension_numbers<[1], [1], [0], [0], [0, 0, 1, 0], [], []>} : vector<64x16xf32>, vector<64x16xf32>, vector<64x64xf32> -> vector<64x64xf32>
    %cst_28 = arith.constant 2.500000e-01 : f32
    %85 = vector.broadcast %cst_28 : f32 to vector<64x64xf32>
    %86 = arith.mulf %84, %85 : vector<64x64xf32>
    %cst_29 = arith.constant dense<0xFF800000> : vector<64xf32>
    %87 = vector.multi_reduction <maximumf>, %86, %cst_29 [1] : vector<64x64xf32> to vector<64xf32>
    %88 = vector.shape_cast %87 : vector<64xf32> to vector<64x1xf32>
    %89 = vector.broadcast %88 : vector<64x1xf32> to vector<64x64xf32>
    %90 = arith.subf %86, %89 : vector<64x64xf32>
    %91 = math.exp %90 : vector<64x64xf32>
    %cst_30 = arith.constant dense<0.000000e+00> : vector<64xf32>
    %92 = vector.multi_reduction <add>, %91, %cst_30 [1] : vector<64x64xf32> to vector<64xf32>
    %93 = vector.shape_cast %92 : vector<64xf32> to vector<64x1xf32>
    %94 = tpu.reciprocal %93 {approx = true} : vector<64x1xf32> -> vector<64x1xf32>
    %95 = vector.broadcast %94 : vector<64x1xf32> to vector<64x64xf32>
    %96 = arith.mulf %91, %95 : vector<64x64xf32>
    %cst_31 = arith.constant dense<0.000000e+00> : vector<64x16xf32>
    %97 = tpu.matmul %96, %83, %cst_31 {dimension_numbers = #tpu.dot_dimension_numbers<[1], [0], [0], [1], [0, 0, 1, 1], [], []>} : vector<64x64xf32>, vector<64x16xf32>, vector<64x16xf32> -> vector<64x16xf32>
    %98 = vector.extract_strided_slice %27 {offsets = [0, 64], sizes = [64, 16], strides = [1, 1]} : vector<64x128xf32> to vector<64x16xf32>
    %99 = vector.extract_strided_slice %28 {offsets = [0, 64], sizes = [64, 16], strides = [1, 1]} : vector<64x128xf32> to vector<64x16xf32>
    %100 = vector.extract_strided_slice %29 {offsets = [0, 64], sizes = [64, 16], strides = [1, 1]} : vector<64x128xf32> to vector<64x16xf32>
    %cst_32 = arith.constant dense<0.000000e+00> : vector<64x64xf32>
    %101 = tpu.matmul %98, %99, %cst_32 {dimension_numbers = #tpu.dot_dimension_numbers<[1], [1], [0], [0], [0, 0, 1, 0], [], []>} : vector<64x16xf32>, vector<64x16xf32>, vector<64x64xf32> -> vector<64x64xf32>
    %cst_33 = arith.constant 2.500000e-01 : f32
    %102 = vector.broadcast %cst_33 : f32 to vector<64x64xf32>
    %103 = arith.mulf %101, %102 : vector<64x64xf32>
    %cst_34 = arith.constant dense<0xFF800000> : vector<64xf32>
    %104 = vector.multi_reduction <maximumf>, %103, %cst_34 [1] : vector<64x64xf32> to vector<64xf32>
    %105 = vector.shape_cast %104 : vector<64xf32> to vector<64x1xf32>
    %106 = vector.broadcast %105 : vector<64x1xf32> to vector<64x64xf32>
    %107 = arith.subf %103, %106 : vector<64x64xf32>
    %108 = math.exp %107 : vector<64x64xf32>
    %cst_35 = arith.constant dense<0.000000e+00> : vector<64xf32>
    %109 = vector.multi_reduction <add>, %108, %cst_35 [1] : vector<64x64xf32> to vector<64xf32>
    %110 = vector.shape_cast %109 : vector<64xf32> to vector<64x1xf32>
    %111 = tpu.reciprocal %110 {approx = true} : vector<64x1xf32> -> vector<64x1xf32>
    %112 = vector.broadcast %111 : vector<64x1xf32> to vector<64x64xf32>
    %113 = arith.mulf %108, %112 : vector<64x64xf32>
    %cst_36 = arith.constant dense<0.000000e+00> : vector<64x16xf32>
    %114 = tpu.matmul %113, %100, %cst_36 {dimension_numbers = #tpu.dot_dimension_numbers<[1], [0], [0], [1], [0, 0, 1, 1], [], []>} : vector<64x64xf32>, vector<64x16xf32>, vector<64x16xf32> -> vector<64x16xf32>
    %115 = vector.extract_strided_slice %27 {offsets = [0, 80], sizes = [64, 16], strides = [1, 1]} : vector<64x128xf32> to vector<64x16xf32>
    %116 = vector.extract_strided_slice %28 {offsets = [0, 80], sizes = [64, 16], strides = [1, 1]} : vector<64x128xf32> to vector<64x16xf32>
    %117 = vector.extract_strided_slice %29 {offsets = [0, 80], sizes = [64, 16], strides = [1, 1]} : vector<64x128xf32> to vector<64x16xf32>
    %cst_37 = arith.constant dense<0.000000e+00> : vector<64x64xf32>
    %118 = tpu.matmul %115, %116, %cst_37 {dimension_numbers = #tpu.dot_dimension_numbers<[1], [1], [0], [0], [0, 0, 1, 0], [], []>} : vector<64x16xf32>, vector<64x16xf32>, vector<64x64xf32> -> vector<64x64xf32>
    %cst_38 = arith.constant 2.500000e-01 : f32
    %119 = vector.broadcast %cst_38 : f32 to vector<64x64xf32>
    %120 = arith.mulf %118, %119 : vector<64x64xf32>
    %cst_39 = arith.constant dense<0xFF800000> : vector<64xf32>
    %121 = vector.multi_reduction <maximumf>, %120, %cst_39 [1] : vector<64x64xf32> to vector<64xf32>
    %122 = vector.shape_cast %121 : vector<64xf32> to vector<64x1xf32>
    %123 = vector.broadcast %122 : vector<64x1xf32> to vector<64x64xf32>
    %124 = arith.subf %120, %123 : vector<64x64xf32>
    %125 = math.exp %124 : vector<64x64xf32>
    %cst_40 = arith.constant dense<0.000000e+00> : vector<64xf32>
    %126 = vector.multi_reduction <add>, %125, %cst_40 [1] : vector<64x64xf32> to vector<64xf32>
    %127 = vector.shape_cast %126 : vector<64xf32> to vector<64x1xf32>
    %128 = tpu.reciprocal %127 {approx = true} : vector<64x1xf32> -> vector<64x1xf32>
    %129 = vector.broadcast %128 : vector<64x1xf32> to vector<64x64xf32>
    %130 = arith.mulf %125, %129 : vector<64x64xf32>
    %cst_41 = arith.constant dense<0.000000e+00> : vector<64x16xf32>
    %131 = tpu.matmul %130, %117, %cst_41 {dimension_numbers = #tpu.dot_dimension_numbers<[1], [0], [0], [1], [0, 0, 1, 1], [], []>} : vector<64x64xf32>, vector<64x16xf32>, vector<64x16xf32> -> vector<64x16xf32>
    %132 = vector.extract_strided_slice %27 {offsets = [0, 96], sizes = [64, 16], strides = [1, 1]} : vector<64x128xf32> to vector<64x16xf32>
    %133 = vector.extract_strided_slice %28 {offsets = [0, 96], sizes = [64, 16], strides = [1, 1]} : vector<64x128xf32> to vector<64x16xf32>
    %134 = vector.extract_strided_slice %29 {offsets = [0, 96], sizes = [64, 16], strides = [1, 1]} : vector<64x128xf32> to vector<64x16xf32>
    %cst_42 = arith.constant dense<0.000000e+00> : vector<64x64xf32>
    %135 = tpu.matmul %132, %133, %cst_42 {dimension_numbers = #tpu.dot_dimension_numbers<[1], [1], [0], [0], [0, 0, 1, 0], [], []>} : vector<64x16xf32>, vector<64x16xf32>, vector<64x64xf32> -> vector<64x64xf32>
    %cst_43 = arith.constant 2.500000e-01 : f32
    %136 = vector.broadcast %cst_43 : f32 to vector<64x64xf32>
    %137 = arith.mulf %135, %136 : vector<64x64xf32>
    %cst_44 = arith.constant dense<0xFF800000> : vector<64xf32>
    %138 = vector.multi_reduction <maximumf>, %137, %cst_44 [1] : vector<64x64xf32> to vector<64xf32>
    %139 = vector.shape_cast %138 : vector<64xf32> to vector<64x1xf32>
    %140 = vector.broadcast %139 : vector<64x1xf32> to vector<64x64xf32>
    %141 = arith.subf %137, %140 : vector<64x64xf32>
    %142 = math.exp %141 : vector<64x64xf32>
    %cst_45 = arith.constant dense<0.000000e+00> : vector<64xf32>
    %143 = vector.multi_reduction <add>, %142, %cst_45 [1] : vector<64x64xf32> to vector<64xf32>
    %144 = vector.shape_cast %143 : vector<64xf32> to vector<64x1xf32>
    %145 = tpu.reciprocal %144 {approx = true} : vector<64x1xf32> -> vector<64x1xf32>
    %146 = vector.broadcast %145 : vector<64x1xf32> to vector<64x64xf32>
    %147 = arith.mulf %142, %146 : vector<64x64xf32>
    %cst_46 = arith.constant dense<0.000000e+00> : vector<64x16xf32>
    %148 = tpu.matmul %147, %134, %cst_46 {dimension_numbers = #tpu.dot_dimension_numbers<[1], [0], [0], [1], [0, 0, 1, 1], [], []>} : vector<64x64xf32>, vector<64x16xf32>, vector<64x16xf32> -> vector<64x16xf32>
    %149 = vector.extract_strided_slice %27 {offsets = [0, 112], sizes = [64, 16], strides = [1, 1]} : vector<64x128xf32> to vector<64x16xf32>
    %150 = vector.extract_strided_slice %28 {offsets = [0, 112], sizes = [64, 16], strides = [1, 1]} : vector<64x128xf32> to vector<64x16xf32>
    %151 = vector.extract_strided_slice %29 {offsets = [0, 112], sizes = [64, 16], strides = [1, 1]} : vector<64x128xf32> to vector<64x16xf32>
    %cst_47 = arith.constant dense<0.000000e+00> : vector<64x64xf32>
    %152 = tpu.matmul %149, %150, %cst_47 {dimension_numbers = #tpu.dot_dimension_numbers<[1], [1], [0], [0], [0, 0, 1, 0], [], []>} : vector<64x16xf32>, vector<64x16xf32>, vector<64x64xf32> -> vector<64x64xf32>
    %cst_48 = arith.constant 2.500000e-01 : f32
    %153 = vector.broadcast %cst_48 : f32 to vector<64x64xf32>
    %154 = arith.mulf %152, %153 : vector<64x64xf32>
    %cst_49 = arith.constant dense<0xFF800000> : vector<64xf32>
    %155 = vector.multi_reduction <maximumf>, %154, %cst_49 [1] : vector<64x64xf32> to vector<64xf32>
    %156 = vector.shape_cast %155 : vector<64xf32> to vector<64x1xf32>
    %157 = vector.broadcast %156 : vector<64x1xf32> to vector<64x64xf32>
    %158 = arith.subf %154, %157 : vector<64x64xf32>
    %159 = math.exp %158 : vector<64x64xf32>
    %cst_50 = arith.constant dense<0.000000e+00> : vector<64xf32>
    %160 = vector.multi_reduction <add>, %159, %cst_50 [1] : vector<64x64xf32> to vector<64xf32>
    %161 = vector.shape_cast %160 : vector<64xf32> to vector<64x1xf32>
    %162 = tpu.reciprocal %161 {approx = true} : vector<64x1xf32> -> vector<64x1xf32>
    %163 = vector.broadcast %162 : vector<64x1xf32> to vector<64x64xf32>
    %164 = arith.mulf %159, %163 : vector<64x64xf32>
    %cst_51 = arith.constant dense<0.000000e+00> : vector<64x16xf32>
    %165 = tpu.matmul %164, %151, %cst_51 {dimension_numbers = #tpu.dot_dimension_numbers<[1], [0], [0], [1], [0, 0, 1, 1], [], []>} : vector<64x64xf32>, vector<64x16xf32>, vector<64x16xf32> -> vector<64x16xf32>
    %166 = tpu.concatenate %46, %63, %80, %97, %114, %131, %148, %165 in 1 : vector<64x16xf32>, vector<64x16xf32>, vector<64x16xf32>, vector<64x16xf32>, vector<64x16xf32>, vector<64x16xf32>, vector<64x16xf32>, vector<64x16xf32> -> vector<64x128xf32>
    %c0_52 = arith.constant 0 : index
    %c0_53 = arith.constant 0 : index
    %167 = vector.load %arg5[%c0_52, %c0_53] : memref<128x128xf32, #tpu.memory_space<vmem>>, vector<128x128xf32>
    %cst_54 = arith.constant dense<0.000000e+00> : vector<64x128xf32>
    %168 = tpu.matmul %166, %167, %cst_54 {dimension_numbers = #tpu.dot_dimension_numbers<[1], [0], [0], [1], [0, 0, 1, 1], [], []>} : vector<64x128xf32>, vector<128x128xf32>, vector<64x128xf32> -> vector<64x128xf32>
    %c0_55 = arith.constant 0 : index
    %c0_56 = arith.constant 0 : index
    %169 = vector.load %arg6[%c0_55, %c0_56] : memref<1x128xf32, #tpu.memory_space<vmem>>, vector<1x128xf32>
    %170 = vector.broadcast %169 : vector<1x128xf32> to vector<64x128xf32>
    %171 = arith.addf %168, %170 : vector<64x128xf32>
    %172 = arith.addf %0, %171 : vector<64x128xf32>
    %cst_57 = arith.constant dense<0.000000e+00> : vector<64xf32>
    %173 = vector.multi_reduction <add>, %172, %cst_57 [1] : vector<64x128xf32> to vector<64xf32>
    %174 = vector.shape_cast %173 : vector<64xf32> to vector<64x1xf32>
    %cst_58 = arith.constant 1.280000e+02 : f32
    %175 = vector.broadcast %cst_58 : f32 to vector<64x1xf32>
    %176 = arith.divf %174, %175 : vector<64x1xf32>
    %177 = vector.broadcast %176 : vector<64x1xf32> to vector<64x128xf32>
    %178 = arith.subf %172, %177 : vector<64x128xf32>
    %179 = arith.mulf %178, %178 : vector<64x128xf32>
    %cst_59 = arith.constant dense<0.000000e+00> : vector<64xf32>
    %180 = vector.multi_reduction <add>, %179, %cst_59 [1] : vector<64x128xf32> to vector<64xf32>
    %181 = vector.shape_cast %180 : vector<64xf32> to vector<64x1xf32>
    %cst_60 = arith.constant 1.280000e+02 : f32
    %182 = vector.broadcast %cst_60 : f32 to vector<64x1xf32>
    %183 = arith.divf %181, %182 : vector<64x1xf32>
    %cst_61 = arith.constant 9.99999974E-6 : f32
    %184 = vector.broadcast %cst_61 : f32 to vector<64x1xf32>
    %185 = arith.addf %183, %184 : vector<64x1xf32>
    %186 = math.rsqrt %185 : vector<64x1xf32>
    %187 = vector.broadcast %176 : vector<64x1xf32> to vector<64x128xf32>
    %188 = arith.subf %172, %187 : vector<64x128xf32>
    %189 = vector.broadcast %186 : vector<64x1xf32> to vector<64x128xf32>
    %190 = arith.mulf %188, %189 : vector<64x128xf32>
    %c0_62 = arith.constant 0 : index
    %c0_63 = arith.constant 0 : index
    %191 = vector.load %arg7[%c0_62, %c0_63] : memref<1x128xf32, #tpu.memory_space<vmem>>, vector<1x128xf32>
    %192 = vector.broadcast %191 : vector<1x128xf32> to vector<64x128xf32>
    %193 = arith.mulf %190, %192 : vector<64x128xf32>
    %c0_64 = arith.constant 0 : index
    %c0_65 = arith.constant 0 : index
    %194 = vector.load %arg8[%c0_64, %c0_65] : memref<1x128xf32, #tpu.memory_space<vmem>>, vector<1x128xf32>
    %195 = vector.broadcast %194 : vector<1x128xf32> to vector<64x128xf32>
    %196 = arith.addf %193, %195 : vector<64x128xf32>
    %c0_66 = arith.constant 0 : index
    %c0_67 = arith.constant 0 : index
    %197 = vector.load %arg9[%c0_66, %c0_67] : memref<128x512xf32, #tpu.memory_space<vmem>>, vector<128x512xf32>
    %cst_68 = arith.constant dense<0.000000e+00> : vector<64x512xf32>
    %198 = tpu.matmul %196, %197, %cst_68 {dimension_numbers = #tpu.dot_dimension_numbers<[1], [0], [0], [1], [0, 0, 1, 1], [], []>} : vector<64x128xf32>, vector<128x512xf32>, vector<64x512xf32> -> vector<64x512xf32>
    %c0_69 = arith.constant 0 : index
    %c0_70 = arith.constant 0 : index
    %199 = vector.load %arg10[%c0_69, %c0_70] : memref<1x512xf32, #tpu.memory_space<vmem>>, vector<1x512xf32>
    %200 = vector.broadcast %199 : vector<1x512xf32> to vector<64x512xf32>
    %201 = arith.addf %198, %200 : vector<64x512xf32>
    %cst_71 = arith.constant 5.000000e-01 : f32
    %202 = vector.broadcast %cst_71 : f32 to vector<64x512xf32>
    %203 = arith.mulf %202, %201 : vector<64x512xf32>
    %cst_72 = arith.constant 0.707106769 : f32
    %204 = vector.broadcast %cst_72 : f32 to vector<64x512xf32>
    %205 = arith.mulf %201, %204 : vector<64x512xf32>
    %206 = math.erf %205 : vector<64x512xf32>
    %cst_73 = arith.constant 1.000000e+00 : f32
    %207 = vector.broadcast %cst_73 : f32 to vector<64x512xf32>
    %208 = arith.addf %207, %206 : vector<64x512xf32>
    %209 = arith.mulf %203, %208 : vector<64x512xf32>
    %c0_74 = arith.constant 0 : index
    %c0_75 = arith.constant 0 : index
    %210 = vector.load %arg11[%c0_74, %c0_75] : memref<512x128xf32, #tpu.memory_space<vmem>>, vector<512x128xf32>
    %cst_76 = arith.constant dense<0.000000e+00> : vector<64x128xf32>
    %211 = tpu.matmul %209, %210, %cst_76 {dimension_numbers = #tpu.dot_dimension_numbers<[1], [0], [0], [1], [0, 0, 1, 1], [], []>} : vector<64x512xf32>, vector<512x128xf32>, vector<64x128xf32> -> vector<64x128xf32>
    %c0_77 = arith.constant 0 : index
    %c0_78 = arith.constant 0 : index
    %212 = vector.load %arg12[%c0_77, %c0_78] : memref<1x128xf32, #tpu.memory_space<vmem>>, vector<1x128xf32>
    %213 = vector.broadcast %212 : vector<1x128xf32> to vector<64x128xf32>
    %214 = arith.addf %211, %213 : vector<64x128xf32>
    %215 = arith.addf %172, %214 : vector<64x128xf32>
    %c0_79 = arith.constant 0 : index
    %c0_80 = arith.constant 0 : index
    %216 = vector.load %arg13[%c0_79, %c0_80] : memref<64x128xf32, #tpu.memory_space<vmem>>, vector<64x128xf32>
    tpu.vector_store %arg13[%c0_79, %c0_80], %215 {strides = array<i32>} : memref<64x128xf32, #tpu.memory_space<vmem>>, vector<64x128xf32>,
    return
  }
  func.func @transform_0(%arg0: i32) -> (i32, i32) {
    %c0_i32 = arith.constant 0 : i32
    %c0_i32_0 = arith.constant 0 : i32
    return %arg0, %c0_i32 : i32, i32
  }
  func.func @transform_1(%arg0: i32) -> (i32, i32) {
    %c0_i32 = arith.constant 0 : i32
    %c0_i32_0 = arith.constant 0 : i32
    %c0_i32_1 = arith.constant 0 : i32
    return %c0_i32, %c0_i32_0 : i32, i32
  }
  func.func @transform_2(%arg0: i32) -> (i32, i32) {
    %c0_i32 = arith.constant 0 : i32
    %c0_i32_0 = arith.constant 0 : i32
    %c0_i32_1 = arith.constant 0 : i32
    return %c0_i32, %c0_i32_0 : i32, i32
  }
  func.func @transform_3(%arg0: i32) -> (i32, i32) {
    %c0_i32 = arith.constant 0 : i32
    %c0_i32_0 = arith.constant 0 : i32
    %c0_i32_1 = arith.constant 0 : i32
    return %c0_i32, %c0_i32_0 : i32, i32
  }
  func.func @transform_4(%arg0: i32) -> (i32, i32) {
    %c0_i32 = arith.constant 0 : i32
    %c0_i32_0 = arith.constant 0 : i32
    %c0_i32_1 = arith.constant 0 : i32
    return %c0_i32, %c0_i32_0 : i32, i32
  }
  func.func @transform_5(%arg0: i32) -> (i32, i32) {
    %c0_i32 = arith.constant 0 : i32
    %c0_i32_0 = arith.constant 0 : i32
    %c0_i32_1 = arith.constant 0 : i32
    return %c0_i32, %c0_i32_0 : i32, i32
  }
  func.func @transform_6(%arg0: i32) -> (i32, i32) {
    %c0_i32 = arith.constant 0 : i32
    %c0_i32_0 = arith.constant 0 : i32
    %c0_i32_1 = arith.constant 0 : i32
    return %c0_i32, %c0_i32_0 : i32, i32
  }
  func.func @transform_7(%arg0: i32) -> (i32, i32) {
    %c0_i32 = arith.constant 0 : i32
    %c0_i32_0 = arith.constant 0 : i32
    %c0_i32_1 = arith.constant 0 : i32
    return %c0_i32, %c0_i32_0 : i32, i32
  }
  func.func @transform_8(%arg0: i32) -> (i32, i32) {
    %c0_i32 = arith.constant 0 : i32
    %c0_i32_0 = arith.constant 0 : i32
    %c0_i32_1 = arith.constant 0 : i32
    return %c0_i32, %c0_i32_0 : i32, i32
  }
  func.func @transform_9(%arg0: i32) -> (i32, i32) {
    %c0_i32 = arith.constant 0 : i32
    %c0_i32_0 = arith.constant 0 : i32
    %c0_i32_1 = arith.constant 0 : i32
    return %c0_i32, %c0_i32_0 : i32, i32
  }
  func.func @transform_10(%arg0: i32) -> (i32, i32) {
    %c0_i32 = arith.constant 0 : i32
    %c0_i32_0 = arith.constant 0 : i32
    %c0_i32_1 = arith.constant 0 : i32
    return %c0_i32, %c0_i32_0 : i32, i32
  }
  func.func @transform_11(%arg0: i32) -> (i32, i32) {
    %c0_i32 = arith.constant 0 : i32
    %c0_i32_0 = arith.constant 0 : i32
    %c0_i32_1 = arith.constant 0 : i32
    return %c0_i32, %c0_i32_0 : i32, i32
  }
  func.func @transform_12(%arg0: i32) -> (i32, i32) {
    %c0_i32 = arith.constant 0 : i32
    %c0_i32_0 = arith.constant 0 : i32
    return %arg0, %c0_i32 : i32, i32
  }
}

</mosaic_0001>

<bundles_post_ra>
// kernel: block_forward.1
= control target key start
LH: loop header
LB: loop body
LE: loop exit
PB: predicated region body
PF: predicated region fallthrough
CT: control target
= control target key end

     0   :  { %17 = vsyncpa [#allocation3], 0  ;;  %s9903_s0 = inlined_call_operand.vmem [shape: f32[128,128], index: 0, kind: input, shape index: {}]   ;;  %s9904_s1 = inlined_call_operand.vmem [shape: f32[1,128], index: 1, kind: input, shape index: {}]   ;;  %s9905_s2 = inlined_call_operand.vmem [shape: f32[1,128], index: 2, kind: input, shape index: {}]   ;;  %s9906_s3 = inlined_call_operand.vmem [shape: f32[128,384], index: 3, kind: input, shape index: {}]   ;;  %s9907_s4 = inlined_call_operand.vmem [shape: f32[128,128], index: 4, kind: input, shape index: {}]   ;;  %s9908_s5 = inlined_call_operand.vmem [shape: f32[1,128], index: 5, kind: input, shape index: {}]   ;;  %s9909_s6 = inlined_call_operand.vmem [shape: f32[1,128], index: 6, kind: input, shape index: {}]   ;;  %s9910_s7 = inlined_call_operand.vmem [shape: f32[1,128], index: 7, kind: input, shape index: {}]   ;;  %s9911_s8 = inlined_call_operand.vmem [shape: f32[128,512], index: 8, kind: input, shape index: {}]   ;;  %s9912_s9 = inlined_call_operand.vmem [shape: f32[1,512], index: 9, kind: input, shape index: {}]   ;;  %s9913_s10 = inlined_call_operand.hbm [shape: f32[512,128], index: 10, kind: input, shape index: {}]   ;;  %s9914_s11 = inlined_call_operand.vmem [shape: f32[1,128], index: 11, kind: input, shape index: {}]   ;;  %s9915_s12 = inlined_call_operand.hbm [shape: f32[128,128], index: 12, kind: output, shape index: {}]  }
   0x1   :  { %18 = vsyncpa [#allocation4], 0 }
   0x2   :  { %20 = vsyncpa [#allocation4 + $0x1], 0  ;;  %s7431_s21 = smov 0   ;;  %s7433_s22 = smov 0  }
   0x3   :  { %s7435_s23 = smov 0   ;;  %s7437_s24 = smov 0  }
   0x4 LB: > { %9951 = sst [smem:[#allocation8_spill]] %s7346_s23  ;;  %s7452_s25 = sadd.s32 4294967295, %s7350_s24   ;;  %s7350_s24 = sphi %s7437_s24, %s10052_s24   ;;  %s7346_s23 = sphi %s7435_s23, %s10051_s23   ;;  %s7342_s22 = sphi %s7433_s22, %s10050_s22   ;;  %s7338_s21 = sphi %s7431_s21, %s10049_s21  }
   0x5   : > { %s5533_s26 = sadd.s32 4294967294, %s7350_s24   ;;  %s7456_s27 = sadd.s32 1, %s7350_s24  }
   0x6   : > { %s290_s28 = sadd.s32 1, %s7346_s23  ;;  %s287_s29 = ssub.s32 %s7350_s24, %s7456_s27 }
   0x7   : > { %p300_p0 = scmp.ne.s32.totalorder %s7346_s23, %s7342_s22  ;;  %p288_p1 = scmp.eq.s32.totalorder %s287_s29, 0 }
   0x8   : > { %p301_p2 = scmp.eq.s32.totalorder %s7452_s25, 1  ;;  %p306_p3 = scmp.ne.s32.totalorder %s7342_s22, %s7338_s21 }
   0x9   : > { %p307_p4 = scmp.eq.s32.totalorder %s5533_s26, 1  ;;  %p5534_p7 = scmp.ge.s32.totalorder %s7350_s24, 1 }
   0xa   : > { %s7467_s30 = scalar_select %p288_p1, %s7346_s23, %s290_s28  }
   0xb   : > { %p7469_p5 = por %p301_p2, %p300_p0  ;;  %p7473_p6 = por %p307_p4, %p306_p3 }
   0xc   : > { %9952 = sst [smem:[#allocation9_spill]] %s7467_s30  ;;  %p314_p8 = scmp.lt.s32.totalorder %s7350_s24, 3 }
   0xd   : > { %s9954_s14 = scalar_select %p7473_p6, 1, 0 }
   0xe   : > { %p6712_p9 = scmp.eq.s32.totalorder %s7452_s25, 0  ;;  %p7480_p10 = pnand %p5534_p7, %p314_p8 }
   0xf   : > { %s7352_s16 = smov [#allocation2]  }
  0x10   : > { %s353_s17 = sshll.u32 %s7352_s16, 4  ;;  %p6704_p11 = pneg %p7480_p10  ;;  %s354_s17 = int_to_ptr.vmem [resolvable:$true] %s353_s17 }
  0x11   : > { %s7271_s18 = scalar_lea.vmem %s354_s17, 8192  ;;  %p7279_p3 = scmp.lt.s32.totalorder %s354_s17, %s354_s17 }
  0x12   : > { %p6705_p12 = pnand %p6712_p9, %p6704_p11  ;;  %p7272_p0 = scmp.ne.s32.totalorder %s354_s17, %s7271_s18 }
  0x13   : > { %p7280_p4 = scmp.lt.s32.totalorder %s7271_s18, %s7271_s18 }
  0x14   : > { %p7262_p13 = pneg %p6705_p12 }
  0x15   : > { %p7281_p6 = por %p7280_p4, %p7279_p3 }
  0x16   : > { %p7274_p1 = pnand %p7272_p0, %p7262_p13 }
  0x18   : > { %p7275_p2 = pneg %p7274_p1 }
  0x1a   : > { %p7282_p7 = pnand %p7281_p6, %p7275_p2 }
  0x1c   : > { %7285 = shalt.err (!%p7282_p7)
}
  0x1d   : > { %s7353_s19 = smov 128   ;;  %s7354_s20 = smov 8  }
  0x1e   : > { %6707 = dma.hbm_to_vmem [thread:$0]  (!%p6705_p12), %s9913_s10, 8192, %s354_s17, [#allocation3], %s7353_s19, %s7353_s19, %s7354_s20  }
  0x1f   : > { %381 = sbr.rel (%p7480_p10) target bundleno = 6073 (0x17b9), region = 68 }
  0x24   : > { %7329 = dma.done.wait (%p6712_p9), [#allocation3], 8192  }
  0x25   : > { %7331 = vsyncadd (%p6712_p9), [#allocation3], 4294959104  ;;  %s5540_s29 = sshll.u32 %s7452_s25, 3  ;;  %v603_v8 = vld [vmem:[%s9906_s3 + $0x170] sm:$0xff]  ;;  %v602_v9 = vld [vmem:[%s9906_s3 + $0x168] sm:$0xff]  ;;  %vm823_vm0 = vcmask 130048  }
  0x26   : > { %p424_p8 = scmp.lt.s32.totalorder %s5540_s29, 15  ;;  %v600_v10 = vld [vmem:[%s9906_s3 + $0x158] sm:$0xff]  ;;  %605 = vmatprep.subr.mxu0 %v603_v8  ;;  %v599_v11 = vld [vmem:[%s9906_s3 + $0x150] sm:$0xff]  ;;  %v597_v13 = vld [vmem:[%s9906_s3 + $0x140] sm:$0xff]  ;;  %s7356_s30 = smov 112   ;;  %vm985_vm1 = vcmask 523264  }
  0x27   : > { %v604_v12 = vld [vmem:[%s9906_s3 + $0x178] sm:$0xff]  ;;  %606 = vmatpush1.msra.mxu0 %v602_v9  ;;  %v601_v14 = vld [vmem:[%s9906_s3 + $0x160] sm:$0xff]  ;;  %v594_v16 = vld [vmem:[%s9906_s3 + $0x128] sm:$0xff]  ;;  %s9945_s15 = smov 96   ;;  %s9949_s17 = smov 80   ;;  %vm4369_vm2 = vcmask 261120  }
  0x28   : > { %s10054_s29 = smov (!%p424_p8, %s5540_s29), 15  ;;  %6162 = vmatprep.subr.mxu1 %v604_v12  ;;  %607 = vmatprep.subr.mxu0 %v600_v10  ;;  %v596_v15 = vld [vmem:[%s9906_s3 + $0x138] sm:$0xff]  ;;  %v593_v17 = vld [vmem:[%s9906_s3 + $0x120] sm:$0xff]  ;;  %v591_v48 = vld [vmem:[%s9906_s3 + $0x110] sm:$0xff]  ;;  %s9946_s19 = smov 64   ;;  %vm4378_vm3 = vcmask 392192  }
  0x29   : > { %s5541_s16 = sshll.u32 %s10054_s29, 3  ;;  %6163 = vmatpush3.msra.mxu1 %v604_v12  ;;  %608 = vmatpush1.msra.mxu0 %v599_v11  ;;  %v598_v49 = vld [vmem:[%s9906_s3 + $0x148] sm:$0xff]  ;;  %v588_v52 = vld [vmem:[%s9906_s3 + $0xf8] sm:$0xff]  ;;  %v595_v53 = vld [vmem:[%s9906_s3 + $0x130] sm:$0xff]  ;;  %s7360_s20 = smov 48   ;;  %vm4395_vm4 = vcmask 654336  }
  0x2a   : > { %s7501_s23 = scalar_lea.vmem %s9903_s0, %s5541_s16  ;;  %6164 = vmatprep.subr.mxu1 %v601_v14  ;;  %609 = vmatprep.subr.mxu0 %v597_v13  ;;  %v590_v51 = vld [vmem:[%s9906_s3 + $0x108] sm:$0xff]  ;;  %v587_v55 = vld [vmem:[%s9906_s3 + $0xf0] sm:$0xff]  ;;  %v585_v56 = vld [vmem:[%s9906_s3 + $0xe0] sm:$0xff]  ;;  %s9947_s26 = smov 32   ;;  %vm4404_vm5 = vcmask 785408   ;;  %vm4413_vm6 = vcmask 916480  }
  0x2b   : > { %v430_v0 = vld [vmem:[%s7501_s23] sm:$0xff]  ;;  %v432_v1 = vld [vmem:[%s7501_s23 + $0x10] sm:$0xff]  ;;  %v431_v2 = vld [vmem:[%s7501_s23 + $0x8] sm:$0xff]  ;;  %6165 = vmatpush3.msra.mxu1 %v601_v14  ;;  %610 = vmatpush1.msra.mxu0 %v596_v15  ;;  %s9948_s28 = smov 16   ;;  %s10017_s29 = smov 80  }
  0x2c   : > { %438 = vadd.xlane.f32.xlu0 %v430_v0  ;;  %442 = vadd.xlane.f32.xlu1 %v432_v1  ;;  %v433_v3 = vld [vmem:[%s7501_s23 + $0x18] sm:$0xff]  ;;  %v434_v4 = vld [vmem:[%s7501_s23 + $0x20] sm:$0xff]  ;;  %v435_v5 = vld [vmem:[%s7501_s23 + $0x28] sm:$0xff]  ;;  %s10019_s16 = smov 16   ;;  %s10033_s18 = smov 64  }
  0x2d   : > { %v436_v6 = vld [vmem:[%s7501_s23 + $0x30] sm:$0xff]  ;;  %v437_v7 = vld [vmem:[%s7501_s23 + $0x38] sm:$0xff]  ;;  %611 = vmatprep.subr.mxu0 %v594_v16  ;;  %6166 = vmatprep.subr.mxu1 %v598_v49  ;;  %v582_v59 = vld [vmem:[%s9906_s3 + $0xc8] sm:$0xff] }
  0x2e   : > { %612 = vmatpush1.msra.mxu0 %v593_v17  ;;  %6167 = vmatpush3.msra.mxu1 %v598_v49  ;;  %v592_v57 = vld [vmem:[%s9906_s3 + $0x118] sm:$0xff]  ;;  %v589_v60 = vld [vmem:[%s9906_s3 + $0x100] sm:$0xff]  ;;  %v579_v62 = vld [vmem:[%s9906_s3 + $0xb0] sm:$0xff] }
  0x2f   : > { %613 = vmatprep.subr.mxu0 %v591_v48  ;;  %6168 = vmatprep.subr.mxu1 %v595_v53  ;;  %v584_v58 = vld [vmem:[%s9906_s3 + $0xd8] sm:$0xff]  ;;  %v581_v61 = vld [vmem:[%s9906_s3 + $0xc0] sm:$0xff]  ;;  %v586_v63 = vld [vmem:[%s9906_s3 + $0xe8] sm:$0xff] }
  0x30   : > { %440 = vadd.xlane.f32.xlu0 %v431_v2  ;;  %444 = vadd.xlane.f32.xlu1 %v433_v3  ;;  %v577_v8 = vld [vmem:[%s9906_s3 + $0xa0] sm:$0xff]  ;;  %v567_v10 = vld [vmem:[%s9906_s3 + $0x50] sm:$0xff]  ;;  %v574_v11 = vld [vmem:[%s9906_s3 + $0x88] sm:$0xff] }
  0x31   : > { %614 = vmatpush1.msra.mxu0 %v590_v51  ;;  %6169 = vmatpush3.msra.mxu1 %v595_v53  ;;  %v569_v9 = vld [vmem:[%s9906_s3 + $0x60] sm:$0xff]  ;;  %v566_v12 = vld [vmem:[%s9906_s3 + $0x48] sm:$0xff]  ;;  %v564_v13 = vld [vmem:[%s9906_s3 + $0x38] sm:$0xff] }
  0x32   : > { %615 = vmatprep.subr.mxu0 %v588_v52  ;;  %6170 = vmatprep.subr.mxu1 %v592_v57  ;;  %v571_v14 = vld [vmem:[%s9906_s3 + $0x70] sm:$0xff]  ;;  %v561_v16 = vld [vmem:[%s9906_s3 + $0x20] sm:$0xff]  ;;  %v568_v17 = vld [vmem:[%s9906_s3 + $0x58] sm:$0xff] }
  0x33   : > { %616 = vmatpush1.msra.mxu0 %v587_v55  ;;  %6171 = vmatpush3.msra.mxu1 %v592_v57  ;;  %v563_v15 = vld [vmem:[%s9906_s3 + $0x30] sm:$0xff]  ;;  %v5542_v57 = vld [vmem:[%s9904_s1] ss:$0 sm:$0xff] }
  0x34   : > { %446 = vadd.xlane.f32.xlu0 %v434_v4  ;;  %448 = vadd.xlane.f32.xlu1 %v435_v5 }
  0x35   : > { %617 = vmatprep.subr.mxu0 %v585_v56  ;;  %6172 = vmatprep.subr.mxu1 %v589_v60 }
  0x36   : > { %618 = vmatpush1.msra.mxu0 %v584_v58  ;;  %6173 = vmatpush3.msra.mxu1 %v589_v60  ;;  %v5543_v60 = vld [vmem:[%s9905_s2] ss:$0 sm:$0xff] }
  0x37   : > { %619 = vmatprep.subr.mxu0 %v582_v59  ;;  %6174 = vmatprep.subr.mxu1 %v586_v63 }
  0x38   : > { %450 = vadd.xlane.f32.xlu0 %v436_v6  ;;  %452 = vadd.xlane.f32.xlu1 %v437_v7 }
  0x39   : > { %620 = vmatpush1.msra.mxu0 %v581_v61  ;;  %6175 = vmatpush3.msra.mxu1 %v586_v63 }
  0x3a   : > { %621 = vmatprep.subr.mxu0 %v579_v62 }
  0xb5   : > { %v439_v18 = vpop.xlane.xlu0 %438  ;;  %v443_v19 = vpop.xlane.xlu1 %442 }
  0xb6   : > { %v455_v20 = vmul.f32 0.0078125, %v439_v18  ;;  %v457_v21 = vmul.f32 0.0078125, %v443_v19  ;;  %v560_v18 = vld [vmem:[%s9906_s3 + $0x18] sm:$0xff]  ;;  %v558_v19 = vld [vmem:[%s9906_s3 + $0x8] sm:$0xff] }
  0xb8   : > { %v7541_v22 = vsub.f32 %v430_v0, %v455_v20  ;;  %v7543_v23 = vsub.f32 %v432_v1, %v457_v21  ;;  %v578_v0 = vld [vmem:[%s9906_s3 + $0xa8] sm:$0xff]  ;;  %v576_v1 = vld [vmem:[%s9906_s3 + $0x98] sm:$0xff]  ;;  %v565_v20 = vld [vmem:[%s9906_s3 + $0x40] sm:$0xff] }
  0xb9   : > { %v441_v24 = vpop.xlane.xlu0 %440  ;;  %v445_v25 = vpop.xlane.xlu1 %444  ;;  %622 = vmatpush1.msra.mxu0 %v578_v0  ;;  %v557_v21 = vld [vmem:[%s9906_s3] sm:$0xff] }
  0xba   : > { %v456_v26 = vmul.f32 0.0078125, %v441_v24  ;;  %v471_v27 = vmul.f32 %v7541_v22, %v7541_v22  ;;  %v458_v28 = vmul.f32 0.0078125, %v445_v25  ;;  %v473_v29 = vmul.f32 %v7543_v23, %v7543_v23  ;;  %623 = vmatprep.subr.mxu0 %v576_v1  ;;  %v562_v24 = vld [vmem:[%s9906_s3 + $0x28] sm:$0xff] }
  0xbb   : > { %v9917_v25 = vmov 0.0  }
  0xbc   : > { %479 = vadd.xlane.f32.xlu0 %v471_v27  ;;  %v7549_v30 = vsub.f32 %v431_v2, %v456_v26  ;;  %v7551_v31 = vsub.f32 %v433_v3, %v458_v28  ;;  %v583_v2 = vld [vmem:[%s9906_s3 + $0xd0] sm:$0xff]  ;;  %669 = vmatprep.mubr.f32.mxu0 %v9917_v25 }
  0xbd   : > { %v447_v32 = vpop.xlane.xlu0 %446  ;;  %v449_v33 = vpop.xlane.xlu1 %448  ;;  %v575_v3 = vld [vmem:[%s9906_s3 + $0x90] sm:$0xff]  ;;  %6176 = vmatprep.subr.mxu1 %v583_v2 }
  0xbe   : > { %v459_v34 = vmul.f32 0.0078125, %v447_v32  ;;  %v472_v35 = vmul.f32 %v7549_v30, %v7549_v30  ;;  %v460_v36 = vmul.f32 0.0078125, %v449_v33  ;;  %v474_v37 = vmul.f32 %v7551_v31, %v7551_v31  ;;  %624 = vmatpush1.msra.mxu0 %v575_v3  ;;  %6177 = vmatpush3.msra.mxu1 %v583_v2  ;;  %v559_v26 = vld [vmem:[%s9906_s3 + $0x10] sm:$0xff] }
  0xc0   : > { %483 = vadd.xlane.f32.xlu0 %v473_v29  ;;  %481 = vadd.xlane.f32.xlu1 %v472_v35  ;;  %v7557_v38 = vsub.f32 %v434_v4, %v459_v34  ;;  %v7559_v39 = vsub.f32 %v435_v5, %v460_v36  ;;  %v573_v4 = vld [vmem:[%s9906_s3 + $0x80] sm:$0xff]  ;;  %v580_v5 = vld [vmem:[%s9906_s3 + $0xb8] sm:$0xff] }
  0xc1   : > { %v451_v40 = vpop.xlane.xlu0 %450  ;;  %v453_v41 = vpop.xlane.xlu1 %452  ;;  %625 = vmatprep.subr.mxu0 %v573_v4  ;;  %6178 = vmatprep.subr.mxu1 %v580_v5 }
  0xc2   : > { %v461_v42 = vmul.f32 0.0078125, %v451_v40  ;;  %v475_v43 = vmul.f32 %v7557_v38, %v7557_v38  ;;  %v462_v44 = vmul.f32 0.0078125, %v453_v41  ;;  %v476_v45 = vmul.f32 %v7559_v39, %v7559_v39  ;;  %6179 = vmatpush3.msra.mxu1 %v580_v5 }
  0xc3   : > { %6180 = vmatprep.subr.mxu1 %v577_v8 }
  0xc4   : > { %485 = vadd.xlane.f32.xlu1 %v474_v37  ;;  %487 = vadd.xlane.f32.xlu0 %v475_v43  ;;  %v7565_v46 = vsub.f32 %v436_v6, %v461_v42  ;;  %v7567_v47 = vsub.f32 %v437_v7, %v462_v44  ;;  %v572_v6 = vld [vmem:[%s9906_s3 + $0x78] sm:$0xff]  ;;  %v570_v7 = vld [vmem:[%s9906_s3 + $0x68] sm:$0xff] }
  0xc5   : > { %626 = vmatpush1.msra.mxu0 %v572_v6  ;;  %6181 = vmatpush3.msra.mxu1 %v577_v8 }
  0xc6   : > { %v477_v50 = vmul.f32 %v7565_v46, %v7565_v46  ;;  %v478_v54 = vmul.f32 %v7567_v47, %v7567_v47  ;;  %627 = vmatprep.subr.mxu0 %v570_v7  ;;  %6182 = vmatprep.subr.mxu1 %v574_v11 }
  0xc7   : > { %628 = vmatpush1.msra.mxu0 %v569_v9  ;;  %6183 = vmatpush3.msra.mxu1 %v574_v11 }
  0xc8   : > { %489 = vadd.xlane.f32.xlu1 %v476_v45  ;;  %491 = vadd.xlane.f32.xlu0 %v477_v50 }
  0xc9   : > { %629 = vmatprep.subr.mxu0 %v567_v10  ;;  %6184 = vmatprep.subr.mxu1 %v571_v14 }
  0xca   : > { %630 = vmatpush1.msra.mxu0 %v566_v12  ;;  %6185 = vmatpush3.msra.mxu1 %v571_v14 }
  0xcb   : > { %631 = vmatprep.subr.mxu0 %v564_v13  ;;  %6186 = vmatprep.subr.mxu1 %v568_v17 }
  0xcc   : > { %493 = vadd.xlane.f32.xlu1 %v478_v54  ;;  %632 = vmatpush1.msra.mxu0 %v563_v15 }
  0xcd   : > { %633 = vmatprep.subr.mxu0 %v561_v16  ;;  %6187 = vmatpush3.msra.mxu1 %v568_v17 }
  0xce   : > { %634 = vmatpush1.msra.mxu0 %v560_v18  ;;  %6188 = vmatprep.subr.mxu1 %v565_v20 }
  0xcf   : > { %635 = vmatprep.subr.mxu0 %v558_v19  ;;  %6189 = vmatpush3.msra.mxu1 %v565_v20 }
  0xd0   : > { %636 = vmatpush1.msra.mxu0 %v557_v21  ;;  %6190 = vmatprep.subr.mxu1 %v562_v24 }
  0xd1   : > { %6191 = vmatpush3.msra.mxu1 %v562_v24 }
  0xd2   : > { %6192 = vmatprep.subr.mxu1 %v559_v26 }
  0xd3   : > { %6193 = vmatpush3.msra.mxu1 %v559_v26 }
 0x145   : > { %v480_v27 = vpop.xlane.xlu0 %479 }
 0x146   : > { %v495_v28 = vmul.f32 0.0078125, %v480_v27 }
 0x148   : > { %v503_v29 = vadd.f32 1e-05, %v495_v28 }
 0x149   : > { %v482_v32 = vpop.xlane.xlu1 %481  ;;  %v484_v33 = vpop.xlane.xlu0 %483 }
 0x14a   : > { %6900 = vrsqrt.f32 %v503_v29  ;;  %v496_v34 = vmul.f32 0.0078125, %v482_v32  ;;  %v497_v35 = vmul.f32 0.0078125, %v484_v33 }
 0x14c   : > { %v504_v36 = vadd.f32 1e-05, %v496_v34  ;;  %v505_v37 = vadd.f32 1e-05, %v497_v35 }
 0x14d   : > { %v486_v40 = vpop.xlane.xlu1 %485  ;;  %v488_v41 = vpop.xlane.xlu0 %487 }
 0x14e   : > { %6902 = vrsqrt.f32 %v504_v36  ;;  %v498_v42 = vmul.f32 0.0078125, %v486_v40  ;;  %v499_v43 = vmul.f32 0.0078125, %v488_v41 }
 0x14f   : > { %6904 = vrsqrt.f32 %v505_v37 }
 0x150   : > { %v506_v44 = vadd.f32 1e-05, %v498_v42  ;;  %v507_v45 = vadd.f32 1e-05, %v499_v43 }
 0x151   : > { %v490_v48 = vpop.xlane.xlu1 %489  ;;  %v492_v49 = vpop.xlane.xlu0 %491 }
 0x152   : > { %6906 = vrsqrt.f32 %v506_v44  ;;  %v500_v50 = vmul.f32 0.0078125, %v490_v48  ;;  %v501_v51 = vmul.f32 0.0078125, %v492_v49 }
 0x153   : > { %6908 = vrsqrt.f32 %v507_v45 }
 0x154   : > { %v508_v52 = vadd.f32 1e-05, %v500_v50  ;;  %v509_v53 = vadd.f32 1e-05, %v501_v51 }
 0x155   : > { %v494_v54 = vpop.xlane.xlu1 %493 }
 0x156   : > { %6910 = vrsqrt.f32 %v508_v52  ;;  %v502_v55 = vmul.f32 0.0078125, %v494_v54 }
 0x157   : > { %v6901_v56 = vpop.eup %6900  ;;  %6912 = vrsqrt.f32 %v509_v53 }
 0x158   : > { %v510_v58 = vadd.f32 1e-05, %v502_v55  ;;  %v519_v59 = vmul.f32 %v6901_v56, %v7541_v22 }
 0x15a   : > { %6914 = vrsqrt.f32 %v510_v58  ;;  %v534_v61 = vmul.f32 %v5542_v57, %v519_v59 }
 0x15b   : > { %v6903_v62 = vpop.eup %6902 }
 0x15c   : > { %v6905_v63 = vpop.eup %6904  ;;  %v549_v0 = vadd.f32 %v5543_v60, %v534_v61  ;;  %v520_v1 = vmul.f32 %v6903_v62, %v7549_v30 }
 0x15d   : > { %v521_v2 = vmul.f32 %v6905_v63, %v7543_v23 }
 0x15e   : > { %670 = vmatmul.mubr.f32.vlgmr.msra.gmra.mxu0 %v549_v0  ;;  %6194 = vmatprep.mubr.f32.mxu1 %v549_v0  ;;  %v535_v3 = vmul.f32 %v5542_v57, %v520_v1 }
 0x15f   : > { %v6907_v4 = vpop.eup %6906  ;;  %675 = vmatprep.mubr.f32.mxu0 %v9917_v25  ;;  %v536_v22 = vmul.f32 %v5542_v57, %v521_v2 }
 0x160   : > { %v6909_v5 = vpop.eup %6908  ;;  %v550_v6 = vadd.f32 %v5543_v60, %v535_v3  ;;  %v522_v7 = vmul.f32 %v6907_v4, %v7551_v31 }
 0x161   : > { %v551_v8 = vadd.f32 %v5543_v60, %v536_v22  ;;  %v523_v9 = vmul.f32 %v6909_v5, %v7557_v38 }
 0x162   : > { %676 = vmatmul.mubr.f32.gmra.mxu0 %v550_v6  ;;  %6195 = vmatmul.mubr.f32.vlgmr.msra.gmra.mxu1 %v550_v6  ;;  %v537_v10 = vmul.f32 %v5542_v57, %v522_v7 }
 0x163   : > { %v6911_v30 = vpop.eup %6910  ;;  %6197 = vmatprep.mubr.f32.mxu1 %v551_v8  ;;  %681 = vmatprep.mubr.f32.mxu0 %v9917_v25  ;;  %v538_v23 = vmul.f32 %v5542_v57, %v523_v9 }
 0x164   : > { %v6913_v11 = vpop.eup %6912  ;;  %v552_v12 = vadd.f32 %v5543_v60, %v537_v10  ;;  %v524_v13 = vmul.f32 %v6911_v30, %v7559_v39 }
 0x165   : > { %v553_v14 = vadd.f32 %v5543_v60, %v538_v23  ;;  %v525_v15 = vmul.f32 %v6913_v11, %v7565_v46 }
 0x166   : > { %682 = vmatmul.mubr.f32.gmra.mxu0 %v551_v8  ;;  %6198 = vmatmul.mubr.f32.gmra.mxu1 %v552_v12  ;;  %v539_v31 = vmul.f32 %v5542_v57, %v524_v13 }
 0x167   : > { %v6915_v16 = vpop.eup %6914  ;;  %6200 = vmatprep.mubr.f32.mxu1 %v553_v14  ;;  %687 = vmatprep.mubr.f32.mxu0 %v9917_v25  ;;  %v540_v38 = vmul.f32 %v5542_v57, %v525_v15 }
 0x168   : > { %v554_v17 = vadd.f32 %v5543_v60, %v539_v31  ;;  %v526_v18 = vmul.f32 %v6915_v16, %v7567_v47 }
 0x169   : > { %v555_v19 = vadd.f32 %v5543_v60, %v540_v38 }
 0x16a   : > { %688 = vmatmul.mubr.f32.gmra.mxu0 %v552_v12  ;;  %6201 = vmatmul.mubr.f32.gmra.mxu1 %v554_v17  ;;  %v541_v20 = vmul.f32 %v5542_v57, %v526_v18 }
 0x16b   : > { %6203 = vmatprep.mubr.f32.mxu1 %v555_v19  ;;  %693 = vmatprep.mubr.f32.mxu0 %v9917_v25 }
 0x16c   : > { %v556_v39 = vadd.f32 %v5543_v60, %v541_v20 }
 0x16e   : > { %694 = vmatmul.mubr.f32.gmra.mxu0 %v553_v14  ;;  %6204 = vmatmul.mubr.f32.gmra.mxu1 %v556_v39 }
 0x16f   : > { %699 = vmatprep.mubr.f32.mxu0 %v9917_v25 }
 0x172   : > { %700 = vmatmul.mubr.f32.gmra.mxu0 %v554_v17 }
 0x173   : > { %705 = vmatprep.mubr.f32.mxu0 %v9917_v25 }
 0x176   : > { %706 = vmatmul.mubr.f32.gmra.mxu0 %v555_v19 }
 0x177   : > { %711 = vmatprep.mubr.f32.mxu0 %v9917_v25 }
 0x17a   : > { %712 = vmatmul.mubr.f32.gmra.mxu0 %v556_v39 }
 0x21e   : > { %v7709_v46 = vpop.f32.mrf.mxu0 }
 0x21f   : > { %6222 = vmatprep.mubr.msk.f32.mxu0 %vm823_vm0, %v7709_v46 }
 0x220   : > { %v7713_v47 = vpop.f32.mrf.mxu0 }
 0x222   : > { %v7715_v21 = vpop.f32.mrf.mxu0  ;;  %v7717_v24 = vpop.f32.mrf.mxu1 }
 0x224   : > { %v7719_v26 = vpop.f32.mrf.mxu0  ;;  %v7721_v27 = vpop.f32.mrf.mxu1 }
 0x225   : > { %1221 = vrot.lane.b32.xlu0 %v7719_v26, %s7356_s30 }
 0x226   : > { %v7725_v28 = vpop.f32.mrf.mxu0  ;;  %v7727_v29 = vpop.f32.mrf.mxu1 }
 0x228   : > { %v7729_v32 = vpop.f32.mrf.mxu0  ;;  %v7731_v33 = vpop.f32.mrf.mxu1 }
 0x229   : > { %1223 = vrot.lane.b32.xlu0 %v7729_v32, %s7356_s30 }
 0x22a   : > { %v7735_v34 = vpop.f32.mrf.mxu0  ;;  %v7737_v35 = vpop.f32.mrf.mxu1 }
 0x22c   : > { %v7739_v36 = vpop.f32.mrf.mxu0  ;;  %v7741_v37 = vpop.f32.mrf.mxu1 }
 0x22d   : > { %1225 = vrot.lane.b32.xlu0 %v7739_v36, %s7356_s30 }
 0x22e   : > { %v7745_v40 = vpop.f32.mrf.mxu0  ;;  %v7747_v41 = vpop.f32.mrf.mxu1 }
 0x22f   : > { %6234 = vmatprep.subr.mxu1 %v7747_v41 }
 0x230   : > { %v7750_v42 = vpop.f32.mrf.mxu0  ;;  %v7752_v43 = vpop.f32.mrf.mxu1  ;;  %6235 = vmatpush3.msra.mxu1 %v7747_v41 }
 0x231   : > { %1227 = vrot.lane.b32.xlu1 %v7750_v42, %s7356_s30  ;;  %6236 = vmatprep.subr.mxu1 %v7752_v43 }
 0x232   : > { %v7758_v44 = vpop.f32.mrf.mxu0  ;;  %6237 = vmatpush3.msra.mxu1 %v7752_v43 }
 0x233   : > { %6238 = vmatprep.subr.mxu1 %v7737_v35 }
 0x234   : > { %v7762_v45 = vpop.f32.mrf.mxu0  ;;  %6239 = vmatpush3.msra.mxu1 %v7737_v35 }
 0x235   : > { %1229 = vrot.lane.b32.xlu1 %v7762_v45, %s7356_s30  ;;  %6240 = vmatprep.subr.mxu1 %v7741_v37 }
 0x236   : > { %v7768_v48 = vpop.f32.mrf.mxu0  ;;  %6241 = vmatpush3.msra.mxu1 %v7741_v37 }
 0x237   : > { %6242 = vmatprep.subr.mxu1 %v7727_v29 }
 0x238   : > { %v7772_v49 = vpop.f32.mrf.mxu0  ;;  %6243 = vmatpush3.msra.mxu1 %v7727_v29 }
 0x239   : > { %9956 = vst [vmem:[#allocation10_spill] sm:$0xff] %v7772_v49  ;;  %1655 = vrot.lane.b32.xlu1 %v7762_v45, %s9945_s15  ;;  %6244 = vmatprep.subr.mxu1 %v7731_v33 }
 0x23a   : > { %v7778_v50 = vpop.f32.mrf.mxu0  ;;  %6245 = vmatpush3.msra.mxu1 %v7731_v33 }
 0x23b   : > { %6246 = vmatprep.subr.mxu1 %v7717_v24 }
 0x23c   : > { %v7782_v51 = vpop.f32.mrf.mxu0  ;;  %6247 = vmatpush3.msra.mxu1 %v7717_v24 }
 0x23d   : > { %9957 = vst [vmem:[#allocation11_spill] sm:$0xff] %v7782_v51  ;;  %6248 = vmatprep.subr.mxu1 %v7721_v27  ;;  %1231 = vrot.lane.b32.xlu1 %v7772_v49, %s7356_s30 }
 0x23e   : > { %1233 = vrot.lane.b32.xlu0 %v7782_v51, %s7356_s30  ;;  %6206 = vmatprep.subr.msk.mxu0 %vm823_vm0, %v7782_v51 }
 0x23f   : > { %6207 = vmatpush3.xpose.msk.msra.mxu0 %vm823_vm0, %v7782_v51  ;;  %6249 = vmatpush3.msra.mxu1 %v7721_v27 }
 0x240   : > { %6208 = vmatprep.subr.msk.mxu0 %vm823_vm0, %v7772_v49 }
 0x241   : > { %1657 = vrot.lane.b32.xlu1 %v7772_v49, %s9945_s15 }
 0x243   : > { %6209 = vmatpush3.xpose.msk.msra.mxu0 %vm823_vm0, %v7772_v49 }
 0x244   : > { %6210 = vmatprep.subr.msk.mxu0 %vm823_vm0, %v7762_v45 }
 0x245   : > { %1659 = vrot.lane.b32.xlu1 %v7782_v51, %s9945_s15 }
 0x247   : > { %6211 = vmatpush3.xpose.msk.msra.mxu0 %vm823_vm0, %v7762_v45 }
 0x248   : > { %6212 = vmatprep.subr.msk.mxu0 %vm823_vm0, %v7750_v42 }
 0x24b   : > { %6213 = vmatpush3.xpose.msk.msra.mxu0 %vm823_vm0, %v7750_v42 }
 0x24c   : > { %6214 = vmatprep.subr.msk.mxu0 %vm823_vm0, %v7739_v36 }
 0x24f   : > { %6215 = vmatpush3.xpose.msk.msra.mxu0 %vm823_vm0, %v7739_v36 }
 0x250   : > { %6216 = vmatprep.subr.msk.mxu0 %vm823_vm0, %v7729_v32 }
 0x253   : > { %6217 = vmatpush3.xpose.msk.msra.mxu0 %vm823_vm0, %v7729_v32 }
 0x254   : > { %6218 = vmatprep.subr.msk.mxu0 %vm823_vm0, %v7719_v26 }
 0x257   : > { %6219 = vmatpush3.xpose.msk.msra.mxu0 %vm823_vm0, %v7719_v26 }
 0x258   : > { %6220 = vmatprep.subr.msk.mxu0 %vm823_vm0, %v7713_v47 }
 0x25b   : > { %6221 = vmatpush3.xpose.msk.msra.mxu0 %vm823_vm0, %v7713_v47 }
 0x25e   : > { %6223 = vmatmul.mubr.msk.f32.vlgmr.msra.gmra.mxu0 %vm823_vm0, %v7715_v21 }
 0x25f   : > { %6225 = vmatprep.mubr.msk.f32.mxu0 %vm823_vm0, %v7725_v28 }
 0x262   : > { %6226 = vmatmul.mubr.msk.f32.gmra.mxu0 %vm823_vm0, %v7735_v34 }
 0x263   : > { %6228 = vmatprep.mubr.msk.f32.mxu0 %vm823_vm0, %v7745_v40 }
 0x266   : > { %6229 = vmatmul.mubr.msk.f32.gmra.mxu0 %vm823_vm0, %v7758_v44 }
 0x267   : > { %6231 = vmatprep.mubr.msk.f32.mxu0 %vm823_vm0, %v7768_v48 }
 0x26a   : > { %6232 = vmatmul.mubr.msk.f32.gmra.mxu0 %vm823_vm0, %v7778_v50 }
 0x297   : > { %v7841_v52 = vpop.permute.xlu0 %1221 }
 0x29b   : > { %v7845_v54 = vpop.permute.xlu0 %1223 }
 0x29f   : > { %v7849_v57 = vpop.permute.xlu0 %1225 }
 0x2a3   : > { %v7843_v53 = vpop.permute.xlu1 %1227 }
 0x2a7   : > { %v7847_v55 = vpop.permute.xlu1 %1229 }
 0x2ab   : > { %v1656_v56 = vpop.permute.xlu1 %1655 }
 0x2af   : > { %v7851_v58 = vpop.permute.xlu1 %1231 }
 0x2b0   : > { %v7853_v59 = vpop.permute.xlu0 %1233 }
 0x2b1   : > { %6262 = vmatprep.subr.msk.mxu1 %vm823_vm0, %v7853_v59 }
 0x2b3   : > { %v1658_v60 = vpop.permute.xlu1 %1657 }
 0x2b7   : > { %v1660_v61 = vpop.permute.xlu1 %1659 }
 0x2b8   : > { %6318 = vmatprep.subr.msk.mxu0 %vm823_vm0, %v1660_v61 }
 0x2b9   : > { %6319 = vmatpush3.xpose.msk.msra.mxu0 %vm823_vm0, %v1660_v61 }
 0x2ba   : > { %6320 = vmatprep.subr.msk.mxu0 %vm823_vm0, %v1658_v60 }
 0x2bd   : > { %6321 = vmatpush3.xpose.msk.msra.mxu0 %vm823_vm0, %v1658_v60 }
 0x2be   : > { %6322 = vmatprep.subr.msk.mxu0 %vm823_vm0, %v1656_v56 }
 0x2c1   : > { %6323 = vmatpush3.xpose.msk.msra.mxu0 %vm823_vm0, %v1656_v56 }
 0x31e   : > { %v6224_v62 = vpop.f32.mrf.mxu0 }
 0x31f   : > { %v978_v63 = vmul.f32 0.25, %v6224_v62 }
 0x320   : > { %v938_v0 = vpop.f32.mrf.mxu0 }
 0x321   : > { %v977_v1 = vmul.f32 0.25, %v938_v0  ;;  %v989_v2 = vsel %vm985_vm1, %v978_v63, -inf }
 0x322   : > { %990 = vmax.xlane.f32.xlu1 %v989_v2  ;;  %v6227_v3 = vpop.f32.mrf.mxu0 }
 0x323   : > { %v980_v4 = vmul.f32 0.25, %v6227_v3  ;;  %v986_v22 = vsel %vm985_vm1, %v977_v1, -inf }
 0x324   : > { %987 = vmax.xlane.f32.xlu0 %v986_v22  ;;  %v948_v5 = vpop.f32.mrf.mxu0 }
 0x325   : > { %v979_v6 = vmul.f32 0.25, %v948_v5  ;;  %v995_v7 = vsel %vm985_vm1, %v980_v4, -inf }
 0x326   : > { %996 = vmax.xlane.f32.xlu1 %v995_v7  ;;  %v6230_v8 = vpop.f32.mrf.mxu0 }
 0x327   : > { %v982_v9 = vmul.f32 0.25, %v6230_v8  ;;  %v992_v10 = vsel %vm985_vm1, %v979_v6, -inf }
 0x328   : > { %993 = vmax.xlane.f32.xlu0 %v992_v10  ;;  %v958_v30 = vpop.f32.mrf.mxu0 }
 0x329   : > { %v981_v23 = vmul.f32 0.25, %v958_v30  ;;  %v1001_v11 = vsel %vm985_vm1, %v982_v9, -inf }
 0x32a   : > { %1002 = vmax.xlane.f32.xlu1 %v1001_v11  ;;  %v6233_v12 = vpop.f32.mrf.mxu0 }
 0x32b   : > { %v984_v13 = vmul.f32 0.25, %v6233_v12  ;;  %v998_v14 = vsel %vm985_vm1, %v981_v23, -inf }
 0x32c   : > { %999 = vmax.xlane.f32.xlu0 %v998_v14  ;;  %v968_v15 = vpop.f32.mrf.mxu0 }
 0x32d   : > { %v983_v31 = vmul.f32 0.25, %v968_v15  ;;  %v1007_v16 = vsel %vm985_vm1, %v984_v13, -inf }
 0x32e   : > { %1008 = vmax.xlane.f32.xlu1 %v1007_v16 }
 0x32f   : > { %v1004_v38 = vsel %vm985_vm1, %v983_v31, -inf }
 0x330   : > { %1005 = vmax.xlane.f32.xlu0 %v1004_v38 }
 0x33f   : > { %1653 = vrot.lane.b32.xlu1 %v7750_v42, %s9945_s15 }
 0x346   : > { %1219 = vrot.lane.b32.xlu0 %v7713_v47, %s7356_s30 }
 0x3ab   : > { %v991_v17 = vpop.xlane.xlu1 %990 }
 0x3ac   : > { %v1011_v18 = vsub.f32 %v978_v63, %v991_v17 }
 0x3ad   : > { %v988_v19 = vpop.xlane.xlu0 %987 }
 0x3ae   : > { %v1020_v20 = vmul.f32 1.442695, %v1011_v18  ;;  %v1010_v39 = vsub.f32 %v977_v1, %v988_v19 }
 0x3af   : > { %v997_v56 = vpop.xlane.xlu1 %996 }
 0x3b0   : > { %6916 = vpow2.f32 %v1020_v20  ;;  %v1018_v60 = vmul.f32 1.442695, %v1010_v39  ;;  %v1013_v5 = vsub.f32 %v980_v4, %v997_v56 }
 0x3b1   : > { %v994_v22 = vpop.xlane.xlu0 %993 }
 0x3b2   : > { %6918 = vpow2.f32 %v1018_v60  ;;  %v1012_v8 = vsub.f32 %v979_v6, %v994_v22  ;;  %v1024_v10 = vmul.f32 1.442695, %v1013_v5 }
 0x3b3   : > { %v1003_v61 = vpop.xlane.xlu1 %1002 }
 0x3b4   : > { %v1015_v30 = vsub.f32 %v982_v9, %v1003_v61  ;;  %v1022_v11 = vmul.f32 1.442695, %v1012_v8  ;;  %6920 = vpow2.f32 %v1024_v10 }
 0x3b5   : > { %v1000_v7 = vpop.xlane.xlu0 %999 }
 0x3b6   : > { %v1014_v12 = vsub.f32 %v981_v23, %v1000_v7  ;;  %v1028_v15 = vmul.f32 1.442695, %v1015_v30  ;;  %6922 = vpow2.f32 %v1022_v11 }
 0x3b7   : > { %v1009_v62 = vpop.xlane.xlu1 %1008 }
 0x3b8   : > { %v1017_v16 = vsub.f32 %v984_v13, %v1009_v62  ;;  %v1026_v38 = vmul.f32 1.442695, %v1014_v12  ;;  %6924 = vpow2.f32 %v1028_v15 }
 0x3b9   : > { %v1006_v14 = vpop.xlane.xlu0 %1005 }
 0x3ba   : > { %v1016_v17 = vsub.f32 %v983_v31, %v1006_v14  ;;  %v1032_v18 = vmul.f32 1.442695, %v1017_v16  ;;  %6926 = vpow2.f32 %v1026_v38 }
 0x3bb   : > { %v1654_v0 = vpop.permute.xlu1 %1653 }
 0x3bc   : > { %6324 = vmatprep.subr.msk.mxu0 %vm823_vm0, %v1654_v0  ;;  %v1030_v19 = vmul.f32 1.442695, %v1016_v17  ;;  %6928 = vpow2.f32 %v1032_v18 }
 0x3bd   : > { %v7876_v2 = vpop.eup %6916  ;;  %6325 = vmatpush3.xpose.msk.msra.mxu0 %vm823_vm0, %v1654_v0  ;;  %v1220_v0 = vpop.permute.xlu0 %1219 }
 0x3be   : > { %v1037_v3 = vsel %vm985_vm1, %v7876_v2, 0.0  ;;  %6930 = vpow2.f32 %v1030_v19 }
 0x3bf   : > { %v7881_v63 = vpop.eup %6918  ;;  %1038 = vadd.xlane.f32.xlu1 %v1037_v3 }
 0x3c0   : > { %v1034_v1 = vsel %vm985_vm1, %v7881_v63, 0.0 }
 0x3c1   : > { %1035 = vadd.xlane.f32.xlu0 %v1034_v1  ;;  %v7889_v4 = vpop.eup %6920 }
 0x3c2   : > { %v1043_v9 = vsel %vm985_vm1, %v7889_v4, 0.0 }
 0x3c3   : > { %v7891_v6 = vpop.eup %6922 }
 0x3c4   : > { %v1040_v13 = vsel %vm985_vm1, %v7891_v6, 0.0 }
 0x3c5   : > { %v7895_v23 = vpop.eup %6924 }
 0x3c6   : > { %v1049_v20 = vsel %vm985_vm1, %v7895_v23, 0.0 }
 0x3c7   : > { %v7899_v31 = vpop.eup %6926 }
 0x3c8   : > { %v1046_v56 = vsel %vm985_vm1, %v7899_v31, 0.0 }
 0x3c9   : > { %v7903_v39 = vpop.eup %6928 }
 0x3ca   : > { %v1055_v61 = vsel %vm985_vm1, %v7903_v39, 0.0 }
 0x3cb   : > { %v7907_v60 = vpop.eup %6930 }
 0x3cc   : > { %v1052_v62 = vsel %vm985_vm1, %v7907_v60, 0.0 }
 0x3d0   : > { %1205 = vrot.lane.b32.xlu1 %v7715_v21, %s7356_s30 }
 0x3d7   : > { %1203 = vrot.lane.b32.xlu0 %v7709_v46, %s7356_s30 }
 0x3f4   : > { %1044 = vadd.xlane.f32.xlu1 %v1043_v9 }
 0x3f6   : > { %1041 = vadd.xlane.f32.xlu0 %v1040_v13 }
 0x3f8   : > { %1050 = vadd.xlane.f32.xlu1 %v1049_v20 }
 0x3fa   : > { %1047 = vadd.xlane.f32.xlu0 %v1046_v56 }
 0x3fc   : > { %1056 = vadd.xlane.f32.xlu1 %v1055_v61 }
 0x3fe   : > { %1053 = vadd.xlane.f32.xlu0 %v1052_v62 }
 0x40d   : > { %1207 = vrot.lane.b32.xlu1 %v7725_v28, %s7356_s30 }
 0x411   : > { %1649 = vrot.lane.b32.xlu1 %v7729_v32, %s9945_s15 }
 0x414   : > { %1651 = vrot.lane.b32.xlu0 %v7739_v36, %s9945_s15 }
 0x415   : > { %1213 = vrot.lane.b32.xlu1 %v7758_v44, %s7356_s30 }
 0x418   : > { %1209 = vrot.lane.b32.xlu0 %v7735_v34, %s7356_s30 }
 0x419   : > { %1215 = vrot.lane.b32.xlu1 %v7768_v48, %s7356_s30 }
 0x41c   : > { %1211 = vrot.lane.b32.xlu0 %v7745_v40, %s7356_s30 }
 0x41d   : > { %1645 = vrot.lane.b32.xlu1 %v7713_v47, %s9945_s15 }
 0x420   : > { %1647 = vrot.lane.b32.xlu0 %v7719_v26, %s9945_s15 }
 0x421   : > { %1631 = vrot.lane.b32.xlu1 %v7715_v21, %s9945_s15 }
 0x424   : > { %1217 = vrot.lane.b32.xlu0 %v7778_v50, %s7356_s30 }
 0x425   : > { %1635 = vrot.lane.b32.xlu1 %v7735_v34, %s9945_s15 }
 0x428   : > { %1629 = vrot.lane.b32.xlu0 %v7709_v46, %s9945_s15 }
 0x429   : > { %1639 = vrot.lane.b32.xlu1 %v7758_v44, %s9945_s15 }
 0x42c   : > { %1633 = vrot.lane.b32.xlu0 %v7725_v28, %s9945_s15 }
 0x42d   : > { %1643 = vrot.lane.b32.xlu1 %v7778_v50, %s9945_s15 }
 0x430   : > { %1637 = vrot.lane.b32.xlu0 %v7745_v40, %s9945_s15 }
 0x434   : > { %1641 = vrot.lane.b32.xlu0 %v7768_v48, %s9945_s15 }
 0x448   : > { %v1039_v3 = vpop.xlane.xlu1 %1038 }
 0x449   : > { %6932 = vrcp.f32 %v1039_v3 }
 0x44a   : > { %v1036_v1 = vpop.xlane.xlu0 %1035 }
 0x44b   : > { %6934 = vrcp.f32 %v1036_v1 }
 0x456   : > { %v6933_v22 = vpop.eup %6932 }
 0x457   : > { %v1067_v8 = vmul.f32 %v6933_v22, %v7876_v2 }
 0x458   : > { %v6935_v5 = vpop.eup %6934 }
 0x459   : > { %v1066_v7 = vmul.f32 %v6935_v5, %v7881_v63 }
 0x45b   : > { %6250 = vmatprep.mubr.msk.f32.mxu1 %vm985_vm1, %v1066_v7 }
 0x45c   : > { %6251 = vmatmul.mubr.msk.f32.vlgmr.msra.gmra.mxu1 %vm985_vm1, %v1067_v8 }
 0x45d   : > { %6263 = vmatpush3.xpose.msk.msra.mxu1 %vm823_vm0, %v7853_v59 }
 0x45e   : > { %6264 = vmatprep.subr.msk.mxu1 %vm823_vm0, %v7851_v58 }
 0x461   : > { %6265 = vmatpush3.xpose.msk.msra.mxu1 %vm823_vm0, %v7851_v58 }
 0x462   : > { %6266 = vmatprep.subr.msk.mxu1 %vm823_vm0, %v7847_v55 }
 0x465   : > { %6267 = vmatpush3.xpose.msk.msra.mxu1 %vm823_vm0, %v7847_v55  ;;  %v1204_v55 = vpop.permute.xlu0 %1203 }
 0x466   : > { %6268 = vmatprep.subr.msk.mxu1 %vm823_vm0, %v7843_v53 }
 0x469   : > { %6269 = vmatpush3.xpose.msk.msra.mxu1 %vm823_vm0, %v7843_v53  ;;  %v1206_v53 = vpop.permute.xlu1 %1205 }
 0x46a   : > { %6270 = vmatprep.subr.msk.mxu1 %vm823_vm0, %v7849_v57 }
 0x46d   : > { %6271 = vmatpush3.xpose.msk.msra.mxu1 %vm823_vm0, %v7849_v57 }
 0x46e   : > { %6272 = vmatprep.subr.msk.mxu1 %vm823_vm0, %v7845_v54 }
 0x471   : > { %6273 = vmatpush3.xpose.msk.msra.mxu1 %vm823_vm0, %v7845_v54 }
 0x472   : > { %6274 = vmatprep.subr.msk.mxu1 %vm823_vm0, %v7841_v52 }
 0x475   : > { %6275 = vmatpush3.xpose.msk.msra.mxu1 %vm823_vm0, %v7841_v52 }
 0x476   : > { %6276 = vmatprep.subr.msk.mxu1 %vm823_vm0, %v1220_v0 }
 0x479   : > { %6277 = vmatpush3.xpose.msk.msra.mxu1 %vm823_vm0, %v1220_v0 }
 0x47d   : > { %v1045_v58 = vpop.xlane.xlu1 %1044 }
 0x47e   : > { %6936 = vrcp.f32 %v1045_v58 }
 0x47f   : > { %v1042_v57 = vpop.xlane.xlu0 %1041 }
 0x480   : > { %6938 = vrcp.f32 %v1042_v57 }
 0x481   : > { %v1051_v59 = vpop.xlane.xlu1 %1050 }
 0x482   : > { %6940 = vrcp.f32 %v1051_v59 }
 0x483   : > { %v1048_v2 = vpop.xlane.xlu0 %1047 }
 0x484   : > { %6942 = vrcp.f32 %v1048_v2 }
 0x485   : > { %v1057_v54 = vpop.xlane.xlu1 %1056 }
 0x486   : > { %6944 = vrcp.f32 %v1057_v54 }
 0x487   : > { %v1054_v63 = vpop.xlane.xlu0 %1053 }
 0x488   : > { %6946 = vrcp.f32 %v1054_v63 }
 0x489   : > { %v1208_v10 = vpop.permute.xlu1 %1207 }
 0x48b   : > { %v1652_v52 = vpop.permute.xlu0 %1651  ;;  %v6937_v30 = vpop.eup %6936 }
 0x48c   : > { %6326 = vmatprep.subr.msk.mxu0 %vm823_vm0, %v1652_v52  ;;  %v1069_v16 = vmul.f32 %v6937_v30, %v7889_v4 }
 0x48d   : > { %v6939_v11 = vpop.eup %6938  ;;  %v1650_v12 = vpop.permute.xlu1 %1649  ;;  %6327 = vmatpush3.xpose.msk.msra.mxu0 %vm823_vm0, %v1652_v52 }
 0x48e   : > { %6328 = vmatprep.subr.msk.mxu0 %vm823_vm0, %v1650_v12  ;;  %v1068_v14 = vmul.f32 %v6939_v11, %v7891_v6 }
 0x48f   : > { %v1210_v15 = vpop.permute.xlu0 %1209  ;;  %v6941_v38 = vpop.eup %6940 }
 0x490   : > { %6253 = vmatprep.mubr.msk.f32.mxu1 %vm985_vm1, %v1068_v14  ;;  %v1071_v13 = vmul.f32 %v6941_v38, %v7895_v23 }
 0x491   : > { %v6943_v17 = vpop.eup %6942  ;;  %v1214_v18 = vpop.permute.xlu1 %1213  ;;  %6254 = vmatmul.mubr.msk.f32.gmra.mxu1 %vm985_vm1, %v1069_v16  ;;  %6329 = vmatpush3.xpose.msk.msra.mxu0 %vm823_vm0, %v1650_v12 }
 0x492   : > { %v1070_v19 = vmul.f32 %v6943_v17, %v7899_v31 }
 0x493   : > { %v1212_v9 = vpop.permute.xlu0 %1211  ;;  %v6945_v20 = vpop.eup %6944 }
 0x494   : > { %6256 = vmatprep.mubr.msk.f32.mxu1 %vm985_vm1, %v1070_v19  ;;  %v1073_v62 = vmul.f32 %v6945_v20, %v7903_v39 }
 0x495   : > { %v6947_v6 = vpop.eup %6946  ;;  %v1216_v56 = vpop.permute.xlu1 %1215  ;;  %6257 = vmatmul.mubr.msk.f32.gmra.mxu1 %vm985_vm1, %v1071_v13 }
 0x496   : > { %v1072_v4 = vmul.f32 %v6947_v6, %v7907_v60 }
 0x497   : > { %v1648_v61 = vpop.permute.xlu0 %1647 }
 0x498   : > { %6259 = vmatprep.mubr.msk.f32.mxu1 %vm985_vm1, %v1072_v4  ;;  %6330 = vmatprep.subr.msk.mxu0 %vm823_vm0, %v1648_v61 }
 0x499   : > { %v1646_v31 = vpop.permute.xlu1 %1645  ;;  %6260 = vmatmul.mubr.msk.f32.gmra.mxu1 %vm985_vm1, %v1073_v62  ;;  %6331 = vmatpush3.xpose.msk.msra.mxu0 %vm823_vm0, %v1648_v61 }
 0x49a   : > { %6278 = vmatprep.mubr.msk.f32.mxu1 %vm823_vm0, %v1204_v55  ;;  %6332 = vmatprep.subr.msk.mxu0 %vm823_vm0, %v1646_v31 }
 0x49b   : > { %v1218_v23 = vpop.permute.xlu0 %1217 }
 0x49d   : > { %v1632_v0 = vpop.permute.xlu1 %1631  ;;  %6279 = vmatmul.mubr.msk.f32.vlgmr.msra.gmra.mxu1 %vm823_vm0, %v1206_v53  ;;  %6333 = vmatpush3.xpose.msk.msra.mxu0 %vm823_vm0, %v1646_v31 }
 0x49e   : > { %6281 = vmatprep.mubr.msk.f32.mxu1 %vm823_vm0, %v1208_v10 }
 0x49f   : > { %v1630_v39 = vpop.permute.xlu0 %1629 }
 0x4a0   : > { %6334 = vmatprep.mubr.msk.f32.mxu0 %vm823_vm0, %v1630_v39 }
 0x4a1   : > { %v1636_v60 = vpop.permute.xlu1 %1635  ;;  %6282 = vmatmul.mubr.msk.f32.gmra.mxu1 %vm823_vm0, %v1210_v15  ;;  %6335 = vmatmul.mubr.msk.f32.vlgmr.msra.gmra.mxu0 %vm823_vm0, %v1632_v0 }
 0x4a2   : > { %6284 = vmatprep.mubr.msk.f32.mxu1 %vm823_vm0, %v1212_v9 }
 0x4a3   : > { %v1634_v3 = vpop.permute.xlu0 %1633 }
 0x4a4   : > { %6337 = vmatprep.mubr.msk.f32.mxu0 %vm823_vm0, %v1634_v3 }
 0x4a5   : > { %6285 = vmatmul.mubr.msk.f32.gmra.mxu1 %vm823_vm0, %v1214_v18  ;;  %6338 = vmatmul.mubr.msk.f32.gmra.mxu0 %vm823_vm0, %v1636_v60  ;;  %v1640_v1 = vpop.permute.xlu1 %1639 }
 0x4a6   : > { %6287 = vmatprep.mubr.msk.f32.mxu1 %vm823_vm0, %v1216_v56 }
 0x4a7   : > { %v1638_v22 = vpop.permute.xlu0 %1637 }
 0x4a8   : > { %6340 = vmatprep.mubr.msk.f32.mxu0 %vm823_vm0, %v1638_v22 }
 0x4a9   : > { %6288 = vmatmul.mubr.msk.f32.gmra.mxu1 %vm823_vm0, %v1218_v23  ;;  %6341 = vmatmul.mubr.msk.f32.gmra.mxu0 %vm823_vm0, %v1640_v1  ;;  %v1644_v7 = vpop.permute.xlu1 %1643 }
 0x4ab   : > { %v1642_v5 = vpop.permute.xlu0 %1641 }
 0x4ac   : > { %6343 = vmatprep.mubr.msk.f32.mxu0 %vm823_vm0, %v1642_v5 }
 0x4ad   : > { %6344 = vmatmul.mubr.msk.f32.gmra.mxu0 %vm823_vm0, %v1644_v7 }
 0x51c   : > { %v8061_v6 = vpop.f32.mrf.mxu1 }
 0x51d   : > { %9958 = vst [vmem:[#allocation12_spill] sm:$0xff] %v8061_v6 }
 0x51e   : > { %v8063_v56 = vpop.f32.mrf.mxu1 }
 0x51f   : > { %9959 = vst [vmem:[#allocation13_spill] sm:$0xff] %v8063_v56 }
 0x551   : > { %v8065_v4 = vpop.f32.mrf.mxu1 }
 0x552   : > { %9960 = vst [vmem:[#allocation14_spill] sm:$0xff] %v8065_v4 }
 0x553   : > { %v8067_v61 = vpop.f32.mrf.mxu1 }
 0x554   : > { %9961 = vst [vmem:[#allocation15_spill] sm:$0xff] %v8067_v61 }
 0x555   : > { %v8069_v62 = vpop.f32.mrf.mxu1 }
 0x556   : > { %9962 = vst [vmem:[#allocation16_spill] sm:$0xff] %v8069_v62 }
 0x557   : > { %v8071_v31 = vpop.f32.mrf.mxu1 }
 0x558   : > { %9963 = vst [vmem:[#allocation17_spill] sm:$0xff] %v8071_v31 }
 0x559   : > { %v8073_v23 = vpop.f32.mrf.mxu1 }
 0x55a   : > { %9964 = vst [vmem:[#allocation18_spill] sm:$0xff] %v8073_v23 }
 0x55b   : > { %v8075_v60 = vpop.f32.mrf.mxu1 }
 0x55c   : > { %9965 = vst [vmem:[#allocation19_spill] sm:$0xff] %v8075_v60 }
 0x561   : > { %v6336_v8 = vpop.f32.mrf.mxu0 }
 0x562   : > { %v1799_v53 = vmul.f32 0.25, %v6336_v8 }
 0x563   : > { %v1759_v55 = vpop.f32.mrf.mxu0 }
 0x564   : > { %v1798_v58 = vmul.f32 0.25, %v1759_v55  ;;  %v1809_v57 = vsel %vm985_vm1, %v1799_v53, -inf  ;;  %v6280_v55 = vpop.f32.mrf.mxu1 }
 0x565   : > { %1810 = vmax.xlane.f32.xlu1 %v1809_v57  ;;  %v6339_v59 = vpop.f32.mrf.mxu0 }
 0x566   : > { %v1801_v2 = vmul.f32 0.25, %v6339_v59  ;;  %v1806_v54 = vsel %vm985_vm1, %v1798_v58, -inf }
 0x567   : > { %1807 = vmax.xlane.f32.xlu0 %v1806_v54  ;;  %v1769_v63 = vpop.f32.mrf.mxu0 }
 0x568   : > { %v1800_v10 = vmul.f32 0.25, %v1769_v63  ;;  %v1815_v52 = vsel %vm985_vm1, %v1801_v2, -inf }
 0x569   : > { %1816 = vmax.xlane.f32.xlu1 %v1815_v52  ;;  %v6342_v30 = vpop.f32.mrf.mxu0 }
 0x56a   : > { %v8020_v11 = vmul.f32 0.25, %v6342_v30  ;;  %v1812_v12 = vsel %vm985_vm1, %v1800_v10, -inf  ;;  %v1333_v30 = vpop.f32.mrf.mxu1 }
 0x56b   : > { %1813 = vmax.xlane.f32.xlu0 %v1812_v12  ;;  %v1779_v14 = vpop.f32.mrf.mxu0 }
 0x56c   : > { %v8023_v15 = vmul.f32 0.25, %v1779_v14  ;;  %v1821_v16 = vsel %vm985_vm1, %v8020_v11, -inf }
 0x56d   : > { %1822 = vmax.xlane.f32.xlu1 %v1821_v16  ;;  %v6345_v38 = vpop.f32.mrf.mxu0 }
 0x56e   : > { %v8027_v17 = vmul.f32 0.25, %v6345_v38  ;;  %v1818_v18 = vsel %vm985_vm1, %v8023_v15, -inf }
 0x56f   : > { %1819 = vmax.xlane.f32.xlu0 %v1818_v18  ;;  %v1789_v19 = vpop.f32.mrf.mxu0 }
 0x570   : > { %v8031_v9 = vmul.f32 0.25, %v1789_v19  ;;  %v1827_v13 = vsel %vm985_vm1, %v8027_v17, -inf }
 0x571   : > { %1828 = vmax.xlane.f32.xlu1 %v1827_v13 }
 0x572   : > { %v1824_v20 = vsel %vm985_vm1, %v8031_v9, -inf }
 0x573   : > { %1825 = vmax.xlane.f32.xlu0 %v1824_v20 }
 0x582   : > { %1490 = vrot.lane.b32.xlu1 %v7747_v41, %s7356_s30 }
 0x586   : > { %1486 = vrot.lane.b32.xlu1 %v7737_v35, %s7356_s30 }
 0x589   : > { %1488 = vrot.lane.b32.xlu0 %v7752_v43, %s7356_s30 }
 0x58a   : > { %1484 = vrot.lane.b32.xlu1 %v7741_v37, %s7356_s30 }
 0x58d   : > { %1482 = vrot.lane.b32.xlu0 %v7727_v29, %s7356_s30 }
 0x58e   : > { %1480 = vrot.lane.b32.xlu1 %v7731_v33, %s7356_s30 }
 0x591   : > { %1908 = vrot.lane.b32.xlu0 %v7747_v41, %s9945_s15 }
 0x592   : > { %1478 = vrot.lane.b32.xlu1 %v7717_v24, %s7356_s30 }
 0x595   : > { %1904 = vrot.lane.b32.xlu0 %v7737_v35, %s9945_s15 }
 0x596   : > { %1476 = vrot.lane.b32.xlu1 %v7721_v27, %s7356_s30 }
 0x59a   : > { %1906 = vrot.lane.b32.xlu1 %v7752_v43, %s9945_s15 }
 0x59e   : > { %1902 = vrot.lane.b32.xlu1 %v7741_v37, %s9945_s15 }
 0x5ee   : > { %v1811_v0 = vpop.xlane.xlu1 %1810 }
 0x5ef   : > { %v1831_v39 = vsub.f32 %v1799_v53, %v1811_v0 }
 0x5f0   : > { %v1808_v3 = vpop.xlane.xlu0 %1807 }
 0x5f1   : > { %v1840_v1 = vmul.f32 1.442695, %v1831_v39  ;;  %v1830_v22 = vsub.f32 %v1798_v58, %v1808_v3  ;;  %v6283_v58 = vpop.f32.mrf.mxu1 }
 0x5f2   : > { %v1817_v5 = vpop.xlane.xlu1 %1816 }
 0x5f3   : > { %6948 = vpow2.f32 %v1840_v1  ;;  %v1838_v7 = vmul.f32 1.442695, %v1830_v22  ;;  %v1833_v8 = vsub.f32 %v1801_v2, %v1817_v5  ;;  %v1343_v38 = vpop.f32.mrf.mxu1  ;;  %v8097_v22 = vmul.f32 0.25, %v6280_v55 }
 0x5f4   : > { %v1814_v57 = vpop.xlane.xlu0 %1813 }
 0x5f5   : > { %6950 = vpow2.f32 %v1838_v7  ;;  %v1844_v59 = vmul.f32 1.442695, %v1833_v8  ;;  %v1832_v54 = vsub.f32 %v1800_v10, %v1814_v57  ;;  %v6286_v39 = vpop.f32.mrf.mxu1  ;;  %v8103_v8 = vmul.f32 0.25, %v1333_v30 }
 0x5f6   : > { %v8077_v63 = vpop.xlane.xlu1 %1822  ;;  %v1383_v55 = vsel %vm985_vm1, %v8097_v22, -inf }
 0x5f7   : > { %6952 = vpow2.f32 %v1844_v59  ;;  %v1842_v52 = vmul.f32 1.442695, %v1832_v54  ;;  %v1353_v57 = vpop.f32.mrf.mxu1  ;;  %v1380_v30 = vsel %vm985_vm1, %v8103_v8, -inf }
 0x5f8   : > { %v8079_v53 = vpop.xlane.xlu0 %1819 }
 0x5f9   : > { %6954 = vpow2.f32 %v1842_v52  ;;  %v8105_v52 = vmul.f32 0.25, %v6286_v39  ;;  %v8117_v39 = vmul.f32 0.25, %v1343_v38 }
 0x5fa   : > { %v8081_v12 = vpop.xlane.xlu1 %1828 }
 0x5fb   : > { %v1386_v38 = vsel %vm985_vm1, %v8117_v39, -inf  ;;  %v1837_v61 = vsub.f32 %v8027_v17, %v8081_v12 }
 0x5fc   : > { %v8083_v14 = vpop.xlane.xlu0 %1825 }
 0x5fe   : > { %v1491_v16 = vpop.permute.xlu1 %1490 }
 0x5ff   : > { %6290 = vmatprep.subr.mxu1 %v1491_v16 }
 0x600   : > { %v8085_v2 = vpop.eup %6948  ;;  %6291 = vmatpush3.msra.mxu1 %v1491_v16  ;;  %v1489_v10 = vpop.permute.xlu0 %1488  ;;  %v8109_v16 = vmul.f32 0.25, %v6283_v58 }
 0x601   : > { %6292 = vmatprep.subr.mxu1 %v1489_v10  ;;  %v1857_v18 = vsel %vm985_vm1, %v8085_v2, 0.0 }
 0x602   : > { %v8089_v19 = vpop.eup %6950  ;;  %v1487_v13 = vpop.permute.xlu1 %1486  ;;  %1858 = vadd.xlane.f32.xlu0 %v1857_v18  ;;  %6293 = vmatpush3.msra.mxu1 %v1489_v10  ;;  %v1389_v58 = vsel %vm985_vm1, %v8109_v16, -inf }
 0x603   : > { %6294 = vmatprep.subr.mxu1 %v1487_v13  ;;  %v1854_v20 = vsel %vm985_vm1, %v8089_v19, 0.0  ;;  %v6289_v10 = vpop.f32.mrf.mxu1 }
 0x604   : > { %v8093_v0 = vpop.eup %6952  ;;  %1855 = vadd.xlane.f32.xlu1 %v1854_v20  ;;  %6295 = vmatpush3.msra.mxu1 %v1487_v13  ;;  %v1483_v59 = vpop.permute.xlu0 %1482  ;;  %v8113_v13 = vmul.f32 0.25, %v6289_v10  ;;  %v1395_v20 = vsel %vm985_vm1, %v8105_v52, -inf }
 0x605   : > { %v1863_v5 = vsel %vm985_vm1, %v8093_v0, 0.0 }
 0x606   : > { %v8095_v3 = vpop.eup %6954  ;;  %v1485_v1 = vpop.permute.xlu1 %1484 }
 0x607   : > { %6296 = vmatprep.subr.mxu1 %v1485_v1  ;;  %v1860_v7 = vsel %vm985_vm1, %v8095_v3, 0.0 }
 0x608   : > { %1864 = vadd.xlane.f32.xlu1 %v1863_v5  ;;  %1861 = vadd.xlane.f32.xlu0 %v1860_v7  ;;  %v1401_v5 = vsel %vm985_vm1, %v8113_v13, -inf  ;;  %v8123_v7 = vmul.f32 0.25, %v1353_v57 }
 0x609   : > { %6297 = vmatpush3.msra.mxu1 %v1485_v1 }
 0x60a   : > { %6298 = vmatprep.subr.mxu1 %v1483_v59  ;;  %v1481_v54 = vpop.permute.xlu1 %1480  ;;  %v1392_v10 = vsel %vm985_vm1, %v8123_v7, -inf }
 0x60b   : > { %6299 = vmatpush3.msra.mxu1 %v1483_v59  ;;  %v8125_v59 = vpop.permute.xlu0 %1908 }
 0x60c   : > { %6300 = vmatprep.subr.mxu1 %v1481_v54  ;;  %1384 = vmax.xlane.f32.xlu1 %v1383_v55 }
 0x60d   : > { %1381 = vmax.xlane.f32.xlu0 %v1380_v30  ;;  %6301 = vmatpush3.msra.mxu1 %v1481_v54  ;;  %v1363_v54 = vpop.f32.mrf.mxu1  ;;  %v1835_v30 = vsub.f32 %v8020_v11, %v8077_v63 }
 0x60e   : > { %v1479_v18 = vpop.permute.xlu1 %1478  ;;  %v8130_v55 = vmul.f32 0.25, %v1363_v54 }
 0x60f   : > { %6302 = vmatprep.subr.mxu1 %v1479_v18  ;;  %v8158_v63 = vpop.permute.xlu0 %1904 }
 0x610   : > { %1396 = vmax.xlane.f32.xlu1 %v1395_v20  ;;  %6303 = vmatpush3.msra.mxu1 %v1479_v18  ;;  %v1398_v57 = vsel %vm985_vm1, %v8130_v55, -inf  ;;  %v1848_v18 = vmul.f32 1.442695, %v1835_v30  ;;  %v1834_v20 = vsub.f32 %v8023_v15, %v8079_v53 }
 0x611   : > { %1390 = vmax.xlane.f32.xlu0 %v1389_v58 }
 0x612   : > { %v1477_v1 = vpop.permute.xlu1 %1476  ;;  %6956 = vpow2.f32 %v1848_v18  ;;  %v1846_v58 = vmul.f32 1.442695, %v1834_v20 }
 0x613   : > { %6304 = vmatprep.subr.mxu1 %v1477_v1 }
 0x614   : > { %1402 = vmax.xlane.f32.xlu1 %v1401_v5  ;;  %6305 = vmatpush3.msra.mxu1 %v1477_v1  ;;  %6958 = vpow2.f32 %v1846_v58 }
 0x615   : > { %1387 = vmax.xlane.f32.xlu0 %v1386_v38  ;;  %6346 = vmatprep.subr.mxu1 %v8125_v59 }
 0x616   : > { %v8156_v15 = vpop.permute.xlu1 %1906 }
 0x619   : > { %1393 = vmax.xlane.f32.xlu0 %v1392_v10 }
 0x61a   : > { %v8160_v53 = vpop.permute.xlu1 %1902 }
 0x61d   : > { %1399 = vmax.xlane.f32.xlu0 %v1398_v57 }
 0x61f   : > { %v8144_v1 = vpop.eup %6956 }
 0x620   : > { %v1869_v5 = vsel %vm985_vm1, %v8144_v1, 0.0 }
 0x621   : > { %v8148_v38 = vpop.eup %6958 }
 0x622   : > { %v1866_v11 = vsel %vm985_vm1, %v8148_v38, 0.0 }
 0x625   : > { %1898 = vrot.lane.b32.xlu1 %v7731_v33, %s9945_s15 }
 0x633   : > { %1900 = vrot.lane.b32.xlu0 %v7727_v29, %s9945_s15 }
 0x649   : > { %1870 = vadd.xlane.f32.xlu1 %v1869_v5 }
 0x652   : > { %1867 = vadd.xlane.f32.xlu0 %v1866_v11 }
 0x65a   : > { %1894 = vrot.lane.b32.xlu1 %v7721_v27, %s9945_s15 }
 0x668   : > { %1896 = vrot.lane.b32.xlu0 %v7717_v24, %s9945_s15 }
 0x68b   : > { %v8162_v54 = vpop.xlane.xlu0 %1858 }
 0x68d   : > { %v8164_v10 = vpop.xlane.xlu1 %1855 }
 0x691   : > { %v8166_v57 = vpop.xlane.xlu1 %1864  ;;  %v8168_v30 = vpop.xlane.xlu0 %1861 }
 0x695   : > { %v1385_v18 = vpop.xlane.xlu1 %1384 }
 0x696   : > { %v1405_v20 = vsub.f32 %v8097_v22, %v1385_v18  ;;  %v1382_v58 = vpop.xlane.xlu0 %1381  ;;  %v1852_v18 = vmul.f32 1.442695, %v1837_v61 }
 0x697   : > { %v1404_v5 = vsub.f32 %v8103_v8, %v1382_v58 }
 0x698   : > { %v1414_v11 = vmul.f32 1.442695, %v1405_v20 }
 0x699   : > { %v1412_v25 = vmul.f32 1.442695, %v1404_v5  ;;  %v1397_v60 = vpop.xlane.xlu1 %1396 }
 0x69a   : > { %6960 = vpow2.f32 %v1414_v11  ;;  %v1409_v23 = vsub.f32 %v8105_v52, %v1397_v60  ;;  %v1391_v31 = vpop.xlane.xlu0 %1390 }
 0x69b   : > { %6962 = vpow2.f32 %v1412_v25  ;;  %v1407_v62 = vsub.f32 %v8109_v16, %v1391_v31 }
 0x69c   : > { %v1422_v4 = vmul.f32 1.442695, %v1409_v23 }
 0x69d   : > { %v1418_v6 = vmul.f32 1.442695, %v1407_v62  ;;  %v1403_v56 = vpop.xlane.xlu1 %1402 }
 0x69e   : > { %v1388_v22 = vpop.xlane.xlu0 %1387  ;;  %v1411_v20 = vsub.f32 %v8113_v13, %v1403_v56  ;;  %v1836_v56 = vsub.f32 %v8031_v9, %v8083_v14 }
 0x69f   : > { %6964 = vpow2.f32 %v1418_v6  ;;  %v1406_v8 = vsub.f32 %v8117_v39, %v1388_v22 }
 0x6a0   : > { %6966 = vpow2.f32 %v1422_v4  ;;  %v1426_v31 = vmul.f32 1.442695, %v1411_v20  ;;  %v1850_v13 = vmul.f32 1.442695, %v1836_v56 }
 0x6a1   : > { %v1416_v58 = vmul.f32 1.442695, %v1406_v8 }
 0x6a2   : > { %v1394_v60 = vpop.xlane.xlu0 %1393 }
 0x6a3   : > { %6968 = vpow2.f32 %v1416_v58  ;;  %v1408_v25 = vsub.f32 %v8123_v7, %v1394_v60 }
 0x6a4   : > { %6970 = vpow2.f32 %v1852_v18 }
 0x6a5   : > { %v1420_v52 = vmul.f32 1.442695, %v1408_v25 }
 0x6a6   : > { %v1400_v17 = vpop.xlane.xlu0 %1399 }
 0x6a7   : > { %v8179_v23 = vpop.eup %6960  ;;  %6972 = vpow2.f32 %v1420_v52  ;;  %v1410_v6 = vsub.f32 %v8130_v55, %v1400_v17  ;;  %v1899_v52 = vpop.permute.xlu1 %1898 }
 0x6a8   : > { %v8182_v62 = vpop.eup %6962  ;;  %v1431_v4 = vsel %vm985_vm1, %v8179_v23, 0.0  ;;  %6974 = vpow2.f32 %v1426_v31 }
 0x6a9   : > { %v1424_v61 = vmul.f32 1.442695, %v1410_v6  ;;  %1432 = vadd.xlane.f32.xlu1 %v1431_v4  ;;  %v1428_v12 = vsel %vm985_vm1, %v8182_v62, 0.0 }
 0x6aa   : > { %1429 = vadd.xlane.f32.xlu0 %v1428_v12  ;;  %v1901_v17 = vpop.permute.xlu0 %1900 }
 0x6ab   : > { %6976 = vpow2.f32 %v1424_v61 }
 0x6ac   : > { %v8190_v16 = vpop.eup %6964  ;;  %6978 = vpow2.f32 %v1850_v13 }
 0x6ad   : > { %v1437_v39 = vsel %vm985_vm1, %v8190_v16, 0.0  ;;  %v8194_v7 = vpop.eup %6966 }
 0x6ae   : > { %1438 = vadd.xlane.f32.xlu1 %v1437_v39  ;;  %v1443_v9 = vsel %vm985_vm1, %v8194_v7, 0.0 }
 0x6b0   : > { %v8196_v55 = vpop.eup %6968 }
 0x6b1   : > { %v1434_v14 = vsel %vm985_vm1, %v8196_v55, 0.0  ;;  %v8202_v5 = vpop.eup %6970 }
 0x6b2   : > { %1444 = vadd.xlane.f32.xlu1 %v1443_v9  ;;  %1435 = vadd.xlane.f32.xlu0 %v1434_v14  ;;  %v1875_v22 = vsel %vm985_vm1, %v8202_v5, 0.0 }
 0x6b4   : > { %v8204_v11 = vpop.eup %6972 }
 0x6b5   : > { %v1440_v8 = vsel %vm985_vm1, %v8204_v11, 0.0  ;;  %v8210_v18 = vpop.eup %6974 }
 0x6b6   : > { %1876 = vadd.xlane.f32.xlu1 %v1875_v22  ;;  %1441 = vadd.xlane.f32.xlu0 %v1440_v8  ;;  %v1449_v20 = vsel %vm985_vm1, %v8210_v18, 0.0 }
 0x6b8   : > { %v8214_v58 = vpop.eup %6976 }
 0x6b9   : > { %v1446_v60 = vsel %vm985_vm1, %v8214_v58, 0.0  ;;  %v8218_v25 = vpop.eup %6978 }
 0x6ba   : > { %1450 = vadd.xlane.f32.xlu0 %v1449_v20  ;;  %v1872_v31 = vsel %vm985_vm1, %v8218_v25, 0.0 }
 0x6be   : > { %1447 = vadd.xlane.f32.xlu0 %v1446_v60 }
 0x6c2   : > { %1873 = vadd.xlane.f32.xlu0 %v1872_v31 }
 0x6c7   : > { %2075 = vrot.lane.b32.xlu1 %v7772_v49, %s9949_s17 }
 0x6cb   : > { %2071 = vrot.lane.b32.xlu1 %v7750_v42, %s9949_s17 }
 0x6cf   : > { %2067 = vrot.lane.b32.xlu1 %v7729_v32, %s9949_s17 }
 0x6d2   : > { %v1871_v6 = vpop.xlane.xlu1 %1870 }
 0x6d3   : > { %2063 = vrot.lane.b32.xlu1 %v7713_v47, %s9949_s17 }
 0x6d6   : > { %v8274_v56 = vpop.permute.xlu1 %1894 }
 0x6d7   : > { %2049 = vrot.lane.b32.xlu1 %v7715_v21, %s9949_s17 }
 0x6d8   : > { %2077 = vrot.lane.b32.xlu0 %v7782_v51, %s9949_s17 }
 0x6db   : > { %2053 = vrot.lane.b32.xlu1 %v7735_v34, %s9949_s17  ;;  %v1868_v4 = vpop.xlane.xlu0 %1867 }
 0x6dc   : > { %2073 = vrot.lane.b32.xlu0 %v7762_v45, %s9949_s17 }
 0x6df   : > { %2057 = vrot.lane.b32.xlu1 %v7758_v44, %s9949_s17  ;;  %v1897_v61 = vpop.permute.xlu0 %1896 }
 0x6e0   : > { %2069 = vrot.lane.b32.xlu0 %v7739_v36, %s9949_s17 }
 0x6e3   : > { %2061 = vrot.lane.b32.xlu1 %v7778_v50, %s9949_s17 }
 0x6e4   : > { %2065 = vrot.lane.b32.xlu0 %v7719_v26, %s9949_s17 }
 0x6e7   : > { %2324 = vrot.lane.b32.xlu1 %v7752_v43, %s9949_s17 }
 0x6e8   : > { %2047 = vrot.lane.b32.xlu0 %v7709_v46, %s9949_s17 }
 0x6eb   : > { %2322 = vrot.lane.b32.xlu1 %v7737_v35, %s9949_s17 }
 0x6ec   : > { %2051 = vrot.lane.b32.xlu0 %v7725_v28, %s9949_s17 }
 0x6ef   : > { %2320 = vrot.lane.b32.xlu1 %v7741_v37, %s9949_s17 }
 0x6f0   : > { %2055 = vrot.lane.b32.xlu0 %v7745_v40, %s9949_s17 }
 0x6f3   : > { %2316 = vrot.lane.b32.xlu1 %v7731_v33, %s9949_s17 }
 0x6f4   : > { %2059 = vrot.lane.b32.xlu0 %v7768_v48, %s9949_s17 }
 0x6f7   : > { %2312 = vrot.lane.b32.xlu1 %v7721_v27, %s9949_s17 }
 0x6f8   : > { %2326 = vrot.lane.b32.xlu0 %v7747_v41, %s9949_s17 }
 0x6fb   : > { %2493 = vrot.lane.b32.xlu1 %v7772_v49, %s9946_s19 }
 0x6fc   : > { %2318 = vrot.lane.b32.xlu0 %v7727_v29, %s9949_s17 }
 0x700   : > { %2314 = vrot.lane.b32.xlu0 %v7717_v24, %s9949_s17 }
 0x704   : > { %2495 = vrot.lane.b32.xlu0 %v7782_v51, %s9946_s19 }
 0x732   : > { %v1433_v12 = vpop.xlane.xlu1 %1432 }
 0x733   : > { %6980 = vrcp.f32 %v1433_v12  ;;  %v1430_v13 = vpop.xlane.xlu0 %1429 }
 0x734   : > { %6982 = vrcp.f32 %v1430_v13 }
 0x737   : > { %v1439_v39 = vpop.xlane.xlu1 %1438 }
 0x738   : > { %6984 = vrcp.f32 %v1439_v39 }
 0x73b   : > { %v1445_v9 = vpop.xlane.xlu1 %1444  ;;  %v1436_v14 = vpop.xlane.xlu0 %1435 }
 0x73c   : > { %6986 = vrcp.f32 %v1436_v14 }
 0x73d   : > { %6988 = vrcp.f32 %v1445_v9 }
 0x73f   : > { %v1877_v22 = vpop.xlane.xlu1 %1876  ;;  %v1442_v8 = vpop.xlane.xlu0 %1441 }
 0x740   : > { %v6981_v20 = vpop.eup %6980  ;;  %6990 = vrcp.f32 %v1442_v8 }
 0x741   : > { %v6983_v60 = vpop.eup %6982  ;;  %v1461_v31 = vmul.f32 %v6981_v20, %v8179_v23  ;;  %6992 = vrcp.f32 %v8164_v10 }
 0x742   : > { %v1460_v49 = vmul.f32 %v6983_v60, %v8182_v62 }
 0x743   : > { %v8278_v51 = vpop.permute.xlu1 %2075  ;;  %v1451_v12 = vpop.xlane.xlu0 %1450 }
 0x744   : > { %6306 = vmatprep.mubr.msk.f32.mxu1 %vm985_vm1, %v1460_v49  ;;  %6994 = vrcp.f32 %v1451_v12 }
 0x745   : > { %6307 = vmatmul.mubr.msk.f32.vlgmr.msra.gmra.mxu1 %vm985_vm1, %v1461_v31  ;;  %v6985_v62 = vpop.eup %6984 }
 0x746   : > { %6347 = vmatpush3.msra.mxu1 %v8125_v59 }
 0x747   : > { %6348 = vmatprep.subr.mxu1 %v8156_v15  ;;  %v8285_v13 = vpop.permute.xlu1 %2071  ;;  %v1448_v23 = vpop.xlane.xlu0 %1447 }
 0x748   : > { %6349 = vmatpush3.msra.mxu1 %v8156_v15  ;;  %6996 = vrcp.f32 %v1448_v23  ;;  %v1463_v15 = vmul.f32 %v6985_v62, %v8190_v16 }
 0x749   : > { %6350 = vmatprep.subr.mxu1 %v8158_v63  ;;  %v6987_v39 = vpop.eup %6986  ;;  %6998 = vrcp.f32 %v8162_v54 }
 0x74a   : > { %6351 = vmatpush3.msra.mxu1 %v8158_v63  ;;  %v1462_v10 = vmul.f32 %v6987_v39, %v8196_v55  ;;  %7000 = vrcp.f32 %v8168_v30  ;;  %v6989_v9 = vpop.eup %6988 }
 0x74b   : > { %6352 = vmatprep.subr.mxu1 %v8160_v53  ;;  %v8292_v49 = vpop.permute.xlu1 %2067  ;;  %v1874_v59 = vpop.xlane.xlu0 %1873  ;;  %7002 = vrcp.f32 %v8166_v57 }
 0x74c   : > { %6353 = vmatpush3.msra.mxu1 %v8160_v53  ;;  %6309 = vmatprep.mubr.msk.f32.mxu1 %vm985_vm1, %v1462_v10  ;;  %7004 = vrcp.f32 %v1868_v4  ;;  %v1465_v53 = vmul.f32 %v6989_v9, %v8194_v7 }
 0x74d   : > { %6354 = vmatprep.subr.mxu1 %v1901_v17  ;;  %v6991_v63 = vpop.eup %6990  ;;  %6310 = vmatmul.mubr.msk.f32.gmra.mxu1 %vm985_vm1, %v1463_v15  ;;  %7006 = vrcp.f32 %v1871_v6 }
 0x74e   : > { %6355 = vmatpush3.msra.mxu1 %v1901_v17  ;;  %v1464_v55 = vmul.f32 %v6991_v63, %v8204_v11  ;;  %v6993_v30 = vpop.eup %6992  ;;  %7008 = vrcp.f32 %v1874_v59 }
 0x74f   : > { %v8301_v54 = vpop.permute.xlu1 %2063  ;;  %v2078_v14 = vpop.permute.xlu0 %2077  ;;  %6356 = vmatprep.subr.mxu1 %v1899_v52  ;;  %7010 = vrcp.f32 %v1877_v22  ;;  %v1886_v8 = vmul.f32 %v6993_v30, %v8089_v19 }
 0x750   : > { %6357 = vmatpush3.msra.mxu1 %v1899_v52  ;;  %6312 = vmatprep.mubr.msk.f32.mxu1 %vm985_vm1, %v1464_v55 }
 0x751   : > { %6358 = vmatprep.subr.mxu1 %v1897_v61  ;;  %6313 = vmatmul.mubr.msk.f32.gmra.mxu1 %vm985_vm1, %v1465_v53  ;;  %v6995_v17 = vpop.eup %6994 }
 0x752   : > { %6359 = vmatpush3.msra.mxu1 %v1897_v61  ;;  %v1467_v6 = vmul.f32 %v6995_v17, %v8210_v18 }
 0x753   : > { %v8307_v57 = vpop.permute.xlu1 %2049  ;;  %v2074_v16 = vpop.permute.xlu0 %2073  ;;  %6360 = vmatprep.subr.mxu1 %v8274_v56 }
 0x754   : > { %6361 = vmatpush3.msra.mxu1 %v8274_v56 }
 0x755   : > { %v6997_v11 = vpop.eup %6996  ;;  %6374 = vmatprep.subr.msk.mxu1 %vm823_vm0, %v2078_v14 }
 0x756   : > { %v1466_v7 = vmul.f32 %v6997_v11, %v8214_v58  ;;  %v6999_v61 = vpop.eup %6998 }
 0x757   : > { %v8313_v52 = vpop.permute.xlu1 %2053  ;;  %v2070_v4 = vpop.permute.xlu0 %2069  ;;  %v1887_v56 = vmul.f32 %v6999_v61, %v8085_v2 }
 0x758   : > { %6315 = vmatprep.mubr.msk.f32.mxu1 %vm985_vm1, %v1466_v7  ;;  %v7001_v20 = vpop.eup %7000 }
 0x759   : > { %6316 = vmatmul.mubr.msk.f32.gmra.mxu1 %vm985_vm1, %v1467_v6  ;;  %v7003_v22 = vpop.eup %7002  ;;  %v1888_v31 = vmul.f32 %v7001_v20, %v8095_v3 }
 0x75a   : > { %6362 = vmatprep.mubr.msk.f32.mxu1 %vm985_vm1, %v1886_v8  ;;  %v7005_v12 = vpop.eup %7004  ;;  %v1889_v2 = vmul.f32 %v7003_v22, %v8093_v0 }
 0x75b   : > { %v8321_v60 = vpop.permute.xlu1 %2057  ;;  %v2066_v58 = vpop.permute.xlu0 %2065  ;;  %v1890_v62 = vmul.f32 %v7005_v12, %v8148_v38 }
 0x75c   : > { %v7007_v23 = vpop.eup %7006 }
 0x75d   : > { %6363 = vmatmul.mubr.msk.f32.vlgmr.msra.gmra.mxu1 %vm985_vm1, %v1887_v56  ;;  %v7009_v39 = vpop.eup %7008  ;;  %v1891_v59 = vmul.f32 %v7007_v23, %v8144_v1 }
 0x75e   : > { %6375 = vmatpush3.xpose.msk.msra.mxu1 %vm823_vm0, %v2078_v14  ;;  %6365 = vmatprep.mubr.msk.f32.mxu1 %vm985_vm1, %v1888_v31  ;;  %v7011_v10 = vpop.eup %7010  ;;  %v1892_v15 = vmul.f32 %v7009_v39, %v8218_v25 }
 0x75f   : > { %6376 = vmatprep.subr.msk.mxu1 %vm823_vm0, %v8278_v51  ;;  %v8329_v19 = vpop.permute.xlu1 %2061  ;;  %v2048_v18 = vpop.permute.xlu0 %2047  ;;  %v1893_v38 = vmul.f32 %v7011_v10, %v8202_v5 }
 0x761   : > { %6366 = vmatmul.mubr.msk.f32.gmra.mxu1 %vm985_vm1, %v1889_v2 }
 0x762   : > { %6377 = vmatpush3.xpose.msk.msra.mxu1 %vm823_vm0, %v8278_v51  ;;  %6368 = vmatprep.mubr.msk.f32.mxu1 %vm985_vm1, %v1890_v62 }
 0x763   : > { %6378 = vmatprep.subr.msk.mxu1 %vm823_vm0, %v2074_v16  ;;  %v2052_v3 = vpop.permute.xlu0 %2051  ;;  %v2325_v0 = vpop.permute.xlu1 %2324 }
 0x765   : > { %6369 = vmatmul.mubr.msk.f32.gmra.mxu1 %vm985_vm1, %v1891_v59 }
 0x766   : > { %6379 = vmatpush3.xpose.msk.msra.mxu1 %vm823_vm0, %v2074_v16  ;;  %6371 = vmatprep.mubr.msk.f32.mxu1 %vm985_vm1, %v1892_v15 }
 0x767   : > { %6380 = vmatprep.subr.msk.mxu1 %vm823_vm0, %v8285_v13  ;;  %v2056_v51 = vpop.permute.xlu0 %2055  ;;  %v2323_v1 = vpop.permute.xlu1 %2322 }
 0x769   : > { %6372 = vmatmul.mubr.msk.f32.gmra.mxu1 %vm985_vm1, %v1893_v38 }
 0x76a   : > { %6381 = vmatpush3.xpose.msk.msra.mxu1 %vm823_vm0, %v8285_v13  ;;  %6390 = vmatprep.mubr.msk.f32.mxu1 %vm823_vm0, %v2048_v18 }
 0x76b   : > { %6382 = vmatprep.subr.msk.mxu1 %vm823_vm0, %v2070_v4  ;;  %v2060_v25 = vpop.permute.xlu0 %2059  ;;  %v2321_v63 = vpop.permute.xlu1 %2320 }
 0x76e   : > { %6383 = vmatpush3.xpose.msk.msra.mxu1 %vm823_vm0, %v2070_v4 }
 0x76f   : > { %6384 = vmatprep.subr.msk.mxu1 %vm823_vm0, %v8292_v49  ;;  %v2327_v9 = vpop.permute.xlu0 %2326  ;;  %v2317_v13 = vpop.permute.xlu1 %2316 }
 0x770   : > { %6402 = vmatprep.subr.mxu0 %v2327_v9 }
 0x771   : > { %6403 = vmatpush3.msra.mxu0 %v2327_v9 }
 0x772   : > { %6385 = vmatpush3.xpose.msk.msra.mxu1 %vm823_vm0, %v8292_v49  ;;  %6404 = vmatprep.subr.mxu0 %v2325_v0 }
 0x773   : > { %6386 = vmatprep.subr.msk.mxu1 %vm823_vm0, %v2066_v58  ;;  %6405 = vmatpush3.msra.mxu0 %v2325_v0  ;;  %v2319_v5 = vpop.permute.xlu0 %2318  ;;  %v2313_v49 = vpop.permute.xlu1 %2312 }
 0x774   : > { %6406 = vmatprep.subr.mxu0 %v2323_v1 }
 0x775   : > { %6407 = vmatpush3.msra.mxu0 %v2323_v1 }
 0x776   : > { %6387 = vmatpush3.xpose.msk.msra.mxu1 %vm823_vm0, %v2066_v58  ;;  %6408 = vmatprep.subr.mxu0 %v2321_v63 }
 0x777   : > { %6388 = vmatprep.subr.msk.mxu1 %vm823_vm0, %v8301_v54  ;;  %6409 = vmatpush3.msra.mxu0 %v2321_v63  ;;  %v2315_v14 = vpop.permute.xlu0 %2314 }
 0x778   : > { %6410 = vmatprep.subr.mxu0 %v2319_v5 }
 0x779   : > { %6411 = vmatpush3.msra.mxu0 %v2319_v5 }
 0x77a   : > { %6389 = vmatpush3.xpose.msk.msra.mxu1 %vm823_vm0, %v8301_v54  ;;  %6412 = vmatprep.subr.mxu0 %v2317_v13 }
 0x77b   : > { %6413 = vmatpush3.msra.mxu0 %v2317_v13  ;;  %v8365_v55 = vpop.permute.xlu0 %2495 }
 0x77c   : > { %6414 = vmatprep.subr.mxu0 %v2315_v14 }
 0x77d   : > { %6391 = vmatmul.mubr.msk.f32.vlgmr.msra.gmra.mxu1 %vm823_vm0, %v8307_v57  ;;  %6415 = vmatpush3.msra.mxu0 %v2315_v14 }
 0x77e   : > { %6393 = vmatprep.mubr.msk.f32.mxu1 %vm823_vm0, %v2052_v3  ;;  %6416 = vmatprep.subr.mxu0 %v2313_v49 }
 0x77f   : > { %6417 = vmatpush3.msra.mxu0 %v2313_v49 }
 0x780   : > { %6430 = vmatprep.subr.msk.mxu0 %vm823_vm0, %v8365_v55 }
 0x781   : > { %6394 = vmatmul.mubr.msk.f32.gmra.mxu1 %vm823_vm0, %v8313_v52 }
 0x782   : > { %6396 = vmatprep.mubr.msk.f32.mxu1 %vm823_vm0, %v2056_v51 }
 0x785   : > { %6397 = vmatmul.mubr.msk.f32.gmra.mxu1 %vm823_vm0, %v8321_v60 }
 0x786   : > { %6399 = vmatprep.mubr.msk.f32.mxu1 %vm823_vm0, %v2060_v25 }
 0x789   : > { %6400 = vmatmul.mubr.msk.f32.gmra.mxu1 %vm823_vm0, %v8329_v19 }
 0x805   : > { %v8377_v54 = vpop.f32.mrf.mxu1 }
 0x807   : > { %v8379_v53 = vpop.f32.mrf.mxu1 }
 0x80d   : > { %v8383_v57 = vpop.f32.mrf.mxu1 }
 0x80f   : > { %v8385_v16 = vpop.f32.mrf.mxu1 }
 0x811   : > { %v8389_v11 = vpop.f32.mrf.mxu1 }
 0x812   : > { %9966 = vst [vmem:[#allocation20_spill] sm:$0xff] %v8389_v11 }
 0x813   : > { %v8391_v7 = vpop.f32.mrf.mxu1 }
 0x814   : > { %9967 = vst [vmem:[#allocation21_spill] sm:$0xff] %v8391_v7 }
 0x819   : > { %v8395_v4 = vpop.f32.mrf.mxu1 }
 0x81a   : > { %9968 = vst [vmem:[#allocation22_spill] sm:$0xff] %v8395_v4 }
 0x81b   : > { %v8397_v6 = vpop.f32.mrf.mxu1 }
 0x81c   : > { %9969 = vst [vmem:[#allocation23_spill] sm:$0xff] %v8397_v6 }
 0x81d   : > { %v8401_v8 = vpop.f32.mrf.mxu1 }
 0x81f   : > { %v8403_v20 = vpop.f32.mrf.mxu1 }
 0x821   : > { %v8407_v60 = vpop.f32.mrf.mxu1 }
 0x822   : > { %9970 = vst [vmem:[#allocation24_spill] sm:$0xff] %v8407_v60 }
 0x823   : > { %v8409_v58 = vpop.f32.mrf.mxu1 }
 0x824   : > { %9971 = vst [vmem:[#allocation25_spill] sm:$0xff] %v8409_v58 }
 0x825   : > { %v8413_v31 = vpop.f32.mrf.mxu1 }
 0x826   : > { %9972 = vst [vmem:[#allocation26_spill] sm:$0xff] %v8413_v31 }
 0x827   : > { %v8415_v12 = vpop.f32.mrf.mxu1 }
 0x828   : > { %9973 = vst [vmem:[#allocation27_spill] sm:$0xff] %v8415_v12 }
 0x829   : > { %v8419_v18 = vpop.f32.mrf.mxu1 }
 0x82a   : > { %9974 = vst [vmem:[#allocation28_spill] sm:$0xff] %v8419_v18 }
 0x82b   : > { %v8421_v2 = vpop.f32.mrf.mxu1 }
 0x82c   : > { %9975 = vst [vmem:[#allocation29_spill] sm:$0xff] %v8421_v2 }
 0x83d   : > { %v6392_v62 = vpop.f32.mrf.mxu1 }
 0x83e   : > { %v2217_v39 = vmul.f32 0.25, %v6392_v62 }
 0x83f   : > { %v2177_v3 = vpop.f32.mrf.mxu1 }
 0x840   : > { %v2216_v59 = vmul.f32 0.25, %v2177_v3  ;;  %v2227_v10 = vsel %vm985_vm1, %v2217_v39, -inf }
 0x841   : > { %2228 = vmax.xlane.f32.xlu1 %v2227_v10  ;;  %v6395_v15 = vpop.f32.mrf.mxu1 }
 0x842   : > { %v2219_v0 = vmul.f32 0.25, %v6395_v15  ;;  %v2224_v51 = vsel %vm985_vm1, %v2216_v59, -inf }
 0x843   : > { %2225 = vmax.xlane.f32.xlu0 %v2224_v51  ;;  %v2187_v38 = vpop.f32.mrf.mxu1 }
 0x844   : > { %v2218_v25 = vmul.f32 0.25, %v2187_v38  ;;  %v2233_v63 = vsel %vm985_vm1, %v2219_v0, -inf }
 0x845   : > { %v6398_v1 = vpop.f32.mrf.mxu1 }
 0x846   : > { %v2221_v9 = vmul.f32 0.25, %v6398_v1  ;;  %v2230_v3 = vsel %vm985_vm1, %v2218_v25, -inf }
 0x847   : > { %2234 = vmax.xlane.f32.xlu0 %v2233_v63  ;;  %v2197_v5 = vpop.f32.mrf.mxu1  ;;  %v8437_v63 = vpop.permute.xlu1 %2493 }
 0x848   : > { %v2239_v13 = vsel %vm985_vm1, %v2221_v9, -inf  ;;  %v2220_v49 = vmul.f32 0.25, %v2197_v5 }
 0x849   : > { %2240 = vmax.xlane.f32.xlu1 %v2239_v13  ;;  %v6401_v14 = vpop.f32.mrf.mxu1 }
 0x84a   : > { %v2223_v62 = vmul.f32 0.25, %v6401_v14  ;;  %v2236_v38 = vsel %vm985_vm1, %v2220_v49, -inf }
 0x84b   : > { %2231 = vmax.xlane.f32.xlu0 %v2230_v3  ;;  %v2207_v10 = vpop.f32.mrf.mxu1 }
 0x84c   : > { %v2245_v15 = vsel %vm985_vm1, %v2223_v62, -inf  ;;  %v2222_v51 = vmul.f32 0.25, %v2207_v10 }
 0x84d   : > { %2246 = vmax.xlane.f32.xlu1 %v2245_v15 }
 0x84e   : > { %v2242_v1 = vsel %vm985_vm1, %v2222_v51, -inf }
 0x84f   : > { %2237 = vmax.xlane.f32.xlu0 %v2236_v38 }
 0x853   : > { %2243 = vmax.xlane.f32.xlu0 %v2242_v1 }
 0x85e   : > { %2489 = vrot.lane.b32.xlu1 %v7750_v42, %s9946_s19 }
 0x869   : > { %2491 = vrot.lane.b32.xlu0 %v7762_v45, %s9946_s19 }
 0x8ca   : > { %v2229_v5 = vpop.xlane.xlu1 %2228 }
 0x8cb   : > { %v2249_v13 = vsub.f32 %v2217_v39, %v2229_v5 }
 0x8cc   : > { %v2226_v14 = vpop.xlane.xlu0 %2225 }
 0x8cd   : > { %v2258_v3 = vmul.f32 1.442695, %v2249_v13  ;;  %v2248_v15 = vsub.f32 %v2216_v59, %v2226_v14 }
 0x8cf   : > { %7012 = vpow2.f32 %v2258_v3  ;;  %v2256_v10 = vmul.f32 1.442695, %v2248_v15 }
 0x8d0   : > { %v2235_v52 = vpop.xlane.xlu0 %2234 }
 0x8d1   : > { %7014 = vpow2.f32 %v2256_v10  ;;  %v2251_v5 = vsub.f32 %v2219_v0, %v2235_v52 }
 0x8d2   : > { %v2241_v59 = vpop.xlane.xlu1 %2240 }
 0x8d3   : > { %v2262_v3 = vmul.f32 1.442695, %v2251_v5  ;;  %v2253_v15 = vsub.f32 %v2221_v9, %v2241_v59 }
 0x8d4   : > { %v2232_v39 = vpop.xlane.xlu0 %2231 }
 0x8d5   : > { %v2250_v14 = vsub.f32 %v2218_v25, %v2232_v39  ;;  %7016 = vpow2.f32 %v2262_v3 }
 0x8d6   : > { %v2247_v10 = vpop.xlane.xlu1 %2246 }
 0x8d7   : > { %v2255_v17 = vsub.f32 %v2223_v62, %v2247_v10  ;;  %v9976_v62 = vld [vmem:[#allocation11_spill] sm:$0xff] }
 0x8d8   : > { %v2238_v13 = vpop.xlane.xlu0 %2237 }
 0x8d9   : > { %v2252_v19 = vsub.f32 %v2220_v49, %v2238_v13  ;;  %v2270_v2 = vmul.f32 1.442695, %v2255_v17 }
 0x8da   : > { %v2490_v39 = vpop.permute.xlu1 %2489 }
 0x8db   : > { %v2264_v30 = vmul.f32 1.442695, %v2252_v19 }
 0x8dc   : > { %v8439_v38 = vpop.eup %7012  ;;  %v2244_v22 = vpop.xlane.xlu0 %2243 }
 0x8dd   : > { %v2275_v1 = vsel %vm985_vm1, %v8439_v38, 0.0  ;;  %v2254_v56 = vsub.f32 %v2222_v51, %v2244_v22  ;;  %v9977_v51 = vld [vmem:[#allocation10_spill] sm:$0xff] }
 0x8de   : > { %v8443_v23 = vpop.eup %7014  ;;  %2276 = vadd.xlane.f32.xlu1 %v2275_v1  ;;  %v2260_v1 = vmul.f32 1.442695, %v2250_v14 }
 0x8df   : > { %v2272_v61 = vsel %vm985_vm1, %v8443_v23, 0.0  ;;  %v2268_v18 = vmul.f32 1.442695, %v2254_v56 }
 0x8e0   : > { %2273 = vadd.xlane.f32.xlu0 %v2272_v61  ;;  %v2266_v61 = vmul.f32 1.442695, %v2253_v15  ;;  %7018 = vpow2.f32 %v2260_v1  ;;  %v2492_v59 = vpop.permute.xlu0 %2491 }
 0x8e2   : > { %7020 = vpow2.f32 %v2266_v61  ;;  %v8451_v52 = vpop.eup %7016 }
 0x8e3   : > { %7022 = vpow2.f32 %v2264_v30  ;;  %v2281_v25 = vsel %vm985_vm1, %v8451_v52, 0.0 }
 0x8e4   : > { %7024 = vpow2.f32 %v2270_v2 }
 0x8e5   : > { %7026 = vpow2.f32 %v2268_v18 }
 0x8ed   : > { %v8453_v0 = vpop.eup %7018 }
 0x8ee   : > { %v2278_v19 = vsel %vm985_vm1, %v8453_v0, 0.0 }
 0x8ef   : > { %2485 = vrot.lane.b32.xlu1 %v7729_v32, %s9946_s19  ;;  %v8457_v9 = vpop.eup %7020 }
 0x8f0   : > { %v8461_v22 = vpop.eup %7022  ;;  %v2287_v30 = vsel %vm985_vm1, %v8457_v9, 0.0 }
 0x8f1   : > { %v8465_v17 = vpop.eup %7024  ;;  %v2284_v56 = vsel %vm985_vm1, %v8461_v22, 0.0 }
 0x8f2   : > { %v8469_v18 = vpop.eup %7026  ;;  %v2293_v2 = vsel %vm985_vm1, %v8465_v17, 0.0 }
 0x8f3   : > { %v2290_v49 = vsel %vm985_vm1, %v8469_v18, 0.0 }
 0x8f6   : > { %2487 = vrot.lane.b32.xlu0 %v7739_v36, %s9946_s19 }
 0x913   : > { %2282 = vadd.xlane.f32.xlu1 %v2281_v25 }
 0x915   : > { %2279 = vadd.xlane.f32.xlu0 %v2278_v19 }
 0x917   : > { %2288 = vadd.xlane.f32.xlu1 %v2287_v30 }
 0x919   : > { %2285 = vadd.xlane.f32.xlu0 %v2284_v56 }
 0x91b   : > { %2294 = vadd.xlane.f32.xlu1 %v2293_v2 }
 0x91d   : > { %2291 = vadd.xlane.f32.xlu0 %v2290_v49 }
 0x92c   : > { %2481 = vrot.lane.b32.xlu1 %v7713_v47, %s9946_s19 }
 0x930   : > { %2467 = vrot.lane.b32.xlu1 %v7715_v21, %s9946_s19 }
 0x933   : > { %2483 = vrot.lane.b32.xlu0 %v7719_v26, %s9946_s19 }
 0x934   : > { %2471 = vrot.lane.b32.xlu1 %v7735_v34, %s9946_s19 }
 0x937   : > { %2465 = vrot.lane.b32.xlu0 %v7709_v46, %s9946_s19 }
 0x938   : > { %2475 = vrot.lane.b32.xlu1 %v7758_v44, %s9946_s19 }
 0x93b   : > { %2469 = vrot.lane.b32.xlu0 %v7725_v28, %s9946_s19 }
 0x93c   : > { %2479 = vrot.lane.b32.xlu1 %v7778_v50, %s9946_s19 }
 0x93f   : > { %2473 = vrot.lane.b32.xlu0 %v7745_v40, %s9946_s19 }
 0x940   : > { %2742 = vrot.lane.b32.xlu1 %v7752_v43, %s9946_s19 }
 0x943   : > { %2477 = vrot.lane.b32.xlu0 %v7768_v48, %s9946_s19 }
 0x944   : > { %2740 = vrot.lane.b32.xlu1 %v7737_v35, %s9946_s19 }
 0x947   : > { %2744 = vrot.lane.b32.xlu0 %v7747_v41, %s9946_s19 }
 0x948   : > { %2738 = vrot.lane.b32.xlu1 %v7741_v37, %s9946_s19 }
 0x94b   : > { %2736 = vrot.lane.b32.xlu0 %v7727_v29, %s9946_s19 }
 0x94c   : > { %2734 = vrot.lane.b32.xlu1 %v7731_v33, %s9946_s19 }
 0x94f   : > { %2732 = vrot.lane.b32.xlu0 %v7717_v24, %s9946_s19 }
 0x950   : > { %2730 = vrot.lane.b32.xlu1 %v7721_v27, %s9946_s19 }
 0x953   : > { %2913 = vrot.lane.b32.xlu0 %v9976_v62, %s7360_s20 }
 0x954   : > { %2911 = vrot.lane.b32.xlu1 %v9977_v51, %s7360_s20 }
 0x967   : > { %v2277_v5 = vpop.xlane.xlu1 %2276 }
 0x968   : > { %7028 = vrcp.f32 %v2277_v5 }
 0x969   : > { %v2274_v13 = vpop.xlane.xlu0 %2273 }
 0x96a   : > { %7030 = vrcp.f32 %v2274_v13 }
 0x975   : > { %v7029_v14 = vpop.eup %7028 }
 0x976   : > { %v2305_v10 = vmul.f32 %v7029_v14, %v8439_v38  ;;  %v2486_v38 = vpop.permute.xlu1 %2485 }
 0x977   : > { %v7031_v3 = vpop.eup %7030 }
 0x978   : > { %v2304_v15 = vmul.f32 %v7031_v3, %v8443_v23  ;;  %v2488_v23 = vpop.permute.xlu0 %2487 }
 0x97a   : > { %6418 = vmatprep.mubr.msk.f32.mxu0 %vm985_vm1, %v2304_v15 }
 0x97b   : > { %6419 = vmatmul.mubr.msk.f32.vlgmr.msra.gmra.mxu0 %vm985_vm1, %v2305_v10 }
 0x97c   : > { %6431 = vmatpush3.xpose.msk.msra.mxu0 %vm823_vm0, %v8365_v55 }
 0x97d   : > { %6432 = vmatprep.subr.msk.mxu0 %vm823_vm0, %v8437_v63 }
 0x980   : > { %6433 = vmatpush3.xpose.msk.msra.mxu0 %vm823_vm0, %v8437_v63 }
 0x981   : > { %6434 = vmatprep.subr.msk.mxu0 %vm823_vm0, %v2492_v59 }
 0x984   : > { %6435 = vmatpush3.xpose.msk.msra.mxu0 %vm823_vm0, %v2492_v59 }
 0x985   : > { %6436 = vmatprep.subr.msk.mxu0 %vm823_vm0, %v2490_v39 }
 0x988   : > { %6437 = vmatpush3.xpose.msk.msra.mxu0 %vm823_vm0, %v2490_v39 }
 0x989   : > { %6438 = vmatprep.subr.msk.mxu0 %vm823_vm0, %v2488_v23 }
 0x98c   : > { %6439 = vmatpush3.xpose.msk.msra.mxu0 %vm823_vm0, %v2488_v23 }
 0x98d   : > { %6440 = vmatprep.subr.msk.mxu0 %vm823_vm0, %v2486_v38 }
 0x990   : > { %6441 = vmatpush3.xpose.msk.msra.mxu0 %vm823_vm0, %v2486_v38 }
 0x99c   : > { %v2283_v55 = vpop.xlane.xlu1 %2282 }
 0x99d   : > { %7032 = vrcp.f32 %v2283_v55 }
 0x99e   : > { %v2280_v63 = vpop.xlane.xlu0 %2279 }
 0x99f   : > { %7034 = vrcp.f32 %v2280_v63 }
 0x9a0   : > { %v2289_v1 = vpop.xlane.xlu1 %2288 }
 0x9a1   : > { %7036 = vrcp.f32 %v2289_v1 }
 0x9a2   : > { %v2286_v61 = vpop.xlane.xlu0 %2285 }
 0x9a3   : > { %7038 = vrcp.f32 %v2286_v61 }
 0x9a4   : > { %v2295_v25 = vpop.xlane.xlu1 %2294 }
 0x9a5   : > { %7040 = vrcp.f32 %v2295_v25 }
 0x9a6   : > { %v2292_v19 = vpop.xlane.xlu0 %2291 }
 0x9a7   : > { %7042 = vrcp.f32 %v2292_v19 }
 0x9a8   : > { %v2482_v30 = vpop.permute.xlu1 %2481 }
 0x9aa   : > { %v2484_v56 = vpop.permute.xlu0 %2483  ;;  %v7033_v2 = vpop.eup %7032 }
 0x9ab   : > { %6442 = vmatprep.subr.msk.mxu0 %vm823_vm0, %v2484_v56  ;;  %v2307_v13 = vmul.f32 %v7033_v2, %v8451_v52 }
 0x9ac   : > { %v7035_v49 = vpop.eup %7034  ;;  %v2468_v39 = vpop.permute.xlu1 %2467  ;;  %6443 = vmatpush3.xpose.msk.msra.mxu0 %vm823_vm0, %v2484_v56 }
 0x9ad   : > { %6444 = vmatprep.subr.msk.mxu0 %vm823_vm0, %v2482_v30  ;;  %v2306_v59 = vmul.f32 %v7035_v49, %v8453_v0 }
 0x9ae   : > { %v2466_v5 = vpop.permute.xlu0 %2465  ;;  %v7037_v14 = vpop.eup %7036 }
 0x9af   : > { %6421 = vmatprep.mubr.msk.f32.mxu0 %vm985_vm1, %v2306_v59  ;;  %v2309_v38 = vmul.f32 %v7037_v14, %v8457_v9 }
 0x9b0   : > { %v7039_v3 = vpop.eup %7038  ;;  %v2472_v15 = vpop.permute.xlu1 %2471  ;;  %6422 = vmatmul.mubr.msk.f32.gmra.mxu0 %vm985_vm1, %v2307_v13 }
 0x9b1   : > { %6445 = vmatpush3.xpose.msk.msra.mxu0 %vm823_vm0, %v2482_v30  ;;  %v2308_v10 = vmul.f32 %v7039_v3, %v8461_v22 }
 0x9b2   : > { %v2470_v23 = vpop.permute.xlu0 %2469  ;;  %v7041_v55 = vpop.eup %7040 }
 0x9b3   : > { %6424 = vmatprep.mubr.msk.f32.mxu0 %vm985_vm1, %v2308_v10  ;;  %v2311_v61 = vmul.f32 %v7041_v55, %v8465_v17 }
 0x9b4   : > { %v7043_v0 = vpop.eup %7042  ;;  %v2476_v63 = vpop.permute.xlu1 %2475  ;;  %6425 = vmatmul.mubr.msk.f32.gmra.mxu0 %vm985_vm1, %v2309_v38 }
 0x9b5   : > { %v2310_v52 = vmul.f32 %v7043_v0, %v8469_v18 }
 0x9b6   : > { %v2474_v1 = vpop.permute.xlu0 %2473 }
 0x9b7   : > { %6427 = vmatprep.mubr.msk.f32.mxu0 %vm985_vm1, %v2310_v52 }
 0x9b8   : > { %v2480_v25 = vpop.permute.xlu1 %2479  ;;  %6428 = vmatmul.mubr.msk.f32.gmra.mxu0 %vm985_vm1, %v2311_v61 }
 0x9b9   : > { %6446 = vmatprep.mubr.msk.f32.mxu0 %vm823_vm0, %v2466_v5 }
 0x9ba   : > { %v2478_v9 = vpop.permute.xlu0 %2477 }
 0x9bc   : > { %v2743_v22 = vpop.permute.xlu1 %2742  ;;  %6447 = vmatmul.mubr.msk.f32.vlgmr.msra.gmra.mxu0 %vm823_vm0, %v2468_v39 }
 0x9bd   : > { %6449 = vmatprep.mubr.msk.f32.mxu0 %vm823_vm0, %v2470_v23 }
 0x9be   : > { %v2745_v19 = vpop.permute.xlu0 %2744 }
 0x9bf   : > { %6458 = vmatprep.subr.mxu1 %v2745_v19 }
 0x9c0   : > { %v2741_v30 = vpop.permute.xlu1 %2740  ;;  %6450 = vmatmul.mubr.msk.f32.gmra.mxu0 %vm823_vm0, %v2472_v15  ;;  %6459 = vmatpush3.msra.mxu1 %v2745_v19 }
 0x9c1   : > { %6452 = vmatprep.mubr.msk.f32.mxu0 %vm823_vm0, %v2474_v1  ;;  %6460 = vmatprep.subr.mxu1 %v2743_v22 }
 0x9c2   : > { %6461 = vmatpush3.msra.mxu1 %v2743_v22  ;;  %v2737_v17 = vpop.permute.xlu0 %2736 }
 0x9c3   : > { %6462 = vmatprep.subr.mxu1 %v2741_v30 }
 0x9c4   : > { %v2739_v18 = vpop.permute.xlu1 %2738  ;;  %6453 = vmatmul.mubr.msk.f32.gmra.mxu0 %vm823_vm0, %v2476_v63  ;;  %6463 = vmatpush3.msra.mxu1 %v2741_v30 }
 0x9c5   : > { %6455 = vmatprep.mubr.msk.f32.mxu0 %vm823_vm0, %v2478_v9  ;;  %6464 = vmatprep.subr.mxu1 %v2739_v18 }
 0x9c6   : > { %6465 = vmatpush3.msra.mxu1 %v2739_v18  ;;  %v2733_v56 = vpop.permute.xlu0 %2732 }
 0x9c7   : > { %6466 = vmatprep.subr.mxu1 %v2737_v17 }
 0x9c8   : > { %v2735_v2 = vpop.permute.xlu1 %2734  ;;  %6456 = vmatmul.mubr.msk.f32.gmra.mxu0 %vm823_vm0, %v2480_v25  ;;  %6467 = vmatpush3.msra.mxu1 %v2737_v17 }
 0x9c9   : > { %6468 = vmatprep.subr.mxu1 %v2735_v2 }
 0x9ca   : > { %6469 = vmatpush3.msra.mxu1 %v2735_v2  ;;  %v8557_v39 = vpop.permute.xlu0 %2913 }
 0x9cb   : > { %6470 = vmatprep.subr.mxu1 %v2733_v56 }
 0x9cc   : > { %v2731_v49 = vpop.permute.xlu1 %2730  ;;  %6471 = vmatpush3.msra.mxu1 %v2733_v56 }
 0x9cd   : > { %6472 = vmatprep.subr.mxu1 %v2731_v49 }
 0x9ce   : > { %6473 = vmatpush3.msra.mxu1 %v2731_v49 }
 0x9cf   : > { %6486 = vmatprep.subr.msk.mxu1 %vm823_vm0, %v8557_v39 }
 0xa3b   : > { %v8561_v59 = vpop.f32.mrf.mxu0 }
 0xa3d   : > { %v8563_v5 = vpop.f32.mrf.mxu0 }
 0xa70   : > { %v8567_v14 = vpop.f32.mrf.mxu0 }
 0xa72   : > { %v8569_v3 = vpop.f32.mrf.mxu0 }
 0xa74   : > { %v8573_v10 = vpop.f32.mrf.mxu0 }
 0xa75   : > { %9978 = vst [vmem:[#allocation11_spill] sm:$0xff] %v8573_v10 }
 0xa76   : > { %v8575_v23 = vpop.f32.mrf.mxu0 }
 0xa77   : > { %9979 = vst [vmem:[#allocation10_spill] sm:$0xff] %v8575_v23 }
 0xa78   : > { %v8579_v55 = vpop.f32.mrf.mxu0 }
 0xa79   : > { %9980 = vst [vmem:[#allocation30_spill] sm:$0xff] %v8579_v55 }
 0xa7a   : > { %v8581_v0 = vpop.f32.mrf.mxu0 }
 0xa7b   : > { %9981 = vst [vmem:[#allocation31_spill] sm:$0xff] %v8581_v0 }
 0xa7c   : > { %v6448_v52 = vpop.f32.mrf.mxu0 }
 0xa7d   : > { %v2635_v1 = vmul.f32 0.25, %v6448_v52 }
 0xa7e   : > { %v2595_v61 = vpop.f32.mrf.mxu0 }
 0xa7f   : > { %v2634_v25 = vmul.f32 0.25, %v2595_v61  ;;  %v2645_v9 = vsel %vm985_vm1, %v2635_v1, -inf }
 0xa80   : > { %2646 = vmax.xlane.f32.xlu1 %v2645_v9  ;;  %v6451_v22 = vpop.f32.mrf.mxu0 }
 0xa81   : > { %v2637_v19 = vmul.f32 0.25, %v6451_v22  ;;  %v2642_v30 = vsel %vm985_vm1, %v2634_v25, -inf }
 0xa82   : > { %2643 = vmax.xlane.f32.xlu0 %v2642_v30  ;;  %v2605_v17 = vpop.f32.mrf.mxu0 }
 0xa83   : > { %v2636_v56 = vmul.f32 0.25, %v2605_v17  ;;  %v2651_v49 = vsel %vm985_vm1, %v2637_v19, -inf }
 0xa84   : > { %v6454_v18 = vpop.f32.mrf.mxu0 }
 0xa85   : > { %v2639_v2 = vmul.f32 0.25, %v6454_v18  ;;  %v2648_v9 = vsel %vm985_vm1, %v2636_v56, -inf }
 0xa86   : > { %2652 = vmax.xlane.f32.xlu0 %v2651_v49  ;;  %v2615_v63 = vpop.f32.mrf.mxu0 }
 0xa87   : > { %v2657_v52 = vsel %vm985_vm1, %v2639_v2, -inf  ;;  %v2638_v38 = vmul.f32 0.25, %v2615_v63  ;;  %v8597_v63 = vpop.permute.xlu1 %2911 }
 0xa88   : > { %2658 = vmax.xlane.f32.xlu1 %v2657_v52  ;;  %v6457_v61 = vpop.f32.mrf.mxu0 }
 0xa89   : > { %v2641_v15 = vmul.f32 0.25, %v6457_v61  ;;  %v2654_v17 = vsel %vm985_vm1, %v2638_v38, -inf }
 0xa8a   : > { %2649 = vmax.xlane.f32.xlu0 %v2648_v9  ;;  %v2625_v22 = vpop.f32.mrf.mxu0 }
 0xa8b   : > { %v2663_v30 = vsel %vm985_vm1, %v2641_v15, -inf  ;;  %v2640_v13 = vmul.f32 0.25, %v2625_v22 }
 0xa8c   : > { %2664 = vmax.xlane.f32.xlu1 %v2663_v30 }
 0xa8d   : > { %v2660_v18 = vsel %vm985_vm1, %v2640_v13, -inf }
 0xa8e   : > { %2655 = vmax.xlane.f32.xlu0 %v2654_v17 }
 0xa92   : > { %2661 = vmax.xlane.f32.xlu0 %v2660_v18 }
 0xa9d   : > { %2907 = vrot.lane.b32.xlu1 %v7750_v42, %s7360_s20 }
 0xaa8   : > { %2909 = vrot.lane.b32.xlu0 %v7762_v45, %s7360_s20 }
 0xb09   : > { %v2647_v49 = vpop.xlane.xlu1 %2646 }
 0xb0a   : > { %v2667_v52 = vsub.f32 %v2635_v1, %v2647_v49 }
 0xb0b   : > { %v2644_v61 = vpop.xlane.xlu0 %2643 }
 0xb0c   : > { %v2676_v9 = vmul.f32 1.442695, %v2667_v52  ;;  %v2666_v30 = vsub.f32 %v2634_v25, %v2644_v61 }
 0xb0e   : > { %7044 = vpow2.f32 %v2676_v9  ;;  %v2674_v22 = vmul.f32 1.442695, %v2666_v30 }
 0xb0f   : > { %v2653_v6 = vpop.xlane.xlu0 %2652 }
 0xb10   : > { %7046 = vpow2.f32 %v2674_v22  ;;  %v2669_v49 = vsub.f32 %v2637_v19, %v2653_v6 }
 0xb11   : > { %v2659_v25 = vpop.xlane.xlu1 %2658 }
 0xb12   : > { %v2680_v9 = vmul.f32 1.442695, %v2669_v49  ;;  %v2671_v30 = vsub.f32 %v2639_v2, %v2659_v25 }
 0xb13   : > { %v2650_v1 = vpop.xlane.xlu0 %2649 }
 0xb14   : > { %v2668_v61 = vsub.f32 %v2636_v56, %v2650_v1  ;;  %7048 = vpow2.f32 %v2680_v9 }
 0xb15   : > { %v2665_v22 = vpop.xlane.xlu1 %2664 }
 0xb16   : > { %v2673_v10 = vsub.f32 %v2641_v15, %v2665_v22 }
 0xb17   : > { %v2656_v52 = vpop.xlane.xlu0 %2655 }
 0xb18   : > { %v2670_v4 = vsub.f32 %v2638_v38, %v2656_v52  ;;  %v2688_v12 = vmul.f32 1.442695, %v2673_v10 }
 0xb1a   : > { %v2682_v7 = vmul.f32 1.442695, %v2670_v4 }
 0xb1b   : > { %v8599_v17 = vpop.eup %7044  ;;  %v2662_v23 = vpop.xlane.xlu0 %2661 }
 0xb1c   : > { %v2693_v18 = vsel %vm985_vm1, %v8599_v17, 0.0  ;;  %v2672_v11 = vsub.f32 %v2640_v13, %v2662_v23  ;;  %v2908_v23 = vpop.permute.xlu1 %2907 }
 0xb1d   : > { %v8603_v0 = vpop.eup %7046  ;;  %2694 = vadd.xlane.f32.xlu1 %v2693_v18  ;;  %v2678_v18 = vmul.f32 1.442695, %v2668_v61 }
 0xb1e   : > { %v2690_v55 = vsel %vm985_vm1, %v8603_v0, 0.0  ;;  %v2686_v31 = vmul.f32 1.442695, %v2672_v11 }
 0xb1f   : > { %2691 = vadd.xlane.f32.xlu0 %v2690_v55  ;;  %v2684_v55 = vmul.f32 1.442695, %v2671_v30  ;;  %7050 = vpow2.f32 %v2678_v18  ;;  %v2910_v2 = vpop.permute.xlu0 %2909 }
 0xb21   : > { %7052 = vpow2.f32 %v2684_v55  ;;  %v8611_v6 = vpop.eup %7048 }
 0xb22   : > { %7054 = vpow2.f32 %v2682_v7  ;;  %v2699_v38 = vsel %vm985_vm1, %v8611_v6, 0.0 }
 0xb23   : > { %7056 = vpow2.f32 %v2688_v12 }
 0xb24   : > { %7058 = vpow2.f32 %v2686_v31 }
 0xb2c   : > { %v8613_v19 = vpop.eup %7050 }
 0xb2d   : > { %v2696_v4 = vsel %vm985_vm1, %v8613_v19, 0.0 }
 0xb2e   : > { %2903 = vrot.lane.b32.xlu1 %v7729_v32, %s7360_s20  ;;  %v8617_v56 = vpop.eup %7052 }
 0xb2f   : > { %v8621_v13 = vpop.eup %7054  ;;  %v2705_v11 = vsel %vm985_vm1, %v8617_v56, 0.0 }
 0xb30   : > { %v8625_v7 = vpop.eup %7056  ;;  %v2702_v31 = vsel %vm985_vm1, %v8621_v13, 0.0 }
 0xb31   : > { %v8629_v12 = vpop.eup %7058  ;;  %v2711_v15 = vsel %vm985_vm1, %v8625_v7, 0.0 }
 0xb32   : > { %v2708_v10 = vsel %vm985_vm1, %v8629_v12, 0.0 }
 0xb35   : > { %2905 = vrot.lane.b32.xlu0 %v7739_v36, %s7360_s20 }
 0xb52   : > { %2700 = vadd.xlane.f32.xlu1 %v2699_v38 }
 0xb54   : > { %2697 = vadd.xlane.f32.xlu0 %v2696_v4 }
 0xb56   : > { %2706 = vadd.xlane.f32.xlu1 %v2705_v11 }
 0xb58   : > { %2703 = vadd.xlane.f32.xlu0 %v2702_v31 }
 0xb5a   : > { %2712 = vadd.xlane.f32.xlu1 %v2711_v15 }
 0xb5c   : > { %2709 = vadd.xlane.f32.xlu0 %v2708_v10 }
 0xb6b   : > { %2899 = vrot.lane.b32.xlu1 %v7713_v47, %s7360_s20 }
 0xb6f   : > { %2885 = vrot.lane.b32.xlu1 %v7715_v21, %s7360_s20 }
 0xb72   : > { %2901 = vrot.lane.b32.xlu0 %v7719_v26, %s7360_s20 }
 0xb73   : > { %2889 = vrot.lane.b32.xlu1 %v7735_v34, %s7360_s20 }
 0xb76   : > { %2883 = vrot.lane.b32.xlu0 %v7709_v46, %s7360_s20 }
 0xb77   : > { %2893 = vrot.lane.b32.xlu1 %v7758_v44, %s7360_s20 }
 0xb7a   : > { %2887 = vrot.lane.b32.xlu0 %v7725_v28, %s7360_s20 }
 0xb7b   : > { %2897 = vrot.lane.b32.xlu1 %v7778_v50, %s7360_s20 }
 0xb7e   : > { %2891 = vrot.lane.b32.xlu0 %v7745_v40, %s7360_s20 }
 0xb7f   : > { %3160 = vrot.lane.b32.xlu1 %v7752_v43, %s7360_s20 }
 0xb82   : > { %2895 = vrot.lane.b32.xlu0 %v7768_v48, %s7360_s20 }
 0xb83   : > { %3158 = vrot.lane.b32.xlu1 %v7737_v35, %s7360_s20 }
 0xb86   : > { %3162 = vrot.lane.b32.xlu0 %v7747_v41, %s7360_s20 }
 0xb87   : > { %3156 = vrot.lane.b32.xlu1 %v7741_v37, %s7360_s20 }
 0xb8a   : > { %3154 = vrot.lane.b32.xlu0 %v7727_v29, %s7360_s20 }
 0xb8b   : > { %3152 = vrot.lane.b32.xlu1 %v7731_v33, %s7360_s20 }
 0xb8e   : > { %3150 = vrot.lane.b32.xlu0 %v7717_v24, %s7360_s20 }
 0xb8f   : > { %3148 = vrot.lane.b32.xlu1 %v7721_v27, %s7360_s20 }
 0xb92   : > { %3331 = vrot.lane.b32.xlu0 %v9976_v62, %s9947_s26 }
 0xb93   : > { %3329 = vrot.lane.b32.xlu1 %v9977_v51, %s9947_s26 }
 0xba6   : > { %v2695_v1 = vpop.xlane.xlu1 %2694 }
 0xba7   : > { %7060 = vrcp.f32 %v2695_v1 }
 0xba8   : > { %v2692_v25 = vpop.xlane.xlu0 %2691 }
 0xba9   : > { %7062 = vrcp.f32 %v2692_v25 }
 0xbb4   : > { %v7061_v49 = vpop.eup %7060 }
 0xbb5   : > { %v2723_v9 = vmul.f32 %v7061_v49, %v8599_v17  ;;  %v2904_v17 = vpop.permute.xlu1 %2903 }
 0xbb6   : > { %v7063_v52 = vpop.eup %7062 }
 0xbb7   : > { %v2722_v61 = vmul.f32 %v7063_v52, %v8603_v0  ;;  %v2906_v0 = vpop.permute.xlu0 %2905 }
 0xbb9   : > { %6474 = vmatprep.mubr.msk.f32.mxu1 %vm985_vm1, %v2722_v61 }
 0xbba   : > { %6475 = vmatmul.mubr.msk.f32.vlgmr.msra.gmra.mxu1 %vm985_vm1, %v2723_v9 }
 0xbbb   : > { %6487 = vmatpush3.xpose.msk.msra.mxu1 %vm823_vm0, %v8557_v39 }
 0xbbc   : > { %6488 = vmatprep.subr.msk.mxu1 %vm823_vm0, %v8597_v63 }
 0xbbf   : > { %6489 = vmatpush3.xpose.msk.msra.mxu1 %vm823_vm0, %v8597_v63 }
 0xbc0   : > { %6490 = vmatprep.subr.msk.mxu1 %vm823_vm0, %v2910_v2 }
 0xbc3   : > { %6491 = vmatpush3.xpose.msk.msra.mxu1 %vm823_vm0, %v2910_v2 }
 0xbc4   : > { %6492 = vmatprep.subr.msk.mxu1 %vm823_vm0, %v2908_v23 }
 0xbc7   : > { %6493 = vmatpush3.xpose.msk.msra.mxu1 %vm823_vm0, %v2908_v23 }
 0xbc8   : > { %6494 = vmatprep.subr.msk.mxu1 %vm823_vm0, %v2906_v0 }
 0xbcb   : > { %6495 = vmatpush3.xpose.msk.msra.mxu1 %vm823_vm0, %v2906_v0 }
 0xbcc   : > { %6496 = vmatprep.subr.msk.mxu1 %vm823_vm0, %v2904_v17 }
 0xbcf   : > { %6497 = vmatpush3.xpose.msk.msra.mxu1 %vm823_vm0, %v2904_v17 }
 0xbdb   : > { %v2701_v39 = vpop.xlane.xlu1 %2700 }
 0xbdc   : > { %7064 = vrcp.f32 %v2701_v39 }
 0xbdd   : > { %v2698_v63 = vpop.xlane.xlu0 %2697 }
 0xbde   : > { %7066 = vrcp.f32 %v2698_v63 }
 0xbdf   : > { %v2707_v30 = vpop.xlane.xlu1 %2706 }
 0xbe0   : > { %7068 = vrcp.f32 %v2707_v30 }
 0xbe1   : > { %v2704_v22 = vpop.xlane.xlu0 %2703 }
 0xbe2   : > { %7070 = vrcp.f32 %v2704_v22 }
 0xbe3   : > { %v2713_v18 = vpop.xlane.xlu1 %2712 }
 0xbe4   : > { %7072 = vrcp.f32 %v2713_v18 }
 0xbe5   : > { %v2710_v55 = vpop.xlane.xlu0 %2709 }
 0xbe6   : > { %7074 = vrcp.f32 %v2710_v55 }
 0xbe7   : > { %v2900_v38 = vpop.permute.xlu1 %2899 }
 0xbe9   : > { %v2902_v4 = vpop.permute.xlu0 %2901  ;;  %v7065_v11 = vpop.eup %7064 }
 0xbea   : > { %6498 = vmatprep.subr.msk.mxu1 %vm823_vm0, %v2902_v4  ;;  %v2725_v2 = vmul.f32 %v7065_v11, %v8611_v6 }
 0xbeb   : > { %v7067_v31 = vpop.eup %7066  ;;  %v2886_v15 = vpop.permute.xlu1 %2885  ;;  %6499 = vmatpush3.xpose.msk.msra.mxu1 %vm823_vm0, %v2902_v4 }
 0xbec   : > { %6500 = vmatprep.subr.msk.mxu1 %vm823_vm0, %v2900_v38  ;;  %v2724_v10 = vmul.f32 %v7067_v31, %v8613_v19 }
 0xbed   : > { %v2884_v23 = vpop.permute.xlu0 %2883  ;;  %v7069_v1 = vpop.eup %7068 }
 0xbee   : > { %6477 = vmatprep.mubr.msk.f32.mxu1 %vm985_vm1, %v2724_v10  ;;  %v2727_v9 = vmul.f32 %v7069_v1, %v8617_v56 }
 0xbef   : > { %v7071_v25 = vpop.eup %7070  ;;  %v2890_v49 = vpop.permute.xlu1 %2889  ;;  %6478 = vmatmul.mubr.msk.f32.gmra.mxu1 %vm985_vm1, %v2725_v2 }
 0xbf0   : > { %6501 = vmatpush3.xpose.msk.msra.mxu1 %vm823_vm0, %v2900_v38  ;;  %v2726_v52 = vmul.f32 %v7071_v25, %v8621_v13 }
 0xbf1   : > { %v2888_v61 = vpop.permute.xlu0 %2887  ;;  %v7073_v0 = vpop.eup %7072 }
 0xbf2   : > { %6480 = vmatprep.mubr.msk.f32.mxu1 %vm985_vm1, %v2726_v52  ;;  %v2729_v63 = vmul.f32 %v7073_v0, %v8625_v7 }
 0xbf3   : > { %v7075_v19 = vpop.eup %7074  ;;  %v2894_v17 = vpop.permute.xlu1 %2893  ;;  %6481 = vmatmul.mubr.msk.f32.gmra.mxu1 %vm985_vm1, %v2727_v9 }
 0xbf4   : > { %v2728_v6 = vmul.f32 %v7075_v19, %v8629_v12 }
 0xbf5   : > { %v2892_v39 = vpop.permute.xlu0 %2891 }
 0xbf6   : > { %6483 = vmatprep.mubr.msk.f32.mxu1 %vm985_vm1, %v2728_v6 }
 0xbf7   : > { %v2898_v30 = vpop.permute.xlu1 %2897  ;;  %6484 = vmatmul.mubr.msk.f32.gmra.mxu1 %vm985_vm1, %v2729_v63 }
 0xbf8   : > { %6502 = vmatprep.mubr.msk.f32.mxu1 %vm823_vm0, %v2884_v23 }
 0xbf9   : > { %v2896_v56 = vpop.permute.xlu0 %2895 }
 0xbfb   : > { %v3161_v13 = vpop.permute.xlu1 %3160  ;;  %6503 = vmatmul.mubr.msk.f32.vlgmr.msra.gmra.mxu1 %vm823_vm0, %v2886_v15 }
 0xbfc   : > { %6505 = vmatprep.mubr.msk.f32.mxu1 %vm823_vm0, %v2888_v61 }
 0xbfd   : > { %v3163_v22 = vpop.permute.xlu0 %3162 }
 0xbfe   : > { %6514 = vmatprep.subr.mxu0 %v3163_v22 }
 0xbff   : > { %v3159_v18 = vpop.permute.xlu1 %3158  ;;  %6506 = vmatmul.mubr.msk.f32.gmra.mxu1 %vm823_vm0, %v2890_v49  ;;  %6515 = vmatpush3.msra.mxu0 %v3163_v22 }
 0xc00   : > { %6508 = vmatprep.mubr.msk.f32.mxu1 %vm823_vm0, %v2892_v39  ;;  %6516 = vmatprep.subr.mxu0 %v3161_v13 }
 0xc01   : > { %6517 = vmatpush3.msra.mxu0 %v3161_v13  ;;  %v3155_v7 = vpop.permute.xlu0 %3154 }
 0xc02   : > { %6518 = vmatprep.subr.mxu0 %v3159_v18 }
 0xc03   : > { %v3157_v12 = vpop.permute.xlu1 %3156  ;;  %6509 = vmatmul.mubr.msk.f32.gmra.mxu1 %vm823_vm0, %v2894_v17  ;;  %6519 = vmatpush3.msra.mxu0 %v3159_v18 }
 0xc04   : > { %6511 = vmatprep.mubr.msk.f32.mxu1 %vm823_vm0, %v2896_v56  ;;  %6520 = vmatprep.subr.mxu0 %v3157_v12 }
 0xc05   : > { %6521 = vmatpush3.msra.mxu0 %v3157_v12  ;;  %v3151_v55 = vpop.permute.xlu0 %3150 }
 0xc06   : > { %6522 = vmatprep.subr.mxu0 %v3155_v7 }
 0xc07   : > { %v3153_v38 = vpop.permute.xlu1 %3152  ;;  %6512 = vmatmul.mubr.msk.f32.gmra.mxu1 %vm823_vm0, %v2898_v30  ;;  %6523 = vmatpush3.msra.mxu0 %v3155_v7 }
 0xc08   : > { %6524 = vmatprep.subr.mxu0 %v3153_v38 }
 0xc09   : > { %6525 = vmatpush3.msra.mxu0 %v3153_v38  ;;  %v8717_v11 = vpop.permute.xlu0 %3331 }
 0xc0a   : > { %6526 = vmatprep.subr.mxu0 %v3151_v55 }
 0xc0b   : > { %v3149_v4 = vpop.permute.xlu1 %3148  ;;  %6527 = vmatpush3.msra.mxu0 %v3151_v55 }
 0xc0c   : > { %6528 = vmatprep.subr.mxu0 %v3149_v4 }
 0xc0d   : > { %6529 = vmatpush3.msra.mxu0 %v3149_v4 }
 0xc0e   : > { %6542 = vmatprep.subr.msk.mxu0 %vm823_vm0, %v8717_v11 }
 0xc7a   : > { %v8721_v31 = vpop.f32.mrf.mxu1 }
 0xc7c   : > { %v8723_v15 = vpop.f32.mrf.mxu1 }
 0xcaf   : > { %v8727_v23 = vpop.f32.mrf.mxu1 }
 0xcb0   : > { %9982 = vst [vmem:[#allocation32_spill] sm:$0xff] %v8727_v23 }
 0xcb1   : > { %v8729_v2 = vpop.f32.mrf.mxu1 }
 0xcb2   : > { %9983 = vst [vmem:[#allocation33_spill] sm:$0xff] %v8729_v2 }
 0xcb3   : > { %v8733_v25 = vpop.f32.mrf.mxu1 }
 0xcb4   : > { %9984 = vst [vmem:[#allocation34_spill] sm:$0xff] %v8733_v25 }
 0xcb5   : > { %v8735_v49 = vpop.f32.mrf.mxu1 }
 0xcb6   : > { %9985 = vst [vmem:[#allocation35_spill] sm:$0xff] %v8735_v49 }
 0xcb7   : > { %v8739_v61 = vpop.f32.mrf.mxu1 }
 0xcb8   : > { %9986 = vst [vmem:[#allocation36_spill] sm:$0xff] %v8739_v61 }
 0xcb9   : > { %v8741_v9 = vpop.f32.mrf.mxu1 }
 0xcba   : > { %9987 = vst [vmem:[#allocation37_spill] sm:$0xff] %v8741_v9 }
 0xcbb   : > { %v6504_v19 = vpop.f32.mrf.mxu1 }
 0xcbc   : > { %v3053_v17 = vmul.f32 0.25, %v6504_v19 }
 0xcbd   : > { %v3013_v6 = vpop.f32.mrf.mxu1 }
 0xcbe   : > { %v3052_v39 = vmul.f32 0.25, %v3013_v6  ;;  %v3063_v63 = vsel %vm985_vm1, %v3053_v17, -inf }
 0xcbf   : > { %3064 = vmax.xlane.f32.xlu1 %v3063_v63  ;;  %v6507_v30 = vpop.f32.mrf.mxu1 }
 0xcc0   : > { %v3055_v56 = vmul.f32 0.25, %v6507_v30  ;;  %v3060_v13 = vsel %vm985_vm1, %v3052_v39, -inf }
 0xcc1   : > { %3061 = vmax.xlane.f32.xlu0 %v3060_v13  ;;  %v3023_v22 = vpop.f32.mrf.mxu1 }
 0xcc2   : > { %v3054_v7 = vmul.f32 0.25, %v3023_v22  ;;  %v3069_v55 = vsel %vm985_vm1, %v3055_v56, -inf }
 0xcc3   : > { %v6510_v18 = vpop.f32.mrf.mxu1 }
 0xcc4   : > { %v3057_v12 = vmul.f32 0.25, %v6510_v18  ;;  %v3066_v63 = vsel %vm985_vm1, %v3054_v7, -inf }
 0xcc5   : > { %3070 = vmax.xlane.f32.xlu0 %v3069_v55  ;;  %v3033_v38 = vpop.f32.mrf.mxu1  ;;  %v8757_v55 = vpop.permute.xlu1 %3329 }
 0xcc6   : > { %v3075_v4 = vsel %vm985_vm1, %v3057_v12, -inf  ;;  %v3056_v6 = vmul.f32 0.25, %v3033_v38 }
 0xcc7   : > { %3076 = vmax.xlane.f32.xlu1 %v3075_v4  ;;  %v6513_v19 = vpop.f32.mrf.mxu1 }
 0xcc8   : > { %v3059_v0 = vmul.f32 0.25, %v6513_v19  ;;  %v3072_v22 = vsel %vm985_vm1, %v3056_v6, -inf }
 0xcc9   : > { %3067 = vmax.xlane.f32.xlu0 %v3066_v63  ;;  %v3043_v30 = vpop.f32.mrf.mxu1 }
 0xcca   : > { %v3081_v13 = vsel %vm985_vm1, %v3059_v0, -inf  ;;  %v3058_v52 = vmul.f32 0.25, %v3043_v30 }
 0xccb   : > { %3082 = vmax.xlane.f32.xlu1 %v3081_v13 }
 0xccc   : > { %v3078_v18 = vsel %vm985_vm1, %v3058_v52, -inf }
 0xccd   : > { %3073 = vmax.xlane.f32.xlu0 %v3072_v22 }
 0xcd1   : > { %3079 = vmax.xlane.f32.xlu0 %v3078_v18 }
 0xcdc   : > { %3325 = vrot.lane.b32.xlu1 %v7750_v42, %s9947_s26 }
 0xce7   : > { %3327 = vrot.lane.b32.xlu0 %v7762_v45, %s9947_s26 }
 0xd48   : > { %v3065_v38 = vpop.xlane.xlu1 %3064 }
 0xd49   : > { %v3085_v4 = vsub.f32 %v3053_v17, %v3065_v38 }
 0xd4a   : > { %v3062_v19 = vpop.xlane.xlu0 %3061 }
 0xd4b   : > { %v3094_v63 = vmul.f32 1.442695, %v3085_v4  ;;  %v3084_v13 = vsub.f32 %v3052_v39, %v3062_v19 }
 0xd4d   : > { %7076 = vpow2.f32 %v3094_v63  ;;  %v3092_v30 = vmul.f32 1.442695, %v3084_v13 }
 0xd4e   : > { %v3071_v9 = vpop.xlane.xlu0 %3070 }
 0xd4f   : > { %7078 = vpow2.f32 %v3092_v30  ;;  %v3087_v38 = vsub.f32 %v3055_v56, %v3071_v9 }
 0xd50   : > { %v3077_v39 = vpop.xlane.xlu1 %3076 }
 0xd51   : > { %v3098_v63 = vmul.f32 1.442695, %v3087_v38  ;;  %v3089_v13 = vsub.f32 %v3057_v12, %v3077_v39 }
 0xd52   : > { %v3068_v17 = vpop.xlane.xlu0 %3067 }
 0xd53   : > { %v3086_v19 = vsub.f32 %v3054_v7, %v3068_v17  ;;  %7080 = vpow2.f32 %v3098_v63 }
 0xd54   : > { %v3083_v30 = vpop.xlane.xlu1 %3082 }
 0xd55   : > { %v3091_v25 = vsub.f32 %v3059_v0, %v3083_v30 }
 0xd56   : > { %v3074_v4 = vpop.xlane.xlu0 %3073 }
 0xd57   : > { %v3088_v61 = vsub.f32 %v3056_v6, %v3074_v4  ;;  %v3106_v58 = vmul.f32 1.442695, %v3091_v25 }
 0xd58   : > { %v3326_v0 = vpop.permute.xlu1 %3325 }
 0xd59   : > { %v3100_v2 = vmul.f32 1.442695, %v3088_v61 }
 0xd5a   : > { %v8759_v22 = vpop.eup %7076  ;;  %v3080_v49 = vpop.xlane.xlu0 %3079 }
 0xd5b   : > { %v3111_v18 = vsel %vm985_vm1, %v8759_v22, 0.0  ;;  %v3090_v23 = vsub.f32 %v3058_v52, %v3080_v49 }
 0xd5c   : > { %v8763_v1 = vpop.eup %7078  ;;  %3112 = vadd.xlane.f32.xlu1 %v3111_v18  ;;  %v3096_v18 = vmul.f32 1.442695, %v3086_v19 }
 0xd5d   : > { %v3108_v10 = vsel %vm985_vm1, %v8763_v1, 0.0  ;;  %v3104_v60 = vmul.f32 1.442695, %v3090_v23 }
 0xd5e   : > { %3109 = vadd.xlane.f32.xlu0 %v3108_v10  ;;  %v3102_v10 = vmul.f32 1.442695, %v3089_v13  ;;  %7082 = vpow2.f32 %v3096_v18  ;;  %v3328_v6 = vpop.permute.xlu0 %3327 }
 0xd60   : > { %7084 = vpow2.f32 %v3102_v10  ;;  %v8771_v9 = vpop.eup %7080 }
 0xd61   : > { %7086 = vpow2.f32 %v3100_v2  ;;  %v3117_v7 = vsel %vm985_vm1, %v8771_v9, 0.0 }
 0xd62   : > { %7088 = vpow2.f32 %v3106_v58 }
 0xd63   : > { %7090 = vpow2.f32 %v3104_v60 }
 0xd6b   : > { %v8773_v56 = vpop.eup %7082 }
 0xd6c   : > { %v3114_v61 = vsel %vm985_vm1, %v8773_v56, 0.0 }
 0xd6d   : > { %3321 = vrot.lane.b32.xlu1 %v7729_v32, %s9947_s26  ;;  %v8777_v12 = vpop.eup %7084 }
 0xd6e   : > { %v8781_v49 = vpop.eup %7086  ;;  %v3123_v58 = vsel %vm985_vm1, %v8777_v12, 0.0 }
 0xd6f   : > { %v8785_v60 = vpop.eup %7088  ;;  %v3120_v23 = vsel %vm985_vm1, %v8781_v49, 0.0 }
 0xd70   : > { %v8789_v2 = vpop.eup %7090  ;;  %v3129_v25 = vsel %vm985_vm1, %v8785_v60, 0.0 }
 0xd71   : > { %v3126_v52 = vsel %vm985_vm1, %v8789_v2, 0.0 }
 0xd74   : > { %3323 = vrot.lane.b32.xlu0 %v7739_v36, %s9947_s26 }
 0xd91   : > { %3118 = vadd.xlane.f32.xlu1 %v3117_v7 }
 0xd93   : > { %3115 = vadd.xlane.f32.xlu0 %v3114_v61 }
 0xd95   : > { %3124 = vadd.xlane.f32.xlu1 %v3123_v58 }
 0xd97   : > { %3121 = vadd.xlane.f32.xlu0 %v3120_v23 }
 0xd99   : > { %3130 = vadd.xlane.f32.xlu1 %v3129_v25 }
 0xd9b   : > { %3127 = vadd.xlane.f32.xlu0 %v3126_v52 }
 0xdaa   : > { %3317 = vrot.lane.b32.xlu1 %v7713_v47, %s9947_s26 }
 0xdae   : > { %3303 = vrot.lane.b32.xlu1 %v7715_v21, %s9947_s26 }
 0xdb1   : > { %3319 = vrot.lane.b32.xlu0 %v7719_v26, %s9947_s26 }
 0xdb2   : > { %3307 = vrot.lane.b32.xlu1 %v7735_v34, %s9947_s26 }
 0xdb5   : > { %3301 = vrot.lane.b32.xlu0 %v7709_v46, %s9947_s26 }
 0xdb6   : > { %3311 = vrot.lane.b32.xlu1 %v7758_v44, %s9947_s26 }
 0xdb9   : > { %3305 = vrot.lane.b32.xlu0 %v7725_v28, %s9947_s26 }
 0xdba   : > { %3315 = vrot.lane.b32.xlu1 %v7778_v50, %s9947_s26 }
 0xdbd   : > { %3309 = vrot.lane.b32.xlu0 %v7745_v40, %s9947_s26 }
 0xdbe   : > { %3578 = vrot.lane.b32.xlu1 %v7752_v43, %s9947_s26 }
 0xdc1   : > { %3313 = vrot.lane.b32.xlu0 %v7768_v48, %s9947_s26 }
 0xdc2   : > { %3576 = vrot.lane.b32.xlu1 %v7737_v35, %s9947_s26 }
 0xdc5   : > { %3580 = vrot.lane.b32.xlu0 %v7747_v41, %s9947_s26 }
 0xdc6   : > { %3574 = vrot.lane.b32.xlu1 %v7741_v37, %s9947_s26 }
 0xdc9   : > { %3572 = vrot.lane.b32.xlu0 %v7727_v29, %s9947_s26 }
 0xdca   : > { %3570 = vrot.lane.b32.xlu1 %v7731_v33, %s9947_s26 }
 0xdcd   : > { %3568 = vrot.lane.b32.xlu0 %v7717_v24, %s9947_s26 }
 0xdce   : > { %3566 = vrot.lane.b32.xlu1 %v7721_v27, %s9947_s26 }
 0xdd1   : > { %3749 = vrot.lane.b32.xlu0 %v9976_v62, %s9948_s28 }
 0xdd2   : > { %3747 = vrot.lane.b32.xlu1 %v9977_v51, %s9948_s28 }
 0xde5   : > { %v3113_v17 = vpop.xlane.xlu1 %3112 }
 0xde6   : > { %7092 = vrcp.f32 %v3113_v17 }
 0xde7   : > { %v3110_v39 = vpop.xlane.xlu0 %3109 }
 0xde8   : > { %7094 = vrcp.f32 %v3110_v39 }
 0xde9   : > { %v3322_v51 = vpop.permute.xlu1 %3321 }
 0xdeb   : > { %v3324_v62 = vpop.permute.xlu0 %3323 }
 0xdf3   : > { %v7093_v38 = vpop.eup %7092 }
 0xdf4   : > { %v3141_v63 = vmul.f32 %v7093_v38, %v8759_v22 }
 0xdf5   : > { %v7095_v4 = vpop.eup %7094 }
 0xdf6   : > { %v3140_v19 = vmul.f32 %v7095_v4, %v8763_v1 }
 0xdf8   : > { %6530 = vmatprep.mubr.msk.f32.mxu0 %vm985_vm1, %v3140_v19 }
 0xdf9   : > { %6531 = vmatmul.mubr.msk.f32.vlgmr.msra.gmra.mxu0 %vm985_vm1, %v3141_v63 }
 0xdfa   : > { %6543 = vmatpush3.xpose.msk.msra.mxu0 %vm823_vm0, %v8717_v11 }
 0xdfb   : > { %6544 = vmatprep.subr.msk.mxu0 %vm823_vm0, %v8757_v55 }
 0xdfe   : > { %6545 = vmatpush3.xpose.msk.msra.mxu0 %vm823_vm0, %v8757_v55 }
 0xdff   : > { %6546 = vmatprep.subr.msk.mxu0 %vm823_vm0, %v3328_v6 }
 0xe02   : > { %6547 = vmatpush3.xpose.msk.msra.mxu0 %vm823_vm0, %v3328_v6 }
 0xe03   : > { %6548 = vmatprep.subr.msk.mxu0 %vm823_vm0, %v3326_v0 }
 0xe06   : > { %6549 = vmatpush3.xpose.msk.msra.mxu0 %vm823_vm0, %v3326_v0 }
 0xe07   : > { %6550 = vmatprep.subr.msk.mxu0 %vm823_vm0, %v3324_v62 }
 0xe0a   : > { %6551 = vmatpush3.xpose.msk.msra.mxu0 %vm823_vm0, %v3324_v62 }
 0xe0b   : > { %6552 = vmatprep.subr.msk.mxu0 %vm823_vm0, %v3322_v51 }
 0xe0e   : > { %6553 = vmatpush3.xpose.msk.msra.mxu0 %vm823_vm0, %v3322_v51 }
 0xe1a   : > { %v3119_v11 = vpop.xlane.xlu1 %3118 }
 0xe1b   : > { %7096 = vrcp.f32 %v3119_v11 }
 0xe1c   : > { %v3116_v1 = vpop.xlane.xlu0 %3115 }
 0xe1d   : > { %7098 = vrcp.f32 %v3116_v1 }
 0xe1e   : > { %v3125_v55 = vpop.xlane.xlu1 %3124 }
 0xe1f   : > { %7100 = vrcp.f32 %v3125_v55 }
 0xe20   : > { %v3122_v22 = vpop.xlane.xlu0 %3121 }
 0xe21   : > { %7102 = vrcp.f32 %v3122_v22 }
 0xe22   : > { %v3131_v13 = vpop.xlane.xlu1 %3130 }
 0xe23   : > { %7104 = vrcp.f32 %v3131_v13 }
 0xe24   : > { %v3128_v30 = vpop.xlane.xlu0 %3127 }
 0xe25   : > { %7106 = vrcp.f32 %v3128_v30 }
 0xe26   : > { %v3318_v18 = vpop.permute.xlu1 %3317 }
 0xe28   : > { %v3320_v10 = vpop.permute.xlu0 %3319  ;;  %v7097_v7 = vpop.eup %7096 }
 0xe29   : > { %6554 = vmatprep.subr.msk.mxu0 %vm823_vm0, %v3320_v10  ;;  %v3143_v52 = vmul.f32 %v7097_v7, %v8771_v9 }
 0xe2a   : > { %v7099_v61 = vpop.eup %7098  ;;  %v3304_v58 = vpop.permute.xlu1 %3303  ;;  %6555 = vmatpush3.xpose.msk.msra.mxu0 %vm823_vm0, %v3320_v10 }
 0xe2b   : > { %6556 = vmatprep.subr.msk.mxu0 %vm823_vm0, %v3318_v18  ;;  %v3142_v23 = vmul.f32 %v7099_v61, %v8773_v56 }
 0xe2c   : > { %v3302_v25 = vpop.permute.xlu0 %3301  ;;  %v7101_v0 = vpop.eup %7100 }
 0xe2d   : > { %6533 = vmatprep.mubr.msk.f32.mxu0 %vm985_vm1, %v3142_v23  ;;  %v3145_v4 = vmul.f32 %v7101_v0, %v8777_v12 }
 0xe2e   : > { %v7103_v6 = vpop.eup %7102  ;;  %v3308_v17 = vpop.permute.xlu1 %3307  ;;  %6534 = vmatmul.mubr.msk.f32.gmra.mxu0 %vm985_vm1, %v3143_v52 }
 0xe2f   : > { %6557 = vmatpush3.xpose.msk.msra.mxu0 %vm823_vm0, %v3318_v18  ;;  %v3144_v39 = vmul.f32 %v7103_v6, %v8781_v49 }
 0xe30   : > { %v3306_v38 = vpop.permute.xlu0 %3305  ;;  %v7105_v19 = vpop.eup %7104 }
 0xe31   : > { %6536 = vmatprep.mubr.msk.f32.mxu0 %vm985_vm1, %v3144_v39  ;;  %v3147_v51 = vmul.f32 %v7105_v19, %v8785_v60 }
 0xe32   : > { %v7107_v56 = vpop.eup %7106  ;;  %v3312_v63 = vpop.permute.xlu1 %3311  ;;  %6537 = vmatmul.mubr.msk.f32.gmra.mxu0 %vm985_vm1, %v3145_v4 }
 0xe33   : > { %v3146_v9 = vmul.f32 %v7107_v56, %v8789_v2 }
 0xe34   : > { %v3310_v62 = vpop.permute.xlu0 %3309 }
 0xe35   : > { %6539 = vmatprep.mubr.msk.f32.mxu0 %vm985_vm1, %v3146_v9 }
 0xe36   : > { %v3316_v11 = vpop.permute.xlu1 %3315  ;;  %6540 = vmatmul.mubr.msk.f32.gmra.mxu0 %vm985_vm1, %v3147_v51 }
 0xe37   : > { %6558 = vmatprep.mubr.msk.f32.mxu0 %vm823_vm0, %v3302_v25 }
 0xe38   : > { %v3314_v12 = vpop.permute.xlu0 %3313 }
 0xe3a   : > { %v3579_v49 = vpop.permute.xlu1 %3578  ;;  %6559 = vmatmul.mubr.msk.f32.vlgmr.msra.gmra.mxu0 %vm823_vm0, %v3304_v58 }
 0xe3b   : > { %6561 = vmatprep.mubr.msk.f32.mxu0 %vm823_vm0, %v3306_v38 }
 0xe3c   : > { %v3581_v1 = vpop.permute.xlu0 %3580 }
 0xe3d   : > { %6570 = vmatprep.subr.mxu1 %v3581_v1 }
 0xe3e   : > { %v3577_v55 = vpop.permute.xlu1 %3576  ;;  %6562 = vmatmul.mubr.msk.f32.gmra.mxu0 %vm823_vm0, %v3308_v17  ;;  %6571 = vmatpush3.msra.mxu1 %v3581_v1 }
 0xe3f   : > { %6564 = vmatprep.mubr.msk.f32.mxu0 %vm823_vm0, %v3310_v62  ;;  %6572 = vmatprep.subr.mxu1 %v3579_v49 }
 0xe40   : > { %6573 = vmatpush3.msra.mxu1 %v3579_v49  ;;  %v3573_v60 = vpop.permute.xlu0 %3572 }
 0xe41   : > { %6574 = vmatprep.subr.mxu1 %v3577_v55 }
 0xe42   : > { %v3575_v2 = vpop.permute.xlu1 %3574  ;;  %6565 = vmatmul.mubr.msk.f32.gmra.mxu0 %vm823_vm0, %v3312_v63  ;;  %6575 = vmatpush3.msra.mxu1 %v3577_v55 }
 0xe43   : > { %6567 = vmatprep.mubr.msk.f32.mxu0 %vm823_vm0, %v3314_v12  ;;  %6576 = vmatprep.subr.mxu1 %v3575_v2 }
 0xe44   : > { %6577 = vmatpush3.msra.mxu1 %v3575_v2  ;;  %v3569_v22 = vpop.permute.xlu0 %3568 }
 0xe45   : > { %6578 = vmatprep.subr.mxu1 %v3573_v60 }
 0xe46   : > { %v3571_v13 = vpop.permute.xlu1 %3570  ;;  %6568 = vmatmul.mubr.msk.f32.gmra.mxu0 %vm823_vm0, %v3316_v11  ;;  %6579 = vmatpush3.msra.mxu1 %v3573_v60 }
 0xe47   : > { %6580 = vmatprep.subr.mxu1 %v3571_v13 }
 0xe48   : > { %6581 = vmatpush3.msra.mxu1 %v3571_v13  ;;  %v8877_v18 = vpop.permute.xlu0 %3749 }
 0xe49   : > { %6582 = vmatprep.subr.mxu1 %v3569_v22 }
 0xe4a   : > { %v3567_v30 = vpop.permute.xlu1 %3566  ;;  %6583 = vmatpush3.msra.mxu1 %v3569_v22 }
 0xe4b   : > { %6584 = vmatprep.subr.mxu1 %v3567_v30 }
 0xe4c   : > { %6585 = vmatpush3.msra.mxu1 %v3567_v30 }
 0xe4d   : > { %6598 = vmatprep.subr.msk.mxu1 %vm823_vm0, %v8877_v18 }
 0xeb9   : > { %v8881_v10 = vpop.f32.mrf.mxu0 }
 0xebb   : > { %v8883_v7 = vpop.f32.mrf.mxu0 }
 0xeee   : > { %v8887_v58 = vpop.f32.mrf.mxu0 }
 0xef0   : > { %v8889_v23 = vpop.f32.mrf.mxu0 }
 0xef2   : > { %v8893_v52 = vpop.f32.mrf.mxu0 }
 0xef4   : > { %v8895_v0 = vpop.f32.mrf.mxu0 }
 0xef6   : > { %v8899_v17 = vpop.f32.mrf.mxu0 }
 0xef7   : > { %9988 = vst [vmem:[#allocation38_spill] sm:$0xff] %v8899_v17 }
 0xef8   : > { %v8901_v39 = vpop.f32.mrf.mxu0 }
 0xef9   : > { %9989 = vst [vmem:[#allocation39_spill] sm:$0xff] %v8901_v39 }
 0xefa   : > { %v6560_v4 = vpop.f32.mrf.mxu0 }
 0xefb   : > { %v3471_v19 = vmul.f32 0.25, %v6560_v4 }
 0xefc   : > { %v3431_v56 = vpop.f32.mrf.mxu0 }
 0xefd   : > { %v3470_v63 = vmul.f32 0.25, %v3431_v56  ;;  %v3481_v9 = vsel %vm985_vm1, %v3471_v19, -inf }
 0xefe   : > { %3482 = vmax.xlane.f32.xlu1 %v3481_v9  ;;  %v6563_v62 = vpop.f32.mrf.mxu0 }
 0xeff   : > { %v3473_v51 = vmul.f32 0.25, %v6563_v62  ;;  %v3478_v11 = vsel %vm985_vm1, %v3470_v63, -inf }
 0xf00   : > { %3479 = vmax.xlane.f32.xlu0 %v3478_v11  ;;  %v3441_v12 = vpop.f32.mrf.mxu0 }
 0xf01   : > { %v3472_v1 = vmul.f32 0.25, %v3441_v12  ;;  %v3487_v60 = vsel %vm985_vm1, %v3473_v51, -inf }
 0xf02   : > { %v6566_v49 = vpop.f32.mrf.mxu0 }
 0xf03   : > { %v3475_v55 = vmul.f32 0.25, %v6566_v49  ;;  %v3484_v56 = vsel %vm985_vm1, %v3472_v1, -inf }
 0xf04   : > { %3488 = vmax.xlane.f32.xlu0 %v3487_v60  ;;  %v3451_v2 = vpop.f32.mrf.mxu0  ;;  %v8917_v60 = vpop.permute.xlu1 %3747 }
 0xf05   : > { %v3493_v22 = vsel %vm985_vm1, %v3475_v55, -inf  ;;  %v3474_v30 = vmul.f32 0.25, %v3451_v2 }
 0xf06   : > { %3494 = vmax.xlane.f32.xlu1 %v3493_v22  ;;  %v6569_v13 = vpop.f32.mrf.mxu0 }
 0xf07   : > { %v3477_v4 = vmul.f32 0.25, %v6569_v13  ;;  %v3490_v12 = vsel %vm985_vm1, %v3474_v30, -inf }
 0xf08   : > { %3485 = vmax.xlane.f32.xlu0 %v3484_v56  ;;  %v3461_v9 = vpop.f32.mrf.mxu0 }
 0xf09   : > { %v3499_v62 = vsel %vm985_vm1, %v3477_v4, -inf  ;;  %v3476_v11 = vmul.f32 0.25, %v3461_v9 }
 0xf0a   : > { %3500 = vmax.xlane.f32.xlu1 %v3499_v62 }
 0xf0b   : > { %v3496_v49 = vsel %vm985_vm1, %v3476_v11, -inf }
 0xf0c   : > { %3491 = vmax.xlane.f32.xlu0 %v3490_v12 }
 0xf10   : > { %3497 = vmax.xlane.f32.xlu0 %v3496_v49 }
 0xf1b   : > { %3743 = vrot.lane.b32.xlu1 %v7750_v42, %s9948_s28 }
 0xf26   : > { %3745 = vrot.lane.b32.xlu0 %v7762_v45, %s9948_s28 }
 0xf87   : > { %v3483_v2 = vpop.xlane.xlu1 %3482 }
 0xf88   : > { %v3503_v22 = vsub.f32 %v3471_v19, %v3483_v2 }
 0xf89   : > { %v3480_v13 = vpop.xlane.xlu0 %3479 }
 0xf8a   : > { %v3512_v56 = vmul.f32 1.442695, %v3503_v22  ;;  %v3502_v62 = vsub.f32 %v3470_v63, %v3480_v13 }
 0xf8c   : > { %7108 = vpow2.f32 %v3512_v56  ;;  %v3510_v9 = vmul.f32 1.442695, %v3502_v62 }
 0xf8d   : > { %v3489_v45 = vpop.xlane.xlu0 %3488 }
 0xf8e   : > { %7110 = vpow2.f32 %v3510_v9  ;;  %v3505_v2 = vsub.f32 %v3473_v51, %v3489_v45 }
 0xf8f   : > { %v3495_v63 = vpop.xlane.xlu1 %3494 }
 0xf90   : > { %v3516_v56 = vmul.f32 1.442695, %v3505_v2  ;;  %v3507_v62 = vsub.f32 %v3475_v55, %v3495_v63 }
 0xf91   : > { %v3486_v19 = vpop.xlane.xlu0 %3485 }
 0xf92   : > { %v3504_v13 = vsub.f32 %v3472_v1, %v3486_v19  ;;  %7112 = vpow2.f32 %v3516_v56 }
 0xf93   : > { %v3501_v9 = vpop.xlane.xlu1 %3500 }
 0xf94   : > { %v3509_v61 = vsub.f32 %v3477_v4, %v3501_v9 }
 0xf95   : > { %v3492_v22 = vpop.xlane.xlu0 %3491 }
 0xf96   : > { %v3506_v6 = vsub.f32 %v3474_v30, %v3492_v22  ;;  %v3524_v17 = vmul.f32 1.442695, %v3509_v61 }
 0xf98   : > { %v3518_v39 = vmul.f32 1.442695, %v3506_v6 }
 0xf99   : > { %v8919_v12 = vpop.eup %7108  ;;  %v3498_v25 = vpop.xlane.xlu0 %3497 }
 0xf9a   : > { %v3529_v49 = vsel %vm985_vm1, %v8919_v12, 0.0 }
 0xf9b   : > { %v8923_v38 = vpop.eup %7110  ;;  %3530 = vadd.xlane.f32.xlu1 %v3529_v49  ;;  %v3514_v49 = vmul.f32 1.442695, %v3504_v13 }
 0xf9c   : > { %v3526_v42 = vsel %vm985_vm1, %v8923_v38, 0.0 }
 0xf9d   : > { %3527 = vadd.xlane.f32.xlu0 %v3526_v42  ;;  %v3520_v42 = vmul.f32 1.442695, %v3507_v62  ;;  %7114 = vpow2.f32 %v3514_v49 }
 0xf9f   : > { %7116 = vpow2.f32 %v3520_v42  ;;  %v8931_v51 = vpop.eup %7112 }
 0xfa0   : > { %7118 = vpow2.f32 %v3518_v39  ;;  %v3535_v55 = vsel %vm985_vm1, %v8931_v51, 0.0 }
 0xfa1   : > { %7120 = vpow2.f32 %v3524_v17 }
 0xfaa   : > { %v8933_v1 = vpop.eup %7114 }
 0xfab   : > { %v3532_v6 = vsel %vm985_vm1, %v8933_v1, 0.0 }
 0xfac   : > { %3739 = vrot.lane.b32.xlu1 %v7729_v32, %s9948_s28  ;;  %v3508_v32 = vsub.f32 %v3476_v11, %v3498_v25  ;;  %v8937_v30 = vpop.eup %7116 }
 0xfad   : > { %v8941_v25 = vpop.eup %7118  ;;  %v3541_v61 = vsel %vm985_vm1, %v8937_v30, 0.0 }
 0xfae   : > { %v8945_v17 = vpop.eup %7120  ;;  %v3538_v39 = vsel %vm985_vm1, %v8941_v25, 0.0 }
 0xfaf   : > { %v3547_v11 = vsel %vm985_vm1, %v8945_v17, 0.0 }
 0xfb3   : > { %3741 = vrot.lane.b32.xlu0 %v7739_v36, %s9948_s28  ;;  %v3522_v36 = vmul.f32 1.442695, %v3508_v32 }
 0xfb5   : > { %7122 = vpow2.f32 %v3522_v36 }
 0xfc2   : > { %v8949_v4 = vpop.eup %7122 }
 0xfc3   : > { %v3544_v45 = vsel %vm985_vm1, %v8949_v4, 0.0 }
 0xfd0   : > { %3536 = vadd.xlane.f32.xlu1 %v3535_v55 }
 0xfd2   : > { %3533 = vadd.xlane.f32.xlu0 %v3532_v6 }
 0xfd4   : > { %3542 = vadd.xlane.f32.xlu1 %v3541_v61 }
 0xfd6   : > { %3539 = vadd.xlane.f32.xlu0 %v3538_v39 }
 0xfd8   : > { %3548 = vadd.xlane.f32.xlu1 %v3547_v11 }
 0xfda   : > { %3545 = vadd.xlane.f32.xlu0 %v3544_v45 }
 0xfe9   : > { %3735 = vrot.lane.b32.xlu1 %v7713_v47, %s9948_s28  ;;  %v3744_v47 = vpop.permute.xlu1 %3743 }
 0xfed   : > { %3721 = vrot.lane.b32.xlu1 %v7715_v21, %s9948_s28  ;;  %v3746_v21 = vpop.permute.xlu0 %3745 }
 0xff0   : > { %3737 = vrot.lane.b32.xlu0 %v7719_v26, %s9948_s28 }
 0xff1   : > { %3725 = vrot.lane.b32.xlu1 %v7735_v34, %s9948_s28 }
 0xff4   : > { %3719 = vrot.lane.b32.xlu0 %v7709_v46, %s9948_s28 }
 0xff5   : > { %3729 = vrot.lane.b32.xlu1 %v7758_v44, %s9948_s28 }
 0xff8   : > { %3723 = vrot.lane.b32.xlu0 %v7725_v28, %s9948_s28 }
 0xff9   : > { %3733 = vrot.lane.b32.xlu1 %v7778_v50, %s9948_s28 }
 0xffc   : > { %3727 = vrot.lane.b32.xlu0 %v7745_v40, %s9948_s28 }
0x1000   : > { %3731 = vrot.lane.b32.xlu0 %v7768_v48, %s9948_s28 }
0x1024   : > { %v3531_v26 = vpop.xlane.xlu1 %3530 }
0x1025   : > { %7124 = vrcp.f32 %v3531_v26 }
0x1026   : > { %v3528_v46 = vpop.xlane.xlu0 %3527 }
0x1027   : > { %7126 = vrcp.f32 %v3528_v46 }
0x1028   : > { %v3740_v48 = vpop.permute.xlu1 %3739 }
0x102a   : > { %v3742_v40 = vpop.permute.xlu0 %3741 }
0x1032   : > { %v7125_v34 = vpop.eup %7124 }
0x1033   : > { %v3559_v28 = vmul.f32 %v7125_v34, %v8919_v12 }
0x1034   : > { %v7127_v44 = vpop.eup %7126 }
0x1035   : > { %v3558_v19 = vmul.f32 %v7127_v44, %v8923_v38 }
0x1037   : > { %6586 = vmatprep.mubr.msk.f32.mxu1 %vm985_vm1, %v3558_v19 }
0x1038   : > { %6587 = vmatmul.mubr.msk.f32.vlgmr.msra.gmra.mxu1 %vm985_vm1, %v3559_v28 }
0x1039   : > { %6599 = vmatpush3.xpose.msk.msra.mxu1 %vm823_vm0, %v8877_v18 }
0x103a   : > { %6600 = vmatprep.subr.msk.mxu1 %vm823_vm0, %v8917_v60 }
0x103d   : > { %6601 = vmatpush3.xpose.msk.msra.mxu1 %vm823_vm0, %v8917_v60 }
0x103e   : > { %6602 = vmatprep.subr.msk.mxu1 %vm823_vm0, %v3746_v21 }
0x1041   : > { %6603 = vmatpush3.xpose.msk.msra.mxu1 %vm823_vm0, %v3746_v21 }
0x1042   : > { %6604 = vmatprep.subr.msk.mxu1 %vm823_vm0, %v3744_v47 }
0x1045   : > { %6605 = vmatpush3.xpose.msk.msra.mxu1 %vm823_vm0, %v3744_v47  ;;  %v9990_v47 = vmov 0.0  }
0x1046   : > { %6606 = vmatprep.subr.msk.mxu1 %vm823_vm0, %v3742_v40 }
0x1049   : > { %6607 = vmatpush3.xpose.msk.msra.mxu1 %vm823_vm0, %v3742_v40 }
0x104a   : > { %6608 = vmatprep.subr.msk.mxu1 %vm823_vm0, %v3740_v48 }
0x104d   : > { %6609 = vmatpush3.xpose.msk.msra.mxu1 %vm823_vm0, %v3740_v48 }
0x1059   : > { %v3537_v50 = vpop.xlane.xlu1 %3536 }
0x105a   : > { %7128 = vrcp.f32 %v3537_v50 }
0x105b   : > { %v3534_v18 = vpop.xlane.xlu0 %3533 }
0x105c   : > { %7130 = vrcp.f32 %v3534_v18 }
0x105d   : > { %v3543_v38 = vpop.xlane.xlu1 %3542 }
0x105e   : > { %7132 = vrcp.f32 %v3543_v38 }
0x105f   : > { %v3540_v60 = vpop.xlane.xlu0 %3539 }
0x1060   : > { %7134 = vrcp.f32 %v3540_v60 }
0x1061   : > { %v3549_v12 = vpop.xlane.xlu1 %3548 }
0x1062   : > { %7136 = vrcp.f32 %v3549_v12 }
0x1063   : > { %v3546_v63 = vpop.xlane.xlu0 %3545 }
0x1064   : > { %7138 = vrcp.f32 %v3546_v63 }
0x1065   : > { %v3736_v56 = vpop.permute.xlu1 %3735 }
0x1067   : > { %v3738_v2 = vpop.permute.xlu0 %3737  ;;  %v7129_v22 = vpop.eup %7128 }
0x1068   : > { %6610 = vmatprep.subr.msk.mxu1 %vm823_vm0, %v3738_v2  ;;  %v3561_v9 = vmul.f32 %v7129_v22, %v8931_v51 }
0x1069   : > { %v7131_v13 = vpop.eup %7130  ;;  %6611 = vmatpush3.xpose.msk.msra.mxu1 %vm823_vm0, %v3738_v2  ;;  %v3722_v51 = vpop.permute.xlu1 %3721 }
0x106a   : > { %6612 = vmatprep.subr.msk.mxu1 %vm823_vm0, %v3736_v56  ;;  %v3560_v62 = vmul.f32 %v7131_v13, %v8933_v1 }
0x106b   : > { %v7133_v49 = vpop.eup %7132  ;;  %v3720_v36 = vpop.permute.xlu0 %3719 }
0x106c   : > { %6589 = vmatprep.mubr.msk.f32.mxu1 %vm985_vm1, %v3560_v62  ;;  %v3563_v55 = vmul.f32 %v7133_v49, %v8937_v30 }
0x106d   : > { %v7135_v42 = vpop.eup %7134  ;;  %6590 = vmatmul.mubr.msk.f32.gmra.mxu1 %vm985_vm1, %v3561_v9 }
0x106e   : > { %6613 = vmatpush3.xpose.msk.msra.mxu1 %vm823_vm0, %v3736_v56  ;;  %v3562_v32 = vmul.f32 %v7135_v42, %v8941_v25  ;;  %v3726_v25 = vpop.permute.xlu1 %3725 }
0x106f   : > { %v7137_v6 = vpop.eup %7136  ;;  %v3724_v11 = vpop.permute.xlu0 %3723 }
0x1070   : > { %6592 = vmatprep.mubr.msk.f32.mxu1 %vm985_vm1, %v3562_v32  ;;  %v3565_v39 = vmul.f32 %v7137_v6, %v8945_v17 }
0x1071   : > { %v7139_v61 = vpop.eup %7138  ;;  %6593 = vmatmul.mubr.msk.f32.gmra.mxu1 %vm985_vm1, %v3563_v55 }
0x1072   : > { %v3564_v1 = vmul.f32 %v7139_v61, %v8949_v4  ;;  %v3730_v45 = vpop.permute.xlu1 %3729 }
0x1073   : > { %v3728_v30 = vpop.permute.xlu0 %3727 }
0x1074   : > { %6595 = vmatprep.mubr.msk.f32.mxu1 %vm985_vm1, %v3564_v1 }
0x1075   : > { %6596 = vmatmul.mubr.msk.f32.gmra.mxu1 %vm985_vm1, %v3565_v39 }
0x1076   : > { %6614 = vmatprep.mubr.msk.f32.mxu1 %vm823_vm0, %v3720_v36  ;;  %v3734_v17 = vpop.permute.xlu1 %3733 }
0x1077   : > { %v3732_v4 = vpop.permute.xlu0 %3731 }
0x1079   : > { %6615 = vmatmul.mubr.msk.f32.vlgmr.msra.gmra.mxu1 %vm823_vm0, %v3722_v51 }
0x107a   : > { %6617 = vmatprep.mubr.msk.f32.mxu1 %vm823_vm0, %v3724_v11 }
0x107d   : > { %6618 = vmatmul.mubr.msk.f32.gmra.mxu1 %vm823_vm0, %v3726_v25 }
0x107e   : > { %6620 = vmatprep.mubr.msk.f32.mxu1 %vm823_vm0, %v3728_v30 }
0x1081   : > { %6621 = vmatmul.mubr.msk.f32.gmra.mxu1 %vm823_vm0, %v3730_v45 }
0x1082   : > { %6623 = vmatprep.mubr.msk.f32.mxu1 %vm823_vm0, %v3732_v4 }
0x1085   : > { %6624 = vmatmul.mubr.msk.f32.gmra.mxu1 %vm823_vm0, %v3734_v17 }
0x1086   : > { %4826 = vmatprep.mubr.f32.mxu1 %v9990_v47 }
0x10f8   : > { %v9018_v21 = vpop.f32.mrf.mxu1 }
0x10fa   : > { %v9020_v26 = vpop.f32.mrf.mxu1 }
0x10fb   : > { %v6785_v46 = vpack.i.bf16 %v9018_v21, %v9020_v26  ;;  %v10012_v21 = vld [vmem:[#allocation21_spill] sm:$0xff] }
0x112d   : > { %v9024_v34 = vpop.f32.mrf.mxu1 }
0x112f   : > { %v9026_v44 = vpop.f32.mrf.mxu1 }
0x1130   : > { %v6815_v19 = vpack.i.bf16 %v9024_v34, %v9026_v44 }
0x1131   : > { %v9030_v28 = vpop.f32.mrf.mxu1 }
0x1133   : > { %v9032_v40 = vpop.f32.mrf.mxu1 }
0x1134   : > { %v6850_v48 = vpack.i.bf16 %v9030_v28, %v9032_v40 }
0x1135   : > { %v9036_v50 = vpop.f32.mrf.mxu1 }
0x1137   : > { %v9038_v18 = vpop.f32.mrf.mxu1 }
0x1138   : > { %v6890_v38 = vpack.i.bf16 %v9036_v50, %v9038_v18 }
0x1139   : > { %v6616_v60 = vpop.f32.mrf.mxu1 }
0x113a   : > { %v3889_v12 = vmul.f32 0.25, %v6616_v60 }
0x113b   : > { %v3849_v63 = vpop.f32.mrf.mxu1 }
0x113c   : > { %v3888_v2 = vmul.f32 0.25, %v3849_v63  ;;  %v3899_v22 = vsel %vm985_vm1, %v3889_v12, -inf }
0x113d   : > { %3900 = vmax.xlane.f32.xlu1 %v3899_v22  ;;  %v6619_v13 = vpop.f32.mrf.mxu1 }
0x113e   : > { %v3891_v56 = vmul.f32 0.25, %v6619_v13  ;;  %v3896_v62 = vsel %vm985_vm1, %v3888_v2, -inf }
0x113f   : > { %3897 = vmax.xlane.f32.xlu0 %v3896_v62  ;;  %v3859_v9 = vpop.f32.mrf.mxu1 }
0x1140   : > { %v3890_v49 = vmul.f32 0.25, %v3859_v9  ;;  %v3905_v42 = vsel %vm985_vm1, %v3891_v56, -inf }
0x1141   : > { %v6622_v36 = vpop.f32.mrf.mxu1 }
0x1142   : > { %v3902_v32 = vsel %vm985_vm1, %v3890_v49, -inf  ;;  %v3893_v6 = vmul.f32 0.25, %v6622_v36 }
0x1143   : > { %3906 = vmax.xlane.f32.xlu0 %v3905_v42  ;;  %v3869_v55 = vpop.f32.mrf.mxu1 }
0x1144   : > { %v3911_v1 = vsel %vm985_vm1, %v3893_v6, -inf  ;;  %v3892_v11 = vmul.f32 0.25, %v3869_v55 }
0x1145   : > { %v6625_v61 = vpop.f32.mrf.mxu1 }
0x1146   : > { %v3895_v51 = vmul.f32 0.25, %v6625_v61  ;;  %v3908_v45 = vsel %vm985_vm1, %v3892_v11, -inf }
0x1147   : > { %3903 = vmax.xlane.f32.xlu0 %v3902_v32  ;;  %v3879_v25 = vpop.f32.mrf.mxu1 }
0x1148   : > { %v3917_v39 = vsel %vm985_vm1, %v3895_v51, -inf  ;;  %v3894_v30 = vmul.f32 0.25, %v3879_v25 }
0x114e   : > { %3996 = vrot.lane.b32.xlu1 %v7752_v43, %s9948_s28  ;;  %v3914_v43 = vsel %vm985_vm1, %v3894_v30, -inf }
0x115d   : > { %3998 = vrot.lane.b32.xlu0 %v7747_v41, %s9948_s28 }
0x1172   : > { %3912 = vmax.xlane.f32.xlu1 %v3911_v1 }
0x1176   : > { %3918 = vmax.xlane.f32.xlu1 %v3917_v39 }
0x117c   : > { %3909 = vmax.xlane.f32.xlu0 %v3908_v45 }
0x1180   : > { %3915 = vmax.xlane.f32.xlu0 %v3914_v43 }
0x1187   : > { %3992 = vrot.lane.b32.xlu1 %v7741_v37, %s9948_s28 }
0x118b   : > { %3990 = vrot.lane.b32.xlu1 %v7727_v29, %s9948_s28 }
0x118f   : > { %3988 = vrot.lane.b32.xlu1 %v7731_v33, %s9948_s28 }
0x1196   : > { %3994 = vrot.lane.b32.xlu0 %v7737_v35, %s9948_s28 }
0x11c6   : > { %v3901_v41 = vpop.xlane.xlu1 %3900 }
0x11c7   : > { %v3921_v4 = vsub.f32 %v3889_v12, %v3901_v41 }
0x11c8   : > { %v3898_v17 = vpop.xlane.xlu0 %3897 }
0x11c9   : > { %v3930_v60 = vmul.f32 1.442695, %v3921_v4  ;;  %v3920_v63 = vsub.f32 %v3888_v2, %v3898_v17 }
0x11ca   : > { %v3997_v33 = vpop.permute.xlu1 %3996 }
0x11cb   : > { %7140 = vpow2.f32 %v3930_v60  ;;  %v3928_v22 = vmul.f32 1.442695, %v3920_v63 }
0x11cc   : > { %v3907_v13 = vpop.xlane.xlu0 %3906 }
0x11cd   : > { %7142 = vpow2.f32 %v3928_v22  ;;  %v3923_v62 = vsub.f32 %v3891_v56, %v3907_v13 }
0x11cf   : > { %v3934_v37 = vmul.f32 1.442695, %v3923_v62 }
0x11d0   : > { %v3904_v9 = vpop.xlane.xlu0 %3903 }
0x11d1   : > { %7144 = vpow2.f32 %v3934_v37  ;;  %v3922_v29 = vsub.f32 %v3890_v49, %v3904_v9 }
0x11d3   : > { %v3932_v42 = vmul.f32 1.442695, %v3922_v29 }
0x11d4   : > { %v3999_v32 = vpop.permute.xlu0 %3998 }
0x11d5   : > { %7146 = vpow2.f32 %v3932_v42  ;;  %6626 = vmatprep.subr.mxu0 %v3999_v32 }
0x11d6   : > { %6627 = vmatpush3.msra.mxu0 %v3999_v32 }
0x11d7   : > { %6628 = vmatprep.subr.mxu0 %v3997_v33 }
0x11d8   : > { %v9062_v35 = vpop.eup %7140  ;;  %6629 = vmatpush3.msra.mxu0 %v3997_v33 }
0x11d9   : > { %v3947_v12 = vsel %vm985_vm1, %v9062_v35, 0.0 }
0x11da   : > { %v9066_v2 = vpop.eup %7142  ;;  %3948 = vadd.xlane.f32.xlu1 %v3947_v12 }
0x11db   : > { %v3944_v56 = vsel %vm985_vm1, %v9066_v2, 0.0 }
0x11dc   : > { %3945 = vadd.xlane.f32.xlu0 %v3944_v56  ;;  %v9991_v56 = vpack.i.bf16 %v8401_v8, %v8403_v20  ;;  %v9998_v8 = vld [vmem:[#allocation24_spill] sm:$0xff]  ;;  %v9999_v20 = vld [vmem:[#allocation25_spill] sm:$0xff] }
0x11de   : > { %v9070_v49 = vpop.eup %7144 }
0x11df   : > { %v3953_v36 = vsel %vm985_vm1, %v9070_v49, 0.0 }
0x11e0   : > { %3954 = vadd.xlane.f32.xlu1 %v3953_v36  ;;  %v9992_v36 = vpack.i.bf16 %v8721_v31, %v8723_v15  ;;  %v10005_v15 = vld [vmem:[#allocation26_spill] sm:$0xff] }
0x11e2   : > { %v9074_v55 = vpop.eup %7146 }
0x11e3   : > { %v3950_v61 = vsel %vm985_vm1, %v9074_v55, 0.0 }
0x11e4   : > { %3951 = vadd.xlane.f32.xlu0 %v3950_v61  ;;  %v9993_v61 = vpack.i.bf16 %v8377_v54, %v8379_v53  ;;  %v9996_v54 = vpack.i.bf16 %v8881_v10, %v8883_v7  ;;  %v9997_v53 = vpack.i.bf16 %v8567_v14, %v8569_v3  ;;  %v10006_v10 = vld [vmem:[#allocation27_spill] sm:$0xff]  ;;  %v10008_v3 = vld [vmem:[#allocation34_spill] sm:$0xff] }
0x11e5   : > { %v10007_v14 = vpack.i.bf16 %v10005_v15, %v10006_v10  ;;  %v10009_v7 = vld [vmem:[#allocation35_spill] sm:$0xff]  ;;  %v10015_v10 = vld [vmem:[#allocation10_spill] sm:$0xff] }
0x11e6   : > { %v10014_v15 = vld [vmem:[#allocation11_spill] sm:$0xff] }
0x11fb   : > { %v3913_v1 = vpop.xlane.xlu1 %3912 }
0x11fc   : > { %v3925_v39 = vsub.f32 %v3893_v6, %v3913_v1 }
0x11fe   : > { %v3938_v25 = vmul.f32 1.442695, %v3925_v39 }
0x11ff   : > { %v3919_v45 = vpop.xlane.xlu1 %3918 }
0x1200   : > { %7148 = vpow2.f32 %v3938_v25  ;;  %v3927_v43 = vsub.f32 %v3895_v51, %v3919_v45 }
0x1202   : > { %v3942_v60 = vmul.f32 1.442695, %v3927_v43 }
0x1203   : > { %v3993_v17 = vpop.permute.xlu1 %3992 }
0x1205   : > { %v3910_v41 = vpop.xlane.xlu0 %3909 }
0x1206   : > { %v3924_v4 = vsub.f32 %v3892_v11, %v3910_v41 }
0x1207   : > { %v3991_v9 = vpop.permute.xlu1 %3990 }
0x1208   : > { %v3936_v63 = vmul.f32 1.442695, %v3924_v4 }
0x1209   : > { %v3916_v22 = vpop.xlane.xlu0 %3915 }
0x120a   : > { %7150 = vpow2.f32 %v3936_v63  ;;  %v3926_v13 = vsub.f32 %v3894_v30, %v3916_v22 }
0x120b   : > { %7152 = vpow2.f32 %v3942_v60  ;;  %v3989_v51 = vpop.permute.xlu1 %3988 }
0x120c   : > { %v3940_v62 = vmul.f32 1.442695, %v3926_v13 }
0x120d   : > { %v9078_v37 = vpop.eup %7148  ;;  %v3995_v29 = vpop.permute.xlu0 %3994 }
0x120e   : > { %7154 = vpow2.f32 %v3940_v62  ;;  %6630 = vmatprep.subr.mxu0 %v3995_v29  ;;  %v3959_v6 = vsel %vm985_vm1, %v9078_v37, 0.0 }
0x120f   : > { %3960 = vadd.xlane.f32.xlu0 %v3959_v6  ;;  %6631 = vmatpush3.msra.mxu0 %v3995_v29 }
0x1210   : > { %6632 = vmatprep.subr.mxu0 %v3993_v17 }
0x1211   : > { %6633 = vmatpush3.msra.mxu0 %v3993_v17 }
0x1212   : > { %6634 = vmatprep.subr.mxu0 %v3991_v9 }
0x1213   : > { %6635 = vmatpush3.msra.mxu0 %v3991_v9 }
0x1214   : > { %6636 = vmatprep.subr.mxu0 %v3989_v51 }
0x1215   : > { %6637 = vmatpush3.msra.mxu0 %v3989_v51  ;;  %v4436_v51 = vld [vmem:[%s9907_s4 + $0x70] sm:$0xff] }
0x1217   : > { %v7151_v11 = vpop.eup %7150 }
0x1218   : > { %v3956_v30 = vsel %vm985_vm1, %v7151_v11, 0.0  ;;  %v9083_v42 = vpop.eup %7152 }
0x1219   : > { %3957 = vadd.xlane.f32.xlu1 %v3956_v30  ;;  %v3965_v33 = vsel %vm985_vm1, %v9083_v42, 0.0  ;;  %v4433_v30 = vld [vmem:[%s9907_s4 + $0x58] sm:$0xff] }
0x121b   : > { %v9085_v32 = vpop.eup %7154 }
0x121c   : > { %v3962_v12 = vsel %vm985_vm1, %v9085_v32, 0.0 }
0x121d   : > { %3966 = vadd.xlane.f32.xlu1 %v3965_v33  ;;  %3963 = vadd.xlane.f32.xlu0 %v3962_v12  ;;  %v4430_v33 = vld [vmem:[%s9907_s4 + $0x40] sm:$0xff]  ;;  %v4429_v12 = vld [vmem:[%s9907_s4 + $0x38] sm:$0xff] }
0x122e   : > { %3984 = vrot.lane.b32.xlu1 %v7721_v27, %s9948_s28  ;;  %v9994_v27 = vpack.i.bf16 %v8561_v59, %v8563_v5  ;;  %v10000_v59 = vpack.i.bf16 %v9998_v8, %v9999_v20  ;;  %v10003_v5 = vld [vmem:[#allocation33_spill] sm:$0xff] }
0x1232   : > { %6766 = vrot.lane.b32.xlu1 %v9991_v56, %s9947_s26  ;;  %v4428_v56 = vld [vmem:[%s9907_s4 + $0x30] sm:$0xff] }
0x1233   : > { %3986 = vrot.lane.b32.xlu0 %v7717_v24, %s9948_s28  ;;  %v9995_v24 = vpack.i.bf16 %v8383_v57, %v8385_v16  ;;  %v10001_v57 = vpack.i.bf16 %v8887_v58, %v8889_v23  ;;  %v10002_v16 = vld [vmem:[#allocation32_spill] sm:$0xff]  ;;  %v10010_v58 = vpack.i.bf16 %v10008_v3, %v10009_v7  ;;  %v10018_v7 = vpack.i.bf16 %v8893_v52, %v8895_v0  ;;  %v10030_v52 = vld [vmem:[#allocation38_spill] sm:$0xff]  ;;  %v10031_v0 = vld [vmem:[#allocation39_spill] sm:$0xff] }
0x1234   : > { %v10004_v31 = vpack.i.bf16 %v10002_v16, %v10003_v5  ;;  %v10011_v23 = vld [vmem:[#allocation20_spill] sm:$0xff] }
0x1235   : > { %v10013_v26 = vpack.i.bf16 %v10011_v23, %v10012_v21  ;;  %v10021_v23 = vld [vmem:[#allocation23_spill] sm:$0xff] }
0x1236   : > { %6776 = vrot.lane.b32.xlu1 %v9992_v36, %s9946_s19  ;;  %v4427_v36 = vld [vmem:[%s9907_s4 + $0x28] sm:$0xff] }
0x1237   : > { %6761 = vrot.lane.b32.xlu0 %v9993_v61, %s9948_s28  ;;  %v4426_v61 = vld [vmem:[%s9907_s4 + $0x20] sm:$0xff] }
0x123a   : > { %6786 = vrot.lane.b32.xlu1 %v6785_v46, %s9945_s15 }
0x123b   : > { %6771 = vrot.lane.b32.xlu0 %v9994_v27, %s7360_s20  ;;  %v4425_v27 = vld [vmem:[%s9907_s4 + $0x18] sm:$0xff] }
0x123e   : > { %6791 = vrot.lane.b32.xlu1 %v9995_v24, %s9948_s28  ;;  %v4424_v24 = vld [vmem:[%s9907_s4 + $0x10] sm:$0xff] }
0x123f   : > { %6781 = vrot.lane.b32.xlu0 %v9996_v54, %s9949_s17  ;;  %v4423_v54 = vld [vmem:[%s9907_s4 + $0x8] sm:$0xff] }
0x1242   : > { %6801 = vrot.lane.b32.xlu1 %v9997_v53, %s7360_s20  ;;  %v4422_v53 = vld [vmem:[%s9907_s4] sm:$0xff] }
0x1243   : > { %6796 = vrot.lane.b32.xlu0 %v10000_v59, %s9947_s26 }
0x1246   : > { %6811 = vrot.lane.b32.xlu1 %v10001_v57, %s9949_s17 }
0x1247   : > { %6806 = vrot.lane.b32.xlu0 %v10004_v31, %s9946_s19 }
0x124a   : > { %6826 = vrot.lane.b32.xlu1 %v10007_v14, %s9947_s26  ;;  %v10016_v14 = vpack.i.bf16 %v10014_v15, %v10015_v10 }
0x124b   : > { %6816 = vrot.lane.b32.xlu0 %v6815_v19, %s9945_s15 }
0x124e   : > { %6841 = vrot.lane.b32.xlu1 %v10010_v58, %s9946_s19  ;;  %v10020_v58 = vld [vmem:[#allocation22_spill] sm:$0xff]  ;;  %s10037_s19 = smov 96  }
0x124f   : > { %6821 = vrot.lane.b32.xlu0 %v10013_v26, %s9948_s28  ;;  %v10022_v21 = vpack.i.bf16 %v10020_v58, %v10021_v23  ;;  %s7363_s28 = smov [#allocation5]  }
0x1252   : > { %6851 = vrot.lane.b32.xlu1 %v6850_v48, %s9945_s15  ;;  %s10023_s15 = smov 32  }
0x1263   : > { %v3949_v44 = vpop.xlane.xlu1 %3948 }
0x1265   : > { %v3946_v46 = vpop.xlane.xlu0 %3945 }
0x1266   : > { %7156 = vrcp.f32 %v3946_v46  ;;  %v10024_v46 = vld [vmem:[#allocation28_spill] sm:$0xff] }
0x1267   : > { %7158 = vrcp.f32 %v3949_v44  ;;  %v10027_v44 = vld [vmem:[#allocation30_spill] sm:$0xff] }
0x1269   : > { %v3955_v39 = vpop.xlane.xlu1 %3954 }
0x126d   : > { %v3952_v19 = vpop.xlane.xlu0 %3951 }
0x126e   : > { %7160 = vrcp.f32 %v3952_v19  ;;  %v10028_v19 = vld [vmem:[#allocation31_spill] sm:$0xff] }
0x126f   : > { %7162 = vrcp.f32 %v3955_v39  ;;  %v10029_v39 = vpack.i.bf16 %v10027_v44, %v10028_v19 }
0x1273   : > { %v7157_v1 = vpop.eup %7156 }
0x1274   : > { %v3976_v34 = vmul.f32 %v7157_v1, %v9066_v2  ;;  %v7159_v40 = vpop.eup %7158  ;;  %v10025_v1 = vld [vmem:[#allocation29_spill] sm:$0xff] }
0x1275   : > { %v3977_v4 = vmul.f32 %v7159_v40, %v9062_v35  ;;  %v10034_v40 = vld [vmem:[#allocation36_spill] sm:$0xff] }
0x1276   : > { %6642 = vmatprep.mubr.msk.f32.mxu0 %vm985_vm1, %v3976_v34  ;;  %v10026_v34 = vpack.i.bf16 %v10024_v46, %v10025_v1 }
0x127b   : > { %v7161_v41 = vpop.eup %7160 }
0x127c   : > { %v7163_v17 = vpop.eup %7162  ;;  %v3978_v60 = vmul.f32 %v7161_v41, %v9074_v55 }
0x127d   : > { %v3979_v22 = vmul.f32 %v7163_v17, %v9070_v49  ;;  %v4437_v49 = vld [vmem:[%s9907_s4 + $0x78] sm:$0xff] }
0x1298   : > { %v3961_v25 = vpop.xlane.xlu0 %3960 }
0x12a2   : > { %v3958_v45 = vpop.xlane.xlu1 %3957 }
0x12a3   : > { %7164 = vrcp.f32 %v3958_v45 }
0x12a4   : > { %7166 = vrcp.f32 %v3961_v25 }
0x12a6   : > { %v3967_v43 = vpop.xlane.xlu1 %3966  ;;  %v3964_v28 = vpop.xlane.xlu0 %3963 }
0x12a7   : > { %7168 = vrcp.f32 %v3964_v28 }
0x12a8   : > { %7170 = vrcp.f32 %v3967_v43  ;;  %v10032_v43 = vpack.i.bf16 %v10030_v52, %v10031_v0 }
0x12aa   : > { %v3987_v48 = vpop.permute.xlu0 %3986  ;;  %v3985_v2 = vpop.permute.xlu1 %3984 }
0x12ab   : > { %6638 = vmatprep.subr.mxu0 %v3987_v48 }
0x12ac   : > { %6639 = vmatpush3.msra.mxu0 %v3987_v48  ;;  %v10035_v48 = vld [vmem:[#allocation37_spill] sm:$0xff] }
0x12ad   : > { %6640 = vmatprep.subr.mxu0 %v3985_v2  ;;  %v10036_v41 = vpack.i.bf16 %v10034_v40, %v10035_v48 }
0x12ae   : > { %6641 = vmatpush3.msra.mxu0 %v3985_v2  ;;  %v6767_v2 = vpop.permute.xlu1 %6766  ;;  %v6762_v17 = vpop.permute.xlu0 %6761 }
0x12af   : > { %6643 = vmatmul.mubr.msk.f32.vlgmr.msra.gmra.mxu0 %vm985_vm1, %v3977_v4  ;;  %6654 = vmatprep.subr.mxu0 %v4437_v49 }
0x12b0   : > { %v7165_v63 = vpop.eup %7164  ;;  %6645 = vmatprep.mubr.msk.f32.mxu0 %vm985_vm1, %v3978_v60  ;;  %6655 = vmatpush3.msra.mxu0 %v4437_v49  ;;  %v6768_v49 = vunpack.i.l.bf16 %v6767_v2 }
0x12b1   : > { %v3980_v13 = vmul.f32 %v7165_v63, %v7151_v11  ;;  %v7167_v62 = vpop.eup %7166  ;;  %6656 = vmatprep.subr.mxu0 %v4436_v51  ;;  %v4434_v11 = vld [vmem:[%s9907_s4 + $0x60] sm:$0xff] }
0x12b2   : > { %v3981_v35 = vmul.f32 %v7167_v62, %v9078_v37  ;;  %v4435_v37 = vld [vmem:[%s9907_s4 + $0x68] sm:$0xff]  ;;  %6657 = vmatpush3.msra.mxu0 %v4436_v51  ;;  %v6777_v4 = vpop.permute.xlu1 %6776  ;;  %v6772_v63 = vpop.permute.xlu0 %6771  ;;  %v6769_v51 = vunpack.i.h.bf16 %v6767_v2 }
0x12b3   : > { %6646 = vmatmul.mubr.msk.f32.gmra.mxu0 %vm985_vm1, %v3979_v22  ;;  %6658 = vmatprep.subr.mxu0 %v4435_v37  ;;  %v6773_v18 = vunpack.i.l.bf16 %v6772_v63 }
0x12b4   : > { %6648 = vmatprep.mubr.msk.f32.mxu0 %vm985_vm1, %v3980_v13  ;;  %v7169_v9 = vpop.eup %7168  ;;  %6659 = vmatpush3.msra.mxu0 %v4435_v37  ;;  %v10038_v37 = vld [vmem:[#allocation13_spill] sm:$0xff] }
0x12b5   : > { %v7171_v29 = vpop.eup %7170  ;;  %v3982_v6 = vmul.f32 %v7169_v9, %v9085_v32  ;;  %6660 = vmatprep.subr.mxu0 %v4434_v11  ;;  %v4431_v32 = vld [vmem:[%s9907_s4 + $0x48] sm:$0xff] }
0x12b6   : > { %v3983_v55 = vmul.f32 %v7171_v29, %v9083_v42  ;;  %6661 = vmatpush3.msra.mxu0 %v4434_v11  ;;  %v4432_v42 = vld [vmem:[%s9907_s4 + $0x50] sm:$0xff]  ;;  %v6787_v60 = vpop.permute.xlu1 %6786  ;;  %v6782_v13 = vpop.permute.xlu0 %6781  ;;  %v6763_v29 = vunpack.i.l.bf16 %v6762_v17 }
0x12b7   : > { %6649 = vmatmul.mubr.msk.f32.gmra.mxu0 %vm985_vm1, %v3981_v35  ;;  %6662 = vmatprep.subr.mxu0 %v4433_v30  ;;  %v6788_v58 = vunpack.i.l.bf16 %v6787_v60 }
0x12b8   : > { %6651 = vmatprep.mubr.msk.f32.mxu0 %vm985_vm1, %v3982_v6  ;;  %6663 = vmatpush3.msra.mxu0 %v4433_v30  ;;  %v6764_v6 = vunpack.i.h.bf16 %v6762_v17  ;;  %v4361_v50 = vsel %vm823_vm0, %v10038_v37, %v6763_v29  ;;  %v6774_v30 = vunpack.i.h.bf16 %v6772_v63 }
0x12b9   : > { %6664 = vmatprep.subr.mxu0 %v4432_v42 }
0x12ba   : > { %6665 = vmatpush3.msra.mxu0 %v4432_v42  ;;  %v6792_v22 = vpop.permute.xlu1 %6791  ;;  %v6797_v9 = vpop.permute.xlu0 %6796 }
0x12bb   : > { %6652 = vmatmul.mubr.msk.f32.gmra.mxu0 %vm985_vm1, %v3983_v55  ;;  %6666 = vmatprep.subr.mxu0 %v4431_v32 }
0x12bc   : > { %6667 = vmatpush3.msra.mxu0 %v4431_v32  ;;  %v6794_v32 = vunpack.i.h.bf16 %v6792_v22 }
0x12bd   : > { %6668 = vmatprep.subr.mxu0 %v4430_v33 }
0x12be   : > { %6669 = vmatpush3.msra.mxu0 %v4430_v33  ;;  %v6802_v62 = vpop.permute.xlu1 %6801  ;;  %v6807_v55 = vpop.permute.xlu0 %6806  ;;  %v6793_v33 = vunpack.i.l.bf16 %v6792_v22 }
0x12bf   : > { %6670 = vmatprep.subr.mxu0 %v4429_v12  ;;  %v6804_v15 = vunpack.i.h.bf16 %v6802_v62  ;;  %v6803_v10 = vunpack.i.l.bf16 %v6802_v62  ;;  %v6809_v1 = vunpack.i.h.bf16 %v6807_v55 }
0x12c0   : > { %6671 = vmatpush3.msra.mxu0 %v4429_v12  ;;  %v6778_v12 = vunpack.i.l.bf16 %v6777_v4 }
0x12c1   : > { %6672 = vmatprep.subr.mxu0 %v4428_v56 }
0x12c2   : > { %6673 = vmatpush3.msra.mxu0 %v4428_v56  ;;  %v9258_v35 = vpop.permute.xlu1 %6811  ;;  %v4370_v56 = vsel %vm4369_vm2, %v4361_v50, %v6768_v49 }
0x12c3   : > { %6674 = vmatprep.subr.mxu0 %v4427_v36  ;;  %v6813_v52 = vunpack.i.l.bf16 %v9258_v35 }
0x12c4   : > { %6675 = vmatpush3.msra.mxu0 %v4427_v36  ;;  %v6817_v36 = vpop.permute.xlu0 %6816 }
0x12c5   : > { %6676 = vmatprep.subr.mxu0 %v4426_v61  ;;  %v6819_v2 = vunpack.i.h.bf16 %v6817_v36 }
0x12c6   : > { %6677 = vmatpush3.msra.mxu0 %v4426_v61  ;;  %v9264_v42 = vpop.permute.xlu1 %6826  ;;  %v6779_v61 = vunpack.i.h.bf16 %v6777_v4  ;;  %v6818_v4 = vunpack.i.l.bf16 %v6817_v36 }
0x12c7   : > { %6678 = vmatprep.subr.mxu0 %v4425_v27  ;;  %v6829_v50 = vunpack.i.h.bf16 %v9264_v42 }
0x12c8   : > { %6679 = vmatpush3.msra.mxu0 %v4425_v27  ;;  %v6822_v44 = vpop.permute.xlu0 %6821 }
0x12c9   : > { %6680 = vmatprep.subr.mxu0 %v4424_v24  ;;  %v6824_v63 = vunpack.i.h.bf16 %v6822_v44  ;;  %v6823_v22 = vunpack.i.l.bf16 %v6822_v44  ;;  %v10045_v44 = vld [vmem:[#allocation19_spill] sm:$0xff] }
0x12ca   : > { %6681 = vmatpush3.msra.mxu0 %v4424_v24  ;;  %v4379_v24 = vsel %vm4378_vm3, %v4370_v56, %v6773_v18  ;;  %v6828_v18 = vunpack.i.l.bf16 %v9264_v42 }
0x12cb   : > { %6682 = vmatprep.subr.mxu0 %v4423_v54 }
0x12cc   : > { %6683 = vmatpush3.msra.mxu0 %v4423_v54  ;;  %v6783_v54 = vunpack.i.l.bf16 %v6782_v13 }
0x12cd   : > { %6684 = vmatprep.subr.mxu0 %v4422_v53 }
0x12ce   : > { %6685 = vmatpush3.msra.mxu0 %v4422_v53 }
0x136f   : > { %v6644_v8 = vpop.f32.mrf.mxu0 }
0x1371   : > { %v4098_v20 = vpop.f32.mrf.mxu0 }
0x1372   : > { %v6830_v59 = vpack.i.bf16 %v6644_v8, %v4098_v20  ;;  %v6784_v8 = vunpack.i.h.bf16 %v6782_v13  ;;  %v6799_v20 = vunpack.i.h.bf16 %v6797_v9 }
0x1373   : > { %v6647_v57 = vpop.f32.mrf.mxu0 }
0x1374   : > { %6831 = vrot.lane.b32.xlu0 %v6830_v59, %s7356_s30  ;;  %v6798_v59 = vunpack.i.l.bf16 %v6797_v9 }
0x1375   : > { %v4108_v16 = vpop.f32.mrf.mxu0 }
0x1376   : > { %v6855_v5 = vpack.i.bf16 %v6647_v57, %v4108_v16  ;;  %v10040_v57 = vld [vmem:[#allocation14_spill] sm:$0xff] }
0x1377   : > { %v6650_v31 = vpop.f32.mrf.mxu0  ;;  %v4364_v16 = vsel %vm823_vm0, %v10040_v57, %v6794_v32 }
0x1378   : > { %6836 = vrot.lane.b32.xlu0 %v10016_v14, %s7360_s20  ;;  %6856 = vrot.lane.b32.xlu1 %v6855_v5, %s7356_s30  ;;  %v10041_v5 = vld [vmem:[#allocation15_spill] sm:$0xff]  ;;  %v9274_v14 = vpop.permute.xlu1 %6841 }
0x1379   : > { %v4118_v3 = vpop.f32.mrf.mxu0  ;;  %v6843_v57 = vunpack.i.l.bf16 %v9274_v14 }
0x137a   : > { %v6875_v25 = vpack.i.bf16 %v6650_v31, %v4118_v3  ;;  %v4363_v31 = vsel %vm823_vm0, %v10041_v5, %v6793_v33  ;;  %v4387_v3 = vsel %vm985_vm1, %v4379_v24, %v6778_v12 }
0x137b   : > { %v6653_v26 = vpop.f32.mrf.mxu0  ;;  %v4372_v46 = vsel %vm4369_vm2, %v4363_v31, %v6798_v59  ;;  %v6844_v59 = vunpack.i.h.bf16 %v9274_v14  ;;  %v10044_v14 = vld [vmem:[#allocation18_spill] sm:$0xff] }
0x137c   : > { %6846 = vrot.lane.b32.xlu0 %v10018_v7, %s10017_s29  ;;  %6861 = vrot.lane.b32.xlu1 %v10022_v21, %s10019_s16  ;;  %v6789_v7 = vunpack.i.h.bf16 %v6787_v60  ;;  %v4396_v21 = vsel %vm4395_vm4, %v4387_v3, %v6783_v54  ;;  %v9289_v40 = vpop.permute.xlu1 %6851  ;;  %s420_s16 = sand.u32 1, %s7342_s22  }
0x137d   : > { %v4128_v45 = vpop.f32.mrf.mxu0  ;;  %v4405_v0 = vsel %vm4404_vm5, %v4396_v21, %v6788_v58  ;;  %s9863_s17 = scalar_lea.sflag [#allocation4], %s420_s16 }
0x137e   : > { %v6895_v28 = vpack.i.bf16 %v6653_v26, %v4128_v45  ;;  %v4373_v26 = vsel %vm4369_vm2, %v4364_v16, %v6799_v20  ;;  %v6814_v45 = vunpack.i.h.bf16 %v9258_v35 }
0x1380   : > { %6866 = vrot.lane.b32.xlu0 %v10026_v34, %s10023_s15  ;;  %6871 = vrot.lane.b32.xlu1 %v10029_v39, %s7360_s20  ;;  %v6808_v34 = vunpack.i.l.bf16 %v6807_v55  ;;  %v4381_v39 = vsel %vm4378_vm3, %v4372_v46, %v6803_v10  ;;  %v6853_v46 = vunpack.i.l.bf16 %v9289_v40  ;;  %s5539_s15 = sshll.u32 %s420_s16, 6 }
0x1384   : > { %6886 = vrot.lane.b32.xlu1 %v10032_v43, %s10017_s29  ;;  %6876 = vrot.lane.b32.xlu0 %v6875_v25, %s7356_s30  ;;  %v4382_v25 = vsel %vm4378_vm3, %v4373_v26, %v6804_v15  ;;  %v4389_v43 = vsel %vm985_vm1, %v4381_v39, %v6808_v34  ;;  %v6854_v26 = vunpack.i.h.bf16 %v9289_v40  ;;  %s7290_s29 = sshll.u32 %s7363_s28, 4  ;;  %s7291_s29 = int_to_ptr.vmem [resolvable:$false] %s7290_s29 }
0x1385   : > { %v4398_v13 = vsel %vm4395_vm4, %v4389_v43, %v6813_v52 }
0x1388   : > { %6881 = vrot.lane.b32.xlu0 %v10036_v41, %s10033_s18  ;;  %6896 = vrot.lane.b32.xlu1 %v6895_v28, %s7356_s30  ;;  %v4390_v28 = vsel %vm985_vm1, %v4382_v25, %v6809_v1  ;;  %s5745_s18 = sshll.u32 %s7452_s25, 10 }
0x1389   : > { %v4399_v62 = vsel %vm4395_vm4, %v4390_v28, %v6814_v45  ;;  %s9855_s26 = scalar_lea.hbm %s9915_s12, %s5745_s18 }
0x138a   : > { %v4408_v37 = vsel %vm4404_vm5, %v4399_v62, %v6819_v2 }
0x138c   : > { %6891 = vrot.lane.b32.xlu0 %v6890_v38, %s10037_s19  ;;  %v10039_v38 = vld [vmem:[#allocation12_spill] sm:$0xff] }
0x138d   : > { %v4362_v11 = vsel %vm823_vm0, %v10039_v38, %v6764_v6  ;;  %v10042_v38 = vld [vmem:[#allocation16_spill] sm:$0xff] }
0x138e   : > { %v4371_v27 = vsel %vm4369_vm2, %v4362_v11, %v6769_v51  ;;  %v4407_v51 = vsel %vm4404_vm5, %v4398_v13, %v6818_v4  ;;  %v4366_v11 = vsel %vm823_vm0, %v10042_v38, %v6824_v63 }
0x138f   : > { %v4380_v53 = vsel %vm4378_vm3, %v4371_v27, %v6774_v30  ;;  %v10043_v30 = vld [vmem:[#allocation17_spill] sm:$0xff]  ;;  %v4375_v42 = vsel %vm4369_vm2, %v4366_v11, %v6829_v50 }
0x1390   : > { %v4388_v23 = vsel %vm985_vm1, %v4380_v53, %v6779_v61  ;;  %v4365_v32 = vsel %vm823_vm0, %v10043_v30, %v6823_v22 }
0x1391   : > { %v4397_v19 = vsel %vm4395_vm4, %v4388_v23, %v6784_v8  ;;  %v4374_v24 = vsel %vm4369_vm2, %v4365_v32, %v6828_v18 }
0x1392   : > { %v4406_v41 = vsel %vm4404_vm5, %v4397_v19, %v6789_v7 }
0x13e6   : > { %v6832_v48 = vpop.permute.xlu0 %6831 }
0x13e7   : > { %v6834_v17 = vunpack.i.h.bf16 %v6832_v48  ;;  %v6833_v60 = vunpack.i.l.bf16 %v6832_v48 }
0x13e9   : > { %v4414_v9 = vsel %vm4413_vm6, %v4405_v0, %v6833_v60  ;;  %v4415_v35 = vsel %vm4413_vm6, %v4406_v41, %v6834_v17 }
0x13ea   : > { %v6857_v29 = vpop.permute.xlu1 %6856  ;;  %v6837_v6 = vpop.permute.xlu0 %6836  ;;  %6686 = vmatprep.mubr.f32.mxu0 %v4414_v9 }
0x13eb   : > { %v6859_v55 = vunpack.i.h.bf16 %v6857_v29  ;;  %v6858_v49 = vunpack.i.l.bf16 %v6857_v29  ;;  %6687 = vmatmul.mubr.f32.vlgmr.msra.gmra.mxu0 %v4415_v35  ;;  %v6839_v33 = vunpack.i.h.bf16 %v6837_v6  ;;  %v6838_v12 = vunpack.i.l.bf16 %v6837_v6 }
0x13ed   : > { %v4416_v56 = vsel %vm4413_vm6, %v4407_v51, %v6858_v49  ;;  %v4417_v36 = vsel %vm4413_vm6, %v4408_v37, %v6859_v55  ;;  %v4383_v54 = vsel %vm4378_vm3, %v4374_v24, %v6838_v12  ;;  %v4384_v53 = vsel %vm4378_vm3, %v4375_v42, %v6839_v33  ;;  %v5736_v33 = vld [vmem:[%s9908_s5] ss:$0 sm:$0xff] }
0x13ee   : > { %v6862_v61 = vpop.permute.xlu1 %6861  ;;  %v6847_v27 = vpop.permute.xlu0 %6846  ;;  %6689 = vmatprep.mubr.f32.mxu0 %v4416_v56  ;;  %v4391_v10 = vsel %vm985_vm1, %v4383_v54, %v6843_v57  ;;  %v4392_v3 = vsel %vm985_vm1, %v4384_v53, %v6844_v59  ;;  %v7253_v54 = vld [vmem:[%s7501_s23] sm:$0xff]  ;;  %v7254_v57 = vld [vmem:[%s7501_s23 + $0x10] sm:$0xff] }
0x13ef   : > { %6690 = vmatmul.mubr.f32.gmra.mxu0 %v4417_v36  ;;  %v6849_v8 = vunpack.i.h.bf16 %v6847_v27  ;;  %v6848_v20 = vunpack.i.l.bf16 %v6847_v27  ;;  %v6864_v31 = vunpack.i.h.bf16 %v6862_v61  ;;  %v6863_v15 = vunpack.i.l.bf16 %v6862_v61  ;;  %v7252_v61 = vld [vmem:[%s7501_s23 + $0x8] sm:$0xff] }
0x13f1   : > { %v4400_v23 = vsel %vm4395_vm4, %v4391_v10, %v6848_v20  ;;  %v4401_v21 = vsel %vm4395_vm4, %v4392_v3, %v6849_v8  ;;  %v4368_v34 = vsel %vm823_vm0, %v10044_v14, %v6864_v31  ;;  %v4367_v19 = vsel %vm823_vm0, %v10045_v44, %v6863_v15 }
0x13f2   : > { %v6872_v16 = vpop.permute.xlu1 %6871  ;;  %v6867_v5 = vpop.permute.xlu0 %6866  ;;  %v4409_v43 = vsel %vm4404_vm5, %v4400_v23, %v6853_v46  ;;  %v4410_v28 = vsel %vm4404_vm5, %v4401_v21, %v6854_v26  ;;  %v7257_v21 = vld [vmem:[%s7501_s23 + $0x20] sm:$0xff] }
0x13f3   : > { %v6869_v7 = vunpack.i.h.bf16 %v6867_v5  ;;  %v6868_v58 = vunpack.i.l.bf16 %v6867_v5  ;;  %v6874_v52 = vunpack.i.h.bf16 %v6872_v16  ;;  %v6873_v0 = vunpack.i.l.bf16 %v6872_v16  ;;  %v7255_v5 = vld [vmem:[%s7501_s23 + $0x18] sm:$0xff] }
0x13f5   : > { %v4377_v48 = vsel %vm4369_vm2, %v4368_v34, %v6869_v7  ;;  %v4376_v40 = vsel %vm4369_vm2, %v4367_v19, %v6868_v58  ;;  %v7256_v7 = vld [vmem:[%s7501_s23 + $0x28] sm:$0xff]  ;;  %v7258_v34 = vld [vmem:[%s7501_s23 + $0x38] sm:$0xff] }
0x13f6   : > { %v6877_v1 = vpop.permute.xlu0 %6876  ;;  %v6887_v39 = vpop.permute.xlu1 %6886  ;;  %v4385_v63 = vsel %vm4378_vm3, %v4376_v40, %v6873_v0  ;;  %v4386_v22 = vsel %vm4378_vm3, %v4377_v48, %v6874_v52  ;;  %v4739_v52 = vld [vmem:[%s9911_s8 + $0x1f8] sm:$0xff]  ;;  %v4736_v0 = vld [vmem:[%s9911_s8 + $0x1e0] sm:$0xff] }
0x13f7   : > { %v6879_v25 = vunpack.i.h.bf16 %v6877_v1  ;;  %v6878_v45 = vunpack.i.l.bf16 %v6877_v1  ;;  %v6889_v35 = vunpack.i.h.bf16 %v6887_v39  ;;  %v6888_v29 = vunpack.i.l.bf16 %v6887_v39  ;;  %v7259_v39 = vld [vmem:[%s7501_s23 + $0x30] sm:$0xff]  ;;  %4875 = vmatprep.subr.mxu0 %v4739_v52  ;;  %v4735_v48 = vld [vmem:[%s9911_s8 + $0x1d8] sm:$0xff]  ;;  %v4732_v40 = vld [vmem:[%s9911_s8 + $0x1c0] sm:$0xff]  ;;  %s9828_s23 = scalar_lea.vmem [#allocation5], %s5539_s15  ;;  %s7292_s15 = scalar_lea.vmem %s7291_s29, 2048 }
0x13f8   : > { %v4708_v52 = vld [vmem:[%s9911_s8 + $0x100] sm:$0xff]  ;;  %s5459_s19 = sshll.u32 %s9828_s23, 4  ;;  %s9857_s19 = int_to_ptr.vmem [resolvable:$true] %s5459_s19 }
0x13f9   : > { %v4418_v41 = vsel %vm4413_vm6, %v4409_v43, %v6878_v45  ;;  %v4419_v2 = vsel %vm4413_vm6, %v4410_v28, %v6879_v25  ;;  %v4737_v45 = vld [vmem:[%s9911_s8 + $0x1e8] sm:$0xff]  ;;  %v4738_v43 = vld [vmem:[%s9911_s8 + $0x1f0] sm:$0xff]  ;;  %s7286_s25 = scalar_lea.vmem %s9857_s19, 1024  ;;  %p7293_p11 = scmp.lt.s32.totalorder %s9857_s19, %s7291_s29 }
0x13fa   : > { %v6882_v4 = vpop.permute.xlu0 %6881  ;;  %6692 = vmatprep.mubr.f32.mxu0 %v4418_v41  ;;  %v6897_v13 = vpop.permute.xlu1 %6896  ;;  %4762 = vmatprep.subr.mxu1 %v4737_v45  ;;  %v4733_v28 = vld [vmem:[%s9911_s8 + $0x1c8] sm:$0xff]  ;;  %v4734_v41 = vld [vmem:[%s9911_s8 + $0x1d0] sm:$0xff]  ;;  %p7287_p6 = scmp.ne.s32.totalorder %s9857_s19, %s7286_s25  ;;  %p7294_p12 = scmp.lt.s32.totalorder %s7292_s15, %s7286_s25 }
0x13fb   : > { %v6884_v17 = vunpack.i.h.bf16 %v6882_v4  ;;  %v6883_v60 = vunpack.i.l.bf16 %v6882_v4  ;;  %6693 = vmatmul.mubr.f32.gmra.mxu0 %v4419_v2  ;;  %v6899_v51 = vunpack.i.h.bf16 %v6897_v13  ;;  %v6898_v37 = vunpack.i.l.bf16 %v6897_v13  ;;  %4763 = vmatpush1.msra.mxu1 %v4736_v0  ;;  %v4729_v2 = vld [vmem:[%s9911_s8 + $0x1a8] sm:$0xff]  ;;  %v4731_v4 = vld [vmem:[%s9911_s8 + $0x1b8] sm:$0xff]  ;;  %v4710_v0 = vld [vmem:[%s9911_s8 + $0x110] sm:$0xff] }
0x13fc   : > { %4876 = vmatpush1.msra.mxu0 %v4738_v43  ;;  %4764 = vmatprep.subr.mxu1 %v4733_v28  ;;  %v4705_v28 = vld [vmem:[%s9911_s8 + $0xe8] sm:$0xff]  ;;  %p7288_p9 = pnand %p7287_p6, %p7469_p5  ;;  %p7295_p13 = por %p7294_p12, %p7293_p11 }
0x13fd   : > { %v4393_v62 = vsel %vm985_vm1, %v4385_v63, %v6883_v60  ;;  %v4394_v9 = vsel %vm985_vm1, %v4386_v22, %v6884_v17  ;;  %4877 = vmatprep.subr.mxu0 %v4735_v48  ;;  %v4728_v17 = vld [vmem:[%s9911_s8 + $0x1a0] sm:$0xff]  ;;  %v4730_v60 = vld [vmem:[%s9911_s8 + $0x1b0] sm:$0xff]  ;;  %4765 = vmatpush1.msra.mxu1 %v4732_v40  ;;  %v4707_v48 = vld [vmem:[%s9911_s8 + $0xf8] sm:$0xff] }
0x13fe   : > { %v6892_v6 = vpop.permute.xlu0 %6891  ;;  %v4402_v50 = vsel %vm4395_vm4, %v4393_v62, %v6888_v29  ;;  %v4403_v18 = vsel %vm4395_vm4, %v4394_v9, %v6889_v35  ;;  %4878 = vmatpush1.msra.mxu0 %v4734_v41  ;;  %4766 = vmatprep.subr.mxu1 %v4729_v2  ;;  %v4704_v2 = vld [vmem:[%s9911_s8 + $0xe0] sm:$0xff]  ;;  %p7289_p10 = pneg %p7288_p9 }
0x13ff   : > { %v6894_v55 = vunpack.i.h.bf16 %v6892_v6  ;;  %v6893_v49 = vunpack.i.l.bf16 %v6892_v6  ;;  %4879 = vmatprep.subr.mxu0 %v4731_v4  ;;  %4767 = vmatpush1.msra.mxu1 %v4728_v17  ;;  %v4706_v4 = vld [vmem:[%s9911_s8 + $0xf0] sm:$0xff]  ;;  %v4701_v17 = vld [vmem:[%s9911_s8 + $0xc8] sm:$0xff] }
0x1400   : > { %4880 = vmatpush1.msra.mxu0 %v4730_v60  ;;  %v4703_v60 = vld [vmem:[%s9911_s8 + $0xd8] sm:$0xff]  ;;  %p7296_p0 = pnand %p7295_p13, %p7289_p10 }
0x1401   : > { %v4411_v38 = vsel %vm4404_vm5, %v4402_v50, %v6893_v49  ;;  %v4412_v11 = vsel %vm4404_vm5, %v4403_v18, %v6894_v55 }
0x1402   : > { %v4420_v30 = vsel %vm4413_vm6, %v4411_v38, %v6898_v37  ;;  %v4421_v32 = vsel %vm4413_vm6, %v4412_v11, %v6899_v51 }
0x1403   : > { %6695 = vmatprep.mubr.f32.mxu0 %v4420_v30 }
0x1404   : > { %6696 = vmatmul.mubr.f32.gmra.mxu0 %v4421_v32 }
0x1405   : > { %4939 = vmatprep.mubr.f32.mxu0 %v9990_v47 }
0x14ab   : > { %v6688_v12 = vpop.f32.mrf.mxu0 }
0x14ac   : > { %v4517_v56 = vadd.f32 %v6688_v12, %v5736_v33  ;;  %v4727_v12 = vld [vmem:[%s9911_s8 + $0x198] sm:$0xff] }
0x14ad   : > { %v4511_v36 = vpop.f32.mrf.mxu0  ;;  %4881 = vmatprep.subr.mxu0 %v4727_v12  ;;  %v4688_v12 = vld [vmem:[%s9911_s8 + $0x60] sm:$0xff] }
0x14ae   : > { %v9343_v27 = vadd.f32 %v7252_v61, %v4517_v56  ;;  %v4512_v24 = vadd.f32 %v5736_v33, %v4511_v36  ;;  %v4724_v36 = vld [vmem:[%s9911_s8 + $0x180] sm:$0xff]  ;;  %v4726_v61 = vld [vmem:[%s9911_s8 + $0x190] sm:$0xff] }
0x14af   : > { %v6691_v42 = vpop.f32.mrf.mxu0  ;;  %4882 = vmatpush1.msra.mxu0 %v4726_v61  ;;  %v4687_v61 = vld [vmem:[%s9911_s8 + $0x58] sm:$0xff] }
0x14b0   : > { %v9346_v53 = vadd.f32 %v7253_v54, %v4512_v24  ;;  %4560 = vadd.xlane.f32.xlu1 %v9343_v27  ;;  %v4527_v59 = vadd.f32 %v6691_v42, %v5736_v33  ;;  %v4721_v54 = vld [vmem:[%s9911_s8 + $0x168] sm:$0xff] }
0x14b1   : > { %v4521_v8 = vpop.f32.mrf.mxu0 }
0x14b2   : > { %v4522_v20 = vadd.f32 %v5736_v33, %v4521_v8  ;;  %4558 = vadd.xlane.f32.xlu0 %v9346_v53  ;;  %v9355_v31 = vadd.f32 %v7255_v5, %v4527_v59  ;;  %v4723_v8 = vld [vmem:[%s9911_s8 + $0x178] sm:$0xff]  ;;  %v4722_v59 = vld [vmem:[%s9911_s8 + $0x170] sm:$0xff] }
0x14b3   : > { %4883 = vmatprep.subr.mxu0 %v4723_v8  ;;  %v4681_v8 = vld [vmem:[%s9911_s8 + $0x28] sm:$0xff] }
0x14b4   : > { %v9351_v16 = vadd.f32 %v7254_v57, %v4522_v20  ;;  %v4720_v20 = vld [vmem:[%s9911_s8 + $0x160] sm:$0xff]  ;;  %4884 = vmatpush1.msra.mxu0 %v4722_v59 }
0x14b5   : > { %v4680_v59 = vld [vmem:[%s9911_s8 + $0x20] sm:$0xff] }
0x14b6   : > { %4562 = vadd.xlane.f32.xlu0 %v9351_v16 }
0x14ba   : > { %4564 = vadd.xlane.f32.xlu0 %v9355_v31 }
0x14bb   : > { %v6694_v15 = vpop.f32.mrf.mxu0 }
0x14bc   : > { %v4537_v10 = vadd.f32 %v6694_v15, %v5736_v33  ;;  %v4717_v15 = vld [vmem:[%s9911_s8 + $0x148] sm:$0xff] }
0x14bd   : > { %v4531_v3 = vpop.f32.mrf.mxu0 }
0x14be   : > { %v9359_v58 = vadd.f32 %v7256_v7, %v4537_v10  ;;  %v4532_v23 = vadd.f32 %v5736_v33, %v4531_v3  ;;  %v4719_v10 = vld [vmem:[%s9911_s8 + $0x158] sm:$0xff]  ;;  %v4716_v3 = vld [vmem:[%s9911_s8 + $0x140] sm:$0xff]  ;;  %v4718_v7 = vld [vmem:[%s9911_s8 + $0x150] sm:$0xff] }
0x14bf   : > { %4885 = vmatprep.subr.mxu0 %v4719_v10  ;;  %v4679_v10 = vld [vmem:[%s9911_s8 + $0x18] sm:$0xff] }
0x14c0   : > { %v9362_v26 = vadd.f32 %v7257_v21, %v4532_v23  ;;  %4568 = vadd.xlane.f32.xlu1 %v9359_v58  ;;  %v4713_v21 = vld [vmem:[%s9911_s8 + $0x128] sm:$0xff]  ;;  %4886 = vmatpush1.msra.mxu0 %v4718_v7  ;;  %v4678_v7 = vld [vmem:[%s9911_s8 + $0x10] sm:$0xff] }
0x14c2   : > { %4566 = vadd.xlane.f32.xlu0 %v9362_v26 }
0x14c4   : > { %v6697_v46 = vpop.f32.mrf.mxu0 }
0x14c5   : > { %v4547_v1 = vadd.f32 %v6697_v46, %v5736_v33  ;;  %v4715_v46 = vld [vmem:[%s9911_s8 + $0x138] sm:$0xff] }
0x14c6   : > { %v4541_v14 = vpop.f32.mrf.mxu0  ;;  %4887 = vmatprep.subr.mxu0 %v4715_v46 }
0x14c7   : > { %v9367_v44 = vadd.f32 %v7258_v34, %v4547_v1  ;;  %v4542_v19 = vadd.f32 %v5736_v33, %v4541_v14  ;;  %v4725_v33 = vld [vmem:[%s9911_s8 + $0x188] sm:$0xff]  ;;  %v4712_v1 = vld [vmem:[%s9911_s8 + $0x120] sm:$0xff]  ;;  %v4714_v14 = vld [vmem:[%s9911_s8 + $0x130] sm:$0xff] }
0x14c8   : > { %4768 = vmatprep.subr.mxu1 %v4725_v33  ;;  %4888 = vmatpush1.msra.mxu0 %v4714_v14  ;;  %v4691_v33 = vld [vmem:[%s9911_s8 + $0x78] sm:$0xff] }
0x14c9   : > { %v9370_v25 = vadd.f32 %v7259_v39, %v4542_v19  ;;  %4572 = vadd.xlane.f32.xlu1 %v9367_v44  ;;  %4769 = vmatpush1.msra.mxu1 %v4724_v36  ;;  %v4709_v19 = vld [vmem:[%s9911_s8 + $0x108] sm:$0xff]  ;;  %v4711_v39 = vld [vmem:[%s9911_s8 + $0x118] sm:$0xff] }
0x14ca   : > { %4770 = vmatprep.subr.mxu1 %v4721_v54  ;;  %4889 = vmatprep.subr.mxu0 %v4711_v39  ;;  %v4685_v36 = vld [vmem:[%s9911_s8 + $0x48] sm:$0xff]  ;;  %v4686_v54 = vld [vmem:[%s9911_s8 + $0x50] sm:$0xff] }
0x14cb   : > { %4570 = vadd.xlane.f32.xlu0 %v9370_v25  ;;  %4771 = vmatpush1.msra.mxu1 %v4720_v20  ;;  %v4683_v20 = vld [vmem:[%s9911_s8 + $0x38] sm:$0xff] }
0x14cc   : > { %4772 = vmatprep.subr.mxu1 %v4717_v15  ;;  %4890 = vmatpush1.msra.mxu0 %v4710_v0  ;;  %v4677_v15 = vld [vmem:[%s9911_s8 + $0x8] sm:$0xff] }
0x14cd   : > { %4773 = vmatpush1.msra.mxu1 %v4716_v3  ;;  %4891 = vmatprep.subr.mxu0 %v4707_v48  ;;  %v4676_v3 = vld [vmem:[%s9911_s8] sm:$0xff] }
0x14ce   : > { %4774 = vmatprep.subr.mxu1 %v4713_v21  ;;  %4892 = vmatpush1.msra.mxu0 %v4706_v4  ;;  %v5211_v21 = vld [vmem:[#allocation2 + $0x1f8] sm:$0xff] }
0x14cf   : > { %4775 = vmatpush1.msra.mxu1 %v4712_v1  ;;  %4893 = vmatprep.subr.mxu0 %v4703_v60 }
0x14d0   : > { %4776 = vmatprep.subr.mxu1 %v4709_v19 }
0x14d1   : > { %4777 = vmatpush1.msra.mxu1 %v4708_v52 }
0x14d2   : > { %4778 = vmatprep.subr.mxu1 %v4705_v28 }
0x14d3   : > { %4779 = vmatpush1.msra.mxu1 %v4704_v2 }
0x14d4   : > { %4780 = vmatprep.subr.mxu1 %v4701_v17 }
0x1539   : > { %v4561_v63 = vpop.xlane.xlu1 %4560 }
0x153a   : > { %v4575_v22 = vmul.f32 0.0078125, %v4561_v63 }
0x153b   : > { %v4559_v13 = vpop.xlane.xlu0 %4558 }
0x153c   : > { %v9411_v62 = vsub.f32 %v9343_v27, %v4575_v22  ;;  %v4574_v9 = vmul.f32 0.0078125, %v4559_v13  ;;  %v4700_v13 = vld [vmem:[%s9911_s8 + $0xc0] sm:$0xff] }
0x153d   : > { %4781 = vmatpush1.msra.mxu1 %v4700_v13 }
0x153e   : > { %v9414_v35 = vsub.f32 %v9346_v53, %v4574_v9  ;;  %v4591_v29 = vmul.f32 %v9411_v62, %v9411_v62  ;;  %v4702_v9 = vld [vmem:[%s9911_s8 + $0xd0] sm:$0xff] }
0x153f   : > { %v4563_v6 = vpop.xlane.xlu0 %4562  ;;  %4894 = vmatpush1.msra.mxu0 %v4702_v9 }
0x1540   : > { %v4576_v55 = vmul.f32 0.0078125, %v4563_v6  ;;  %4600 = vadd.xlane.f32.xlu1 %v4591_v29  ;;  %v4590_v49 = vmul.f32 %v9414_v35, %v9414_v35  ;;  %v4697_v29 = vld [vmem:[%s9911_s8 + $0xa8] sm:$0xff]  ;;  %v4699_v6 = vld [vmem:[%s9911_s8 + $0xb8] sm:$0xff] }
0x1541   : > { %4782 = vmatprep.subr.mxu1 %v4697_v29  ;;  %4895 = vmatprep.subr.mxu0 %v4699_v6 }
0x1542   : > { %v9421_v51 = vsub.f32 %v9351_v16, %v4576_v55  ;;  %4598 = vadd.xlane.f32.xlu0 %v4590_v49  ;;  %v4696_v49 = vld [vmem:[%s9911_s8 + $0xa0] sm:$0xff] }
0x1543   : > { %v4565_v37 = vpop.xlane.xlu0 %4564  ;;  %4783 = vmatpush1.msra.mxu1 %v4696_v49 }
0x1544   : > { %v4577_v50 = vmul.f32 0.0078125, %v4565_v37  ;;  %v4592_v18 = vmul.f32 %v9421_v51, %v9421_v51  ;;  %v4698_v37 = vld [vmem:[%s9911_s8 + $0xb0] sm:$0xff] }
0x1545   : > { %4896 = vmatpush1.msra.mxu0 %v4698_v37 }
0x1546   : > { %v9426_v38 = vsub.f32 %v9355_v31, %v4577_v50  ;;  %4602 = vadd.xlane.f32.xlu0 %v4592_v18  ;;  %v4693_v50 = vld [vmem:[%s9911_s8 + $0x88] sm:$0xff]  ;;  %v4695_v18 = vld [vmem:[%s9911_s8 + $0x98] sm:$0xff] }
0x1547   : > { %4784 = vmatprep.subr.mxu1 %v4693_v50  ;;  %4897 = vmatprep.subr.mxu0 %v4695_v18  ;;  %v9617_v50 = vld [vmem:[%s9910_s7] ss:$0 sm:$0xff] }
0x1548   : > { %v4593_v11 = vmul.f32 %v9426_v38, %v9426_v38 }
0x1549   : > { %v4569_v30 = vpop.xlane.xlu1 %4568 }
0x154a   : > { %v4579_v32 = vmul.f32 0.0078125, %v4569_v30  ;;  %4604 = vadd.xlane.f32.xlu1 %v4593_v11  ;;  %v4692_v11 = vld [vmem:[%s9911_s8 + $0x80] sm:$0xff]  ;;  %v4694_v30 = vld [vmem:[%s9911_s8 + $0x90] sm:$0xff] }
0x154b   : > { %v4567_v56 = vpop.xlane.xlu0 %4566  ;;  %4785 = vmatpush1.msra.mxu1 %v4692_v11  ;;  %4898 = vmatpush1.msra.mxu0 %v4694_v30 }
0x154c   : > { %v9443_v24 = vsub.f32 %v9359_v58, %v4579_v32  ;;  %v4578_v42 = vmul.f32 0.0078125, %v4567_v56  ;;  %v4689_v32 = vld [vmem:[%s9911_s8 + $0x68] sm:$0xff]  ;;  %v4690_v56 = vld [vmem:[%s9911_s8 + $0x70] sm:$0xff]  ;;  %4899 = vmatprep.subr.mxu0 %v4691_v33  ;;  %v5195_v33 = vld [vmem:[#allocation2 + $0x178] sm:$0xff] }
0x154d   : > { %4786 = vmatprep.subr.mxu1 %v4689_v32  ;;  %4900 = vmatpush1.msra.mxu0 %v4690_v56  ;;  %v5163_v32 = vld [vmem:[#allocation2 + $0x78] sm:$0xff]  ;;  %v5178_v56 = vld [vmem:[#allocation2 + $0xf0] sm:$0xff] }
0x154e   : > { %v9458_v57 = vsub.f32 %v9362_v26, %v4578_v42  ;;  %v4595_v5 = vmul.f32 %v9443_v24, %v9443_v24  ;;  %v4684_v42 = vld [vmem:[%s9911_s8 + $0x40] sm:$0xff]  ;;  %4787 = vmatpush1.msra.mxu1 %v4688_v12  ;;  %4901 = vmatprep.subr.mxu0 %v4687_v61 }
0x154f   : > { %4788 = vmatprep.subr.mxu1 %v4685_v36  ;;  %4902 = vmatpush1.msra.mxu0 %v4686_v54  ;;  %v5210_v36 = vld [vmem:[#allocation2 + $0x1f0] sm:$0xff] }
0x1550   : > { %4608 = vadd.xlane.f32.xlu1 %v4595_v5  ;;  %v4594_v23 = vmul.f32 %v9458_v57, %v9458_v57  ;;  %v4682_v5 = vld [vmem:[%s9911_s8 + $0x30] sm:$0xff]  ;;  %4789 = vmatpush1.msra.mxu1 %v4684_v42 }
0x1551   : > { %4790 = vmatprep.subr.mxu1 %v4681_v8  ;;  %4903 = vmatprep.subr.mxu0 %v4683_v20 }
0x1552   : > { %v4573_v34 = vpop.xlane.xlu1 %4572  ;;  %4606 = vadd.xlane.f32.xlu0 %v4594_v23  ;;  %4791 = vmatpush1.msra.mxu1 %v4680_v59  ;;  %v5179_v23 = vld [vmem:[#allocation2 + $0xf8] sm:$0xff] }
0x1553   : > { %v4581_v45 = vmul.f32 0.0078125, %v4573_v34  ;;  %4904 = vmatpush1.msra.mxu0 %v4682_v5  ;;  %4792 = vmatprep.subr.mxu1 %v4677_v15  ;;  %v5162_v5 = vld [vmem:[#allocation2 + $0x70] sm:$0xff] }
0x1554   : > { %v4571_v43 = vpop.xlane.xlu0 %4570  ;;  %4905 = vmatprep.subr.mxu0 %v4679_v10  ;;  %4793 = vmatpush1.msra.mxu1 %v4676_v3  ;;  %v5194_v15 = vld [vmem:[#allocation2 + $0x170] sm:$0xff]  ;;  %v5177_v10 = vld [vmem:[#allocation2 + $0xe8] sm:$0xff] }
0x1555   : > { %v9507_v40 = vsub.f32 %v9367_v44, %v4581_v45  ;;  %v4580_v41 = vmul.f32 0.0078125, %v4571_v43  ;;  %4906 = vmatpush1.msra.mxu0 %v4678_v7  ;;  %6050 = vmatprep.subr.mxu1 %v5179_v23  ;;  %v5209_v3 = vld [vmem:[#allocation2 + $0x1e8] sm:$0xff] }
0x1556   : > { %6106 = vmatprep.subr.mxu0 %v5211_v21  ;;  %v5161_v21 = vld [vmem:[#allocation2 + $0x68] sm:$0xff] }
0x1557   : > { %v9522_v63 = vsub.f32 %v9370_v25, %v4580_v41  ;;  %v4597_v22 = vmul.f32 %v9507_v40, %v9507_v40 }
0x1559   : > { %4612 = vadd.xlane.f32.xlu1 %v4597_v22  ;;  %v4596_v55 = vmul.f32 %v9522_v63, %v9522_v63 }
0x155b   : > { %4610 = vadd.xlane.f32.xlu0 %v4596_v55  ;;  %v9611_v55 = vld [vmem:[%s9909_s6] ss:$0 sm:$0xff] }
0x15c9   : > { %v4601_v46 = vpop.xlane.xlu1 %4600 }
0x15ca   : > { %v4615_v1 = vmul.f32 0.0078125, %v4601_v46  ;;  %v5193_v46 = vld [vmem:[#allocation2 + $0x168] sm:$0xff] }
0x15cb   : > { %v4599_v14 = vpop.xlane.xlu0 %4598 }
0x15cc   : > { %v4623_v34 = vadd.f32 1e-05, %v4615_v1  ;;  %v4614_v19 = vmul.f32 0.0078125, %v4599_v14 }
0x15ce   : > { %7172 = vrsqrt.f32 %v4623_v34  ;;  %v4622_v39 = vadd.f32 1e-05, %v4614_v19 }
0x15cf   : > { %v4603_v45 = vpop.xlane.xlu0 %4602 }
0x15d0   : > { %7174 = vrsqrt.f32 %v4622_v39  ;;  %v4616_v52 = vmul.f32 0.0078125, %v4603_v45 }
0x15d2   : > { %v4624_v0 = vadd.f32 1e-05, %v4616_v52 }
0x15d3   : > { %v4605_v43 = vpop.xlane.xlu1 %4604 }
0x15d4   : > { %7176 = vrsqrt.f32 %v4624_v0  ;;  %v4617_v28 = vmul.f32 0.0078125, %v4605_v43 }
0x15d6   : > { %v4625_v48 = vadd.f32 1e-05, %v4617_v28 }
0x15d8   : > { %7178 = vrsqrt.f32 %v4625_v48 }
0x15d9   : > { %v4609_v41 = vpop.xlane.xlu1 %4608 }
0x15da   : > { %v4619_v2 = vmul.f32 0.0078125, %v4609_v41 }
0x15db   : > { %v7173_v4 = vpop.eup %7172  ;;  %v4607_v17 = vpop.xlane.xlu0 %4606 }
0x15dc   : > { %v4627_v60 = vadd.f32 1e-05, %v4619_v2  ;;  %v4618_v22 = vmul.f32 0.0078125, %v4607_v17  ;;  %v4639_v6 = vmul.f32 %v7173_v4, %v9411_v62  ;;  %v5208_v4 = vld [vmem:[#allocation2 + $0x1e0] sm:$0xff] }
0x15dd   : > { %v7175_v13 = vpop.eup %7174  ;;  %v5160_v17 = vld [vmem:[#allocation2 + $0x60] sm:$0xff] }
0x15de   : > { %v4638_v9 = vmul.f32 %v7175_v13, %v9414_v35  ;;  %7180 = vrsqrt.f32 %v4627_v60  ;;  %v4626_v29 = vadd.f32 1e-05, %v4618_v22  ;;  %v4654_v11 = vmul.f32 %v9611_v55, %v4639_v6  ;;  %v5192_v60 = vld [vmem:[#allocation2 + $0x160] sm:$0xff]  ;;  %v5175_v22 = vld [vmem:[#allocation2 + $0xd8] sm:$0xff]  ;;  %v5206_v6 = vld [vmem:[#allocation2 + $0x1d0] sm:$0xff] }
0x15df   : > { %v5207_v13 = vld [vmem:[#allocation2 + $0x1d8] sm:$0xff] }
0x15e0   : > { %7182 = vrsqrt.f32 %v4626_v29  ;;  %v4653_v49 = vmul.f32 %v9611_v55, %v4638_v9  ;;  %v4669_v8 = vadd.f32 %v9617_v50, %v4654_v11  ;;  %v5159_v9 = vld [vmem:[#allocation2 + $0x58] sm:$0xff]  ;;  %v5172_v11 = vld [vmem:[#allocation2 + $0xc0] sm:$0xff] }
0x15e1   : > { %v7177_v37 = vpop.eup %7176  ;;  %v5191_v29 = vld [vmem:[#allocation2 + $0x158] sm:$0xff] }
0x15e2   : > { %v4613_v18 = vpop.xlane.xlu1 %4612  ;;  %v4668_v35 = vadd.f32 %v9617_v50, %v4653_v49  ;;  %v4640_v62 = vmul.f32 %v7177_v37, %v9421_v51  ;;  %v5190_v49 = vld [vmem:[#allocation2 + $0x150] sm:$0xff]  ;;  %v5173_v37 = vld [vmem:[#allocation2 + $0xc8] sm:$0xff] }
0x15e3   : > { %v4621_v30 = vmul.f32 0.0078125, %v4613_v18  ;;  %v5157_v18 = vld [vmem:[#allocation2 + $0x48] sm:$0xff] }
0x15e4   : > { %4827 = vmatmul.mubr.f32.vlgmr.msra.gmra.mxu1 %v4668_v35  ;;  %4940 = vmatmul.mubr.f32.vlgmr.msra.gmra.mxu0 %v4668_v35  ;;  %v4611_v12 = vpop.xlane.xlu0 %4610  ;;  %v4655_v20 = vmul.f32 %v9611_v55, %v4640_v62  ;;  %v5189_v35 = vld [vmem:[#allocation2 + $0x148] sm:$0xff]  ;;  %v5204_v62 = vld [vmem:[#allocation2 + $0x1c0] sm:$0xff] }
0x15e5   : > { %v7179_v61 = vpop.eup %7178  ;;  %v4629_v42 = vadd.f32 1e-05, %v4621_v30  ;;  %v4620_v54 = vmul.f32 0.0078125, %v4611_v12  ;;  %4832 = vmatprep.mubr.f32.mxu1 %v9990_v47  ;;  %4945 = vmatprep.mubr.f32.mxu0 %v9990_v47  ;;  %v5156_v30 = vld [vmem:[#allocation2 + $0x40] sm:$0xff]  ;;  %v5203_v12 = vld [vmem:[#allocation2 + $0x1b8] sm:$0xff] }
0x15e6   : > { %v4641_v51 = vmul.f32 %v7179_v61, %v9426_v38  ;;  %6051 = vmatpush3.msra.mxu1 %v5163_v32  ;;  %6107 = vmatpush3.msra.mxu0 %v5195_v33  ;;  %v4670_v7 = vadd.f32 %v9617_v50, %v4655_v20  ;;  %v5188_v32 = vld [vmem:[#allocation2 + $0x140] sm:$0xff]  ;;  %v5171_v33 = vld [vmem:[#allocation2 + $0xb8] sm:$0xff]  ;;  %v5170_v61 = vld [vmem:[#allocation2 + $0xb0] sm:$0xff] }
0x15e7   : > { %7184 = vrsqrt.f32 %v4629_v42  ;;  %v4628_v59 = vadd.f32 1e-05, %v4620_v54  ;;  %6052 = vmatprep.subr.mxu1 %v5178_v56  ;;  %6108 = vmatprep.subr.mxu0 %v5210_v36  ;;  %v5155_v56 = vld [vmem:[#allocation2 + $0x38] sm:$0xff]  ;;  %v5202_v42 = vld [vmem:[#allocation2 + $0x1b0] sm:$0xff]  ;;  %v5169_v20 = vld [vmem:[#allocation2 + $0xa8] sm:$0xff] }
0x15e8   : > { %4833 = vmatmul.mubr.f32.gmra.mxu1 %v4669_v8  ;;  %4946 = vmatmul.mubr.f32.gmra.mxu0 %v4669_v8  ;;  %v4656_v38 = vmul.f32 %v9611_v55, %v4641_v51  ;;  %v5187_v36 = vld [vmem:[#allocation2 + $0x138] sm:$0xff]  ;;  %v5154_v54 = vld [vmem:[#allocation2 + $0x30] sm:$0xff]  ;;  %v5201_v51 = vld [vmem:[#allocation2 + $0x1a8] sm:$0xff] }
0x15e9   : > { %7186 = vrsqrt.f32 %v4628_v59  ;;  %4838 = vmatprep.mubr.f32.mxu1 %v9990_v47  ;;  %4951 = vmatprep.mubr.f32.mxu0 %v9990_v47  ;;  %v5186_v8 = vld [vmem:[#allocation2 + $0x130] sm:$0xff]  ;;  %v5153_v59 = vld [vmem:[#allocation2 + $0x28] sm:$0xff] }
0x15ea   : > { %6053 = vmatpush3.msra.mxu1 %v5162_v5  ;;  %6109 = vmatpush3.msra.mxu0 %v5194_v15  ;;  %v4671_v14 = vadd.f32 %v9617_v50, %v4656_v38  ;;  %v5185_v5 = vld [vmem:[#allocation2 + $0x128] sm:$0xff]  ;;  %v5168_v15 = vld [vmem:[#allocation2 + $0xa0] sm:$0xff]  ;;  %v5167_v38 = vld [vmem:[#allocation2 + $0x98] sm:$0xff] }
0x15eb   : > { %v7181_v23 = vpop.eup %7180  ;;  %6054 = vmatprep.subr.mxu1 %v5177_v10  ;;  %6110 = vmatprep.subr.mxu0 %v5209_v3  ;;  %v5200_v10 = vld [vmem:[#allocation2 + $0x1a0] sm:$0xff] }
0x15ec   : > { %4839 = vmatmul.mubr.f32.gmra.mxu1 %v4670_v7  ;;  %4952 = vmatmul.mubr.f32.gmra.mxu0 %v4670_v7  ;;  %v4643_v19 = vmul.f32 %v7181_v23, %v9443_v24  ;;  %v5152_v3 = vld [vmem:[#allocation2 + $0x20] sm:$0xff]  ;;  %v5199_v23 = vld [vmem:[#allocation2 + $0x198] sm:$0xff] }
0x15ed   : > { %v7183_v1 = vpop.eup %7182  ;;  %4844 = vmatprep.mubr.f32.mxu1 %v9990_v47  ;;  %4957 = vmatprep.mubr.f32.mxu0 %v9990_v47  ;;  %v5184_v7 = vld [vmem:[#allocation2 + $0x120] sm:$0xff] }
0x15ee   : > { %v4642_v34 = vmul.f32 %v7183_v1, %v9458_v57  ;;  %6055 = vmatpush3.msra.mxu1 %v5161_v21  ;;  %6111 = vmatpush3.msra.mxu0 %v5193_v46  ;;  %v4658_v52 = vmul.f32 %v9611_v55, %v4643_v19  ;;  %v5151_v21 = vld [vmem:[#allocation2 + $0x18] sm:$0xff]  ;;  %v5166_v1 = vld [vmem:[#allocation2 + $0x90] sm:$0xff] }
0x15ef   : > { %6112 = vmatprep.subr.mxu0 %v5208_v4  ;;  %v5183_v46 = vld [vmem:[#allocation2 + $0x118] sm:$0xff]  ;;  %v5182_v19 = vld [vmem:[#allocation2 + $0x110] sm:$0xff] }
0x15f0   : > { %4845 = vmatmul.mubr.f32.gmra.mxu1 %v4671_v14  ;;  %4958 = vmatmul.mubr.f32.gmra.mxu0 %v4671_v14  ;;  %v4657_v39 = vmul.f32 %v9611_v55, %v4642_v34  ;;  %v4673_v57 = vadd.f32 %v9617_v50, %v4658_v52  ;;  %v5198_v14 = vld [vmem:[#allocation2 + $0x190] sm:$0xff]  ;;  %v5149_v52 = vld [vmem:[#allocation2 + $0x8] sm:$0xff] }
0x15f1   : > { %4850 = vmatprep.mubr.f32.mxu1 %v9990_v47  ;;  %4963 = vmatprep.mubr.f32.mxu0 %v9990_v47  ;;  %v5150_v34 = vld [vmem:[#allocation2 + $0x10] sm:$0xff] }
0x15f2   : > { %v4672_v45 = vadd.f32 %v9617_v50, %v4657_v39  ;;  %6113 = vmatpush3.msra.mxu0 %v5192_v60  ;;  %v5165_v39 = vld [vmem:[#allocation2 + $0x88] sm:$0xff] }
0x15f3   : > { %6114 = vmatprep.subr.mxu0 %v5207_v13 }
0x15f4   : > { %v7185_v0 = vpop.eup %7184  ;;  %4851 = vmatmul.mubr.f32.gmra.mxu1 %v4672_v45  ;;  %4964 = vmatmul.mubr.f32.gmra.mxu0 %v4672_v45  ;;  %v5197_v45 = vld [vmem:[#allocation2 + $0x188] sm:$0xff] }
0x15f5   : > { %4856 = vmatprep.mubr.f32.mxu1 %v9990_v47  ;;  %4969 = vmatprep.mubr.f32.mxu0 %v9990_v47  ;;  %v4645_v28 = vmul.f32 %v7185_v0, %v9507_v40  ;;  %v5181_v0 = vld [vmem:[#allocation2 + $0x108] sm:$0xff] }
0x15f6   : > { %v7187_v24 = vpop.eup %7186  ;;  %6115 = vmatpush3.msra.mxu0 %v5191_v29 }
0x15f7   : > { %v4644_v43 = vmul.f32 %v7187_v24, %v9522_v63  ;;  %v4660_v2 = vmul.f32 %v9611_v55, %v4645_v28  ;;  %v5176_v63 = vld [vmem:[#allocation2 + $0xe0] sm:$0xff]  ;;  %6116 = vmatprep.subr.mxu0 %v5206_v6 }
0x15f8   : > { %4857 = vmatmul.mubr.f32.gmra.mxu1 %v4673_v57  ;;  %4970 = vmatmul.mubr.f32.gmra.mxu0 %v4673_v57  ;;  %v5164_v24 = vld [vmem:[#allocation2 + $0x80] sm:$0xff] }
0x15f9   : > { %4862 = vmatprep.mubr.f32.mxu1 %v9990_v47  ;;  %4975 = vmatprep.mubr.f32.mxu0 %v9990_v47  ;;  %v4659_v48 = vmul.f32 %v9611_v55, %v4644_v43  ;;  %v4675_v40 = vadd.f32 %v9617_v50, %v4660_v2  ;;  %v5158_v55 = vld [vmem:[#allocation2 + $0x50] sm:$0xff]  ;;  %v5196_v57 = vld [vmem:[#allocation2 + $0x180] sm:$0xff] }
0x15fa   : > { %6056 = vmatprep.subr.mxu1 %v5176_v63  ;;  %6117 = vmatpush3.msra.mxu0 %v5190_v49  ;;  %v5148_v43 = vld [vmem:[#allocation2] sm:$0xff] }
0x15fb   : > { %v4674_v41 = vadd.f32 %v9617_v50, %v4659_v48  ;;  %6057 = vmatpush3.msra.mxu1 %v5160_v17  ;;  %v5205_v50 = vld [vmem:[#allocation2 + $0x1c8] sm:$0xff]  ;;  %v5180_v28 = vld [vmem:[#allocation2 + $0x100] sm:$0xff]  ;;  %v4742_v48 = vlaneseq }
0x15fc   : > { %6058 = vmatprep.subr.mxu1 %v5175_v22  ;;  %6118 = vmatprep.subr.mxu0 %v5205_v50 }
0x15fd   : > { %4863 = vmatmul.mubr.f32.gmra.mxu1 %v4674_v41  ;;  %4976 = vmatmul.mubr.f32.gmra.mxu0 %v4674_v41  ;;  %v4743_v41 = vshrl.u32 %v4742_v48, 7 }
0x15fe   : > { %4868 = vmatprep.mubr.f32.mxu1 %v9990_v47  ;;  %4981 = vmatprep.mubr.f32.mxu0 %v9990_v47  ;;  %v5174_v47 = vld [vmem:[#allocation2 + $0xd0] sm:$0xff] }
0x15ff   : > { %6059 = vmatpush3.msra.mxu1 %v5159_v9  ;;  %6119 = vmatpush3.msra.mxu0 %v5189_v35  ;;  %v4744_v2 = vsub.s32 0, %v4743_v41  ;;  %v4752_v63 = vsub.s32 2, %v4743_v41  ;;  %v4748_v4 = vsub.s32 1, %v4743_v41  ;;  %v4756_v17 = vsub.s32 3, %v4743_v41 }
0x1600   : > { %6060 = vmatprep.subr.mxu1 %v5174_v47  ;;  %6120 = vmatprep.subr.mxu0 %v5204_v62 }
0x1601   : > { %4869 = vmatmul.mubr.f32.gmra.mxu1 %v4675_v40  ;;  %4982 = vmatmul.mubr.f32.gmra.mxu0 %v4675_v40  ;;  %v4740_v40 = vld [vmem:[%s9912_s9] sm:$0xf] }
0x1602   : > { %6061 = vmatpush3.msra.mxu1 %v5158_v55  ;;  %6121 = vmatpush3.msra.mxu0 %v5188_v32  ;;  %v9657_v60 = vrot.slane %v4740_v40, %v4744_v2  ;;  %v9659_v22 = vrot.slane %v4740_v40, %v4752_v63  ;;  %v9661_v29 = vrot.slane %v4740_v40, %v4748_v4 }
0x1603   : > { %6062 = vmatprep.subr.mxu1 %v5173_v37  ;;  %6122 = vmatprep.subr.mxu0 %v5203_v12  ;;  %v9663_v47 = vrot.slane %v4740_v40, %v4756_v17 }
0x1604   : > { %6063 = vmatpush3.msra.mxu1 %v5157_v18  ;;  %6123 = vmatpush3.msra.mxu0 %v5187_v36 }
0x1605   : > { %6064 = vmatprep.subr.mxu1 %v5172_v11  ;;  %6124 = vmatprep.subr.mxu0 %v5202_v42 }
0x1606   : > { %6065 = vmatpush3.msra.mxu1 %v5156_v30  ;;  %6125 = vmatpush3.msra.mxu0 %v5186_v8 }
0x1607   : > { %6066 = vmatprep.subr.mxu1 %v5171_v33  ;;  %6126 = vmatprep.subr.mxu0 %v5201_v51 }
0x1608   : > { %6067 = vmatpush3.msra.mxu1 %v5155_v56  ;;  %6127 = vmatpush3.msra.mxu0 %v5185_v5 }
0x1609   : > { %6068 = vmatprep.subr.mxu1 %v5170_v61  ;;  %6128 = vmatprep.subr.mxu0 %v5200_v10 }
0x160a   : > { %6069 = vmatpush3.msra.mxu1 %v5154_v54  ;;  %6129 = vmatpush3.msra.mxu0 %v5184_v7 }
0x160b   : > { %6070 = vmatprep.subr.mxu1 %v5169_v20  ;;  %6130 = vmatprep.subr.mxu0 %v5199_v23 }
0x160c   : > { %6071 = vmatpush3.msra.mxu1 %v5153_v59  ;;  %6131 = vmatpush3.msra.mxu0 %v5183_v46 }
0x160d   : > { %6072 = vmatprep.subr.mxu1 %v5168_v15  ;;  %6132 = vmatprep.subr.mxu0 %v5198_v14 }
0x160e   : > { %6073 = vmatpush3.msra.mxu1 %v5152_v3  ;;  %6133 = vmatpush3.msra.mxu0 %v5182_v19 }
0x160f   : > { %6074 = vmatprep.subr.mxu1 %v5167_v38  ;;  %6134 = vmatprep.subr.mxu0 %v5197_v45 }
0x1610   : > { %6075 = vmatpush3.msra.mxu1 %v5151_v21  ;;  %6135 = vmatpush3.msra.mxu0 %v5181_v0 }
0x1611   : > { %6076 = vmatprep.subr.mxu1 %v5166_v1  ;;  %6136 = vmatprep.subr.mxu0 %v5196_v57 }
0x1612   : > { %6077 = vmatpush3.msra.mxu1 %v5150_v34  ;;  %6137 = vmatpush3.msra.mxu0 %v5180_v28 }
0x1613   : > { %6078 = vmatprep.subr.mxu1 %v5165_v39 }
0x1614   : > { %6079 = vmatpush3.msra.mxu1 %v5149_v52 }
0x1615   : > { %6080 = vmatprep.subr.mxu1 %v5164_v24 }
0x1616   : > { %6081 = vmatpush3.msra.mxu1 %v5148_v43 }
0x16a4   : > { %v4828_v13 = vpop.f32.mrf.mxu1  ;;  %v4941_v9 = vpop.f32.mrf.mxu0 }
0x16a5   : > { %v4829_v6 = vadd.f32 %v4828_v13, %v9657_v60  ;;  %v4942_v55 = vadd.f32 %v4941_v9, %v9659_v22 }
0x16a6   : > { %v4830_v49 = vpop.f32.mrf.mxu1  ;;  %v4943_v37 = vpop.f32.mrf.mxu0 }
0x16a7   : > { %v4831_v50 = vadd.f32 %v4830_v49, %v9661_v29  ;;  %v4944_v18 = vadd.f32 %v4943_v37, %v9663_v47  ;;  %v5020_v62 = vmul.f32 0.70710677, %v4829_v6  ;;  %v5022_v30 = vmul.f32 0.70710677, %v4942_v55 }
0x16a8   : > { %v4834_v35 = vpop.f32.mrf.mxu1  ;;  %v4947_v11 = vpop.f32.mrf.mxu0  ;;  %v9687_v0 = vmul.f32 0.5, %v4829_v6  ;;  %v9697_v2 = vmul.f32 0.5, %v4942_v55 }
0x16a9   : > { %v4835_v32 = vadd.f32 %v4834_v35, %v9657_v60  ;;  %v5021_v56 = vmul.f32 0.70710677, %v4831_v50  ;;  %v4948_v36 = vadd.f32 %v4947_v11, %v9659_v22  ;;  %v5023_v61 = vmul.f32 0.70710677, %v4944_v18 }
0x16aa   : > { %v4836_v33 = vpop.f32.mrf.mxu1  ;;  %v4949_v12 = vpop.f32.mrf.mxu0  ;;  %7188 = verf.f32 %v5020_v62  ;;  %v9703_v13 = vmul.f32 0.5, %v4831_v50  ;;  %v9705_v9 = vmul.f32 0.5, %v4944_v18 }
0x16ab   : > { %v4837_v42 = vadd.f32 %v4836_v33, %v9661_v29  ;;  %v4950_v20 = vadd.f32 %v4949_v12, %v9663_v47  ;;  %7190 = verf.f32 %v5022_v30  ;;  %v5024_v51 = vmul.f32 0.70710677, %v4835_v32 }
0x16ac   : > { %v4840_v54 = vpop.f32.mrf.mxu1  ;;  %v4953_v8 = vpop.f32.mrf.mxu0  ;;  %7192 = verf.f32 %v5021_v56  ;;  %v5026_v10 = vmul.f32 0.70710677, %v4948_v36  ;;  %v9708_v49 = vmul.f32 0.5, %v4835_v32  ;;  %v9710_v37 = vmul.f32 0.5, %v4948_v36 }
0x16ad   : > { %v4841_v59 = vadd.f32 %v4840_v54, %v9657_v60  ;;  %v4954_v3 = vadd.f32 %v4953_v8, %v9659_v22  ;;  %7194 = verf.f32 %v5023_v61  ;;  %v5025_v7 = vmul.f32 0.70710677, %v4837_v42 }
0x16ae   : > { %v4842_v5 = vpop.f32.mrf.mxu1  ;;  %v4955_v15 = vpop.f32.mrf.mxu0  ;;  %v5027_v46 = vmul.f32 0.70710677, %v4950_v20  ;;  %7196 = verf.f32 %v5024_v51  ;;  %v9713_v62 = vmul.f32 0.5, %v4837_v42  ;;  %v9719_v33 = vmul.f32 0.5, %v4950_v20 }
0x16af   : > { %v9676_v38 = vadd.f32 %v4842_v5, %v9661_v29  ;;  %v9679_v1 = vadd.f32 %v4955_v15, %v9663_v47  ;;  %v5028_v14 = vmul.f32 0.70710677, %v4841_v59  ;;  %7198 = verf.f32 %v5026_v10 }
0x16b0   : > { %v4846_v23 = vpop.f32.mrf.mxu1  ;;  %v4959_v21 = vpop.f32.mrf.mxu0  ;;  %v5030_v45 = vmul.f32 0.70710677, %v4954_v3  ;;  %7200 = verf.f32 %v5025_v7  ;;  %v9725_v42 = vmul.f32 0.5, %v4841_v59  ;;  %v9727_v54 = vmul.f32 0.5, %v4954_v3 }
0x16b1   : > { %v9682_v34 = vadd.f32 %v4846_v23, %v9657_v60  ;;  %v9685_v52 = vadd.f32 %v4959_v21, %v9659_v22  ;;  %v5029_v24 = vmul.f32 0.70710677, %v9676_v38  ;;  %7202 = verf.f32 %v5027_v46 }
0x16b2   : > { %v4848_v19 = vpop.f32.mrf.mxu1  ;;  %v4961_v39 = vpop.f32.mrf.mxu0  ;;  %v5031_v28 = vmul.f32 0.70710677, %v9679_v1  ;;  %7204 = verf.f32 %v5028_v14 }
0x16b3   : > { %v9692_v48 = vadd.f32 %v4848_v19, %v9661_v29  ;;  %v9695_v41 = vadd.f32 %v4961_v39, %v9663_v47  ;;  %v5032_v40 = vmul.f32 0.70710677, %v9682_v34  ;;  %7206 = verf.f32 %v5030_v45 }
0x16b4   : > { %v4852_v57 = vpop.f32.mrf.mxu1  ;;  %v4965_v43 = vpop.f32.mrf.mxu0  ;;  %v5034_v6 = vmul.f32 0.70710677, %v9685_v52  ;;  %7208 = verf.f32 %v5029_v24  ;;  %v9745_v19 = vmul.f32 0.5, %v9676_v38 }
0x16b5   : > { %v9701_v63 = vadd.f32 %v4852_v57, %v9657_v60  ;;  %v5033_v55 = vmul.f32 0.70710677, %v9692_v48  ;;  %7210 = verf.f32 %v5031_v28  ;;  %v5035_v50 = vmul.f32 0.70710677, %v9695_v41 }
0x16b6   : > { %v4854_v4 = vpop.f32.mrf.mxu1  ;;  %v4967_v17 = vpop.f32.mrf.mxu0  ;;  %v9717_v18 = vadd.f32 %v4965_v43, %v9659_v22  ;;  %7212 = verf.f32 %v5032_v40 }
0x16b7   : > { %v7189_v30 = vpop.eup %7188  ;;  %v5036_v32 = vmul.f32 0.70710677, %v9701_v63  ;;  %v9723_v12 = vadd.f32 %v4854_v4, %v9661_v29  ;;  %7214 = verf.f32 %v5034_v6  ;;  %v9730_v8 = vadd.f32 %v4967_v17, %v9663_v47 }
0x16b8   : > { %v4858_v35 = vpop.f32.mrf.mxu1  ;;  %v4971_v11 = vpop.f32.mrf.mxu0  ;;  %7216 = verf.f32 %v5033_v55  ;;  %v5038_v59 = vmul.f32 0.70710677, %v9717_v18  ;;  %v5084_v46 = vadd.f32 1.0, %v7189_v30 }
0x16b9   : > { %v7191_v61 = vpop.eup %7190  ;;  %v5037_v20 = vmul.f32 0.70710677, %v9723_v12  ;;  %v9734_v5 = vadd.f32 %v4858_v35, %v9657_v60  ;;  %7218 = verf.f32 %v5035_v50  ;;  %v5039_v3 = vmul.f32 0.70710677, %v9730_v8 }
0x16ba   : > { %v4860_v56 = vpop.f32.mrf.mxu1  ;;  %v4973_v36 = vpop.f32.mrf.mxu0  ;;  %v9742_v7 = vadd.f32 %v4971_v11, %v9659_v22  ;;  %v5086_v14 = vadd.f32 1.0, %v7191_v61  ;;  %7220 = verf.f32 %v5036_v32 }
0x16bb   : > { %v7193_v51 = vpop.eup %7192  ;;  %v9737_v15 = vadd.f32 %v4860_v56, %v9661_v29  ;;  %7222 = verf.f32 %v5037_v20  ;;  %v9749_v24 = vadd.f32 %v4973_v36, %v9663_v47  ;;  %v5040_v4 = vmul.f32 0.70710677, %v9734_v5 }
0x16bc   : > { %v7195_v10 = vpop.eup %7194  ;;  %7224 = verf.f32 %v5039_v3  ;;  %v5085_v17 = vadd.f32 1.0, %v7193_v51  ;;  %v5042_v55 = vmul.f32 0.70710677, %v9742_v7  ;;  %v5116_v56 = vmul.f32 %v5084_v46, %v9687_v0 }
0x16bd   : > { %v4864_v23 = vpop.f32.mrf.mxu1  ;;  %v4977_v21 = vpop.f32.mrf.mxu0  ;;  %v5041_v45 = vmul.f32 0.70710677, %v9737_v15  ;;  %v5087_v38 = vadd.f32 1.0, %v7195_v10  ;;  %7226 = verf.f32 %v5038_v59  ;;  %v5043_v35 = vmul.f32 0.70710677, %v9749_v24 }
0x16be   : > { %v7197_v39 = vpop.eup %7196  ;;  %v9752_v57 = vadd.f32 %v4864_v23, %v9657_v60  ;;  %v9758_v11 = vadd.f32 %v4977_v21, %v9659_v22  ;;  %v5118_v36 = vmul.f32 %v5086_v14, %v9697_v2  ;;  %v5117_v20 = vmul.f32 %v5085_v17, %v9703_v13 }
0x16bf   : > { %v4866_v43 = vpop.f32.mrf.mxu1  ;;  %v4979_v28 = vpop.f32.mrf.mxu0  ;;  %7228 = verf.f32 %v5041_v45  ;;  %v5119_v10 = vmul.f32 %v5087_v38, %v9705_v9  ;;  %v4999_v45 = vmul.f32 0.5, %v9679_v1  ;;  %v5001_v17 = vmul.f32 0.5, %v9692_v48 }
0x16c0   : > { %v7199_v40 = vpop.eup %7198  ;;  %v5044_v61 = vmul.f32 0.70710677, %v9752_v57  ;;  %7230 = verf.f32 %v5043_v35  ;;  %v9766_v59 = vadd.f32 %v4866_v43, %v9661_v29  ;;  %v9769_v23 = vadd.f32 %v4979_v28, %v9663_v47  ;;  %5283 = vmatprep.mubr.f32.mxu1 %v5117_v20 }
0x16c1   : > { %v7201_v6 = vpop.eup %7200  ;;  %v4870_v50 = vpop.f32.mrf.mxu1  ;;  %7232 = verf.f32 %v5040_v4  ;;  %v5046_v13 = vmul.f32 0.70710677, %v9758_v11  ;;  %5388 = vmatprep.mubr.f32.mxu0 %v5119_v10  ;;  %5284 = vmatmul.mubr.f32.vlgmr.msra.gmra.mxu1 %v5116_v56  ;;  %v5088_v35 = vadd.f32 1.0, %v7197_v39  ;;  %v5003_v20 = vmul.f32 0.5, %v9695_v41 }
0x16c2   : > { %v4983_v30 = vpop.f32.mrf.mxu0  ;;  %v7203_v32 = vpop.eup %7202  ;;  %v9772_v0 = vadd.f32 %v4870_v50, %v9657_v60  ;;  %7234 = verf.f32 %v5042_v55  ;;  %v5045_v9 = vmul.f32 0.70710677, %v9766_v59  ;;  %v5089_v46 = vadd.f32 1.0, %v7201_v6  ;;  %5389 = vmatmul.mubr.f32.vlgmr.msra.gmra.mxu0 %v5118_v36 }
0x16c3   : > { %v7205_v51 = vpop.eup %7204  ;;  %v9775_v2 = vadd.f32 %v4983_v30, %v9659_v22  ;;  %7236 = verf.f32 %v5044_v61  ;;  %v5047_v60 = vmul.f32 0.70710677, %v9769_v23  ;;  %v4872_v43 = vpop.f32.mrf.mxu1  ;;  %v5091_v1 = vadd.f32 1.0, %v7203_v32 }
0x16c4   : > { %v7207_v3 = vpop.eup %7206  ;;  %v5048_v22 = vmul.f32 0.70710677, %v9772_v0  ;;  %v4985_v28 = vpop.f32.mrf.mxu0  ;;  %7238 = verf.f32 %v5045_v9  ;;  %v5121_v6 = vmul.f32 %v5089_v46, %v9713_v62  ;;  %v5090_v50 = vadd.f32 1.0, %v7199_v40 }
0x16c5   : > { %v7209_v21 = vpop.eup %7208  ;;  %v5050_v38 = vmul.f32 0.70710677, %v9775_v2  ;;  %7240 = verf.f32 %v5047_v60  ;;  %v9786_v56 = vadd.f32 %v4872_v43, %v9661_v29  ;;  %v9789_v36 = vadd.f32 %v4985_v28, %v9663_v47 }
0x16c6   : > { %v7211_v14 = vpop.eup %7210  ;;  %7242 = verf.f32 %v5046_v13  ;;  %5288 = vmatprep.mubr.f32.mxu1 %v5121_v6  ;;  %v5093_v48 = vadd.f32 1.0, %v7209_v21  ;;  %v5123_v62 = vmul.f32 %v5091_v1, %v9719_v33  ;;  %v5120_v32 = vmul.f32 %v5088_v35, %v9708_v49 }
0x16c7   : > { %v7213_v4 = vpop.eup %7212  ;;  %7244 = verf.f32 %v5048_v22  ;;  %v5122_v40 = vmul.f32 %v5090_v50, %v9710_v37  ;;  %v5049_v10 = vmul.f32 0.70710677, %v9786_v56  ;;  %v5051_v29 = vmul.f32 0.70710677, %v9789_v36 }
0x16c8   : > { %v7215_v55 = vpop.eup %7214  ;;  %7246 = verf.f32 %v5050_v38  ;;  %5393 = vmatprep.mubr.f32.mxu0 %v5123_v62  ;;  %5289 = vmatmul.mubr.f32.gmra.mxu1 %v5120_v32  ;;  %v5125_v47 = vmul.f32 %v5093_v48, %v9745_v19  ;;  %v5095_v21 = vadd.f32 1.0, %v7211_v14  ;;  %v5092_v41 = vadd.f32 1.0, %v7205_v51 }
0x16c9   : > { %v7217_v30 = vpop.eup %7216  ;;  %v5094_v9 = vadd.f32 1.0, %v7207_v3  ;;  %5394 = vmatmul.mubr.f32.gmra.mxu0 %v5122_v40  ;;  %7248 = verf.f32 %v5049_v10  ;;  %v5096_v60 = vadd.f32 1.0, %v7213_v4  ;;  %v5000_v37 = vmul.f32 0.5, %v9682_v34 }
0x16ca   : > { %v7219_v61 = vpop.eup %7218  ;;  %v5097_v49 = vadd.f32 1.0, %v7217_v30  ;;  %7250 = verf.f32 %v5051_v29  ;;  %5293 = vmatprep.mubr.f32.mxu1 %v5125_v47  ;;  %v5127_v43 = vmul.f32 %v5095_v21, %v4999_v45  ;;  %v5124_v28 = vmul.f32 %v5092_v41, %v9725_v42 }
0x16cb   : > { %v7221_v39 = vpop.eup %7220  ;;  %v5099_v33 = vadd.f32 1.0, %v7219_v61  ;;  %v5126_v19 = vmul.f32 %v5094_v9, %v9727_v54  ;;  %v5098_v3 = vadd.f32 1.0, %v7215_v55  ;;  %v5005_v1 = vmul.f32 0.5, %v9723_v12 }
0x16cc   : > { %v7223_v13 = vpop.eup %7222  ;;  %v5129_v14 = vmul.f32 %v5097_v49, %v5001_v17  ;;  %v5007_v35 = vmul.f32 0.5, %v9730_v8  ;;  %5398 = vmatprep.mubr.f32.mxu0 %v5127_v43  ;;  %5294 = vmatmul.mubr.f32.gmra.mxu1 %v5124_v28  ;;  %v5002_v45 = vmul.f32 0.5, %v9685_v52  ;;  %v5128_v42 = vmul.f32 %v5096_v60, %v5000_v37 }
0x16cd   : > { %v7225_v46 = vpop.eup %7224  ;;  %v5131_v51 = vmul.f32 %v5099_v33, %v5003_v20  ;;  %v5101_v4 = vadd.f32 1.0, %v7223_v13  ;;  %5399 = vmatmul.mubr.f32.gmra.mxu0 %v5126_v19  ;;  %v5100_v48 = vadd.f32 1.0, %v7221_v39  ;;  %v5009_v8 = vmul.f32 0.5, %v9737_v15 }
0x16ce   : > { %v7227_v22 = vpop.eup %7226  ;;  %v5103_v34 = vadd.f32 1.0, %v7225_v46  ;;  %5298 = vmatprep.mubr.f32.mxu1 %v5129_v14  ;;  %v5130_v20 = vmul.f32 %v5098_v3, %v5002_v45  ;;  %v5004_v40 = vmul.f32 0.5, %v9701_v63  ;;  %v5011_v52 = vmul.f32 0.5, %v9749_v24 }
0x16cf   : > { %v7229_v38 = vpop.eup %7228  ;;  %5403 = vmatprep.mubr.f32.mxu0 %v5131_v51  ;;  %v5133_v17 = vmul.f32 %v5101_v4, %v5005_v1  ;;  %v5102_v62 = vadd.f32 1.0, %v7227_v22  ;;  %v5006_v29 = vmul.f32 0.5, %v9717_v18  ;;  %v5013_v49 = vmul.f32 0.5, %v9766_v59 }
0x16d0   : > { %v7231_v6 = vpop.eup %7230  ;;  %v5105_v30 = vadd.f32 1.0, %v7229_v38  ;;  %v5135_v55 = vmul.f32 %v5103_v34, %v5007_v35  ;;  %5299 = vmatmul.mubr.f32.gmra.mxu1 %v5128_v42  ;;  %v5132_v21 = vmul.f32 %v5100_v48, %v5004_v40  ;;  %v5008_v60 = vmul.f32 0.5, %v9734_v5 }
0x16d1   : > { %v7233_v50 = vpop.eup %7232  ;;  %v5107_v61 = vadd.f32 1.0, %v7231_v6  ;;  %5404 = vmatmul.mubr.f32.gmra.mxu0 %v5130_v20  ;;  %5303 = vmatprep.mubr.f32.mxu1 %v5133_v17  ;;  %v5134_v63 = vmul.f32 %v5102_v62, %v5006_v29  ;;  %v5015_v18 = vmul.f32 0.5, %v9769_v23  ;;  %v5010_v22 = vmul.f32 0.5, %v9742_v7  ;;  %v9821_v17 = vld [vmem:[%s9914_s11] ss:$0 sm:$0xff] }
0x16d2   : > { %v7235_v54 = vpop.eup %7234  ;;  %v5137_v13 = vmul.f32 %v5105_v30, %v5009_v8  ;;  %5408 = vmatprep.mubr.f32.mxu0 %v5135_v55  ;;  %v5104_v15 = vadd.f32 1.0, %v7233_v50  ;;  %v5017_v59 = vmul.f32 0.5, %v9786_v56  ;;  %v5012_v5 = vmul.f32 0.5, %v9752_v57 }
0x16d3   : > { %v7237_v12 = vpop.eup %7236  ;;  %v5139_v41 = vmul.f32 %v5107_v61, %v5011_v52  ;;  %v5106_v33 = vadd.f32 1.0, %v7235_v54  ;;  %v5019_v23 = vmul.f32 0.5, %v9789_v36  ;;  %v5014_v1 = vmul.f32 0.5, %v9758_v11 }
0x16d4   : > { %v7239_v32 = vpop.eup %7238  ;;  %5304 = vmatmul.mubr.f32.gmra.mxu1 %v5132_v21  ;;  %v5136_v28 = vmul.f32 %v5104_v15, %v5008_v60  ;;  %v5108_v19 = vadd.f32 1.0, %v7237_v12  ;;  %v5016_v42 = vmul.f32 0.5, %v9772_v0  ;;  %v5018_v57 = vmul.f32 0.5, %v9775_v2 }
0x16d5   : > { %v7241_v10 = vpop.eup %7240  ;;  %v5109_v47 = vadd.f32 1.0, %v7239_v32  ;;  %5409 = vmatmul.mubr.f32.gmra.mxu0 %v5134_v63  ;;  %5308 = vmatprep.mubr.f32.mxu1 %v5137_v13  ;;  %v5138_v51 = vmul.f32 %v5106_v33, %v5010_v22 }
0x16d6   : > { %v7243_v39 = vpop.eup %7242  ;;  %v5111_v9 = vadd.f32 1.0, %v7241_v10  ;;  %5413 = vmatprep.mubr.f32.mxu0 %v5139_v41  ;;  %v5140_v4 = vmul.f32 %v5108_v19, %v5012_v5 }
0x16d7   : > { %v7245_v46 = vpop.eup %7244  ;;  %v5141_v37 = vmul.f32 %v5109_v47, %v5013_v49  ;;  %v5110_v3 = vadd.f32 1.0, %v7243_v39 }
0x16d8   : > { %v7247_v24 = vpop.eup %7246  ;;  %v5143_v38 = vmul.f32 %v5111_v9, %v5015_v18  ;;  %5309 = vmatmul.mubr.f32.gmra.mxu1 %v5136_v28  ;;  %v5112_v50 = vadd.f32 1.0, %v7245_v46 }
0x16d9   : > { %v7249_v43 = vpop.eup %7248  ;;  %5414 = vmatmul.mubr.f32.gmra.mxu0 %v5138_v51  ;;  %5313 = vmatprep.mubr.f32.mxu1 %v5141_v37  ;;  %v5142_v45 = vmul.f32 %v5110_v3, %v5014_v1  ;;  %v5114_v56 = vadd.f32 1.0, %v7247_v24 }
0x16da   : > { %v7251_v14 = vpop.eup %7250  ;;  %v5113_v6 = vadd.f32 1.0, %v7249_v43  ;;  %5418 = vmatprep.mubr.f32.mxu0 %v5143_v38  ;;  %v5144_v11 = vmul.f32 %v5112_v50, %v5016_v42 }
0x16db   : > { %v5115_v7 = vadd.f32 1.0, %v7251_v14  ;;  %v5146_v36 = vmul.f32 %v5114_v56, %v5018_v57 }
0x16dc   : > { %v5145_v35 = vmul.f32 %v5113_v6, %v5017_v59  ;;  %5314 = vmatmul.mubr.f32.gmra.mxu1 %v5140_v4 }
0x16dd   : > { %v5147_v34 = vmul.f32 %v5115_v7, %v5019_v23  ;;  %5419 = vmatmul.mubr.f32.gmra.mxu0 %v5142_v45 }
0x16de   : > { %5318 = vmatprep.mubr.f32.mxu1 %v5145_v35 }
0x16df   : > { %5423 = vmatprep.mubr.f32.mxu0 %v5147_v34 }
0x16e0   : > { %5319 = vmatmul.mubr.f32.gmra.mxu1 %v5144_v11 }
0x16e1   : > { %5424 = vmatmul.mubr.f32.gmra.mxu0 %v5146_v36 }
0x1781   : > { %v6082_v30 = vpop.f32.mrf.mxu1 }
0x1782   : > { %v6138_v54 = vpop.f32.mrf.mxu0 }
0x1783   : > { %v6083_v55 = vpop.f32.mrf.mxu1 }
0x1784   : > { %v6139_v0 = vpop.f32.mrf.mxu0  ;;  %v6084_v48 = vadd.f32 %v6083_v55, %v6082_v30 }
0x1785   : > { %v6140_v61 = vadd.f32 %v6139_v0, %v6138_v54 }
0x1786   : > { %v5286_v2 = vadd.f32 %v6084_v48, %v9821_v17 }
0x1788   : > { %v6085_v12 = vpop.f32.mrf.mxu1  ;;  %v5391_v8 = vadd.f32 %v6140_v61, %v5286_v2 }
0x1789   : > { %v6141_v20 = vpop.f32.mrf.mxu0 }
0x178a   : > { %v6086_v62 = vpop.f32.mrf.mxu1  ;;  %v5429_v32 = vadd.f32 %v5391_v8, %v9346_v53 }
0x178b   : > { %v6087_v40 = vadd.f32 %v6086_v62, %v6085_v12  ;;  %v6142_v52 = vpop.f32.mrf.mxu0 }
0x178c   : > { %v6088_v10 = vpop.f32.mrf.mxu1  ;;  %5437 = vst [vmem:[%s9828_s23] sm:$0xff] %v5429_v32  ;;  %v6143_v13 = vadd.f32 %v6142_v52, %v6141_v20 }
0x178d   : > { %v5291_v29 = vadd.f32 %v6087_v40, %v9821_v17  ;;  %v6144_v47 = vpop.f32.mrf.mxu0 }
0x178e   : > { %v6089_v39 = vpop.f32.mrf.mxu1 }
0x178f   : > { %v5396_v21 = vadd.f32 %v6143_v13, %v5291_v29  ;;  %v6090_v41 = vadd.f32 %v6089_v39, %v6088_v10  ;;  %v6145_v15 = vpop.f32.mrf.mxu0 }
0x1790   : > { %v6091_v9 = vpop.f32.mrf.mxu1  ;;  %v6146_v49 = vadd.f32 %v6145_v15, %v6144_v47 }
0x1791   : > { %v5430_v53 = vadd.f32 %v5396_v21, %v9343_v27  ;;  %v5296_v46 = vadd.f32 %v6090_v41, %v9821_v17  ;;  %v6147_v63 = vpop.f32.mrf.mxu0 }
0x1792   : > { %v6092_v33 = vpop.f32.mrf.mxu1 }
0x1793   : > { %5438 = vst [vmem:[%s9828_s23 + $0x8] sm:$0xff] %v5430_v53  ;;  %v5401_v24 = vadd.f32 %v6146_v49, %v5296_v46  ;;  %v6093_v60 = vadd.f32 %v6092_v33, %v6091_v9  ;;  %v6148_v18 = vpop.f32.mrf.mxu0 }
0x1794   : > { %v6094_v22 = vpop.f32.mrf.mxu1  ;;  %v6149_v28 = vadd.f32 %v6148_v18, %v6147_v63 }
0x1795   : > { %v5431_v37 = vadd.f32 %v5401_v24, %v9351_v16  ;;  %v5301_v43 = vadd.f32 %v6093_v60, %v9821_v17  ;;  %v6150_v38 = vpop.f32.mrf.mxu0 }
0x1796   : > { %v6095_v19 = vpop.f32.mrf.mxu1 }
0x1797   : > { %5439 = vst [vmem:[%s9828_s23 + $0x10] sm:$0xff] %v5431_v37  ;;  %v5406_v27 = vadd.f32 %v6149_v28, %v5301_v43  ;;  %v6096_v14 = vadd.f32 %v6095_v19, %v6094_v22  ;;  %v6151_v59 = vpop.f32.mrf.mxu0 }
0x1798   : > { %v6097_v51 = vpop.f32.mrf.mxu1  ;;  %v6152_v5 = vadd.f32 %v6151_v59, %v6150_v38 }
0x1799   : > { %v5432_v3 = vadd.f32 %v5406_v27, %v9355_v31  ;;  %v5306_v6 = vadd.f32 %v6096_v14, %v9821_v17  ;;  %v6153_v23 = vpop.f32.mrf.mxu0 }
0x179a   : > { %v6098_v7 = vpop.f32.mrf.mxu1 }
0x179b   : > { %5440 = vst [vmem:[%s9828_s23 + $0x18] sm:$0xff] %v5432_v3  ;;  %v5411_v16 = vadd.f32 %v6152_v5, %v5306_v6  ;;  %v6099_v1 = vadd.f32 %v6098_v7, %v6097_v51  ;;  %v6154_v35 = vpop.f32.mrf.mxu0 }
0x179c   : > { %v6100_v4 = vpop.f32.mrf.mxu1  ;;  %v6155_v45 = vadd.f32 %v6154_v35, %v6153_v23 }
0x179d   : > { %v5433_v34 = vadd.f32 %v5411_v16, %v9362_v26  ;;  %v5311_v50 = vadd.f32 %v6099_v1, %v9821_v17  ;;  %v6156_v56 = vpop.f32.mrf.mxu0 }
0x179e   : > { %v6101_v42 = vpop.f32.mrf.mxu1 }
0x179f   : > { %5441 = vst [vmem:[%s9828_s23 + $0x20] sm:$0xff] %v5433_v34  ;;  %v5416_v31 = vadd.f32 %v6155_v45, %v5311_v50  ;;  %v6102_v57 = vadd.f32 %v6101_v42, %v6100_v4  ;;  %v6157_v11 = vpop.f32.mrf.mxu0 }
0x17a0   : > { %v6103_v36 = vpop.f32.mrf.mxu1  ;;  %v6158_v55 = vadd.f32 %v6157_v11, %v6156_v56 }
0x17a1   : > { %v5434_v30 = vadd.f32 %v5416_v31, %v9359_v58  ;;  %v5316_v54 = vadd.f32 %v6102_v57, %v9821_v17  ;;  %v6159_v0 = vpop.f32.mrf.mxu0 }
0x17a2   : > { %v6104_v26 = vpop.f32.mrf.mxu1 }
0x17a3   : > { %5442 = vst [vmem:[%s9828_s23 + $0x28] sm:$0xff] %v5434_v30  ;;  %v5421_v48 = vadd.f32 %v6158_v55, %v5316_v54  ;;  %v6105_v2 = vadd.f32 %v6104_v26, %v6103_v36  ;;  %v6160_v61 = vpop.f32.mrf.mxu0 }
0x17a4   : > { %v6161_v20 = vadd.f32 %v6160_v61, %v6159_v0 }
0x17a5   : > { %v5435_v12 = vadd.f32 %v5421_v48, %v9370_v25  ;;  %v5321_v8 = vadd.f32 %v6105_v2, %v9821_v17 }
0x17a7   : > { %5443 = vst [vmem:[%s9828_s23 + $0x30] sm:$0xff] %v5435_v12  ;;  %v5426_v58 = vadd.f32 %v6161_v20, %v5321_v8 }
0x17a9   : > { %v5436_v62 = vadd.f32 %v5426_v58, %v9367_v44 }
0x17ab   : > { %5444 = vst [vmem:[%s9828_s23 + $0x38] sm:$0xff] %v5436_v62 }
0x17ac   : > { %7299 = shalt.err (!%p7296_p0)
}
0x17ad   : > { %s7300_s16 = scalar_lea.hbm %s9855_s26, 1024  ;;  %s7304_s30 = scalar_lea.hbm %s9915_s12, 2048 }
0x17ae   : > { %p7301_p1 = scmp.ne.s32.totalorder %s9855_s26, %s7300_s16  ;;  %p7305_p4 = scmp.lt.s32.totalorder %s9855_s26, %s9915_s12 }
0x17af   : > { %p7306_p7 = scmp.lt.s32.totalorder %s7304_s30, %s7300_s16 }
0x17b0   : > { %p7302_p2 = pnand %p7301_p1, %p7469_p5 }
0x17b1   : > { %p7307_p8 = por %p7306_p7, %p7305_p4 }
0x17b2   : > { %p7303_p3 = pneg %p7302_p2 }
0x17b4   : > { %p7308_p6 = pnand %p7307_p8, %p7303_p3 }
0x17b6   : > { %7311 = shalt.err (!%p7308_p6)
}
0x17b7   : > { %s7364_s25 = smov 128   ;;  %s7365_s29 = smov 8  }
0x17b8   : > { %6702 = dma.vmem_to_hbm [thread:$0]  (%p7469_p5), %s9857_s19, 1024, %s9855_s26, %s9863_s17, %s7364_s25, %s7364_s25, %s7365_s29  }
0x17b9 PF: > { %p6714_p9 = scmp.ge.s32.totalorder %s7350_s24, 2  ;;  %s5474_s15 = sand.u32 1, %s7338_s21  }
0x17ba   : > { %p10046_p10 = scmp.ne.s32.totalorder %s9954_s14, 0  ;;  %s5475_s16 = scalar_lea.sflag [#allocation4], %s5474_s15 }
0x17bc   : > { %p6709_p11 = pnand %p6714_p9, %p10046_p10 }
0x17be   : > { %p6710_p12 = pneg %p6709_p11 }
0x17c0   : > { %7333 = dma.done.wait (%p6710_p12), %s5475_s16, 1024  }
0x17c1   : > { %7335 = vsyncadd (%p6710_p12), %s5475_s16, 4294966272  ;;  %s10047_s23 = sld [smem:[#allocation8_spill]]  ;;  %p23_p13 = scmp.ge.s32.totalorder %s7456_s27, 4  }
0x17c2   : > { %s10048_s18 = sld [smem:[#allocation9_spill]]  ;;  %s10049_s21 = smov %s7342_s22 }
0x17c3   : > { %s10052_s24 = smov %s7456_s27 }
0x17c4   :  { %25 = sbr.rel (!%p23_p13) target bundleno = 4 (0x4), region = 108 }
0x17c7   : > { %s10050_s22 = smov %s10047_s23 }
0x17c8   : > { %s10051_s23 = smov %s10048_s18 }
0x17c9   :  { %5480 = vsyncpa [#allocation3], 1 }
0x17ca   :  { %5482 = vsyncpa [#allocation3 + $0x1], 1 }
0x17cb   :  { %5483 = vsyncpa [#allocation4], 1 }
0x17cc   :  { %5485 = vsyncpa [#allocation4 + $0x1], 1 }

// kernel: block_forward.1
= control target key start
LH: loop header
LB: loop body
LE: loop exit
PB: predicated region body
PF: predicated region fallthrough
CT: control target
= control target key end

     0   :  { %17 = vsyncpa [#allocation3], 0  ;;  %s9903_s0 = inlined_call_operand.vmem [shape: f32[128,128], index: 0, kind: input, shape index: {}]   ;;  %s9904_s1 = inlined_call_operand.vmem [shape: f32[1,128], index: 1, kind: input, shape index: {}]   ;;  %s9905_s2 = inlined_call_operand.vmem [shape: f32[1,128], index: 2, kind: input, shape index: {}]   ;;  %s9906_s3 = inlined_call_operand.vmem [shape: f32[128,384], index: 3, kind: input, shape index: {}]   ;;  %s9907_s4 = inlined_call_operand.vmem [shape: f32[128,128], index: 4, kind: input, shape index: {}]   ;;  %s9908_s5 = inlined_call_operand.vmem [shape: f32[1,128], index: 5, kind: input, shape index: {}]   ;;  %s9909_s6 = inlined_call_operand.vmem [shape: f32[1,128], index: 6, kind: input, shape index: {}]   ;;  %s9910_s7 = inlined_call_operand.vmem [shape: f32[1,128], index: 7, kind: input, shape index: {}]   ;;  %s9911_s8 = inlined_call_operand.vmem [shape: f32[128,512], index: 8, kind: input, shape index: {}]   ;;  %s9912_s9 = inlined_call_operand.vmem [shape: f32[1,512], index: 9, kind: input, shape index: {}]   ;;  %s9913_s10 = inlined_call_operand.hbm [shape: f32[512,128], index: 10, kind: input, shape index: {}]   ;;  %s9914_s11 = inlined_call_operand.vmem [shape: f32[1,128], index: 11, kind: input, shape index: {}]   ;;  %s9915_s12 = inlined_call_operand.hbm [shape: f32[128,128], index: 12, kind: output, shape index: {}]  }
   0x1   :  { %18 = vsyncpa [#allocation4], 0 }
   0x2   :  { %20 = vsyncpa [#allocation4 + $0x1], 0  ;;  %s7431_s21 = smov 0   ;;  %s7433_s22 = smov 0  }
   0x3   :  { %s7435_s23 = smov 0   ;;  %s7437_s24 = smov 0  }
   0x4 LB: > { %9951 = sst [smem:[#allocation8_spill]] %s7346_s23  ;;  %s7452_s25 = sadd.s32 4294967295, %s7350_s24   ;;  %s7350_s24 = sphi %s7437_s24, %s10052_s24   ;;  %s7346_s23 = sphi %s7435_s23, %s10051_s23   ;;  %s7342_s22 = sphi %s7433_s22, %s10050_s22   ;;  %s7338_s21 = sphi %s7431_s21, %s10049_s21  }
   0x5   : > { %s5533_s26 = sadd.s32 4294967294, %s7350_s24   ;;  %s7456_s27 = sadd.s32 1, %s7350_s24  }
   0x6   : > { %s290_s28 = sadd.s32 1, %s7346_s23  ;;  %s287_s29 = ssub.s32 %s7350_s24, %s7456_s27 }
   0x7   : > { %p300_p0 = scmp.ne.s32.totalorder %s7346_s23, %s7342_s22  ;;  %p288_p1 = scmp.eq.s32.totalorder %s287_s29, 0 }
   0x8   : > { %p301_p2 = scmp.eq.s32.totalorder %s7452_s25, 1  ;;  %p306_p3 = scmp.ne.s32.totalorder %s7342_s22, %s7338_s21 }
   0x9   : > { %p307_p4 = scmp.eq.s32.totalorder %s5533_s26, 1  ;;  %p5534_p7 = scmp.ge.s32.totalorder %s7350_s24, 1 }
   0xa   : > { %s7467_s30 = scalar_select %p288_p1, %s7346_s23, %s290_s28  }
   0xb   : > { %p7469_p5 = por %p301_p2, %p300_p0  ;;  %p7473_p6 = por %p307_p4, %p306_p3 }
   0xc   : > { %9952 = sst [smem:[#allocation9_spill]] %s7467_s30  ;;  %p314_p8 = scmp.lt.s32.totalorder %s7350_s24, 3 }
   0xd   : > { %s9954_s14 = scalar_select %p7473_p6, 1, 0 }
   0xe   : > { %p6712_p9 = scmp.eq.s32.totalorder %s7452_s25, 0  ;;  %p7480_p10 = pnand %p5534_p7, %p314_p8 }
   0xf   : > { %s7352_s16 = smov [#allocation2]  }
  0x10   : > { %s353_s17 = sshll.u32 %s7352_s16, 4  ;;  %p6704_p11 = pneg %p7480_p10  ;;  %s354_s17 = int_to_ptr.vmem [resolvable:$true] %s353_s17 }
  0x11   : > { %s7271_s18 = scalar_lea.vmem %s354_s17, 8192  ;;  %p7279_p3 = scmp.lt.s32.totalorder %s354_s17, %s354_s17 }
  0x12   : > { %p6705_p12 = pnand %p6712_p9, %p6704_p11  ;;  %p7272_p0 = scmp.ne.s32.totalorder %s354_s17, %s7271_s18 }
  0x13   : > { %p7280_p4 = scmp.lt.s32.totalorder %s7271_s18, %s7271_s18 }
  0x14   : > { %p7262_p13 = pneg %p6705_p12 }
  0x15   : > { %p7281_p6 = por %p7280_p4, %p7279_p3 }
  0x16   : > { %p7274_p1 = pnand %p7272_p0, %p7262_p13 }
  0x18   : > { %p7275_p2 = pneg %p7274_p1 }
  0x1a   : > { %p7282_p7 = pnand %p7281_p6, %p7275_p2 }
  0x1c   : > { %7285 = shalt.err (!%p7282_p7)
}
  0x1d   : > { %s7353_s19 = smov 128   ;;  %s7354_s20 = smov 8  }
  0x1e   : > { %6707 = dma.hbm_to_vmem [thread:$0]  (!%p6705_p12), %s9913_s10, 8192, %s354_s17, [#allocation3], %s7353_s19, %s7353_s19, %s7354_s20  }
  0x1f   : > { %381 = sbr.rel (%p7480_p10) target bundleno = 6073 (0x17b9), region = 68 }
  0x24   : > { %7329 = dma.done.wait (%p6712_p9), [#allocation3], 8192  }
  0x25   : > { %7331 = vsyncadd (%p6712_p9), [#allocation3], 4294959104  ;;  %s5540_s29 = sshll.u32 %s7452_s25, 3  ;;  %v603_v8 = vld [vmem:[%s9906_s3 + $0x170] sm:$0xff]  ;;  %v602_v9 = vld [vmem:[%s9906_s3 + $0x168] sm:$0xff]  ;;  %vm823_vm0 = vcmask 130048  }
  0x26   : > { %p424_p8 = scmp.lt.s32.totalorder %s5540_s29, 15  ;;  %v600_v10 = vld [vmem:[%s9906_s3 + $0x158] sm:$0xff]  ;;  %605 = vmatprep.subr.mxu0 %v603_v8  ;;  %v599_v11 = vld [vmem:[%s9906_s3 + $0x150] sm:$0xff]  ;;  %v597_v13 = vld [vmem:[%s9906_s3 + $0x140] sm:$0xff]  ;;  %s7356_s30 = smov 112   ;;  %vm985_vm1 = vcmask 523264  }
  0x27   : > { %v604_v12 = vld [vmem:[%s9906_s3 + $0x178] sm:$0xff]  ;;  %606 = vmatpush1.msra.mxu0 %v602_v9  ;;  %v601_v14 = vld [vmem:[%s9906_s3 + $0x160] sm:$0xff]  ;;  %v594_v16 = vld [vmem:[%s9906_s3 + $0x128] sm:$0xff]  ;;  %s9945_s15 = smov 96   ;;  %s9949_s17 = smov 80   ;;  %vm4369_vm2 = vcmask 261120  }
  0x28   : > { %s10054_s29 = smov (!%p424_p8, %s5540_s29), 15  ;;  %6162 = vmatprep.subr.mxu1 %v604_v12  ;;  %607 = vmatprep.subr.mxu0 %v600_v10  ;;  %v596_v15 = vld [vmem:[%s9906_s3 + $0x138] sm:$0xff]  ;;  %v593_v17 = vld [vmem:[%s9906_s3 + $0x120] sm:$0xff]  ;;  %v591_v48 = vld [vmem:[%s9906_s3 + $0x110] sm:$0xff]  ;;  %s9946_s19 = smov 64   ;;  %vm4378_vm3 = vcmask 392192  }
  0x29   : > { %s5541_s16 = sshll.u32 %s10054_s29, 3  ;;  %6163 = vmatpush3.msra.mxu1 %v604_v12  ;;  %608 = vmatpush1.msra.mxu0 %v599_v11  ;;  %v598_v49 = vld [vmem:[%s9906_s3 + $0x148] sm:$0xff]  ;;  %v588_v52 = vld [vmem:[%s9906_s3 + $0xf8] sm:$0xff]  ;;  %v595_v53 = vld [vmem:[%s9906_s3 + $0x130] sm:$0xff]  ;;  %s7360_s20 = smov 48   ;;  %vm4395_vm4 = vcmask 654336  }
  0x2a   : > { %s7501_s23 = scalar_lea.vmem %s9903_s0, %s5541_s16  ;;  %6164 = vmatprep.subr.mxu1 %v601_v14  ;;  %609 = vmatprep.subr.mxu0 %v597_v13  ;;  %v590_v51 = vld [vmem:[%s9906_s3 + $0x108] sm:$0xff]  ;;  %v587_v55 = vld [vmem:[%s9906_s3 + $0xf0] sm:$0xff]  ;;  %v585_v56 = vld [vmem:[%s9906_s3 + $0xe0] sm:$0xff]  ;;  %s9947_s26 = smov 32   ;;  %vm4404_vm5 = vcmask 785408   ;;  %vm4413_vm6 = vcmask 916480  }
  0x2b   : > { %v430_v0 = vld [vmem:[%s7501_s23] sm:$0xff]  ;;  %v432_v1 = vld [vmem:[%s7501_s23 + $0x10] sm:$0xff]  ;;  %v431_v2 = vld [vmem:[%s7501_s23 + $0x8] sm:$0xff]  ;;  %6165 = vmatpush3.msra.mxu1 %v601_v14  ;;  %610 = vmatpush1.msra.mxu0 %v596_v15  ;;  %s9948_s28 = smov 16   ;;  %s10017_s29 = smov 80  }
  0x2c   : > { %438 = vadd.xlane.f32.xlu0 %v430_v0  ;;  %442 = vadd.xlane.f32.xlu1 %v432_v1  ;;  %v433_v3 = vld [vmem:[%s7501_s23 + $0x18] sm:$0xff]  ;;  %v434_v4 = vld [vmem:[%s7501_s23 + $0x20] sm:$0xff]  ;;  %v435_v5 = vld [vmem:[%s7501_s23 + $0x28] sm:$0xff]  ;;  %s10019_s16 = smov 16   ;;  %s10033_s18 = smov 64  }
  0x2d   : > { %v436_v6 = vld [vmem:[%s7501_s23 + $0x30] sm:$0xff]  ;;  %v437_v7 = vld [vmem:[%s7501_s23 + $0x38] sm:$0xff]  ;;  %611 = vmatprep.subr.mxu0 %v594_v16  ;;  %6166 = vmatprep.subr.mxu1 %v598_v49  ;;  %v582_v59 = vld [vmem:[%s9906_s3 + $0xc8] sm:$0xff] }
  0x2e   : > { %612 = vmatpush1.msra.mxu0 %v593_v17  ;;  %6167 = vmatpush3.msra.mxu1 %v598_v49  ;;  %v592_v57 = vld [vmem:[%s9906_s3 + $0x118] sm:$0xff]  ;;  %v589_v60 = vld [vmem:[%s9906_s3 + $0x100] sm:$0xff]  ;;  %v579_v62 = vld [vmem:[%s9906_s3 + $0xb0] sm:$0xff] }
  0x2f   : > { %613 = vmatprep.subr.mxu0 %v591_v48  ;;  %6168 = vmatprep.subr.mxu1 %v595_v53  ;;  %v584_v58 = vld [vmem:[%s9906_s3 + $0xd8] sm:$0xff]  ;;  %v581_v61 = vld [vmem:[%s9906_s3 + $0xc0] sm:$0xff]  ;;  %v586_v63 = vld [vmem:[%s9906_s3 + $0xe8] sm:$0xff] }
  0x30   : > { %440 = vadd.xlane.f32.xlu0 %v431_v2  ;;  %444 = vadd.xlane.f32.xlu1 %v433_v3  ;;  %v577_v8 = vld [vmem:[%s9906_s3 + $0xa0] sm:$0xff]  ;;  %v567_v10 = vld [vmem:[%s9906_s3 + $0x50] sm:$0xff]  ;;  %v574_v11 = vld [vmem:[%s9906_s3 + $0x88] sm:$0xff] }
  0x31   : > { %614 = vmatpush1.msra.mxu0 %v590_v51  ;;  %6169 = vmatpush3.msra.mxu1 %v595_v53  ;;  %v569_v9 = vld [vmem:[%s9906_s3 + $0x60] sm:$0xff]  ;;  %v566_v12 = vld [vmem:[%s9906_s3 + $0x48] sm:$0xff]  ;;  %v564_v13 = vld [vmem:[%s9906_s3 + $0x38] sm:$0xff] }
  0x32   : > { %615 = vmatprep.subr.mxu0 %v588_v52  ;;  %6170 = vmatprep.subr.mxu1 %v592_v57  ;;  %v571_v14 = vld [vmem:[%s9906_s3 + $0x70] sm:$0xff]  ;;  %v561_v16 = vld [vmem:[%s9906_s3 + $0x20] sm:$0xff]  ;;  %v568_v17 = vld [vmem:[%s9906_s3 + $0x58] sm:$0xff] }
  0x33   : > { %616 = vmatpush1.msra.mxu0 %v587_v55  ;;  %6171 = vmatpush3.msra.mxu1 %v592_v57  ;;  %v563_v15 = vld [vmem:[%s9906_s3 + $0x30] sm:$0xff]  ;;  %v5542_v57 = vld [vmem:[%s9904_s1] ss:$0 sm:$0xff] }
  0x34   : > { %446 = vadd.xlane.f32.xlu0 %v434_v4  ;;  %448 = vadd.xlane.f32.xlu1 %v435_v5 }
  0x35   : > { %617 = vmatprep.subr.mxu0 %v585_v56  ;;  %6172 = vmatprep.subr.mxu1 %v589_v60 }
  0x36   : > { %618 = vmatpush1.msra.mxu0 %v584_v58  ;;  %6173 = vmatpush3.msra.mxu1 %v589_v60  ;;  %v5543_v60 = vld [vmem:[%s9905_s2] ss:$0 sm:$0xff] }
  0x37   : > { %619 = vmatprep.subr.mxu0 %v582_v59  ;;  %6174 = vmatprep.subr.mxu1 %v586_v63 }
  0x38   : > { %450 = vadd.xlane.f32.xlu0 %v436_v6  ;;  %452 = vadd.xlane.f32.xlu1 %v437_v7 }
  0x39   : > { %620 = vmatpush1.msra.mxu0 %v581_v61  ;;  %6175 = vmatpush3.msra.mxu1 %v586_v63 }
  0x3a   : > { %621 = vmatprep.subr.mxu0 %v579_v62 }
  0xb5   : > { %v439_v18 = vpop.xlane.xlu0 %438  ;;  %v443_v19 = vpop.xlane.xlu1 %442 }
  0xb6   : > { %v455_v20 = vmul.f32 0.0078125, %v439_v18  ;;  %v457_v21 = vmul.f32 0.0078125, %v443_v19  ;;  %v560_v18 = vld [vmem:[%s9906_s3 + $0x18] sm:$0xff]  ;;  %v558_v19 = vld [vmem:[%s9906_s3 + $0x8] sm:$0xff] }
  0xb8   : > { %v7541_v22 = vsub.f32 %v430_v0, %v455_v20  ;;  %v7543_v23 = vsub.f32 %v432_v1, %v457_v21  ;;  %v578_v0 = vld [vmem:[%s9906_s3 + $0xa8] sm:$0xff]  ;;  %v576_v1 = vld [vmem:[%s9906_s3 + $0x98] sm:$0xff]  ;;  %v565_v20 = vld [vmem:[%s9906_s3 + $0x40] sm:$0xff] }
  0xb9   : > { %v441_v24 = vpop.xlane.xlu0 %440  ;;  %v445_v25 = vpop.xlane.xlu1 %444  ;;  %622 = vmatpush1.msra.mxu0 %v578_v0  ;;  %v557_v21 = vld [vmem:[%s9906_s3] sm:$0xff] }
  0xba   : > { %v456_v26 = vmul.f32 0.0078125, %v441_v24  ;;  %v471_v27 = vmul.f32 %v7541_v22, %v7541_v22  ;;  %v458_v28 = vmul.f32 0.0078125, %v445_v25  ;;  %v473_v29 = vmul.f32 %v7543_v23, %v7543_v23  ;;  %623 = vmatprep.subr.mxu0 %v576_v1  ;;  %v562_v24 = vld [vmem:[%s9906_s3 + $0x28] sm:$0xff] }
  0xbb   : > { %v9917_v25 = vmov 0.0  }
  0xbc   : > { %479 = vadd.xlane.f32.xlu0 %v471_v27  ;;  %v7549_v30 = vsub.f32 %v431_v2, %v456_v26  ;;  %v7551_v31 = vsub.f32 %v433_v3, %v458_v28  ;;  %v583_v2 = vld [vmem:[%s9906_s3 + $0xd0] sm:$0xff]  ;;  %669 = vmatprep.mubr.f32.mxu0 %v9917_v25 }
  0xbd   : > { %v447_v32 = vpop.xlane.xlu0 %446  ;;  %v449_v33 = vpop.xlane.xlu1 %448  ;;  %v575_v3 = vld [vmem:[%s9906_s3 + $0x90] sm:$0xff]  ;;  %6176 = vmatprep.subr.mxu1 %v583_v2 }
  0xbe   : > { %v459_v34 = vmul.f32 0.0078125, %v447_v32  ;;  %v472_v35 = vmul.f32 %v7549_v30, %v7549_v30  ;;  %v460_v36 = vmul.f32 0.0078125, %v449_v33  ;;  %v474_v37 = vmul.f32 %v7551_v31, %v7551_v31  ;;  %624 = vmatpush1.msra.mxu0 %v575_v3  ;;  %6177 = vmatpush3.msra.mxu1 %v583_v2  ;;  %v559_v26 = vld [vmem:[%s9906_s3 + $0x10] sm:$0xff] }
  0xc0   : > { %483 = vadd.xlane.f32.xlu0 %v473_v29  ;;  %481 = vadd.xlane.f32.xlu1 %v472_v35  ;;  %v7557_v38 = vsub.f32 %v434_v4, %v459_v34  ;;  %v7559_v39 = vsub.f32 %v435_v5, %v460_v36  ;;  %v573_v4 = vld [vmem:[%s9906_s3 + $0x80] sm:$0xff]  ;;  %v580_v5 = vld [vmem:[%s9906_s3 + $0xb8] sm:$0xff] }
  0xc1   : > { %v451_v40 = vpop.xlane.xlu0 %450  ;;  %v453_v41 = vpop.xlane.xlu1 %452  ;;  %625 = vmatprep.subr.mxu0 %v573_v4  ;;  %6178 = vmatprep.subr.mxu1 %v580_v5 }
  0xc2   : > { %v461_v42 = vmul.f32 0.0078125, %v451_v40  ;;  %v475_v43 = vmul.f32 %v7557_v38, %v7557_v38  ;;  %v462_v44 = vmul.f32 0.0078125, %v453_v41  ;;  %v476_v45 = vmul.f32 %v7559_v39, %v7559_v39  ;;  %6179 = vmatpush3.msra.mxu1 %v580_v5 }
  0xc3   : > { %6180 = vmatprep.subr.mxu1 %v577_v8 }
  0xc4   : > { %485 = vadd.xlane.f32.xlu1 %v474_v37  ;;  %487 = vadd.xlane.f32.xlu0 %v475_v43  ;;  %v7565_v46 = vsub.f32 %v436_v6, %v461_v42  ;;  %v7567_v47 = vsub.f32 %v437_v7, %v462_v44  ;;  %v572_v6 = vld [vmem:[%s9906_s3 + $0x78] sm:$0xff]  ;;  %v570_v7 = vld [vmem:[%s9906_s3 + $0x68] sm:$0xff] }
  0xc5   : > { %626 = vmatpush1.msra.mxu0 %v572_v6  ;;  %6181 = vmatpush3.msra.mxu1 %v577_v8 }
  0xc6   : > { %v477_v50 = vmul.f32 %v7565_v46, %v7565_v46  ;;  %v478_v54 = vmul.f32 %v7567_v47, %v7567_v47  ;;  %627 = vmatprep.subr.mxu0 %v570_v7  ;;  %6182 = vmatprep.subr.mxu1 %v574_v11 }
  0xc7   : > { %628 = vmatpush1.msra.mxu0 %v569_v9  ;;  %6183 = vmatpush3.msra.mxu1 %v574_v11 }
  0xc8   : > { %489 = vadd.xlane.f32.xlu1 %v476_v45  ;;  %491 = vadd.xlane.f32.xlu0 %v477_v50 }
  0xc9   : > { %629 = vmatprep.subr.mxu0 %v567_v10  ;;  %6184 = vmatprep.subr.mxu1 %v571_v14 }
  0xca   : > { %630 = vmatpush1.msra.mxu0 %v566_v12  ;;  %6185 = vmatpush3.msra.mxu1 %v571_v14 }
  0xcb   : > { %631 = vmatprep.subr.mxu0 %v564_v13  ;;  %6186 = vmatprep.subr.mxu1 %v568_v17 }
  0xcc   : > { %493 = vadd.xlane.f32.xlu1 %v478_v54  ;;  %632 = vmatpush1.msra.mxu0 %v563_v15 }
  0xcd   : > { %633 = vmatprep.subr.mxu0 %v561_v16  ;;  %6187 = vmatpush3.msra.mxu1 %v568_v17 }
  0xce   : > { %634 = vmatpush1.msra.mxu0 %v560_v18  ;;  %6188 = vmatprep.subr.mxu1 %v565_v20 }
  0xcf   : > { %635 = vmatprep.subr.mxu0 %v558_v19  ;;  %6189 = vmatpush3.msra.mxu1 %v565_v20 }
  0xd0   : > { %636 = vmatpush1.msra.mxu0 %v557_v21  ;;  %6190 = vmatprep.subr.mxu1 %v562_v24 }
  0xd1   : > { %6191 = vmatpush3.msra.mxu1 %v562_v24 }
  0xd2   : > { %6192 = vmatprep.subr.mxu1 %v559_v26 }
  0xd3   : > { %6193 = vmatpush3.msra.mxu1 %v559_v26 }
 0x145   : > { %v480_v27 = vpop.xlane.xlu0 %479 }
 0x146   : > { %v495_v28 = vmul.f32 0.0078125, %v480_v27 }
 0x148   : > { %v503_v29 = vadd.f32 1e-05, %v495_v28 }
 0x149   : > { %v482_v32 = vpop.xlane.xlu1 %481  ;;  %v484_v33 = vpop.xlane.xlu0 %483 }
 0x14a   : > { %6900 = vrsqrt.f32 %v503_v29  ;;  %v496_v34 = vmul.f32 0.0078125, %v482_v32  ;;  %v497_v35 = vmul.f32 0.0078125, %v484_v33 }
 0x14c   : > { %v504_v36 = vadd.f32 1e-05, %v496_v34  ;;  %v505_v37 = vadd.f32 1e-05, %v497_v35 }
 0x14d   : > { %v486_v40 = vpop.xlane.xlu1 %485  ;;  %v488_v41 = vpop.xlane.xlu0 %487 }
 0x14e   : > { %6902 = vrsqrt.f32 %v504_v36  ;;  %v498_v42 = vmul.f32 0.0078125, %v486_v40  ;;  %v499_v43 = vmul.f32 0.0078125, %v488_v41 }
 0x14f   : > { %6904 = vrsqrt.f32 %v505_v37 }
 0x150   : > { %v506_v44 = vadd.f32 1e-05, %v498_v42  ;;  %v507_v45 = vadd.f32 1e-05, %v499_v43 }
 0x151   : > { %v490_v48 = vpop.xlane.xlu1 %489  ;;  %v492_v49 = vpop.xlane.xlu0 %491 }
 0x152   : > { %6906 = vrsqrt.f32 %v506_v44  ;;  %v500_v50 = vmul.f32 0.0078125, %v490_v48  ;;  %v501_v51 = vmul.f32 0.0078125, %v492_v49 }
 0x153   : > { %6908 = vrsqrt.f32 %v507_v45 }
 0x154   : > { %v508_v52 = vadd.f32 1e-05, %v500_v50  ;;  %v509_v53 = vadd.f32 1e-05, %v501_v51 }
 0x155   : > { %v494_v54 = vpop.xlane.xlu1 %493 }
 0x156   : > { %6910 = vrsqrt.f32 %v508_v52  ;;  %v502_v55 = vmul.f32 0.0078125, %v494_v54 }
 0x157   : > { %v6901_v56 = vpop.eup %6900  ;;  %6912 = vrsqrt.f32 %v509_v53 }
 0x158   : > { %v510_v58 = vadd.f32 1e-05, %v502_v55  ;;  %v519_v59 = vmul.f32 %v6901_v56, %v7541_v22 }
 0x15a   : > { %6914 = vrsqrt.f32 %v510_v58  ;;  %v534_v61 = vmul.f32 %v5542_v57, %v519_v59 }
 0x15b   : > { %v6903_v62 = vpop.eup %6902 }
 0x15c   : > { %v6905_v63 = vpop.eup %6904  ;;  %v549_v0 = vadd.f32 %v5543_v60, %v534_v61  ;;  %v520_v1 = vmul.f32 %v6903_v62, %v7549_v30 }
 0x15d   : > { %v521_v2 = vmul.f32 %v6905_v63, %v7543_v23 }
 0x15e   : > { %670 = vmatmul.mubr.f32.vlgmr.msra.gmra.mxu0 %v549_v0  ;;  %6194 = vmatprep.mubr.f32.mxu1 %v549_v0  ;;  %v535_v3 = vmul.f32 %v5542_v57, %v520_v1 }
 0x15f   : > { %v6907_v4 = vpop.eup %6906  ;;  %675 = vmatprep.mubr.f32.mxu0 %v9917_v25  ;;  %v536_v22 = vmul.f32 %v5542_v57, %v521_v2 }
 0x160   : > { %v6909_v5 = vpop.eup %6908  ;;  %v550_v6 = vadd.f32 %v5543_v60, %v535_v3  ;;  %v522_v7 = vmul.f32 %v6907_v4, %v7551_v31 }
 0x161   : > { %v551_v8 = vadd.f32 %v5543_v60, %v536_v22  ;;  %v523_v9 = vmul.f32 %v6909_v5, %v7557_v38 }
 0x162   : > { %676 = vmatmul.mubr.f32.gmra.mxu0 %v550_v6  ;;  %6195 = vmatmul.mubr.f32.vlgmr.msra.gmra.mxu1 %v550_v6  ;;  %v537_v10 = vmul.f32 %v5542_v57, %v522_v7 }
 0x163   : > { %v6911_v30 = vpop.eup %6910  ;;  %6197 = vmatprep.mubr.f32.mxu1 %v551_v8  ;;  %681 = vmatprep.mubr.f32.mxu0 %v9917_v25  ;;  %v538_v23 = vmul.f32 %v5542_v57, %v523_v9 }
 0x164   : > { %v6913_v11 = vpop.eup %6912  ;;  %v552_v12 = vadd.f32 %v5543_v60, %v537_v10  ;;  %v524_v13 = vmul.f32 %v6911_v30, %v7559_v39 }
 0x165   : > { %v553_v14 = vadd.f32 %v5543_v60, %v538_v23  ;;  %v525_v15 = vmul.f32 %v6913_v11, %v7565_v46 }
 0x166   : > { %682 = vmatmul.mubr.f32.gmra.mxu0 %v551_v8  ;;  %6198 = vmatmul.mubr.f32.gmra.mxu1 %v552_v12  ;;  %v539_v31 = vmul.f32 %v5542_v57, %v524_v13 }
 0x167   : > { %v6915_v16 = vpop.eup %6914  ;;  %6200 = vmatprep.mubr.f32.mxu1 %v553_v14  ;;  %687 = vmatprep.mubr.f32.mxu0 %v9917_v25  ;;  %v540_v38 = vmul.f32 %v5542_v57, %v525_v15 }
 0x168   : > { %v554_v17 = vadd.f32 %v5543_v60, %v539_v31  ;;  %v526_v18 = vmul.f32 %v6915_v16, %v7567_v47 }
 0x169   : > { %v555_v19 = vadd.f32 %v5543_v60, %v540_v38 }
 0x16a   : > { %688 = vmatmul.mubr.f32.gmra.mxu0 %v552_v12  ;;  %6201 = vmatmul.mubr.f32.gmra.mxu1 %v554_v17  ;;  %v541_v20 = vmul.f32 %v5542_v57, %v526_v18 }
 0x16b   : > { %6203 = vmatprep.mubr.f32.mxu1 %v555_v19  ;;  %693 = vmatprep.mubr.f32.mxu0 %v9917_v25 }
 0x16c   : > { %v556_v39 = vadd.f32 %v5543_v60, %v541_v20 }
 0x16e   : > { %694 = vmatmul.mubr.f32.gmra.mxu0 %v553_v14  ;;  %6204 = vmatmul.mubr.f32.gmra.mxu1 %v556_v39 }
 0x16f   : > { %699 = vmatprep.mubr.f32.mxu0 %v9917_v25 }
 0x172   : > { %700 = vmatmul.mubr.f32.gmra.mxu0 %v554_v17 }
 0x173   : > { %705 = vmatprep.mubr.f32.mxu0 %v9917_v25 }
 0x176   : > { %706 = vmatmul.mubr.f32.gmra.mxu0 %v555_v19 }
 0x177   : > { %711 = vmatprep.mubr.f32.mxu0 %v9917_v25 }
 0x17a   : > { %712 = vmatmul.mubr.f32.gmra.mxu0 %v556_v39 }
 0x21e   : > { %v7709_v46 = vpop.f32.mrf.mxu0 }
 0x21f   : > { %6222 = vmatprep.mubr.msk.f32.mxu0 %vm823_vm0, %v7709_v46 }
 0x220   : > { %v7713_v47 = vpop.f32.mrf.mxu0 }
 0x222   : > { %v7715_v21 = vpop.f32.mrf.mxu0  ;;  %v7717_v24 = vpop.f32.mrf.mxu1 }
 0x224   : > { %v7719_v26 = vpop.f32.mrf.mxu0  ;;  %v7721_v27 = vpop.f32.mrf.mxu1 }
 0x225   : > { %1221 = vrot.lane.b32.xlu0 %v7719_v26, %s7356_s30 }
 0x226   : > { %v7725_v28 = vpop.f32.mrf.mxu0  ;;  %v7727_v29 = vpop.f32.mrf.mxu1 }
 0x228   : > { %v7729_v32 = vpop.f32.mrf.mxu0  ;;  %v7731_v33 = vpop.f32.mrf.mxu1 }
 0x229   : > { %1223 = vrot.lane.b32.xlu0 %v7729_v32, %s7356_s30 }
 0x22a   : > { %v7735_v34 = vpop.f32.mrf.mxu0  ;;  %v7737_v35 = vpop.f32.mrf.mxu1 }
 0x22c   : > { %v7739_v36 = vpop.f32.mrf.mxu0  ;;  %v7741_v37 = vpop.f32.mrf.mxu1 }
 0x22d   : > { %1225 = vrot.lane.b32.xlu0 %v7739_v36, %s7356_s30 }
 0x22e   : > { %v7745_v40 = vpop.f32.mrf.mxu0  ;;  %v7747_v41 = vpop.f32.mrf.mxu1 }
 0x22f   : > { %6234 = vmatprep.subr.mxu1 %v7747_v41 }
 0x230   : > { %v7750_v42 = vpop.f32.mrf.mxu0  ;;  %v7752_v43 = vpop.f32.mrf.mxu1  ;;  %6235 = vmatpush3.msra.mxu1 %v7747_v41 }
 0x231   : > { %1227 = vrot.lane.b32.xlu1 %v7750_v42, %s7356_s30  ;;  %6236 = vmatprep.subr.mxu1 %v7752_v43 }
 0x232   : > { %v7758_v44 = vpop.f32.mrf.mxu0  ;;  %6237 = vmatpush3.msra.mxu1 %v7752_v43 }
 0x233   : > { %6238 = vmatprep.subr.mxu1 %v7737_v35 }
 0x234   : > { %v7762_v45 = vpop.f32.mrf.mxu0  ;;  %6239 = vmatpush3.msra.mxu1 %v7737_v35 }
 0x235   : > { %1229 = vrot.lane.b32.xlu1 %v7762_v45, %s7356_s30  ;;  %6240 = vmatprep.subr.mxu1 %v7741_v37 }
 0x236   : > { %v7768_v48 = vpop.f32.mrf.mxu0  ;;  %6241 = vmatpush3.msra.mxu1 %v7741_v37 }
 0x237   : > { %6242 = vmatprep.subr.mxu1 %v7727_v29 }
 0x238   : > { %v7772_v49 = vpop.f32.mrf.mxu0  ;;  %6243 = vmatpush3.msra.mxu1 %v7727_v29 }
 0x239   : > { %9956 = vst [vmem:[#allocation10_spill] sm:$0xff] %v7772_v49  ;;  %1655 = vrot.lane.b32.xlu1 %v7762_v45, %s9945_s15  ;;  %6244 = vmatprep.subr.mxu1 %v7731_v33 }
 0x23a   : > { %v7778_v50 = vpop.f32.mrf.mxu0  ;;  %6245 = vmatpush3.msra.mxu1 %v7731_v33 }
 0x23b   : > { %6246 = vmatprep.subr.mxu1 %v7717_v24 }
 0x23c   : > { %v7782_v51 = vpop.f32.mrf.mxu0  ;;  %6247 = vmatpush3.msra.mxu1 %v7717_v24 }
 0x23d   : > { %9957 = vst [vmem:[#allocation11_spill] sm:$0xff] %v7782_v51  ;;  %6248 = vmatprep.subr.mxu1 %v7721_v27  ;;  %1231 = vrot.lane.b32.xlu1 %v7772_v49, %s7356_s30 }
 0x23e   : > { %1233 = vrot.lane.b32.xlu0 %v7782_v51, %s7356_s30  ;;  %6206 = vmatprep.subr.msk.mxu0 %vm823_vm0, %v7782_v51 }
 0x23f   : > { %6207 = vmatpush3.xpose.msk.msra.mxu0 %vm823_vm0, %v7782_v51  ;;  %6249 = vmatpush3.msra.mxu1 %v7721_v27 }
 0x240   : > { %6208 = vmatprep.subr.msk.mxu0 %vm823_vm0, %v7772_v49 }
 0x241   : > { %1657 = vrot.lane.b32.xlu1 %v7772_v49, %s9945_s15 }
 0x243   : > { %6209 = vmatpush3.xpose.msk.msra.mxu0 %vm823_vm0, %v7772_v49 }
 0x244   : > { %6210 = vmatprep.subr.msk.mxu0 %vm823_vm0, %v7762_v45 }
 0x245   : > { %1659 = vrot.lane.b32.xlu1 %v7782_v51, %s9945_s15 }
 0x247   : > { %6211 = vmatpush3.xpose.msk.msra.mxu0 %vm823_vm0, %v7762_v45 }
 0x248   : > { %6212 = vmatprep.subr.msk.mxu0 %vm823_vm0, %v7750_v42 }
 0x24b   : > { %6213 = vmatpush3.xpose.msk.msra.mxu0 %vm823_vm0, %v7750_v42 }
 0x24c   : > { %6214 = vmatprep.subr.msk.mxu0 %vm823_vm0, %v7739_v36 }
 0x24f   : > { %6215 = vmatpush3.xpose.msk.msra.mxu0 %vm823_vm0, %v7739_v36 }
 0x250   : > { %6216 = vmatprep.subr.msk.mxu0 %vm823_vm0, %v7729_v32 }
 0x253   : > { %6217 = vmatpush3.xpose.msk.msra.mxu0 %vm823_vm0, %v7729_v32 }
 0x254   : > { %6218 = vmatprep.subr.msk.mxu0 %vm823_vm0, %v7719_v26 }
 0x257   : > { %6219 = vmatpush3.xpose.msk.msra.mxu0 %vm823_vm0, %v7719_v26 }
 0x258   : > { %6220 = vmatprep.subr.msk.mxu0 %vm823_vm0, %v7713_v47 }
 0x25b   : > { %6221 = vmatpush3.xpose.msk.msra.mxu0 %vm823_vm0, %v7713_v47 }
 0x25e   : > { %6223 = vmatmul.mubr.msk.f32.vlgmr.msra.gmra.mxu0 %vm823_vm0, %v7715_v21 }
 0x25f   : > { %6225 = vmatprep.mubr.msk.f32.mxu0 %vm823_vm0, %v7725_v28 }
 0x262   : > { %6226 = vmatmul.mubr.msk.f32.gmra.mxu0 %vm823_vm0, %v7735_v34 }
 0x263   : > { %6228 = vmatprep.mubr.msk.f32.mxu0 %vm823_vm0, %v7745_v40 }
 0x266   : > { %6229 = vmatmul.mubr.msk.f32.gmra.mxu0 %vm823_vm0, %v7758_v44 }
 0x267   : > { %6231 = vmatprep.mubr.msk.f32.mxu0 %vm823_vm0, %v7768_v48 }
 0x26a   : > { %6232 = vmatmul.mubr.msk.f32.gmra.mxu0 %vm823_vm0, %v7778_v50 }
 0x297   : > { %v7841_v52 = vpop.permute.xlu0 %1221 }
 0x29b   : > { %v7845_v54 = vpop.permute.xlu0 %1223 }
 0x29f   : > { %v7849_v57 = vpop.permute.xlu0 %1225 }
 0x2a3   : > { %v7843_v53 = vpop.permute.xlu1 %1227 }
 0x2a7   : > { %v7847_v55 = vpop.permute.xlu1 %1229 }
 0x2ab   : > { %v1656_v56 = vpop.permute.xlu1 %1655 }
 0x2af   : > { %v7851_v58 = vpop.permute.xlu1 %1231 }
 0x2b0   : > { %v7853_v59 = vpop.permute.xlu0 %1233 }
 0x2b1   : > { %6262 = vmatprep.subr.msk.mxu1 %vm823_vm0, %v7853_v59 }
 0x2b3   : > { %v1658_v60 = vpop.permute.xlu1 %1657 }
 0x2b7   : > { %v1660_v61 = vpop.permute.xlu1 %1659 }
 0x2b8   : > { %6318 = vmatprep.subr.msk.mxu0 %vm823_vm0, %v1660_v61 }
 0x2b9   : > { %6319 = vmatpush3.xpose.msk.msra.mxu0 %vm823_vm0, %v1660_v61 }
 0x2ba   : > { %6320 = vmatprep.subr.msk.mxu0 %vm823_vm0, %v1658_v60 }
 0x2bd   : > { %6321 = vmatpush3.xpose.msk.msra.mxu0 %vm823_vm0, %v1658_v60 }
 0x2be   : > { %6322 = vmatprep.subr.msk.mxu0 %vm823_vm0, %v1656_v56 }
 0x2c1   : > { %6323 = vmatpush3.xpose.msk.msra.mxu0 %vm823_vm0, %v1656_v56 }
 0x31e   : > { %v6224_v62 = vpop.f32.mrf.mxu0 }
 0x31f   : > { %v978_v63 = vmul.f32 0.25, %v6224_v62 }
 0x320   : > { %v938_v0 = vpop.f32.mrf.mxu0 }
 0x321   : > { %v977_v1 = vmul.f32 0.25, %v938_v0  ;;  %v989_v2 = vsel %vm985_vm1, %v978_v63, -inf }
 0x322   : > { %990 = vmax.xlane.f32.xlu1 %v989_v2  ;;  %v6227_v3 = vpop.f32.mrf.mxu0 }
 0x323   : > { %v980_v4 = vmul.f32 0.25, %v6227_v3  ;;  %v986_v22 = vsel %vm985_vm1, %v977_v1, -inf }
 0x324   : > { %987 = vmax.xlane.f32.xlu0 %v986_v22  ;;  %v948_v5 = vpop.f32.mrf.mxu0 }
 0x325   : > { %v979_v6 = vmul.f32 0.25, %v948_v5  ;;  %v995_v7 = vsel %vm985_vm1, %v980_v4, -inf }
 0x326   : > { %996 = vmax.xlane.f32.xlu1 %v995_v7  ;;  %v6230_v8 = vpop.f32.mrf.mxu0 }
 0x327   : > { %v982_v9 = vmul.f32 0.25, %v6230_v8  ;;  %v992_v10 = vsel %vm985_vm1, %v979_v6, -inf }
 0x328   : > { %993 = vmax.xlane.f32.xlu0 %v992_v10  ;;  %v958_v30 = vpop.f32.mrf.mxu0 }
 0x329   : > { %v981_v23 = vmul.f32 0.25, %v958_v30  ;;  %v1001_v11 = vsel %vm985_vm1, %v982_v9, -inf }
 0x32a   : > { %1002 = vmax.xlane.f32.xlu1 %v1001_v11  ;;  %v6233_v12 = vpop.f32.mrf.mxu0 }
 0x32b   : > { %v984_v13 = vmul.f32 0.25, %v6233_v12  ;;  %v998_v14 = vsel %vm985_vm1, %v981_v23, -inf }
 0x32c   : > { %999 = vmax.xlane.f32.xlu0 %v998_v14  ;;  %v968_v15 = vpop.f32.mrf.mxu0 }
 0x32d   : > { %v983_v31 = vmul.f32 0.25, %v968_v15  ;;  %v1007_v16 = vsel %vm985_vm1, %v984_v13, -inf }
 0x32e   : > { %1008 = vmax.xlane.f32.xlu1 %v1007_v16 }
 0x32f   : > { %v1004_v38 = vsel %vm985_vm1, %v983_v31, -inf }
 0x330   : > { %1005 = vmax.xlane.f32.xlu0 %v1004_v38 }
 0x33f   : > { %1653 = vrot.lane.b32.xlu1 %v7750_v42, %s9945_s15 }
 0x346   : > { %1219 = vrot.lane.b32.xlu0 %v7713_v47, %s7356_s30 }
 0x3ab   : > { %v991_v17 = vpop.xlane.xlu1 %990 }
 0x3ac   : > { %v1011_v18 = vsub.f32 %v978_v63, %v991_v17 }
 0x3ad   : > { %v988_v19 = vpop.xlane.xlu0 %987 }
 0x3ae   : > { %v1020_v20 = vmul.f32 1.442695, %v1011_v18  ;;  %v1010_v39 = vsub.f32 %v977_v1, %v988_v19 }
 0x3af   : > { %v997_v56 = vpop.xlane.xlu1 %996 }
 0x3b0   : > { %6916 = vpow2.f32 %v1020_v20  ;;  %v1018_v60 = vmul.f32 1.442695, %v1010_v39  ;;  %v1013_v5 = vsub.f32 %v980_v4, %v997_v56 }
 0x3b1   : > { %v994_v22 = vpop.xlane.xlu0 %993 }
 0x3b2   : > { %6918 = vpow2.f32 %v1018_v60  ;;  %v1012_v8 = vsub.f32 %v979_v6, %v994_v22  ;;  %v1024_v10 = vmul.f32 1.442695, %v1013_v5 }
 0x3b3   : > { %v1003_v61 = vpop.xlane.xlu1 %1002 }
 0x3b4   : > { %v1015_v30 = vsub.f32 %v982_v9, %v1003_v61  ;;  %v1022_v11 = vmul.f32 1.442695, %v1012_v8  ;;  %6920 = vpow2.f32 %v1024_v10 }
 0x3b5   : > { %v1000_v7 = vpop.xlane.xlu0 %999 }
 0x3b6   : > { %v1014_v12 = vsub.f32 %v981_v23, %v1000_v7  ;;  %v1028_v15 = vmul.f32 1.442695, %v1015_v30  ;;  %6922 = vpow2.f32 %v1022_v11 }
 0x3b7   : > { %v1009_v62 = vpop.xlane.xlu1 %1008 }
 0x3b8   : > { %v1017_v16 = vsub.f32 %v984_v13, %v1009_v62  ;;  %v1026_v38 = vmul.f32 1.442695, %v1014_v12  ;;  %6924 = vpow2.f32 %v1028_v15 }
 0x3b9   : > { %v1006_v14 = vpop.xlane.xlu0 %1005 }
 0x3ba   : > { %v1016_v17 = vsub.f32 %v983_v31, %v1006_v14  ;;  %v1032_v18 = vmul.f32 1.442695, %v1017_v16  ;;  %6926 = vpow2.f32 %v1026_v38 }
 0x3bb   : > { %v1654_v0 = vpop.permute.xlu1 %1653 }
 0x3bc   : > { %6324 = vmatprep.subr.msk.mxu0 %vm823_vm0, %v1654_v0  ;;  %v1030_v19 = vmul.f32 1.442695, %v1016_v17  ;;  %6928 = vpow2.f32 %v1032_v18 }
 0x3bd   : > { %v7876_v2 = vpop.eup %6916  ;;  %6325 = vmatpush3.xpose.msk.msra.mxu0 %vm823_vm0, %v1654_v0  ;;  %v1220_v0 = vpop.permute.xlu0 %1219 }
 0x3be   : > { %v1037_v3 = vsel %vm985_vm1, %v7876_v2, 0.0  ;;  %6930 = vpow2.f32 %v1030_v19 }
 0x3bf   : > { %v7881_v63 = vpop.eup %6918  ;;  %1038 = vadd.xlane.f32.xlu1 %v1037_v3 }
 0x3c0   : > { %v1034_v1 = vsel %vm985_vm1, %v7881_v63, 0.0 }
 0x3c1   : > { %1035 = vadd.xlane.f32.xlu0 %v1034_v1  ;;  %v7889_v4 = vpop.eup %6920 }
 0x3c2   : > { %v1043_v9 = vsel %vm985_vm1, %v7889_v4, 0.0 }
 0x3c3   : > { %v7891_v6 = vpop.eup %6922 }
 0x3c4   : > { %v1040_v13 = vsel %vm985_vm1, %v7891_v6, 0.0 }
 0x3c5   : > { %v7895_v23 = vpop.eup %6924 }
 0x3c6   : > { %v1049_v20 = vsel %vm985_vm1, %v7895_v23, 0.0 }
 0x3c7   : > { %v7899_v31 = vpop.eup %6926 }
 0x3c8   : > { %v1046_v56 = vsel %vm985_vm1, %v7899_v31, 0.0 }
 0x3c9   : > { %v7903_v39 = vpop.eup %6928 }
 0x3ca   : > { %v1055_v61 = vsel %vm985_vm1, %v7903_v39, 0.0 }
 0x3cb   : > { %v7907_v60 = vpop.eup %6930 }
 0x3cc   : > { %v1052_v62 = vsel %vm985_vm1, %v7907_v60, 0.0 }
 0x3d0   : > { %1205 = vrot.lane.b32.xlu1 %v7715_v21, %s7356_s30 }
 0x3d7   : > { %1203 = vrot.lane.b32.xlu0 %v7709_v46, %s7356_s30 }
 0x3f4   : > { %1044 = vadd.xlane.f32.xlu1 %v1043_v9 }
 0x3f6   : > { %1041 = vadd.xlane.f32.xlu0 %v1040_v13 }
 0x3f8   : > { %1050 = vadd.xlane.f32.xlu1 %v1049_v20 }
 0x3fa   : > { %1047 = vadd.xlane.f32.xlu0 %v1046_v56 }
 0x3fc   : > { %1056 = vadd.xlane.f32.xlu1 %v1055_v61 }
 0x3fe   : > { %1053 = vadd.xlane.f32.xlu0 %v1052_v62 }
 0x40d   : > { %1207 = vrot.lane.b32.xlu1 %v7725_v28, %s7356_s30 }
 0x411   : > { %1649 = vrot.lane.b32.xlu1 %v7729_v32, %s9945_s15 }
 0x414   : > { %1651 = vrot.lane.b32.xlu0 %v7739_v36, %s9945_s15 }
 0x415   : > { %1213 = vrot.lane.b32.xlu1 %v7758_v44, %s7356_s30 }
 0x418   : > { %1209 = vrot.lane.b32.xlu0 %v7735_v34, %s7356_s30 }
 0x419   : > { %1215 = vrot.lane.b32.xlu1 %v7768_v48, %s7356_s30 }
 0x41c   : > { %1211 = vrot.lane.b32.xlu0 %v7745_v40, %s7356_s30 }
 0x41d   : > { %1645 = vrot.lane.b32.xlu1 %v7713_v47, %s9945_s15 }
 0x420   : > { %1647 = vrot.lane.b32.xlu0 %v7719_v26, %s9945_s15 }
 0x421   : > { %1631 = vrot.lane.b32.xlu1 %v7715_v21, %s9945_s15 }
 0x424   : > { %1217 = vrot.lane.b32.xlu0 %v7778_v50, %s7356_s30 }
 0x425   : > { %1635 = vrot.lane.b32.xlu1 %v7735_v34, %s9945_s15 }
 0x428   : > { %1629 = vrot.lane.b32.xlu0 %v7709_v46, %s9945_s15 }
 0x429   : > { %1639 = vrot.lane.b32.xlu1 %v7758_v44, %s9945_s15 }
 0x42c   : > { %1633 = vrot.lane.b32.xlu0 %v7725_v28, %s9945_s15 }
 0x42d   : > { %1643 = vrot.lane.b32.xlu1 %v7778_v50, %s9945_s15 }
 0x430   : > { %1637 = vrot.lane.b32.xlu0 %v7745_v40, %s9945_s15 }
 0x434   : > { %1641 = vrot.lane.b32.xlu0 %v7768_v48, %s9945_s15 }
 0x448   : > { %v1039_v3 = vpop.xlane.xlu1 %1038 }
 0x449   : > { %6932 = vrcp.f32 %v1039_v3 }
 0x44a   : > { %v1036_v1 = vpop.xlane.xlu0 %1035 }
 0x44b   : > { %6934 = vrcp.f32 %v1036_v1 }
 0x456   : > { %v6933_v22 = vpop.eup %6932 }
 0x457   : > { %v1067_v8 = vmul.f32 %v6933_v22, %v7876_v2 }
 0x458   : > { %v6935_v5 = vpop.eup %6934 }
 0x459   : > { %v1066_v7 = vmul.f32 %v6935_v5, %v7881_v63 }
 0x45b   : > { %6250 = vmatprep.mubr.msk.f32.mxu1 %vm985_vm1, %v1066_v7 }
 0x45c   : > { %6251 = vmatmul.mubr.msk.f32.vlgmr.msra.gmra.mxu1 %vm985_vm1, %v1067_v8 }
 0x45d   : > { %6263 = vmatpush3.xpose.msk.msra.mxu1 %vm823_vm0, %v7853_v59 }
 0x45e   : > { %6264 = vmatprep.subr.msk.mxu1 %vm823_vm0, %v7851_v58 }
 0x461   : > { %6265 = vmatpush3.xpose.msk.msra.mxu1 %vm823_vm0, %v7851_v58 }
 0x462   : > { %6266 = vmatprep.subr.msk.mxu1 %vm823_vm0, %v7847_v55 }
 0x465   : > { %6267 = vmatpush3.xpose.msk.msra.mxu1 %vm823_vm0, %v7847_v55  ;;  %v1204_v55 = vpop.permute.xlu0 %1203 }
 0x466   : > { %6268 = vmatprep.subr.msk.mxu1 %vm823_vm0, %v7843_v53 }
 0x469   : > { %6269 = vmatpush3.xpose.msk.msra.mxu1 %vm823_vm0, %v7843_v53  ;;  %v1206_v53 = vpop.permute.xlu1 %1205 }
 0x46a   : > { %6270 = vmatprep.subr.msk.mxu1 %vm823_vm0, %v7849_v57 }
 0x46d   : > { %6271 = vmatpush3.xpose.msk.msra.mxu1 %vm823_vm0, %v7849_v57 }
 0x46e   : > { %6272 = vmatprep.subr.msk.mxu1 %vm823_vm0, %v7845_v54 }
 0x471   : > { %6273 = vmatpush3.xpose.msk.msra.mxu1 %vm823_vm0, %v7845_v54 }
 0x472   : > { %6274 = vmatprep.subr.msk.mxu1 %vm823_vm0, %v7841_v52 }
 0x475   : > { %6275 = vmatpush3.xpose.msk.msra.mxu1 %vm823_vm0, %v7841_v52 }
 0x476   : > { %6276 = vmatprep.subr.msk.mxu1 %vm823_vm0, %v1220_v0 }
 0x479   : > { %6277 = vmatpush3.xpose.msk.msra.mxu1 %vm823_vm0, %v1220_v0 }
 0x47d   : > { %v1045_v58 = vpop.xlane.xlu1 %1044 }
 0x47e   : > { %6936 = vrcp.f32 %v1045_v58 }
 0x47f   : > { %v1042_v57 = vpop.xlane.xlu0 %1041 }
 0x480   : > { %6938 = vrcp.f32 %v1042_v57 }
 0x481   : > { %v1051_v59 = vpop.xlane.xlu1 %1050 }
 0x482   : > { %6940 = vrcp.f32 %v1051_v59 }
 0x483   : > { %v1048_v2 = vpop.xlane.xlu0 %1047 }
 0x484   : > { %6942 = vrcp.f32 %v1048_v2 }
 0x485   : > { %v1057_v54 = vpop.xlane.xlu1 %1056 }
 0x486   : > { %6944 = vrcp.f32 %v1057_v54 }
 0x487   : > { %v1054_v63 = vpop.xlane.xlu0 %1053 }
 0x488   : > { %6946 = vrcp.f32 %v1054_v63 }
 0x489   : > { %v1208_v10 = vpop.permute.xlu1 %1207 }
 0x48b   : > { %v1652_v52 = vpop.permute.xlu0 %1651  ;;  %v6937_v30 = vpop.eup %6936 }
 0x48c   : > { %6326 = vmatprep.subr.msk.mxu0 %vm823_vm0, %v1652_v52  ;;  %v1069_v16 = vmul.f32 %v6937_v30, %v7889_v4 }
 0x48d   : > { %v6939_v11 = vpop.eup %6938  ;;  %v1650_v12 = vpop.permute.xlu1 %1649  ;;  %6327 = vmatpush3.xpose.msk.msra.mxu0 %vm823_vm0, %v1652_v52 }
 0x48e   : > { %6328 = vmatprep.subr.msk.mxu0 %vm823_vm0, %v1650_v12  ;;  %v1068_v14 = vmul.f32 %v6939_v11, %v7891_v6 }
 0x48f   : > { %v1210_v15 = vpop.permute.xlu0 %1209  ;;  %v6941_v38 = vpop.eup %6940 }
 0x490   : > { %6253 = vmatprep.mubr.msk.f32.mxu1 %vm985_vm1, %v1068_v14  ;;  %v1071_v13 = vmul.f32 %v6941_v38, %v7895_v23 }
 0x491   : > { %v6943_v17 = vpop.eup %6942  ;;  %v1214_v18 = vpop.permute.xlu1 %1213  ;;  %6254 = vmatmul.mubr.msk.f32.gmra.mxu1 %vm985_vm1, %v1069_v16  ;;  %6329 = vmatpush3.xpose.msk.msra.mxu0 %vm823_vm0, %v1650_v12 }
 0x492   : > { %v1070_v19 = vmul.f32 %v6943_v17, %v7899_v31 }
 0x493   : > { %v1212_v9 = vpop.permute.xlu0 %1211  ;;  %v6945_v20 = vpop.eup %6944 }
 0x494   : > { %6256 = vmatprep.mubr.msk.f32.mxu1 %vm985_vm1, %v1070_v19  ;;  %v1073_v62 = vmul.f32 %v6945_v20, %v7903_v39 }
 0x495   : > { %v6947_v6 = vpop.eup %6946  ;;  %v1216_v56 = vpop.permute.xlu1 %1215  ;;  %6257 = vmatmul.mubr.msk.f32.gmra.mxu1 %vm985_vm1, %v1071_v13 }
 0x496   : > { %v1072_v4 = vmul.f32 %v6947_v6, %v7907_v60 }
 0x497   : > { %v1648_v61 = vpop.permute.xlu0 %1647 }
 0x498   : > { %6259 = vmatprep.mubr.msk.f32.mxu1 %vm985_vm1, %v1072_v4  ;;  %6330 = vmatprep.subr.msk.mxu0 %vm823_vm0, %v1648_v61 }
 0x499   : > { %v1646_v31 = vpop.permute.xlu1 %1645  ;;  %6260 = vmatmul.mubr.msk.f32.gmra.mxu1 %vm985_vm1, %v1073_v62  ;;  %6331 = vmatpush3.xpose.msk.msra.mxu0 %vm823_vm0, %v1648_v61 }
 0x49a   : > { %6278 = vmatprep.mubr.msk.f32.mxu1 %vm823_vm0, %v1204_v55  ;;  %6332 = vmatprep.subr.msk.mxu0 %vm823_vm0, %v1646_v31 }
 0x49b   : > { %v1218_v23 = vpop.permute.xlu0 %1217 }
 0x49d   : > { %v1632_v0 = vpop.permute.xlu1 %1631  ;;  %6279 = vmatmul.mubr.msk.f32.vlgmr.msra.gmra.mxu1 %vm823_vm0, %v1206_v53  ;;  %6333 = vmatpush3.xpose.msk.msra.mxu0 %vm823_vm0, %v1646_v31 }
 0x49e   : > { %6281 = vmatprep.mubr.msk.f32.mxu1 %vm823_vm0, %v1208_v10 }
 0x49f   : > { %v1630_v39 = vpop.permute.xlu0 %1629 }
 0x4a0   : > { %6334 = vmatprep.mubr.msk.f32.mxu0 %vm823_vm0, %v1630_v39 }
 0x4a1   : > { %v1636_v60 = vpop.permute.xlu1 %1635  ;;  %6282 = vmatmul.mubr.msk.f32.gmra.mxu1 %vm823_vm0, %v1210_v15  ;;  %6335 = vmatmul.mubr.msk.f32.vlgmr.msra.gmra.mxu0 %vm823_vm0, %v1632_v0 }
 0x4a2   : > { %6284 = vmatprep.mubr.msk.f32.mxu1 %vm823_vm0, %v1212_v9 }
 0x4a3   : > { %v1634_v3 = vpop.permute.xlu0 %1633 }
 0x4a4   : > { %6337 = vmatprep.mubr.msk.f32.mxu0 %vm823_vm0, %v1634_v3 }
 0x4a5   : > { %6285 = vmatmul.mubr.msk.f32.gmra.mxu1 %vm823_vm0, %v1214_v18  ;;  %6338 = vmatmul.mubr.msk.f32.gmra.mxu0 %vm823_vm0, %v1636_v60  ;;  %v1640_v1 = vpop.permute.xlu1 %1639 }
 0x4a6   : > { %6287 = vmatprep.mubr.msk.f32.mxu1 %vm823_vm0, %v1216_v56 }
 0x4a7   : > { %v1638_v22 = vpop.permute.xlu0 %1637 }
 0x4a8   : > { %6340 = vmatprep.mubr.msk.f32.mxu0 %vm823_vm0, %v1638_v22 }
 0x4a9   : > { %6288 = vmatmul.mubr.msk.f32.gmra.mxu1 %vm823_vm0, %v1218_v23  ;;  %6341 = vmatmul.mubr.msk.f32.gmra.mxu0 %vm823_vm0, %v1640_v1  ;;  %v1644_v7 = vpop.permute.xlu1 %1643 }
 0x4ab   : > { %v1642_v5 = vpop.permute.xlu0 %1641 }
 0x4ac   : > { %6343 = vmatprep.mubr.msk.f32.mxu0 %vm823_vm0, %v1642_v5 }
 0x4ad   : > { %6344 = vmatmul.mubr.msk.f32.gmra.mxu0 %vm823_vm0, %v1644_v7 }
 0x51c   : > { %v8061_v6 = vpop.f32.mrf.mxu1 }
 0x51d   : > { %9958 = vst [vmem:[#allocation12_spill] sm:$0xff] %v8061_v6 }
 0x51e   : > { %v8063_v56 = vpop.f32.mrf.mxu1 }
 0x51f   : > { %9959 = vst [vmem:[#allocation13_spill] sm:$0xff] %v8063_v56 }
 0x551   : > { %v8065_v4 = vpop.f32.mrf.mxu1 }
 0x552   : > { %9960 = vst [vmem:[#allocation14_spill] sm:$0xff] %v8065_v4 }
 0x553   : > { %v8067_v61 = vpop.f32.mrf.mxu1 }
 0x554   : > { %9961 = vst [vmem:[#allocation15_spill] sm:$0xff] %v8067_v61 }
 0x555   : > { %v8069_v62 = vpop.f32.mrf.mxu1 }
 0x556   : > { %9962 = vst [vmem:[#allocation16_spill] sm:$0xff] %v8069_v62 }
 0x557   : > { %v8071_v31 = vpop.f32.mrf.mxu1 }
 0x558   : > { %9963 = vst [vmem:[#allocation17_spill] sm:$0xff] %v8071_v31 }
 0x559   : > { %v8073_v23 = vpop.f32.mrf.mxu1 }
 0x55a   : > { %9964 = vst [vmem:[#allocation18_spill] sm:$0xff] %v8073_v23 }
 0x55b   : > { %v8075_v60 = vpop.f32.mrf.mxu1 }
 0x55c   : > { %9965 = vst [vmem:[#allocation19_spill] sm:$0xff] %v8075_v60 }
 0x561   : > { %v6336_v8 = vpop.f32.mrf.mxu0 }
 0x562   : > { %v1799_v53 = vmul.f32 0.25, %v6336_v8 }
 0x563   : > { %v1759_v55 = vpop.f32.mrf.mxu0 }
 0x564   : > { %v1798_v58 = vmul.f32 0.25, %v1759_v55  ;;  %v1809_v57 = vsel %vm985_vm1, %v1799_v53, -inf  ;;  %v6280_v55 = vpop.f32.mrf.mxu1 }
 0x565   : > { %1810 = vmax.xlane.f32.xlu1 %v1809_v57  ;;  %v6339_v59 = vpop.f32.mrf.mxu0 }
 0x566   : > { %v1801_v2 = vmul.f32 0.25, %v6339_v59  ;;  %v1806_v54 = vsel %vm985_vm1, %v1798_v58, -inf }
 0x567   : > { %1807 = vmax.xlane.f32.xlu0 %v1806_v54  ;;  %v1769_v63 = vpop.f32.mrf.mxu0 }
 0x568   : > { %v1800_v10 = vmul.f32 0.25, %v1769_v63  ;;  %v1815_v52 = vsel %vm985_vm1, %v1801_v2, -inf }
 0x569   : > { %1816 = vmax.xlane.f32.xlu1 %v1815_v52  ;;  %v6342_v30 = vpop.f32.mrf.mxu0 }
 0x56a   : > { %v8020_v11 = vmul.f32 0.25, %v6342_v30  ;;  %v1812_v12 = vsel %vm985_vm1, %v1800_v10, -inf  ;;  %v1333_v30 = vpop.f32.mrf.mxu1 }
 0x56b   : > { %1813 = vmax.xlane.f32.xlu0 %v1812_v12  ;;  %v1779_v14 = vpop.f32.mrf.mxu0 }
 0x56c   : > { %v8023_v15 = vmul.f32 0.25, %v1779_v14  ;;  %v1821_v16 = vsel %vm985_vm1, %v8020_v11, -inf }
 0x56d   : > { %1822 = vmax.xlane.f32.xlu1 %v1821_v16  ;;  %v6345_v38 = vpop.f32.mrf.mxu0 }
 0x56e   : > { %v8027_v17 = vmul.f32 0.25, %v6345_v38  ;;  %v1818_v18 = vsel %vm985_vm1, %v8023_v15, -inf }
 0x56f   : > { %1819 = vmax.xlane.f32.xlu0 %v1818_v18  ;;  %v1789_v19 = vpop.f32.mrf.mxu0 }
 0x570   : > { %v8031_v9 = vmul.f32 0.25, %v1789_v19  ;;  %v1827_v13 = vsel %vm985_vm1, %v8027_v17, -inf }
 0x571   : > { %1828 = vmax.xlane.f32.xlu1 %v1827_v13 }
 0x572   : > { %v1824_v20 = vsel %vm985_vm1, %v8031_v9, -inf }
 0x573   : > { %1825 = vmax.xlane.f32.xlu0 %v1824_v20 }
 0x582   : > { %1490 = vrot.lane.b32.xlu1 %v7747_v41, %s7356_s30 }
 0x586   : > { %1486 = vrot.lane.b32.xlu1 %v7737_v35, %s7356_s30 }
 0x589   : > { %1488 = vrot.lane.b32.xlu0 %v7752_v43, %s7356_s30 }
 0x58a   : > { %1484 = vrot.lane.b32.xlu1 %v7741_v37, %s7356_s30 }
 0x58d   : > { %1482 = vrot.lane.b32.xlu0 %v7727_v29, %s7356_s30 }
 0x58e   : > { %1480 = vrot.lane.b32.xlu1 %v7731_v33, %s7356_s30 }
 0x591   : > { %1908 = vrot.lane.b32.xlu0 %v7747_v41, %s9945_s15 }
 0x592   : > { %1478 = vrot.lane.b32.xlu1 %v7717_v24, %s7356_s30 }
 0x595   : > { %1904 = vrot.lane.b32.xlu0 %v7737_v35, %s9945_s15 }
 0x596   : > { %1476 = vrot.lane.b32.xlu1 %v7721_v27, %s7356_s30 }
 0x59a   : > { %1906 = vrot.lane.b32.xlu1 %v7752_v43, %s9945_s15 }
 0x59e   : > { %1902 = vrot.lane.b32.xlu1 %v7741_v37, %s9945_s15 }
 0x5ee   : > { %v1811_v0 = vpop.xlane.xlu1 %1810 }
 0x5ef   : > { %v1831_v39 = vsub.f32 %v1799_v53, %v1811_v0 }
 0x5f0   : > { %v1808_v3 = vpop.xlane.xlu0 %1807 }
 0x5f1   : > { %v1840_v1 = vmul.f32 1.442695, %v1831_v39  ;;  %v1830_v22 = vsub.f32 %v1798_v58, %v1808_v3  ;;  %v6283_v58 = vpop.f32.mrf.mxu1 }
 0x5f2   : > { %v1817_v5 = vpop.xlane.xlu1 %1816 }
 0x5f3   : > { %6948 = vpow2.f32 %v1840_v1  ;;  %v1838_v7 = vmul.f32 1.442695, %v1830_v22  ;;  %v1833_v8 = vsub.f32 %v1801_v2, %v1817_v5  ;;  %v1343_v38 = vpop.f32.mrf.mxu1  ;;  %v8097_v22 = vmul.f32 0.25, %v6280_v55 }
 0x5f4   : > { %v1814_v57 = vpop.xlane.xlu0 %1813 }
 0x5f5   : > { %6950 = vpow2.f32 %v1838_v7  ;;  %v1844_v59 = vmul.f32 1.442695, %v1833_v8  ;;  %v1832_v54 = vsub.f32 %v1800_v10, %v1814_v57  ;;  %v6286_v39 = vpop.f32.mrf.mxu1  ;;  %v8103_v8 = vmul.f32 0.25, %v1333_v30 }
 0x5f6   : > { %v8077_v63 = vpop.xlane.xlu1 %1822  ;;  %v1383_v55 = vsel %vm985_vm1, %v8097_v22, -inf }
 0x5f7   : > { %6952 = vpow2.f32 %v1844_v59  ;;  %v1842_v52 = vmul.f32 1.442695, %v1832_v54  ;;  %v1353_v57 = vpop.f32.mrf.mxu1  ;;  %v1380_v30 = vsel %vm985_vm1, %v8103_v8, -inf }
 0x5f8   : > { %v8079_v53 = vpop.xlane.xlu0 %1819 }
 0x5f9   : > { %6954 = vpow2.f32 %v1842_v52  ;;  %v8105_v52 = vmul.f32 0.25, %v6286_v39  ;;  %v8117_v39 = vmul.f32 0.25, %v1343_v38 }
 0x5fa   : > { %v8081_v12 = vpop.xlane.xlu1 %1828 }
 0x5fb   : > { %v1386_v38 = vsel %vm985_vm1, %v8117_v39, -inf  ;;  %v1837_v61 = vsub.f32 %v8027_v17, %v8081_v12 }
 0x5fc   : > { %v8083_v14 = vpop.xlane.xlu0 %1825 }
 0x5fe   : > { %v1491_v16 = vpop.permute.xlu1 %1490 }
 0x5ff   : > { %6290 = vmatprep.subr.mxu1 %v1491_v16 }
 0x600   : > { %v8085_v2 = vpop.eup %6948  ;;  %6291 = vmatpush3.msra.mxu1 %v1491_v16  ;;  %v1489_v10 = vpop.permute.xlu0 %1488  ;;  %v8109_v16 = vmul.f32 0.25, %v6283_v58 }
 0x601   : > { %6292 = vmatprep.subr.mxu1 %v1489_v10  ;;  %v1857_v18 = vsel %vm985_vm1, %v8085_v2, 0.0 }
 0x602   : > { %v8089_v19 = vpop.eup %6950  ;;  %v1487_v13 = vpop.permute.xlu1 %1486  ;;  %1858 = vadd.xlane.f32.xlu0 %v1857_v18  ;;  %6293 = vmatpush3.msra.mxu1 %v1489_v10  ;;  %v1389_v58 = vsel %vm985_vm1, %v8109_v16, -inf }
 0x603   : > { %6294 = vmatprep.subr.mxu1 %v1487_v13  ;;  %v1854_v20 = vsel %vm985_vm1, %v8089_v19, 0.0  ;;  %v6289_v10 = vpop.f32.mrf.mxu1 }
 0x604   : > { %v8093_v0 = vpop.eup %6952  ;;  %1855 = vadd.xlane.f32.xlu1 %v1854_v20  ;;  %6295 = vmatpush3.msra.mxu1 %v1487_v13  ;;  %v1483_v59 = vpop.permute.xlu0 %1482  ;;  %v8113_v13 = vmul.f32 0.25, %v6289_v10  ;;  %v1395_v20 = vsel %vm985_vm1, %v8105_v52, -inf }
 0x605   : > { %v1863_v5 = vsel %vm985_vm1, %v8093_v0, 0.0 }
 0x606   : > { %v8095_v3 = vpop.eup %6954  ;;  %v1485_v1 = vpop.permute.xlu1 %1484 }
 0x607   : > { %6296 = vmatprep.subr.mxu1 %v1485_v1  ;;  %v1860_v7 = vsel %vm985_vm1, %v8095_v3, 0.0 }
 0x608   : > { %1864 = vadd.xlane.f32.xlu1 %v1863_v5  ;;  %1861 = vadd.xlane.f32.xlu0 %v1860_v7  ;;  %v1401_v5 = vsel %vm985_vm1, %v8113_v13, -inf  ;;  %v8123_v7 = vmul.f32 0.25, %v1353_v57 }
 0x609   : > { %6297 = vmatpush3.msra.mxu1 %v1485_v1 }
 0x60a   : > { %6298 = vmatprep.subr.mxu1 %v1483_v59  ;;  %v1481_v54 = vpop.permute.xlu1 %1480  ;;  %v1392_v10 = vsel %vm985_vm1, %v8123_v7, -inf }
 0x60b   : > { %6299 = vmatpush3.msra.mxu1 %v1483_v59  ;;  %v8125_v59 = vpop.permute.xlu0 %1908 }
 0x60c   : > { %6300 = vmatprep.subr.mxu1 %v1481_v54  ;;  %1384 = vmax.xlane.f32.xlu1 %v1383_v55 }
 0x60d   : > { %1381 = vmax.xlane.f32.xlu0 %v1380_v30  ;;  %6301 = vmatpush3.msra.mxu1 %v1481_v54  ;;  %v1363_v54 = vpop.f32.mrf.mxu1  ;;  %v1835_v30 = vsub.f32 %v8020_v11, %v8077_v63 }
 0x60e   : > { %v1479_v18 = vpop.permute.xlu1 %1478  ;;  %v8130_v55 = vmul.f32 0.25, %v1363_v54 }
 0x60f   : > { %6302 = vmatprep.subr.mxu1 %v1479_v18  ;;  %v8158_v63 = vpop.permute.xlu0 %1904 }
 0x610   : > { %1396 = vmax.xlane.f32.xlu1 %v1395_v20  ;;  %6303 = vmatpush3.msra.mxu1 %v1479_v18  ;;  %v1398_v57 = vsel %vm985_vm1, %v8130_v55, -inf  ;;  %v1848_v18 = vmul.f32 1.442695, %v1835_v30  ;;  %v1834_v20 = vsub.f32 %v8023_v15, %v8079_v53 }
 0x611   : > { %1390 = vmax.xlane.f32.xlu0 %v1389_v58 }
 0x612   : > { %v1477_v1 = vpop.permute.xlu1 %1476  ;;  %6956 = vpow2.f32 %v1848_v18  ;;  %v1846_v58 = vmul.f32 1.442695, %v1834_v20 }
 0x613   : > { %6304 = vmatprep.subr.mxu1 %v1477_v1 }
 0x614   : > { %1402 = vmax.xlane.f32.xlu1 %v1401_v5  ;;  %6305 = vmatpush3.msra.mxu1 %v1477_v1  ;;  %6958 = vpow2.f32 %v1846_v58 }
 0x615   : > { %1387 = vmax.xlane.f32.xlu0 %v1386_v38  ;;  %6346 = vmatprep.subr.mxu1 %v8125_v59 }
 0x616   : > { %v8156_v15 = vpop.permute.xlu1 %1906 }
 0x619   : > { %1393 = vmax.xlane.f32.xlu0 %v1392_v10 }
 0x61a   : > { %v8160_v53 = vpop.permute.xlu1 %1902 }
 0x61d   : > { %1399 = vmax.xlane.f32.xlu0 %v1398_v57 }
 0x61f   : > { %v8144_v1 = vpop.eup %6956 }
 0x620   : > { %v1869_v5 = vsel %vm985_vm1, %v8144_v1, 0.0 }
 0x621   : > { %v8148_v38 = vpop.eup %6958 }
 0x622   : > { %v1866_v11 = vsel %vm985_vm1, %v8148_v38, 0.0 }
 0x625   : > { %1898 = vrot.lane.b32.xlu1 %v7731_v33, %s9945_s15 }
 0x633   : > { %1900 = vrot.lane.b32.xlu0 %v7727_v29, %s9945_s15 }
 0x649   : > { %1870 = vadd.xlane.f32.xlu1 %v1869_v5 }
 0x652   : > { %1867 = vadd.xlane.f32.xlu0 %v1866_v11 }
 0x65a   : > { %1894 = vrot.lane.b32.xlu1 %v7721_v27, %s9945_s15 }
 0x668   : > { %1896 = vrot.lane.b32.xlu0 %v7717_v24, %s9945_s15 }
 0x68b   : > { %v8162_v54 = vpop.xlane.xlu0 %1858 }
 0x68d   : > { %v8164_v10 = vpop.xlane.xlu1 %1855 }
 0x691   : > { %v8166_v57 = vpop.xlane.xlu1 %1864  ;;  %v8168_v30 = vpop.xlane.xlu0 %1861 }
 0x695   : > { %v1385_v18 = vpop.xlane.xlu1 %1384 }
 0x696   : > { %v1405_v20 = vsub.f32 %v8097_v22, %v1385_v18  ;;  %v1382_v58 = vpop.xlane.xlu0 %1381  ;;  %v1852_v18 = vmul.f32 1.442695, %v1837_v61 }
 0x697   : > { %v1404_v5 = vsub.f32 %v8103_v8, %v1382_v58 }
 0x698   : > { %v1414_v11 = vmul.f32 1.442695, %v1405_v20 }
 0x699   : > { %v1412_v25 = vmul.f32 1.442695, %v1404_v5  ;;  %v1397_v60 = vpop.xlane.xlu1 %1396 }
 0x69a   : > { %6960 = vpow2.f32 %v1414_v11  ;;  %v1409_v23 = vsub.f32 %v8105_v52, %v1397_v60  ;;  %v1391_v31 = vpop.xlane.xlu0 %1390 }
 0x69b   : > { %6962 = vpow2.f32 %v1412_v25  ;;  %v1407_v62 = vsub.f32 %v8109_v16, %v1391_v31 }
 0x69c   : > { %v1422_v4 = vmul.f32 1.442695, %v1409_v23 }
 0x69d   : > { %v1418_v6 = vmul.f32 1.442695, %v1407_v62  ;;  %v1403_v56 = vpop.xlane.xlu1 %1402 }
 0x69e   : > { %v1388_v22 = vpop.xlane.xlu0 %1387  ;;  %v1411_v20 = vsub.f32 %v8113_v13, %v1403_v56  ;;  %v1836_v56 = vsub.f32 %v8031_v9, %v8083_v14 }
 0x69f   : > { %6964 = vpow2.f32 %v1418_v6  ;;  %v1406_v8 = vsub.f32 %v8117_v39, %v1388_v22 }
 0x6a0   : > { %6966 = vpow2.f32 %v1422_v4  ;;  %v1426_v31 = vmul.f32 1.442695, %v1411_v20  ;;  %v1850_v13 = vmul.f32 1.442695, %v1836_v56 }
 0x6a1   : > { %v1416_v58 = vmul.f32 1.442695, %v1406_v8 }
 0x6a2   : > { %v1394_v60 = vpop.xlane.xlu0 %1393 }
 0x6a3   : > { %6968 = vpow2.f32 %v1416_v58  ;;  %v1408_v25 = vsub.f32 %v8123_v7, %v1394_v60 }
 0x6a4   : > { %6970 = vpow2.f32 %v1852_v18 }
 0x6a5   : > { %v1420_v52 = vmul.f32 1.442695, %v1408_v25 }
 0x6a6   : > { %v1400_v17 = vpop.xlane.xlu0 %1399 }
 0x6a7   : > { %v8179_v23 = vpop.eup %6960  ;;  %6972 = vpow2.f32 %v1420_v52  ;;  %v1410_v6 = vsub.f32 %v8130_v55, %v1400_v17  ;;  %v1899_v52 = vpop.permute.xlu1 %1898 }
 0x6a8   : > { %v8182_v62 = vpop.eup %6962  ;;  %v1431_v4 = vsel %vm985_vm1, %v8179_v23, 0.0  ;;  %6974 = vpow2.f32 %v1426_v31 }
 0x6a9   : > { %v1424_v61 = vmul.f32 1.442695, %v1410_v6  ;;  %1432 = vadd.xlane.f32.xlu1 %v1431_v4  ;;  %v1428_v12 = vsel %vm985_vm1, %v8182_v62, 0.0 }
 0x6aa   : > { %1429 = vadd.xlane.f32.xlu0 %v1428_v12  ;;  %v1901_v17 = vpop.permute.xlu0 %1900 }
 0x6ab   : > { %6976 = vpow2.f32 %v1424_v61 }
 0x6ac   : > { %v8190_v16 = vpop.eup %6964  ;;  %6978 = vpow2.f32 %v1850_v13 }
 0x6ad   : > { %v1437_v39 = vsel %vm985_vm1, %v8190_v16, 0.0  ;;  %v8194_v7 = vpop.eup %6966 }
 0x6ae   : > { %1438 = vadd.xlane.f32.xlu1 %v1437_v39  ;;  %v1443_v9 = vsel %vm985_vm1, %v8194_v7, 0.0 }
 0x6b0   : > { %v8196_v55 = vpop.eup %6968 }
 0x6b1   : > { %v1434_v14 = vsel %vm985_vm1, %v8196_v55, 0.0  ;;  %v8202_v5 = vpop.eup %6970 }
 0x6b2   : > { %1444 = vadd.xlane.f32.xlu1 %v1443_v9  ;;  %1435 = vadd.xlane.f32.xlu0 %v1434_v14  ;;  %v1875_v22 = vsel %vm985_vm1, %v8202_v5, 0.0 }
 0x6b4   : > { %v8204_v11 = vpop.eup %6972 }
 0x6b5   : > { %v1440_v8 = vsel %vm985_vm1, %v8204_v11, 0.0  ;;  %v8210_v18 = vpop.eup %6974 }
 0x6b6   : > { %1876 = vadd.xlane.f32.xlu1 %v1875_v22  ;;  %1441 = vadd.xlane.f32.xlu0 %v1440_v8  ;;  %v1449_v20 = vsel %vm985_vm1, %v8210_v18, 0.0 }
 0x6b8   : > { %v8214_v58 = vpop.eup %6976 }
 0x6b9   : > { %v1446_v60 = vsel %vm985_vm1, %v8214_v58, 0.0  ;;  %v8218_v25 = vpop.eup %6978 }
 0x6ba   : > { %1450 = vadd.xlane.f32.xlu0 %v1449_v20  ;;  %v1872_v31 = vsel %vm985_vm1, %v8218_v25, 0.0 }
 0x6be   : > { %1447 = vadd.xlane.f32.xlu0 %v1446_v60 }
 0x6c2   : > { %1873 = vadd.xlane.f32.xlu0 %v1872_v31 }
 0x6c7   : > { %2075 = vrot.lane.b32.xlu1 %v7772_v49, %s9949_s17 }
 0x6cb   : > { %2071 = vrot.lane.b32.xlu1 %v7750_v42, %s9949_s17 }
 0x6cf   : > { %2067 = vrot.lane.b32.xlu1 %v7729_v32, %s9949_s17 }
 0x6d2   : > { %v1871_v6 = vpop.xlane.xlu1 %1870 }
 0x6d3   : > { %2063 = vrot.lane.b32.xlu1 %v7713_v47, %s9949_s17 }
 0x6d6   : > { %v8274_v56 = vpop.permute.xlu1 %1894 }
 0x6d7   : > { %2049 = vrot.lane.b32.xlu1 %v7715_v21, %s9949_s17 }
 0x6d8   : > { %2077 = vrot.lane.b32.xlu0 %v7782_v51, %s9949_s17 }
 0x6db   : > { %2053 = vrot.lane.b32.xlu1 %v7735_v34, %s9949_s17  ;;  %v1868_v4 = vpop.xlane.xlu0 %1867 }
 0x6dc   : > { %2073 = vrot.lane.b32.xlu0 %v7762_v45, %s9949_s17 }
 0x6df   : > { %2057 = vrot.lane.b32.xlu1 %v7758_v44, %s9949_s17  ;;  %v1897_v61 = vpop.permute.xlu0 %1896 }
 0x6e0   : > { %2069 = vrot.lane.b32.xlu0 %v7739_v36, %s9949_s17 }
 0x6e3   : > { %2061 = vrot.lane.b32.xlu1 %v7778_v50, %s9949_s17 }
 0x6e4   : > { %2065 = vrot.lane.b32.xlu0 %v7719_v26, %s9949_s17 }
 0x6e7   : > { %2324 = vrot.lane.b32.xlu1 %v7752_v43, %s9949_s17 }
 0x6e8   : > { %2047 = vrot.lane.b32.xlu0 %v7709_v46, %s9949_s17 }
 0x6eb   : > { %2322 = vrot.lane.b32.xlu1 %v7737_v35, %s9949_s17 }
 0x6ec   : > { %2051 = vrot.lane.b32.xlu0 %v7725_v28, %s9949_s17 }
 0x6ef   : > { %2320 = vrot.lane.b32.xlu1 %v7741_v37, %s9949_s17 }
 0x6f0   : > { %2055 = vrot.lane.b32.xlu0 %v7745_v40, %s9949_s17 }
 0x6f3   : > { %2316 = vrot.lane.b32.xlu1 %v7731_v33, %s9949_s17 }
 0x6f4   : > { %2059 = vrot.lane.b32.xlu0 %v7768_v48, %s9949_s17 }
 0x6f7   : > { %2312 = vrot.lane.b32.xlu1 %v7721_v27, %s9949_s17 }
 0x6f8   : > { %2326 = vrot.lane.b32.xlu0 %v7747_v41, %s9949_s17 }
 0x6fb   : > { %2493 = vrot.lane.b32.xlu1 %v7772_v49, %s9946_s19 }
 0x6fc   : > { %2318 = vrot.lane.b32.xlu0 %v7727_v29, %s9949_s17 }
 0x700   : > { %2314 = vrot.lane.b32.xlu0 %v7717_v24, %s9949_s17 }
 0x704   : > { %2495 = vrot.lane.b32.xlu0 %v7782_v51, %s9946_s19 }
 0x732   : > { %v1433_v12 = vpop.xlane.xlu1 %1432 }
 0x733   : > { %6980 = vrcp.f32 %v1433_v12  ;;  %v1430_v13 = vpop.xlane.xlu0 %1429 }
 0x734   : > { %6982 = vrcp.f32 %v1430_v13 }
 0x737   : > { %v1439_v39 = vpop.xlane.xlu1 %1438 }
 0x738   : > { %6984 = vrcp.f32 %v1439_v39 }
 0x73b   : > { %v1445_v9 = vpop.xlane.xlu1 %1444  ;;  %v1436_v14 = vpop.xlane.xlu0 %1435 }
 0x73c   : > { %6986 = vrcp.f32 %v1436_v14 }
 0x73d   : > { %6988 = vrcp.f32 %v1445_v9 }
 0x73f   : > { %v1877_v22 = vpop.xlane.xlu1 %1876  ;;  %v1442_v8 = vpop.xlane.xlu0 %1441 }
 0x740   : > { %v6981_v20 = vpop.eup %6980  ;;  %6990 = vrcp.f32 %v1442_v8 }
 0x741   : > { %v6983_v60 = vpop.eup %6982  ;;  %v1461_v31 = vmul.f32 %v6981_v20, %v8179_v23  ;;  %6992 = vrcp.f32 %v8164_v10 }
 0x742   : > { %v1460_v49 = vmul.f32 %v6983_v60, %v8182_v62 }
 0x743   : > { %v8278_v51 = vpop.permute.xlu1 %2075  ;;  %v1451_v12 = vpop.xlane.xlu0 %1450 }
 0x744   : > { %6306 = vmatprep.mubr.msk.f32.mxu1 %vm985_vm1, %v1460_v49  ;;  %6994 = vrcp.f32 %v1451_v12 }
 0x745   : > { %6307 = vmatmul.mubr.msk.f32.vlgmr.msra.gmra.mxu1 %vm985_vm1, %v1461_v31  ;;  %v6985_v62 = vpop.eup %6984 }
 0x746   : > { %6347 = vmatpush3.msra.mxu1 %v8125_v59 }
 0x747   : > { %6348 = vmatprep.subr.mxu1 %v8156_v15  ;;  %v8285_v13 = vpop.permute.xlu1 %2071  ;;  %v1448_v23 = vpop.xlane.xlu0 %1447 }
 0x748   : > { %6349 = vmatpush3.msra.mxu1 %v8156_v15  ;;  %6996 = vrcp.f32 %v1448_v23  ;;  %v1463_v15 = vmul.f32 %v6985_v62, %v8190_v16 }
 0x749   : > { %6350 = vmatprep.subr.mxu1 %v8158_v63  ;;  %v6987_v39 = vpop.eup %6986  ;;  %6998 = vrcp.f32 %v8162_v54 }
 0x74a   : > { %6351 = vmatpush3.msra.mxu1 %v8158_v63  ;;  %v1462_v10 = vmul.f32 %v6987_v39, %v8196_v55  ;;  %7000 = vrcp.f32 %v8168_v30  ;;  %v6989_v9 = vpop.eup %6988 }
 0x74b   : > { %6352 = vmatprep.subr.mxu1 %v8160_v53  ;;  %v8292_v49 = vpop.permute.xlu1 %2067  ;;  %v1874_v59 = vpop.xlane.xlu0 %1873  ;;  %7002 = vrcp.f32 %v8166_v57 }
 0x74c   : > { %6353 = vmatpush3.msra.mxu1 %v8160_v53  ;;  %6309 = vmatprep.mubr.msk.f32.mxu1 %vm985_vm1, %v1462_v10  ;;  %7004 = vrcp.f32 %v1868_v4  ;;  %v1465_v53 = vmul.f32 %v6989_v9, %v8194_v7 }
 0x74d   : > { %6354 = vmatprep.subr.mxu1 %v1901_v17  ;;  %v6991_v63 = vpop.eup %6990  ;;  %6310 = vmatmul.mubr.msk.f32.gmra.mxu1 %vm985_vm1, %v1463_v15  ;;  %7006 = vrcp.f32 %v1871_v6 }
 0x74e   : > { %6355 = vmatpush3.msra.mxu1 %v1901_v17  ;;  %v1464_v55 = vmul.f32 %v6991_v63, %v8204_v11  ;;  %v6993_v30 = vpop.eup %6992  ;;  %7008 = vrcp.f32 %v1874_v59 }
 0x74f   : > { %v8301_v54 = vpop.permute.xlu1 %2063  ;;  %v2078_v14 = vpop.permute.xlu0 %2077  ;;  %6356 = vmatprep.subr.mxu1 %v1899_v52  ;;  %7010 = vrcp.f32 %v1877_v22  ;;  %v1886_v8 = vmul.f32 %v6993_v30, %v8089_v19 }
 0x750   : > { %6357 = vmatpush3.msra.mxu1 %v1899_v52  ;;  %6312 = vmatprep.mubr.msk.f32.mxu1 %vm985_vm1, %v1464_v55 }
 0x751   : > { %6358 = vmatprep.subr.mxu1 %v1897_v61  ;;  %6313 = vmatmul.mubr.msk.f32.gmra.mxu1 %vm985_vm1, %v1465_v53  ;;  %v6995_v17 = vpop.eup %6994 }
 0x752   : > { %6359 = vmatpush3.msra.mxu1 %v1897_v61  ;;  %v1467_v6 = vmul.f32 %v6995_v17, %v8210_v18 }
 0x753   : > { %v8307_v57 = vpop.permute.xlu1 %2049  ;;  %v2074_v16 = vpop.permute.xlu0 %2073  ;;  %6360 = vmatprep.subr.mxu1 %v8274_v56 }
 0x754   : > { %6361 = vmatpush3.msra.mxu1 %v8274_v56 }
 0x755   : > { %v6997_v11 = vpop.eup %6996  ;;  %6374 = vmatprep.subr.msk.mxu1 %vm823_vm0, %v2078_v14 }
 0x756   : > { %v1466_v7 = vmul.f32 %v6997_v11, %v8214_v58  ;;  %v6999_v61 = vpop.eup %6998 }
 0x757   : > { %v8313_v52 = vpop.permute.xlu1 %2053  ;;  %v2070_v4 = vpop.permute.xlu0 %2069  ;;  %v1887_v56 = vmul.f32 %v6999_v61, %v8085_v2 }
 0x758   : > { %6315 = vmatprep.mubr.msk.f32.mxu1 %vm985_vm1, %v1466_v7  ;;  %v7001_v20 = vpop.eup %7000 }
 0x759   : > { %6316 = vmatmul.mubr.msk.f32.gmra.mxu1 %vm985_vm1, %v1467_v6  ;;  %v7003_v22 = vpop.eup %7002  ;;  %v1888_v31 = vmul.f32 %v7001_v20, %v8095_v3 }
 0x75a   : > { %6362 = vmatprep.mubr.msk.f32.mxu1 %vm985_vm1, %v1886_v8  ;;  %v7005_v12 = vpop.eup %7004  ;;  %v1889_v2 = vmul.f32 %v7003_v22, %v8093_v0 }
 0x75b   : > { %v8321_v60 = vpop.permute.xlu1 %2057  ;;  %v2066_v58 = vpop.permute.xlu0 %2065  ;;  %v1890_v62 = vmul.f32 %v7005_v12, %v8148_v38 }
 0x75c   : > { %v7007_v23 = vpop.eup %7006 }
 0x75d   : > { %6363 = vmatmul.mubr.msk.f32.vlgmr.msra.gmra.mxu1 %vm985_vm1, %v1887_v56  ;;  %v7009_v39 = vpop.eup %7008  ;;  %v1891_v59 = vmul.f32 %v7007_v23, %v8144_v1 }
 0x75e   : > { %6375 = vmatpush3.xpose.msk.msra.mxu1 %vm823_vm0, %v2078_v14  ;;  %6365 = vmatprep.mubr.msk.f32.mxu1 %vm985_vm1, %v1888_v31  ;;  %v7011_v10 = vpop.eup %7010  ;;  %v1892_v15 = vmul.f32 %v7009_v39, %v8218_v25 }
 0x75f   : > { %6376 = vmatprep.subr.msk.mxu1 %vm823_vm0, %v8278_v51  ;;  %v8329_v19 = vpop.permute.xlu1 %2061  ;;  %v2048_v18 = vpop.permute.xlu0 %2047  ;;  %v1893_v38 = vmul.f32 %v7011_v10, %v8202_v5 }
 0x761   : > { %6366 = vmatmul.mubr.msk.f32.gmra.mxu1 %vm985_vm1, %v1889_v2 }
 0x762   : > { %6377 = vmatpush3.xpose.msk.msra.mxu1 %vm823_vm0, %v8278_v51  ;;  %6368 = vmatprep.mubr.msk.f32.mxu1 %vm985_vm1, %v1890_v62 }
 0x763   : > { %6378 = vmatprep.subr.msk.mxu1 %vm823_vm0, %v2074_v16  ;;  %v2052_v3 = vpop.permute.xlu0 %2051  ;;  %v2325_v0 = vpop.permute.xlu1 %2324 }
 0x765   : > { %6369 = vmatmul.mubr.msk.f32.gmra.mxu1 %vm985_vm1, %v1891_v59 }
 0x766   : > { %6379 = vmatpush3.xpose.msk.msra.mxu1 %vm823_vm0, %v2074_v16  ;;  %6371 = vmatprep.mubr.msk.f32.mxu1 %vm985_vm1, %v1892_v15 }
 0x767   : > { %6380 = vmatprep.subr.msk.mxu1 %vm823_vm0, %v8285_v13  ;;  %v2056_v51 = vpop.permute.xlu0 %2055  ;;  %v2323_v1 = vpop.permute.xlu1 %2322 }
 0x769   : > { %6372 = vmatmul.mubr.msk.f32.gmra.mxu1 %vm985_vm1, %v1893_v38 }
 0x76a   : > { %6381 = vmatpush3.xpose.msk.msra.mxu1 %vm823_vm0, %v8285_v13  ;;  %6390 = vmatprep.mubr.msk.f32.mxu1 %vm823_vm0, %v2048_v18 }
 0x76b   : > { %6382 = vmatprep.subr.msk.mxu1 %vm823_vm0, %v2070_v4  ;;  %v2060_v25 = vpop.permute.xlu0 %2059  ;;  %v2321_v63 = vpop.permute.xlu1 %2320 }
 0x76e   : > { %6383 = vmatpush3.xpose.msk.msra.mxu1 %vm823_vm0, %v2070_v4 }
 0x76f   : > { %6384 = vmatprep.subr.msk.mxu1 %vm823_vm0, %v8292_v49  ;;  %v2327_v9 = vpop.permute.xlu0 %2326  ;;  %v2317_v13 = vpop.permute.xlu1 %2316 }
 0x770   : > { %6402 = vmatprep.subr.mxu0 %v2327_v9 }
 0x771   : > { %6403 = vmatpush3.msra.mxu0 %v2327_v9 }
 0x772   : > { %6385 = vmatpush3.xpose.msk.msra.mxu1 %vm823_vm0, %v8292_v49  ;;  %6404 = vmatprep.subr.mxu0 %v2325_v0 }
 0x773   : > { %6386 = vmatprep.subr.msk.mxu1 %vm823_vm0, %v2066_v58  ;;  %6405 = vmatpush3.msra.mxu0 %v2325_v0  ;;  %v2319_v5 = vpop.permute.xlu0 %2318  ;;  %v2313_v49 = vpop.permute.xlu1 %2312 }
 0x774   : > { %6406 = vmatprep.subr.mxu0 %v2323_v1 }
 0x775   : > { %6407 = vmatpush3.msra.mxu0 %v2323_v1 }
 0x776   : > { %6387 = vmatpush3.xpose.msk.msra.mxu1 %vm823_vm0, %v2066_v58  ;;  %6408 = vmatprep.subr.mxu0 %v2321_v63 }
 0x777   : > { %6388 = vmatprep.subr.msk.mxu1 %vm823_vm0, %v8301_v54  ;;  %6409 = vmatpush3.msra.mxu0 %v2321_v63  ;;  %v2315_v14 = vpop.permute.xlu0 %2314 }
 0x778   : > { %6410 = vmatprep.subr.mxu0 %v2319_v5 }
 0x779   : > { %6411 = vmatpush3.msra.mxu0 %v2319_v5 }
 0x77a   : > { %6389 = vmatpush3.xpose.msk.msra.mxu1 %vm823_vm0, %v8301_v54  ;;  %6412 = vmatprep.subr.mxu0 %v2317_v13 }
 0x77b   : > { %6413 = vmatpush3.msra.mxu0 %v2317_v13  ;;  %v8365_v55 = vpop.permute.xlu0 %2495 }
 0x77c   : > { %6414 = vmatprep.subr.mxu0 %v2315_v14 }
 0x77d   : > { %6391 = vmatmul.mubr.msk.f32.vlgmr.msra.gmra.mxu1 %vm823_vm0, %v8307_v57  ;;  %6415 = vmatpush3.msra.mxu0 %v2315_v14 }
 0x77e   : > { %6393 = vmatprep.mubr.msk.f32.mxu1 %vm823_vm0, %v2052_v3  ;;  %6416 = vmatprep.subr.mxu0 %v2313_v49 }
 0x77f   : > { %6417 = vmatpush3.msra.mxu0 %v2313_v49 }
 0x780   : > { %6430 = vmatprep.subr.msk.mxu0 %vm823_vm0, %v8365_v55 }
 0x781   : > { %6394 = vmatmul.mubr.msk.f32.gmra.mxu1 %vm823_vm0, %v8313_v52 }
 0x782   : > { %6396 = vmatprep.mubr.msk.f32.mxu1 %vm823_vm0, %v2056_v51 }
 0x785   : > { %6397 = vmatmul.mubr.msk.f32.gmra.mxu1 %vm823_vm0, %v8321_v60 }
 0x786   : > { %6399 = vmatprep.mubr.msk.f32.mxu1 %vm823_vm0, %v2060_v25 }
 0x789   : > { %6400 = vmatmul.mubr.msk.f32.gmra.mxu1 %vm823_vm0, %v8329_v19 }
 0x805   : > { %v8377_v54 = vpop.f32.mrf.mxu1 }
 0x807   : > { %v8379_v53 = vpop.f32.mrf.mxu1 }
 0x80d   : > { %v8383_v57 = vpop.f32.mrf.mxu1 }
 0x80f   : > { %v8385_v16 = vpop.f32.mrf.mxu1 }
 0x811   : > { %v8389_v11 = vpop.f32.mrf.mxu1 }
 0x812   : > { %9966 = vst [vmem:[#allocation20_spill] sm:$0xff] %v8389_v11 }
 0x813   : > { %v8391_v7 = vpop.f32.mrf.mxu1 }
 0x814   : > { %9967 = vst [vmem:[#allocation21_spill] sm:$0xff] %v8391_v7 }
 0x819   : > { %v8395_v4 = vpop.f32.mrf.mxu1 }
 0x81a   : > { %9968 = vst [vmem:[#allocation22_spill] sm:$0xff] %v8395_v4 }
 0x81b   : > { %v8397_v6 = vpop.f32.mrf.mxu1 }
 0x81c   : > { %9969 = vst [vmem:[#allocation23_spill] sm:$0xff] %v8397_v6 }
 0x81d   : > { %v8401_v8 = vpop.f32.mrf.mxu1 }
 0x81f   : > { %v8403_v20 = vpop.f32.mrf.mxu1 }
 0x821   : > { %v8407_v60 = vpop.f32.mrf.mxu1 }
 0x822   : > { %9970 = vst [vmem:[#allocation24_spill] sm:$0xff] %v8407_v60 }
 0x823   : > { %v8409_v58 = vpop.f32.mrf.mxu1 }
 0x824   : > { %9971 = vst [vmem:[#allocation25_spill] sm:$0xff] %v8409_v58 }
 0x825   : > { %v8413_v31 = vpop.f32.mrf.mxu1 }
 0x826   : > { %9972 = vst [vmem:[#allocation26_spill] sm:$0xff] %v8413_v31 }
 0x827   : > { %v8415_v12 = vpop.f32.mrf.mxu1 }
 0x828   : > { %9973 = vst [vmem:[#allocation27_spill] sm:$0xff] %v8415_v12 }
 0x829   : > { %v8419_v18 = vpop.f32.mrf.mxu1 }
 0x82a   : > { %9974 = vst [vmem:[#allocation28_spill] sm:$0xff] %v8419_v18 }
 0x82b   : > { %v8421_v2 = vpop.f32.mrf.mxu1 }
 0x82c   : > { %9975 = vst [vmem:[#allocation29_spill] sm:$0xff] %v8421_v2 }
 0x83d   : > { %v6392_v62 = vpop.f32.mrf.mxu1 }
 0x83e   : > { %v2217_v39 = vmul.f32 0.25, %v6392_v62 }
 0x83f   : > { %v2177_v3 = vpop.f32.mrf.mxu1 }
 0x840   : > { %v2216_v59 = vmul.f32 0.25, %v2177_v3  ;;  %v2227_v10 = vsel %vm985_vm1, %v2217_v39, -inf }
 0x841   : > { %2228 = vmax.xlane.f32.xlu1 %v2227_v10  ;;  %v6395_v15 = vpop.f32.mrf.mxu1 }
 0x842   : > { %v2219_v0 = vmul.f32 0.25, %v6395_v15  ;;  %v2224_v51 = vsel %vm985_vm1, %v2216_v59, -inf }
 0x843   : > { %2225 = vmax.xlane.f32.xlu0 %v2224_v51  ;;  %v2187_v38 = vpop.f32.mrf.mxu1 }
 0x844   : > { %v2218_v25 = vmul.f32 0.25, %v2187_v38  ;;  %v2233_v63 = vsel %vm985_vm1, %v2219_v0, -inf }
 0x845   : > { %v6398_v1 = vpop.f32.mrf.mxu1 }
 0x846   : > { %v2221_v9 = vmul.f32 0.25, %v6398_v1  ;;  %v2230_v3 = vsel %vm985_vm1, %v2218_v25, -inf }
 0x847   : > { %2234 = vmax.xlane.f32.xlu0 %v2233_v63  ;;  %v2197_v5 = vpop.f32.mrf.mxu1  ;;  %v8437_v63 = vpop.permute.xlu1 %2493 }
 0x848   : > { %v2239_v13 = vsel %vm985_vm1, %v2221_v9, -inf  ;;  %v2220_v49 = vmul.f32 0.25, %v2197_v5 }
 0x849   : > { %2240 = vmax.xlane.f32.xlu1 %v2239_v13  ;;  %v6401_v14 = vpop.f32.mrf.mxu1 }
 0x84a   : > { %v2223_v62 = vmul.f32 0.25, %v6401_v14  ;;  %v2236_v38 = vsel %vm985_vm1, %v2220_v49, -inf }
 0x84b   : > { %2231 = vmax.xlane.f32.xlu0 %v2230_v3  ;;  %v2207_v10 = vpop.f32.mrf.mxu1 }
 0x84c   : > { %v2245_v15 = vsel %vm985_vm1, %v2223_v62, -inf  ;;  %v2222_v51 = vmul.f32 0.25, %v2207_v10 }
 0x84d   : > { %2246 = vmax.xlane.f32.xlu1 %v2245_v15 }
 0x84e   : > { %v2242_v1 = vsel %vm985_vm1, %v2222_v51, -inf }
 0x84f   : > { %2237 = vmax.xlane.f32.xlu0 %v2236_v38 }
 0x853   : > { %2243 = vmax.xlane.f32.xlu0 %v2242_v1 }
 0x85e   : > { %2489 = vrot.lane.b32.xlu1 %v7750_v42, %s9946_s19 }
 0x869   : > { %2491 = vrot.lane.b32.xlu0 %v7762_v45, %s9946_s19 }
 0x8ca   : > { %v2229_v5 = vpop.xlane.xlu1 %2228 }
 0x8cb   : > { %v2249_v13 = vsub.f32 %v2217_v39, %v2229_v5 }
 0x8cc   : > { %v2226_v14 = vpop.xlane.xlu0 %2225 }
 0x8cd   : > { %v2258_v3 = vmul.f32 1.442695, %v2249_v13  ;;  %v2248_v15 = vsub.f32 %v2216_v59, %v2226_v14 }
 0x8cf   : > { %7012 = vpow2.f32 %v2258_v3  ;;  %v2256_v10 = vmul.f32 1.442695, %v2248_v15 }
 0x8d0   : > { %v2235_v52 = vpop.xlane.xlu0 %2234 }
 0x8d1   : > { %7014 = vpow2.f32 %v2256_v10  ;;  %v2251_v5 = vsub.f32 %v2219_v0, %v2235_v52 }
 0x8d2   : > { %v2241_v59 = vpop.xlane.xlu1 %2240 }
 0x8d3   : > { %v2262_v3 = vmul.f32 1.442695, %v2251_v5  ;;  %v2253_v15 = vsub.f32 %v2221_v9, %v2241_v59 }
 0x8d4   : > { %v2232_v39 = vpop.xlane.xlu0 %2231 }
 0x8d5   : > { %v2250_v14 = vsub.f32 %v2218_v25, %v2232_v39  ;;  %7016 = vpow2.f32 %v2262_v3 }
 0x8d6   : > { %v2247_v10 = vpop.xlane.xlu1 %2246 }
 0x8d7   : > { %v2255_v17 = vsub.f32 %v2223_v62, %v2247_v10  ;;  %v9976_v62 = vld [vmem:[#allocation11_spill] sm:$0xff] }
 0x8d8   : > { %v2238_v13 = vpop.xlane.xlu0 %2237 }
 0x8d9   : > { %v2252_v19 = vsub.f32 %v2220_v49, %v2238_v13  ;;  %v2270_v2 = vmul.f32 1.442695, %v2255_v17 }
 0x8da   : > { %v2490_v39 = vpop.permute.xlu1 %2489 }
 0x8db   : > { %v2264_v30 = vmul.f32 1.442695, %v2252_v19 }
 0x8dc   : > { %v8439_v38 = vpop.eup %7012  ;;  %v2244_v22 = vpop.xlane.xlu0 %2243 }
 0x8dd   : > { %v2275_v1 = vsel %vm985_vm1, %v8439_v38, 0.0  ;;  %v2254_v56 = vsub.f32 %v2222_v51, %v2244_v22  ;;  %v9977_v51 = vld [vmem:[#allocation10_spill] sm:$0xff] }
 0x8de   : > { %v8443_v23 = vpop.eup %7014  ;;  %2276 = vadd.xlane.f32.xlu1 %v2275_v1  ;;  %v2260_v1 = vmul.f32 1.442695, %v2250_v14 }
 0x8df   : > { %v2272_v61 = vsel %vm985_vm1, %v8443_v23, 0.0  ;;  %v2268_v18 = vmul.f32 1.442695, %v2254_v56 }
 0x8e0   : > { %2273 = vadd.xlane.f32.xlu0 %v2272_v61  ;;  %v2266_v61 = vmul.f32 1.442695, %v2253_v15  ;;  %7018 = vpow2.f32 %v2260_v1  ;;  %v2492_v59 = vpop.permute.xlu0 %2491 }
 0x8e2   : > { %7020 = vpow2.f32 %v2266_v61  ;;  %v8451_v52 = vpop.eup %7016 }
 0x8e3   : > { %7022 = vpow2.f32 %v2264_v30  ;;  %v2281_v25 = vsel %vm985_vm1, %v8451_v52, 0.0 }
 0x8e4   : > { %7024 = vpow2.f32 %v2270_v2 }
 0x8e5   : > { %7026 = vpow2.f32 %v2268_v18 }
 0x8ed   : > { %v8453_v0 = vpop.eup %7018 }
 0x8ee   : > { %v2278_v19 = vsel %vm985_vm1, %v8453_v0, 0.0 }
 0x8ef   : > { %2485 = vrot.lane.b32.xlu1 %v7729_v32, %s9946_s19  ;;  %v8457_v9 = vpop.eup %7020 }
 0x8f0   : > { %v8461_v22 = vpop.eup %7022  ;;  %v2287_v30 = vsel %vm985_vm1, %v8457_v9, 0.0 }
 0x8f1   : > { %v8465_v17 = vpop.eup %7024  ;;  %v2284_v56 = vsel %vm985_vm1, %v8461_v22, 0.0 }
 0x8f2   : > { %v8469_v18 = vpop.eup %7026  ;;  %v2293_v2 = vsel %vm985_vm1, %v8465_v17, 0.0 }
 0x8f3   : > { %v2290_v49 = vsel %vm985_vm1, %v8469_v18, 0.0 }
 0x8f6   : > { %2487 = vrot.lane.b32.xlu0 %v7739_v36, %s9946_s19 }
 0x913   : > { %2282 = vadd.xlane.f32.xlu1 %v2281_v25 }
 0x915   : > { %2279 = vadd.xlane.f32.xlu0 %v2278_v19 }
 0x917   : > { %2288 = vadd.xlane.f32.xlu1 %v2287_v30 }
 0x919   : > { %2285 = vadd.xlane.f32.xlu0 %v2284_v56 }
 0x91b   : > { %2294 = vadd.xlane.f32.xlu1 %v2293_v2 }
 0x91d   : > { %2291 = vadd.xlane.f32.xlu0 %v2290_v49 }
 0x92c   : > { %2481 = vrot.lane.b32.xlu1 %v7713_v47, %s9946_s19 }
 0x930   : > { %2467 = vrot.lane.b32.xlu1 %v7715_v21, %s9946_s19 }
 0x933   : > { %2483 = vrot.lane.b32.xlu0 %v7719_v26, %s9946_s19 }
 0x934   : > { %2471 = vrot.lane.b32.xlu1 %v7735_v34, %s9946_s19 }
 0x937   : > { %2465 = vrot.lane.b32.xlu0 %v7709_v46, %s9946_s19 }
 0x938   : > { %2475 = vrot.lane.b32.xlu1 %v7758_v44, %s9946_s19 }
 0x93b   : > { %2469 = vrot.lane.b32.xlu0 %v7725_v28, %s9946_s19 }
 0x93c   : > { %2479 = vrot.lane.b32.xlu1 %v7778_v50, %s9946_s19 }
 0x93f   : > { %2473 = vrot.lane.b32.xlu0 %v7745_v40, %s9946_s19 }
 0x940   : > { %2742 = vrot.lane.b32.xlu1 %v7752_v43, %s9946_s19 }
 0x943   : > { %2477 = vrot.lane.b32.xlu0 %v7768_v48, %s9946_s19 }
 0x944   : > { %2740 = vrot.lane.b32.xlu1 %v7737_v35, %s9946_s19 }
 0x947   : > { %2744 = vrot.lane.b32.xlu0 %v7747_v41, %s9946_s19 }
 0x948   : > { %2738 = vrot.lane.b32.xlu1 %v7741_v37, %s9946_s19 }
 0x94b   : > { %2736 = vrot.lane.b32.xlu0 %v7727_v29, %s9946_s19 }
 0x94c   : > { %2734 = vrot.lane.b32.xlu1 %v7731_v33, %s9946_s19 }
 0x94f   : > { %2732 = vrot.lane.b32.xlu0 %v7717_v24, %s9946_s19 }
 0x950   : > { %2730 = vrot.lane.b32.xlu1 %v7721_v27, %s9946_s19 }
 0x953   : > { %2913 = vrot.lane.b32.xlu0 %v9976_v62, %s7360_s20 }
 0x954   : > { %2911 = vrot.lane.b32.xlu1 %v9977_v51, %s7360_s20 }
 0x967   : > { %v2277_v5 = vpop.xlane.xlu1 %2276 }
 0x968   : > { %7028 = vrcp.f32 %v2277_v5 }
 0x969   : > { %v2274_v13 = vpop.xlane.xlu0 %2273 }
 0x96a   : > { %7030 = vrcp.f32 %v2274_v13 }
 0x975   : > { %v7029_v14 = vpop.eup %7028 }
 0x976   : > { %v2305_v10 = vmul.f32 %v7029_v14, %v8439_v38  ;;  %v2486_v38 = vpop.permute.xlu1 %2485 }
 0x977   : > { %v7031_v3 = vpop.eup %7030 }
 0x978   : > { %v2304_v15 = vmul.f32 %v7031_v3, %v8443_v23  ;;  %v2488_v23 = vpop.permute.xlu0 %2487 }
 0x97a   : > { %6418 = vmatprep.mubr.msk.f32.mxu0 %vm985_vm1, %v2304_v15 }
 0x97b   : > { %6419 = vmatmul.mubr.msk.f32.vlgmr.msra.gmra.mxu0 %vm985_vm1, %v2305_v10 }
 0x97c   : > { %6431 = vmatpush3.xpose.msk.msra.mxu0 %vm823_vm0, %v8365_v55 }
 0x97d   : > { %6432 = vmatprep.subr.msk.mxu0 %vm823_vm0, %v8437_v63 }
 0x980   : > { %6433 = vmatpush3.xpose.msk.msra.mxu0 %vm823_vm0, %v8437_v63 }
 0x981   : > { %6434 = vmatprep.subr.msk.mxu0 %vm823_vm0, %v2492_v59 }
 0x984   : > { %6435 = vmatpush3.xpose.msk.msra.mxu0 %vm823_vm0, %v2492_v59 }
 0x985   : > { %6436 = vmatprep.subr.msk.mxu0 %vm823_vm0, %v2490_v39 }
 0x988   : > { %6437 = vmatpush3.xpose.msk.msra.mxu0 %vm823_vm0, %v2490_v39 }
 0x989   : > { %6438 = vmatprep.subr.msk.mxu0 %vm823_vm0, %v2488_v23 }
 0x98c   : > { %6439 = vmatpush3.xpose.msk.msra.mxu0 %vm823_vm0, %v2488_v23 }
 0x98d   : > { %6440 = vmatprep.subr.msk.mxu0 %vm823_vm0, %v2486_v38 }
 0x990   : > { %6441 = vmatpush3.xpose.msk.msra.mxu0 %vm823_vm0, %v2486_v38 }
 0x99c   : > { %v2283_v55 = vpop.xlane.xlu1 %2282 }
 0x99d   : > { %7032 = vrcp.f32 %v2283_v55 }
 0x99e   : > { %v2280_v63 = vpop.xlane.xlu0 %2279 }
 0x99f   : > { %7034 = vrcp.f32 %v2280_v63 }
 0x9a0   : > { %v2289_v1 = vpop.xlane.xlu1 %2288 }
 0x9a1   : > { %7036 = vrcp.f32 %v2289_v1 }
 0x9a2   : > { %v2286_v61 = vpop.xlane.xlu0 %2285 }
 0x9a3   : > { %7038 = vrcp.f32 %v2286_v61 }
 0x9a4   : > { %v2295_v25 = vpop.xlane.xlu1 %2294 }
 0x9a5   : > { %7040 = vrcp.f32 %v2295_v25 }
 0x9a6   : > { %v2292_v19 = vpop.xlane.xlu0 %2291 }
 0x9a7   : > { %7042 = vrcp.f32 %v2292_v19 }
 0x9a8   : > { %v2482_v30 = vpop.permute.xlu1 %2481 }
 0x9aa   : > { %v2484_v56 = vpop.permute.xlu0 %2483  ;;  %v7033_v2 = vpop.eup %7032 }
 0x9ab   : > { %6442 = vmatprep.subr.msk.mxu0 %vm823_vm0, %v2484_v56  ;;  %v2307_v13 = vmul.f32 %v7033_v2, %v8451_v52 }
 0x9ac   : > { %v7035_v49 = vpop.eup %7034  ;;  %v2468_v39 = vpop.permute.xlu1 %2467  ;;  %6443 = vmatpush3.xpose.msk.msra.mxu0 %vm823_vm0, %v2484_v56 }
 0x9ad   : > { %6444 = vmatprep.subr.msk.mxu0 %vm823_vm0, %v2482_v30  ;;  %v2306_v59 = vmul.f32 %v7035_v49, %v8453_v0 }
 0x9ae   : > { %v2466_v5 = vpop.permute.xlu0 %2465  ;;  %v7037_v14 = vpop.eup %7036 }
 0x9af   : > { %6421 = vmatprep.mubr.msk.f32.mxu0 %vm985_vm1, %v2306_v59  ;;  %v2309_v38 = vmul.f32 %v7037_v14, %v8457_v9 }
 0x9b0   : > { %v7039_v3 = vpop.eup %7038  ;;  %v2472_v15 = vpop.permute.xlu1 %2471  ;;  %6422 = vmatmul.mubr.msk.f32.gmra.mxu0 %vm985_vm1, %v2307_v13 }
 0x9b1   : > { %6445 = vmatpush3.xpose.msk.msra.mxu0 %vm823_vm0, %v2482_v30  ;;  %v2308_v10 = vmul.f32 %v7039_v3, %v8461_v22 }
 0x9b2   : > { %v2470_v23 = vpop.permute.xlu0 %2469  ;;  %v7041_v55 = vpop.eup %7040 }
 0x9b3   : > { %6424 = vmatprep.mubr.msk.f32.mxu0 %vm985_vm1, %v2308_v10  ;;  %v2311_v61 = vmul.f32 %v7041_v55, %v8465_v17 }
 0x9b4   : > { %v7043_v0 = vpop.eup %7042  ;;  %v2476_v63 = vpop.permute.xlu1 %2475  ;;  %6425 = vmatmul.mubr.msk.f32.gmra.mxu0 %vm985_vm1, %v2309_v38 }
 0x9b5   : > { %v2310_v52 = vmul.f32 %v7043_v0, %v8469_v18 }
 0x9b6   : > { %v2474_v1 = vpop.permute.xlu0 %2473 }
 0x9b7   : > { %6427 = vmatprep.mubr.msk.f32.mxu0 %vm985_vm1, %v2310_v52 }
 0x9b8   : > { %v2480_v25 = vpop.permute.xlu1 %2479  ;;  %6428 = vmatmul.mubr.msk.f32.gmra.mxu0 %vm985_vm1, %v2311_v61 }
 0x9b9   : > { %6446 = vmatprep.mubr.msk.f32.mxu0 %vm823_vm0, %v2466_v5 }
 0x9ba   : > { %v2478_v9 = vpop.permute.xlu0 %2477 }
 0x9bc   : > { %v2743_v22 = vpop.permute.xlu1 %2742  ;;  %6447 = vmatmul.mubr.msk.f32.vlgmr.msra.gmra.mxu0 %vm823_vm0, %v2468_v39 }
 0x9bd   : > { %6449 = vmatprep.mubr.msk.f32.mxu0 %vm823_vm0, %v2470_v23 }
 0x9be   : > { %v2745_v19 = vpop.permute.xlu0 %2744 }
 0x9bf   : > { %6458 = vmatprep.subr.mxu1 %v2745_v19 }
 0x9c0   : > { %v2741_v30 = vpop.permute.xlu1 %2740  ;;  %6450 = vmatmul.mubr.msk.f32.gmra.mxu0 %vm823_vm0, %v2472_v15  ;;  %6459 = vmatpush3.msra.mxu1 %v2745_v19 }
 0x9c1   : > { %6452 = vmatprep.mubr.msk.f32.mxu0 %vm823_vm0, %v2474_v1  ;;  %6460 = vmatprep.subr.mxu1 %v2743_v22 }
 0x9c2   : > { %6461 = vmatpush3.msra.mxu1 %v2743_v22  ;;  %v2737_v17 = vpop.permute.xlu0 %2736 }
 0x9c3   : > { %6462 = vmatprep.subr.mxu1 %v2741_v30 }
 0x9c4   : > { %v2739_v18 = vpop.permute.xlu1 %2738  ;;  %6453 = vmatmul.mubr.msk.f32.gmra.mxu0 %vm823_vm0, %v2476_v63  ;;  %6463 = vmatpush3.msra.mxu1 %v2741_v30 }
 0x9c5   : > { %6455 = vmatprep.mubr.msk.f32.mxu0 %vm823_vm0, %v2478_v9  ;;  %6464 = vmatprep.subr.mxu1 %v2739_v18 }
 0x9c6   : > { %6465 = vmatpush3.msra.mxu1 %v2739_v18  ;;  %v2733_v56 = vpop.permute.xlu0 %2732 }
 0x9c7   : > { %6466 = vmatprep.subr.mxu1 %v2737_v17 }
 0x9c8   : > { %v2735_v2 = vpop.permute.xlu1 %2734  ;;  %6456 = vmatmul.mubr.msk.f32.gmra.mxu0 %vm823_vm0, %v2480_v25  ;;  %6467 = vmatpush3.msra.mxu1 %v2737_v17 }
 0x9c9   : > { %6468 = vmatprep.subr.mxu1 %v2735_v2 }
 0x9ca   : > { %6469 = vmatpush3.msra.mxu1 %v2735_v2  ;;  %v8557_v39 = vpop.permute.xlu0 %2913 }
 0x9cb   : > { %6470 = vmatprep.subr.mxu1 %v2733_v56 }
 0x9cc   : > { %v2731_v49 = vpop.permute.xlu1 %2730  ;;  %6471 = vmatpush3.msra.mxu1 %v2733_v56 }
 0x9cd   : > { %6472 = vmatprep.subr.mxu1 %v2731_v49 }
 0x9ce   : > { %6473 = vmatpush3.msra.mxu1 %v2731_v49 }
 0x9cf   : > { %6486 = vmatprep.subr.msk.mxu1 %vm823_vm0, %v8557_v39 }
 0xa3b   : > { %v8561_v59 = vpop.f32.mrf.mxu0 }
 0xa3d   : > { %v8563_v5 = vpop.f32.mrf.mxu0 }
 0xa70   : > { %v8567_v14 = vpop.f32.mrf.mxu0 }
 0xa72   : > { %v8569_v3 = vpop.f32.mrf.mxu0 }
 0xa74   : > { %v8573_v10 = vpop.f32.mrf.mxu0 }
 0xa75   : > { %9978 = vst [vmem:[#allocation11_spill] sm:$0xff] %v8573_v10 }
 0xa76   : > { %v8575_v23 = vpop.f32.mrf.mxu0 }
 0xa77   : > { %9979 = vst [vmem:[#allocation10_spill] sm:$0xff] %v8575_v23 }
 0xa78   : > { %v8579_v55 = vpop.f32.mrf.mxu0 }
 0xa79   : > { %9980 = vst [vmem:[#allocation30_spill] sm:$0xff] %v8579_v55 }
 0xa7a   : > { %v8581_v0 = vpop.f32.mrf.mxu0 }
 0xa7b   : > { %9981 = vst [vmem:[#allocation31_spill] sm:$0xff] %v8581_v0 }
 0xa7c   : > { %v6448_v52 = vpop.f32.mrf.mxu0 }
 0xa7d   : > { %v2635_v1 = vmul.f32 0.25, %v6448_v52 }
 0xa7e   : > { %v2595_v61 = vpop.f32.mrf.mxu0 }
 0xa7f   : > { %v2634_v25 = vmul.f32 0.25, %v2595_v61  ;;  %v2645_v9 = vsel %vm985_vm1, %v2635_v1, -inf }
 0xa80   : > { %2646 = vmax.xlane.f32.xlu1 %v2645_v9  ;;  %v6451_v22 = vpop.f32.mrf.mxu0 }
 0xa81   : > { %v2637_v19 = vmul.f32 0.25, %v6451_v22  ;;  %v2642_v30 = vsel %vm985_vm1, %v2634_v25, -inf }
 0xa82   : > { %2643 = vmax.xlane.f32.xlu0 %v2642_v30  ;;  %v2605_v17 = vpop.f32.mrf.mxu0 }
 0xa83   : > { %v2636_v56 = vmul.f32 0.25, %v2605_v17  ;;  %v2651_v49 = vsel %vm985_vm1, %v2637_v19, -inf }
 0xa84   : > { %v6454_v18 = vpop.f32.mrf.mxu0 }
 0xa85   : > { %v2639_v2 = vmul.f32 0.25, %v6454_v18  ;;  %v2648_v9 = vsel %vm985_vm1, %v2636_v56, -inf }
 0xa86   : > { %2652 = vmax.xlane.f32.xlu0 %v2651_v49  ;;  %v2615_v63 = vpop.f32.mrf.mxu0 }
 0xa87   : > { %v2657_v52 = vsel %vm985_vm1, %v2639_v2, -inf  ;;  %v2638_v38 = vmul.f32 0.25, %v2615_v63  ;;  %v8597_v63 = vpop.permute.xlu1 %2911 }
 0xa88   : > { %2658 = vmax.xlane.f32.xlu1 %v2657_v52  ;;  %v6457_v61 = vpop.f32.mrf.mxu0 }
 0xa89   : > { %v2641_v15 = vmul.f32 0.25, %v6457_v61  ;;  %v2654_v17 = vsel %vm985_vm1, %v2638_v38, -inf }
 0xa8a   : > { %2649 = vmax.xlane.f32.xlu0 %v2648_v9  ;;  %v2625_v22 = vpop.f32.mrf.mxu0 }
 0xa8b   : > { %v2663_v30 = vsel %vm985_vm1, %v2641_v15, -inf  ;;  %v2640_v13 = vmul.f32 0.25, %v2625_v22 }
 0xa8c   : > { %2664 = vmax.xlane.f32.xlu1 %v2663_v30 }
 0xa8d   : > { %v2660_v18 = vsel %vm985_vm1, %v2640_v13, -inf }
 0xa8e   : > { %2655 = vmax.xlane.f32.xlu0 %v2654_v17 }
 0xa92   : > { %2661 = vmax.xlane.f32.xlu0 %v2660_v18 }
 0xa9d   : > { %2907 = vrot.lane.b32.xlu1 %v7750_v42, %s7360_s20 }
 0xaa8   : > { %2909 = vrot.lane.b32.xlu0 %v7762_v45, %s7360_s20 }
 0xb09   : > { %v2647_v49 = vpop.xlane.xlu1 %2646 }
 0xb0a   : > { %v2667_v52 = vsub.f32 %v2635_v1, %v2647_v49 }
 0xb0b   : > { %v2644_v61 = vpop.xlane.xlu0 %2643 }
 0xb0c   : > { %v2676_v9 = vmul.f32 1.442695, %v2667_v52  ;;  %v2666_v30 = vsub.f32 %v2634_v25, %v2644_v61 }
 0xb0e   : > { %7044 = vpow2.f32 %v2676_v9  ;;  %v2674_v22 = vmul.f32 1.442695, %v2666_v30 }
 0xb0f   : > { %v2653_v6 = vpop.xlane.xlu0 %2652 }
 0xb10   : > { %7046 = vpow2.f32 %v2674_v22  ;;  %v2669_v49 = vsub.f32 %v2637_v19, %v2653_v6 }
 0xb11   : > { %v2659_v25 = vpop.xlane.xlu1 %2658 }
 0xb12   : > { %v2680_v9 = vmul.f32 1.442695, %v2669_v49  ;;  %v2671_v30 = vsub.f32 %v2639_v2, %v2659_v25 }
 0xb13   : > { %v2650_v1 = vpop.xlane.xlu0 %2649 }
 0xb14   : > { %v2668_v61 = vsub.f32 %v2636_v56, %v2650_v1  ;;  %7048 = vpow2.f32 %v2680_v9 }
 0xb15   : > { %v2665_v22 = vpop.xlane.xlu1 %2664 }
 0xb16   : > { %v2673_v10 = vsub.f32 %v2641_v15, %v2665_v22 }
 0xb17   : > { %v2656_v52 = vpop.xlane.xlu0 %2655 }
 0xb18   : > { %v2670_v4 = vsub.f32 %v2638_v38, %v2656_v52  ;;  %v2688_v12 = vmul.f32 1.442695, %v2673_v10 }
 0xb1a   : > { %v2682_v7 = vmul.f32 1.442695, %v2670_v4 }
 0xb1b   : > { %v8599_v17 = vpop.eup %7044  ;;  %v2662_v23 = vpop.xlane.xlu0 %2661 }
 0xb1c   : > { %v2693_v18 = vsel %vm985_vm1, %v8599_v17, 0.0  ;;  %v2672_v11 = vsub.f32 %v2640_v13, %v2662_v23  ;;  %v2908_v23 = vpop.permute.xlu1 %2907 }
 0xb1d   : > { %v8603_v0 = vpop.eup %7046  ;;  %2694 = vadd.xlane.f32.xlu1 %v2693_v18  ;;  %v2678_v18 = vmul.f32 1.442695, %v2668_v61 }
 0xb1e   : > { %v2690_v55 = vsel %vm985_vm1, %v8603_v0, 0.0  ;;  %v2686_v31 = vmul.f32 1.442695, %v2672_v11 }
 0xb1f   : > { %2691 = vadd.xlane.f32.xlu0 %v2690_v55  ;;  %v2684_v55 = vmul.f32 1.442695, %v2671_v30  ;;  %7050 = vpow2.f32 %v2678_v18  ;;  %v2910_v2 = vpop.permute.xlu0 %2909 }
 0xb21   : > { %7052 = vpow2.f32 %v2684_v55  ;;  %v8611_v6 = vpop.eup %7048 }
 0xb22   : > { %7054 = vpow2.f32 %v2682_v7  ;;  %v2699_v38 = vsel %vm985_vm1, %v8611_v6, 0.0 }
 0xb23   : > { %7056 = vpow2.f32 %v2688_v12 }
 0xb24   : > { %7058 = vpow2.f32 %v2686_v31 }
 0xb2c   : > { %v8613_v19 = vpop.eup %7050 }
 0xb2d   : > { %v2696_v4 = vsel %vm985_vm1, %v8613_v19, 0.0 }
 0xb2e   : > { %2903 = vrot.lane.b32.xlu1 %v7729_v32, %s7360_s20  ;;  %v8617_v56 = vpop.eup %7052 }
 0xb2f   : > { %v8621_v13 = vpop.eup %7054  ;;  %v2705_v11 = vsel %vm985_vm1, %v8617_v56, 0.0 }
 0xb30   : > { %v8625_v7 = vpop.eup %7056  ;;  %v2702_v31 = vsel %vm985_vm1, %v8621_v13, 0.0 }
 0xb31   : > { %v8629_v12 = vpop.eup %7058  ;;  %v2711_v15 = vsel %vm985_vm1, %v8625_v7, 0.0 }
 0xb32   : > { %v2708_v10 = vsel %vm985_vm1, %v8629_v12, 0.0 }
 0xb35   : > { %2905 = vrot.lane.b32.xlu0 %v7739_v36, %s7360_s20 }
 0xb52   : > { %2700 = vadd.xlane.f32.xlu1 %v2699_v38 }
 0xb54   : > { %2697 = vadd.xlane.f32.xlu0 %v2696_v4 }
 0xb56   : > { %2706 = vadd.xlane.f32.xlu1 %v2705_v11 }
 0xb58   : > { %2703 = vadd.xlane.f32.xlu0 %v2702_v31 }
 0xb5a   : > { %2712 = vadd.xlane.f32.xlu1 %v2711_v15 }
 0xb5c   : > { %2709 = vadd.xlane.f32.xlu0 %v2708_v10 }
 0xb6b   : > { %2899 = vrot.lane.b32.xlu1 %v7713_v47, %s7360_s20 }
 0xb6f   : > { %2885 = vrot.lane.b32.xlu1 %v7715_v21, %s7360_s20 }
 0xb72   : > { %2901 = vrot.lane.b32.xlu0 %v7719_v26, %s7360_s20 }
 0xb73   : > { %2889 = vrot.lane.b32.xlu1 %v7735_v34, %s7360_s20 }
 0xb76   : > { %2883 = vrot.lane.b32.xlu0 %v7709_v46, %s7360_s20 }
 0xb77   : > { %2893 = vrot.lane.b32.xlu1 %v7758_v44, %s7360_s20 }
 0xb7a   : > { %2887 = vrot.lane.b32.xlu0 %v7725_v28, %s7360_s20 }
 0xb7b   : > { %2897 = vrot.lane.b32.xlu1 %v7778_v50, %s7360_s20 }
 0xb7e   : > { %2891 = vrot.lane.b32.xlu0 %v7745_v40, %s7360_s20 }
 0xb7f   : > { %3160 = vrot.lane.b32.xlu1 %v7752_v43, %s7360_s20 }
 0xb82   : > { %2895 = vrot.lane.b32.xlu0 %v7768_v48, %s7360_s20 }
 0xb83   : > { %3158 = vrot.lane.b32.xlu1 %v7737_v35, %s7360_s20 }
 0xb86   : > { %3162 = vrot.lane.b32.xlu0 %v7747_v41, %s7360_s20 }
 0xb87   : > { %3156 = vrot.lane.b32.xlu1 %v7741_v37, %s7360_s20 }
 0xb8a   : > { %3154 = vrot.lane.b32.xlu0 %v7727_v29, %s7360_s20 }
 0xb8b   : > { %3152 = vrot.lane.b32.xlu1 %v7731_v33, %s7360_s20 }
 0xb8e   : > { %3150 = vrot.lane.b32.xlu0 %v7717_v24, %s7360_s20 }
 0xb8f   : > { %3148 = vrot.lane.b32.xlu1 %v7721_v27, %s7360_s20 }
 0xb92   : > { %3331 = vrot.lane.b32.xlu0 %v9976_v62, %s9947_s26 }
 0xb93   : > { %3329 = vrot.lane.b32.xlu1 %v9977_v51, %s9947_s26 }
 0xba6   : > { %v2695_v1 = vpop.xlane.xlu1 %2694 }
 0xba7   : > { %7060 = vrcp.f32 %v2695_v1 }
 0xba8   : > { %v2692_v25 = vpop.xlane.xlu0 %2691 }
 0xba9   : > { %7062 = vrcp.f32 %v2692_v25 }
 0xbb4   : > { %v7061_v49 = vpop.eup %7060 }
 0xbb5   : > { %v2723_v9 = vmul.f32 %v7061_v49, %v8599_v17  ;;  %v2904_v17 = vpop.permute.xlu1 %2903 }
 0xbb6   : > { %v7063_v52 = vpop.eup %7062 }
 0xbb7   : > { %v2722_v61 = vmul.f32 %v7063_v52, %v8603_v0  ;;  %v2906_v0 = vpop.permute.xlu0 %2905 }
 0xbb9   : > { %6474 = vmatprep.mubr.msk.f32.mxu1 %vm985_vm1, %v2722_v61 }
 0xbba   : > { %6475 = vmatmul.mubr.msk.f32.vlgmr.msra.gmra.mxu1 %vm985_vm1, %v2723_v9 }
 0xbbb   : > { %6487 = vmatpush3.xpose.msk.msra.mxu1 %vm823_vm0, %v8557_v39 }
 0xbbc   : > { %6488 = vmatprep.subr.msk.mxu1 %vm823_vm0, %v8597_v63 }
 0xbbf   : > { %6489 = vmatpush3.xpose.msk.msra.mxu1 %vm823_vm0, %v8597_v63 }
 0xbc0   : > { %6490 = vmatprep.subr.msk.mxu1 %vm823_vm0, %v2910_v2 }
 0xbc3   : > { %6491 = vmatpush3.xpose.msk.msra.mxu1 %vm823_vm0, %v2910_v2 }
 0xbc4   : > { %6492 = vmatprep.subr.msk.mxu1 %vm823_vm0, %v2908_v23 }
 0xbc7   : > { %6493 = vmatpush3.xpose.msk.msra.mxu1 %vm823_vm0, %v2908_v23 }
 0xbc8   : > { %6494 = vmatprep.subr.msk.mxu1 %vm823_vm0, %v2906_v0 }
 0xbcb   : > { %6495 = vmatpush3.xpose.msk.msra.mxu1 %vm823_vm0, %v2906_v0 }
 0xbcc   : > { %6496 = vmatprep.subr.msk.mxu1 %vm823_vm0, %v2904_v17 }
 0xbcf   : > { %6497 = vmatpush3.xpose.msk.msra.mxu1 %vm823_vm0, %v2904_v17 }
 0xbdb   : > { %v2701_v39 = vpop.xlane.xlu1 %2700 }
 0xbdc   : > { %7064 = vrcp.f32 %v2701_v39 }
 0xbdd   : > { %v2698_v63 = vpop.xlane.xlu0 %2697 }
 0xbde   : > { %7066 = vrcp.f32 %v2698_v63 }
 0xbdf   : > { %v2707_v30 = vpop.xlane.xlu1 %2706 }
 0xbe0   : > { %7068 = vrcp.f32 %v2707_v30 }
 0xbe1   : > { %v2704_v22 = vpop.xlane.xlu0 %2703 }
 0xbe2   : > { %7070 = vrcp.f32 %v2704_v22 }
 0xbe3   : > { %v2713_v18 = vpop.xlane.xlu1 %2712 }
 0xbe4   : > { %7072 = vrcp.f32 %v2713_v18 }
 0xbe5   : > { %v2710_v55 = vpop.xlane.xlu0 %2709 }
 0xbe6   : > { %7074 = vrcp.f32 %v2710_v55 }
 0xbe7   : > { %v2900_v38 = vpop.permute.xlu1 %2899 }
 0xbe9   : > { %v2902_v4 = vpop.permute.xlu0 %2901  ;;  %v7065_v11 = vpop.eup %7064 }
 0xbea   : > { %6498 = vmatprep.subr.msk.mxu1 %vm823_vm0, %v2902_v4  ;;  %v2725_v2 = vmul.f32 %v7065_v11, %v8611_v6 }
 0xbeb   : > { %v7067_v31 = vpop.eup %7066  ;;  %v2886_v15 = vpop.permute.xlu1 %2885  ;;  %6499 = vmatpush3.xpose.msk.msra.mxu1 %vm823_vm0, %v2902_v4 }
 0xbec   : > { %6500 = vmatprep.subr.msk.mxu1 %vm823_vm0, %v2900_v38  ;;  %v2724_v10 = vmul.f32 %v7067_v31, %v8613_v19 }
 0xbed   : > { %v2884_v23 = vpop.permute.xlu0 %2883  ;;  %v7069_v1 = vpop.eup %7068 }
 0xbee   : > { %6477 = vmatprep.mubr.msk.f32.mxu1 %vm985_vm1, %v2724_v10  ;;  %v2727_v9 = vmul.f32 %v7069_v1, %v8617_v56 }
 0xbef   : > { %v7071_v25 = vpop.eup %7070  ;;  %v2890_v49 = vpop.permute.xlu1 %2889  ;;  %6478 = vmatmul.mubr.msk.f32.gmra.mxu1 %vm985_vm1, %v2725_v2 }
 0xbf0   : > { %6501 = vmatpush3.xpose.msk.msra.mxu1 %vm823_vm0, %v2900_v38  ;;  %v2726_v52 = vmul.f32 %v7071_v25, %v8621_v13 }
 0xbf1   : > { %v2888_v61 = vpop.permute.xlu0 %2887  ;;  %v7073_v0 = vpop.eup %7072 }
 0xbf2   : > { %6480 = vmatprep.mubr.msk.f32.mxu1 %vm985_vm1, %v2726_v52  ;;  %v2729_v63 = vmul.f32 %v7073_v0, %v8625_v7 }
 0xbf3   : > { %v7075_v19 = vpop.eup %7074  ;;  %v2894_v17 = vpop.permute.xlu1 %2893  ;;  %6481 = vmatmul.mubr.msk.f32.gmra.mxu1 %vm985_vm1, %v2727_v9 }
 0xbf4   : > { %v2728_v6 = vmul.f32 %v7075_v19, %v8629_v12 }
 0xbf5   : > { %v2892_v39 = vpop.permute.xlu0 %2891 }
 0xbf6   : > { %6483 = vmatprep.mubr.msk.f32.mxu1 %vm985_vm1, %v2728_v6 }
 0xbf7   : > { %v2898_v30 = vpop.permute.xlu1 %2897  ;;  %6484 = vmatmul.mubr.msk.f32.gmra.mxu1 %vm985_vm1, %v2729_v63 }
 0xbf8   : > { %6502 = vmatprep.mubr.msk.f32.mxu1 %vm823_vm0, %v2884_v23 }
 0xbf9   : > { %v2896_v56 = vpop.permute.xlu0 %2895 }
 0xbfb   : > { %v3161_v13 = vpop.permute.xlu1 %3160  ;;  %6503 = vmatmul.mubr.msk.f32.vlgmr.msra.gmra.mxu1 %vm823_vm0, %v2886_v15 }
 0xbfc   : > { %6505 = vmatprep.mubr.msk.f32.mxu1 %vm823_vm0, %v2888_v61 }
 0xbfd   : > { %v3163_v22 = vpop.permute.xlu0 %3162 }
 0xbfe   : > { %6514 = vmatprep.subr.mxu0 %v3163_v22 }
 0xbff   : > { %v3159_v18 = vpop.permute.xlu1 %3158  ;;  %6506 = vmatmul.mubr.msk.f32.gmra.mxu1 %vm823_vm0, %v2890_v49  ;;  %6515 = vmatpush3.msra.mxu0 %v3163_v22 }
 0xc00   : > { %6508 = vmatprep.mubr.msk.f32.mxu1 %vm823_vm0, %v2892_v39  ;;  %6516 = vmatprep.subr.mxu0 %v3161_v13 }
 0xc01   : > { %6517 = vmatpush3.msra.mxu0 %v3161_v13  ;;  %v3155_v7 = vpop.permute.xlu0 %3154 }
 0xc02   : > { %6518 = vmatprep.subr.mxu0 %v3159_v18 }
 0xc03   : > { %v3157_v12 = vpop.permute.xlu1 %3156  ;;  %6509 = vmatmul.mubr.msk.f32.gmra.mxu1 %vm823_vm0, %v2894_v17  ;;  %6519 = vmatpush3.msra.mxu0 %v3159_v18 }
 0xc04   : > { %6511 = vmatprep.mubr.msk.f32.mxu1 %vm823_vm0, %v2896_v56  ;;  %6520 = vmatprep.subr.mxu0 %v3157_v12 }
 0xc05   : > { %6521 = vmatpush3.msra.mxu0 %v3157_v12  ;;  %v3151_v55 = vpop.permute.xlu0 %3150 }
 0xc06   : > { %6522 = vmatprep.subr.mxu0 %v3155_v7 }
 0xc07   : > { %v3153_v38 = vpop.permute.xlu1 %3152  ;;  %6512 = vmatmul.mubr.msk.f32.gmra.mxu1 %vm823_vm0, %v2898_v30  ;;  %6523 = vmatpush3.msra.mxu0 %v3155_v7 }
 0xc08   : > { %6524 = vmatprep.subr.mxu0 %v3153_v38 }
 0xc09   : > { %6525 = vmatpush3.msra.mxu0 %v3153_v38  ;;  %v8717_v11 = vpop.permute.xlu0 %3331 }
 0xc0a   : > { %6526 = vmatprep.subr.mxu0 %v3151_v55 }
 0xc0b   : > { %v3149_v4 = vpop.permute.xlu1 %3148  ;;  %6527 = vmatpush3.msra.mxu0 %v3151_v55 }
 0xc0c   : > { %6528 = vmatprep.subr.mxu0 %v3149_v4 }
 0xc0d   : > { %6529 = vmatpush3.msra.mxu0 %v3149_v4 }
 0xc0e   : > { %6542 = vmatprep.subr.msk.mxu0 %vm823_vm0, %v8717_v11 }
 0xc7a   : > { %v8721_v31 = vpop.f32.mrf.mxu1 }
 0xc7c   : > { %v8723_v15 = vpop.f32.mrf.mxu1 }
 0xcaf   : > { %v8727_v23 = vpop.f32.mrf.mxu1 }
 0xcb0   : > { %9982 = vst [vmem:[#allocation32_spill] sm:$0xff] %v8727_v23 }
 0xcb1   : > { %v8729_v2 = vpop.f32.mrf.mxu1 }
 0xcb2   : > { %9983 = vst [vmem:[#allocation33_spill] sm:$0xff] %v8729_v2 }
 0xcb3   : > { %v8733_v25 = vpop.f32.mrf.mxu1 }
 0xcb4   : > { %9984 = vst [vmem:[#allocation34_spill] sm:$0xff] %v8733_v25 }
 0xcb5   : > { %v8735_v49 = vpop.f32.mrf.mxu1 }
 0xcb6   : > { %9985 = vst [vmem:[#allocation35_spill] sm:$0xff] %v8735_v49 }
 0xcb7   : > { %v8739_v61 = vpop.f32.mrf.mxu1 }
 0xcb8   : > { %9986 = vst [vmem:[#allocation36_spill] sm:$0xff] %v8739_v61 }
 0xcb9   : > { %v8741_v9 = vpop.f32.mrf.mxu1 }
 0xcba   : > { %9987 = vst [vmem:[#allocation37_spill] sm:$0xff] %v8741_v9 }
 0xcbb   : > { %v6504_v19 = vpop.f32.mrf.mxu1 }
 0xcbc   : > { %v3053_v17 = vmul.f32 0.25, %v6504_v19 }
 0xcbd   : > { %v3013_v6 = vpop.f32.mrf.mxu1 }
 0xcbe   : > { %v3052_v39 = vmul.f32 0.25, %v3013_v6  ;;  %v3063_v63 = vsel %vm985_vm1, %v3053_v17, -inf }
 0xcbf   : > { %3064 = vmax.xlane.f32.xlu1 %v3063_v63  ;;  %v6507_v30 = vpop.f32.mrf.mxu1 }
 0xcc0   : > { %v3055_v56 = vmul.f32 0.25, %v6507_v30  ;;  %v3060_v13 = vsel %vm985_vm1, %v3052_v39, -inf }
 0xcc1   : > { %3061 = vmax.xlane.f32.xlu0 %v3060_v13  ;;  %v3023_v22 = vpop.f32.mrf.mxu1 }
 0xcc2   : > { %v3054_v7 = vmul.f32 0.25, %v3023_v22  ;;  %v3069_v55 = vsel %vm985_vm1, %v3055_v56, -inf }
 0xcc3   : > { %v6510_v18 = vpop.f32.mrf.mxu1 }
 0xcc4   : > { %v3057_v12 = vmul.f32 0.25, %v6510_v18  ;;  %v3066_v63 = vsel %vm985_vm1, %v3054_v7, -inf }
 0xcc5   : > { %3070 = vmax.xlane.f32.xlu0 %v3069_v55  ;;  %v3033_v38 = vpop.f32.mrf.mxu1  ;;  %v8757_v55 = vpop.permute.xlu1 %3329 }
 0xcc6   : > { %v3075_v4 = vsel %vm985_vm1, %v3057_v12, -inf  ;;  %v3056_v6 = vmul.f32 0.25, %v3033_v38 }
 0xcc7   : > { %3076 = vmax.xlane.f32.xlu1 %v3075_v4  ;;  %v6513_v19 = vpop.f32.mrf.mxu1 }
 0xcc8   : > { %v3059_v0 = vmul.f32 0.25, %v6513_v19  ;;  %v3072_v22 = vsel %vm985_vm1, %v3056_v6, -inf }
 0xcc9   : > { %3067 = vmax.xlane.f32.xlu0 %v3066_v63  ;;  %v3043_v30 = vpop.f32.mrf.mxu1 }
 0xcca   : > { %v3081_v13 = vsel %vm985_vm1, %v3059_v0, -inf  ;;  %v3058_v52 = vmul.f32 0.25, %v3043_v30 }
 0xccb   : > { %3082 = vmax.xlane.f32.xlu1 %v3081_v13 }
 0xccc   : > { %v3078_v18 = vsel %vm985_vm1, %v3058_v52, -inf }
 0xccd   : > { %3073 = vmax.xlane.f32.xlu0 %v3072_v22 }
 0xcd1   : > { %3079 = vmax.xlane.f32.xlu0 %v3078_v18 }
 0xcdc   : > { %3325 = vrot.lane.b32.xlu1 %v7750_v42, %s9947_s26 }
 0xce7   : > { %3327 = vrot.lane.b32.xlu0 %v7762_v45, %s9947_s26 }
 0xd48   : > { %v3065_v38 = vpop.xlane.xlu1 %3064 }
 0xd49   : > { %v3085_v4 = vsub.f32 %v3053_v17, %v3065_v38 }
 0xd4a   : > { %v3062_v19 = vpop.xlane.xlu0 %3061 }
 0xd4b   : > { %v3094_v63 = vmul.f32 1.442695, %v3085_v4  ;;  %v3084_v13 = vsub.f32 %v3052_v39, %v3062_v19 }
 0xd4d   : > { %7076 = vpow2.f32 %v3094_v63  ;;  %v3092_v30 = vmul.f32 1.442695, %v3084_v13 }
 0xd4e   : > { %v3071_v9 = vpop.xlane.xlu0 %3070 }
 0xd4f   : > { %7078 = vpow2.f32 %v3092_v30  ;;  %v3087_v38 = vsub.f32 %v3055_v56, %v3071_v9 }
 0xd50   : > { %v3077_v39 = vpop.xlane.xlu1 %3076 }
 0xd51   : > { %v3098_v63 = vmul.f32 1.442695, %v3087_v38  ;;  %v3089_v13 = vsub.f32 %v3057_v12, %v3077_v39 }
 0xd52   : > { %v3068_v17 = vpop.xlane.xlu0 %3067 }
 0xd53   : > { %v3086_v19 = vsub.f32 %v3054_v7, %v3068_v17  ;;  %7080 = vpow2.f32 %v3098_v63 }
 0xd54   : > { %v3083_v30 = vpop.xlane.xlu1 %3082 }
 0xd55   : > { %v3091_v25 = vsub.f32 %v3059_v0, %v3083_v30 }
 0xd56   : > { %v3074_v4 = vpop.xlane.xlu0 %3073 }
 0xd57   : > { %v3088_v61 = vsub.f32 %v3056_v6, %v3074_v4  ;;  %v3106_v58 = vmul.f32 1.442695, %v3091_v25 }
 0xd58   : > { %v3326_v0 = vpop.permute.xlu1 %3325 }
 0xd59   : > { %v3100_v2 = vmul.f32 1.442695, %v3088_v61 }
 0xd5a   : > { %v8759_v22 = vpop.eup %7076  ;;  %v3080_v49 = vpop.xlane.xlu0 %3079 }
 0xd5b   : > { %v3111_v18 = vsel %vm985_vm1, %v8759_v22, 0.0  ;;  %v3090_v23 = vsub.f32 %v3058_v52, %v3080_v49 }
 0xd5c   : > { %v8763_v1 = vpop.eup %7078  ;;  %3112 = vadd.xlane.f32.xlu1 %v3111_v18  ;;  %v3096_v18 = vmul.f32 1.442695, %v3086_v19 }
 0xd5d   : > { %v3108_v10 = vsel %vm985_vm1, %v8763_v1, 0.0  ;;  %v3104_v60 = vmul.f32 1.442695, %v3090_v23 }
 0xd5e   : > { %3109 = vadd.xlane.f32.xlu0 %v3108_v10  ;;  %v3102_v10 = vmul.f32 1.442695, %v3089_v13  ;;  %7082 = vpow2.f32 %v3096_v18  ;;  %v3328_v6 = vpop.permute.xlu0 %3327 }
 0xd60   : > { %7084 = vpow2.f32 %v3102_v10  ;;  %v8771_v9 = vpop.eup %7080 }
 0xd61   : > { %7086 = vpow2.f32 %v3100_v2  ;;  %v3117_v7 = vsel %vm985_vm1, %v8771_v9, 0.0 }
 0xd62   : > { %7088 = vpow2.f32 %v3106_v58 }
 0xd63   : > { %7090 = vpow2.f32 %v3104_v60 }
 0xd6b   : > { %v8773_v56 = vpop.eup %7082 }
 0xd6c   : > { %v3114_v61 = vsel %vm985_vm1, %v8773_v56, 0.0 }
 0xd6d   : > { %3321 = vrot.lane.b32.xlu1 %v7729_v32, %s9947_s26  ;;  %v8777_v12 = vpop.eup %7084 }
 0xd6e   : > { %v8781_v49 = vpop.eup %7086  ;;  %v3123_v58 = vsel %vm985_vm1, %v8777_v12, 0.0 }
 0xd6f   : > { %v8785_v60 = vpop.eup %7088  ;;  %v3120_v23 = vsel %vm985_vm1, %v8781_v49, 0.0 }
 0xd70   : > { %v8789_v2 = vpop.eup %7090  ;;  %v3129_v25 = vsel %vm985_vm1, %v8785_v60, 0.0 }
 0xd71   : > { %v3126_v52 = vsel %vm985_vm1, %v8789_v2, 0.0 }
 0xd74   : > { %3323 = vrot.lane.b32.xlu0 %v7739_v36, %s9947_s26 }
 0xd91   : > { %3118 = vadd.xlane.f32.xlu1 %v3117_v7 }
 0xd93   : > { %3115 = vadd.xlane.f32.xlu0 %v3114_v61 }
 0xd95   : > { %3124 = vadd.xlane.f32.xlu1 %v3123_v58 }
 0xd97   : > { %3121 = vadd.xlane.f32.xlu0 %v3120_v23 }
 0xd99   : > { %3130 = vadd.xlane.f32.xlu1 %v3129_v25 }
 0xd9b   : > { %3127 = vadd.xlane.f32.xlu0 %v3126_v52 }
 0xdaa   : > { %3317 = vrot.lane.b32.xlu1 %v7713_v47, %s9947_s26 }
 0xdae   : > { %3303 = vrot.lane.b32.xlu1 %v7715_v21, %s9947_s26 }
 0xdb1   : > { %3319 = vrot.lane.b32.xlu0 %v7719_v26, %s9947_s26 }
 0xdb2   : > { %3307 = vrot.lane.b32.xlu1 %v7735_v34, %s9947_s26 }
 0xdb5   : > { %3301 = vrot.lane.b32.xlu0 %v7709_v46, %s9947_s26 }
 0xdb6   : > { %3311 = vrot.lane.b32.xlu1 %v7758_v44, %s9947_s26 }
 0xdb9   : > { %3305 = vrot.lane.b32.xlu0 %v7725_v28, %s9947_s26 }
 0xdba   : > { %3315 = vrot.lane.b32.xlu1 %v7778_v50, %s9947_s26 }
 0xdbd   : > { %3309 = vrot.lane.b32.xlu0 %v7745_v40, %s9947_s26 }
 0xdbe   : > { %3578 = vrot.lane.b32.xlu1 %v7752_v43, %s9947_s26 }
 0xdc1   : > { %3313 = vrot.lane.b32.xlu0 %v7768_v48, %s9947_s26 }
 0xdc2   : > { %3576 = vrot.lane.b32.xlu1 %v7737_v35, %s9947_s26 }
 0xdc5   : > { %3580 = vrot.lane.b32.xlu0 %v7747_v41, %s9947_s26 }
 0xdc6   : > { %3574 = vrot.lane.b32.xlu1 %v7741_v37, %s9947_s26 }
 0xdc9   : > { %3572 = vrot.lane.b32.xlu0 %v7727_v29, %s9947_s26 }
 0xdca   : > { %3570 = vrot.lane.b32.xlu1 %v7731_v33, %s9947_s26 }
 0xdcd   : > { %3568 = vrot.lane.b32.xlu0 %v7717_v24, %s9947_s26 }
 0xdce   : > { %3566 = vrot.lane.b32.xlu1 %v7721_v27, %s9947_s26 }
 0xdd1   : > { %3749 = vrot.lane.b32.xlu0 %v9976_v62, %s9948_s28 }
 0xdd2   : > { %3747 = vrot.lane.b32.xlu1 %v9977_v51, %s9948_s28 }
 0xde5   : > { %v3113_v17 = vpop.xlane.xlu1 %3112 }
 0xde6   : > { %7092 = vrcp.f32 %v3113_v17 }
 0xde7   : > { %v3110_v39 = vpop.xlane.xlu0 %3109 }
 0xde8   : > { %7094 = vrcp.f32 %v3110_v39 }
 0xde9   : > { %v3322_v51 = vpop.permute.xlu1 %3321 }
 0xdeb   : > { %v3324_v62 = vpop.permute.xlu0 %3323 }
 0xdf3   : > { %v7093_v38 = vpop.eup %7092 }
 0xdf4   : > { %v3141_v63 = vmul.f32 %v7093_v38, %v8759_v22 }
 0xdf5   : > { %v7095_v4 = vpop.eup %7094 }
 0xdf6   : > { %v3140_v19 = vmul.f32 %v7095_v4, %v8763_v1 }
 0xdf8   : > { %6530 = vmatprep.mubr.msk.f32.mxu0 %vm985_vm1, %v3140_v19 }
 0xdf9   : > { %6531 = vmatmul.mubr.msk.f32.vlgmr.msra.gmra.mxu0 %vm985_vm1, %v3141_v63 }
 0xdfa   : > { %6543 = vmatpush3.xpose.msk.msra.mxu0 %vm823_vm0, %v8717_v11 }
 0xdfb   : > { %6544 = vmatprep.subr.msk.mxu0 %vm823_vm0, %v8757_v55 }
 0xdfe   : > { %6545 = vmatpush3.xpose.msk.msra.mxu0 %vm823_vm0, %v8757_v55 }
 0xdff   : > { %6546 = vmatprep.subr.msk.mxu0 %vm823_vm0, %v3328_v6 }
 0xe02   : > { %6547 = vmatpush3.xpose.msk.msra.mxu0 %vm823_vm0, %v3328_v6 }
 0xe03   : > { %6548 = vmatprep.subr.msk.mxu0 %vm823_vm0, %v3326_v0 }
 0xe06   : > { %6549 = vmatpush3.xpose.msk.msra.mxu0 %vm823_vm0, %v3326_v0 }
 0xe07   : > { %6550 = vmatprep.subr.msk.mxu0 %vm823_vm0, %v3324_v62 }
 0xe0a   : > { %6551 = vmatpush3.xpose.msk.msra.mxu0 %vm823_vm0, %v3324_v62 }
 0xe0b   : > { %6552 = vmatprep.subr.msk.mxu0 %vm823_vm0, %v3322_v51 }
 0xe0e   : > { %6553 = vmatpush3.xpose.msk.msra.mxu0 %vm823_vm0, %v3322_v51 }
 0xe1a   : > { %v3119_v11 = vpop.xlane.xlu1 %3118 }
 0xe1b   : > { %7096 = vrcp.f32 %v3119_v11 }
 0xe1c   : > { %v3116_v1 = vpop.xlane.xlu0 %3115 }
 0xe1d   : > { %7098 = vrcp.f32 %v3116_v1 }
 0xe1e   : > { %v3125_v55 = vpop.xlane.xlu1 %3124 }
 0xe1f   : > { %7100 = vrcp.f32 %v3125_v55 }
 0xe20   : > { %v3122_v22 = vpop.xlane.xlu0 %3121 }
 0xe21   : > { %7102 = vrcp.f32 %v3122_v22 }
 0xe22   : > { %v3131_v13 = vpop.xlane.xlu1 %3130 }
 0xe23   : > { %7104 = vrcp.f32 %v3131_v13 }
 0xe24   : > { %v3128_v30 = vpop.xlane.xlu0 %3127 }
 0xe25   : > { %7106 = vrcp.f32 %v3128_v30 }
 0xe26   : > { %v3318_v18 = vpop.permute.xlu1 %3317 }
 0xe28   : > { %v3320_v10 = vpop.permute.xlu0 %3319  ;;  %v7097_v7 = vpop.eup %7096 }
 0xe29   : > { %6554 = vmatprep.subr.msk.mxu0 %vm823_vm0, %v3320_v10  ;;  %v3143_v52 = vmul.f32 %v7097_v7, %v8771_v9 }
 0xe2a   : > { %v7099_v61 = vpop.eup %7098  ;;  %v3304_v58 = vpop.permute.xlu1 %3303  ;;  %6555 = vmatpush3.xpose.msk.msra.mxu0 %vm823_vm0, %v3320_v10 }
 0xe2b   : > { %6556 = vmatprep.subr.msk.mxu0 %vm823_vm0, %v3318_v18  ;;  %v3142_v23 = vmul.f32 %v7099_v61, %v8773_v56 }
 0xe2c   : > { %v3302_v25 = vpop.permute.xlu0 %3301  ;;  %v7101_v0 = vpop.eup %7100 }
 0xe2d   : > { %6533 = vmatprep.mubr.msk.f32.mxu0 %vm985_vm1, %v3142_v23  ;;  %v3145_v4 = vmul.f32 %v7101_v0, %v8777_v12 }
 0xe2e   : > { %v7103_v6 = vpop.eup %7102  ;;  %v3308_v17 = vpop.permute.xlu1 %3307  ;;  %6534 = vmatmul.mubr.msk.f32.gmra.mxu0 %vm985_vm1, %v3143_v52 }
 0xe2f   : > { %6557 = vmatpush3.xpose.msk.msra.mxu0 %vm823_vm0, %v3318_v18  ;;  %v3144_v39 = vmul.f32 %v7103_v6, %v8781_v49 }
 0xe30   : > { %v3306_v38 = vpop.permute.xlu0 %3305  ;;  %v7105_v19 = vpop.eup %7104 }
 0xe31   : > { %6536 = vmatprep.mubr.msk.f32.mxu0 %vm985_vm1, %v3144_v39  ;;  %v3147_v51 = vmul.f32 %v7105_v19, %v8785_v60 }
 0xe32   : > { %v7107_v56 = vpop.eup %7106  ;;  %v3312_v63 = vpop.permute.xlu1 %3311  ;;  %6537 = vmatmul.mubr.msk.f32.gmra.mxu0 %vm985_vm1, %v3145_v4 }
 0xe33   : > { %v3146_v9 = vmul.f32 %v7107_v56, %v8789_v2 }
 0xe34   : > { %v3310_v62 = vpop.permute.xlu0 %3309 }
 0xe35   : > { %6539 = vmatprep.mubr.msk.f32.mxu0 %vm985_vm1, %v3146_v9 }
 0xe36   : > { %v3316_v11 = vpop.permute.xlu1 %3315  ;;  %6540 = vmatmul.mubr.msk.f32.gmra.mxu0 %vm985_vm1, %v3147_v51 }
 0xe37   : > { %6558 = vmatprep.mubr.msk.f32.mxu0 %vm823_vm0, %v3302_v25 }
 0xe38   : > { %v3314_v12 = vpop.permute.xlu0 %3313 }
 0xe3a   : > { %v3579_v49 = vpop.permute.xlu1 %3578  ;;  %6559 = vmatmul.mubr.msk.f32.vlgmr.msra.gmra.mxu0 %vm823_vm0, %v3304_v58 }
 0xe3b   : > { %6561 = vmatprep.mubr.msk.f32.mxu0 %vm823_vm0, %v3306_v38 }
 0xe3c   : > { %v3581_v1 = vpop.permute.xlu0 %3580 }
 0xe3d   : > { %6570 = vmatprep.subr.mxu1 %v3581_v1 }
 0xe3e   : > { %v3577_v55 = vpop.permute.xlu1 %3576  ;;  %6562 = vmatmul.mubr.msk.f32.gmra.mxu0 %vm823_vm0, %v3308_v17  ;;  %6571 = vmatpush3.msra.mxu1 %v3581_v1 }
 0xe3f   : > { %6564 = vmatprep.mubr.msk.f32.mxu0 %vm823_vm0, %v3310_v62  ;;  %6572 = vmatprep.subr.mxu1 %v3579_v49 }
 0xe40   : > { %6573 = vmatpush3.msra.mxu1 %v3579_v49  ;;  %v3573_v60 = vpop.permute.xlu0 %3572 }
 0xe41   : > { %6574 = vmatprep.subr.mxu1 %v3577_v55 }
 0xe42   : > { %v3575_v2 = vpop.permute.xlu1 %3574  ;;  %6565 = vmatmul.mubr.msk.f32.gmra.mxu0 %vm823_vm0, %v3312_v63  ;;  %6575 = vmatpush3.msra.mxu1 %v3577_v55 }
 0xe43   : > { %6567 = vmatprep.mubr.msk.f32.mxu0 %vm823_vm0, %v3314_v12  ;;  %6576 = vmatprep.subr.mxu1 %v3575_v2 }
 0xe44   : > { %6577 = vmatpush3.msra.mxu1 %v3575_v2  ;;  %v3569_v22 = vpop.permute.xlu0 %3568 }
 0xe45   : > { %6578 = vmatprep.subr.mxu1 %v3573_v60 }
 0xe46   : > { %v3571_v13 = vpop.permute.xlu1 %3570  ;;  %6568 = vmatmul.mubr.msk.f32.gmra.mxu0 %vm823_vm0, %v3316_v11  ;;  %6579 = vmatpush3.msra.mxu1 %v3573_v60 }
 0xe47   : > { %6580 = vmatprep.subr.mxu1 %v3571_v13 }
 0xe48   : > { %6581 = vmatpush3.msra.mxu1 %v3571_v13  ;;  %v8877_v18 = vpop.permute.xlu0 %3749 }
 0xe49   : > { %6582 = vmatprep.subr.mxu1 %v3569_v22 }
 0xe4a   : > { %v3567_v30 = vpop.permute.xlu1 %3566  ;;  %6583 = vmatpush3.msra.mxu1 %v3569_v22 }
 0xe4b   : > { %6584 = vmatprep.subr.mxu1 %v3567_v30 }
 0xe4c   : > { %6585 = vmatpush3.msra.mxu1 %v3567_v30 }
 0xe4d   : > { %6598 = vmatprep.subr.msk.mxu1 %vm823_vm0, %v8877_v18 }
 0xeb9   : > { %v8881_v10 = vpop.f32.mrf.mxu0 }
 0xebb   : > { %v8883_v7 = vpop.f32.mrf.mxu0 }
 0xeee   : > { %v8887_v58 = vpop.f32.mrf.mxu0 }
 0xef0   : > { %v8889_v23 = vpop.f32.mrf.mxu0 }
 0xef2   : > { %v8893_v52 = vpop.f32.mrf.mxu0 }
 0xef4   : > { %v8895_v0 = vpop.f32.mrf.mxu0 }
 0xef6   : > { %v8899_v17 = vpop.f32.mrf.mxu0 }
 0xef7   : > { %9988 = vst [vmem:[#allocation38_spill] sm:$0xff] %v8899_v17 }
 0xef8   : > { %v8901_v39 = vpop.f32.mrf.mxu0 }
 0xef9   : > { %9989 = vst [vmem:[#allocation39_spill] sm:$0xff] %v8901_v39 }
 0xefa   : > { %v6560_v4 = vpop.f32.mrf.mxu0 }
 0xefb   : > { %v3471_v19 = vmul.f32 0.25, %v6560_v4 }
 0xefc   : > { %v3431_v56 = vpop.f32.mrf.mxu0 }
 0xefd   : > { %v3470_v63 = vmul.f32 0.25, %v3431_v56  ;;  %v3481_v9 = vsel %vm985_vm1, %v3471_v19, -inf }
 0xefe   : > { %3482 = vmax.xlane.f32.xlu1 %v3481_v9  ;;  %v6563_v62 = vpop.f32.mrf.mxu0 }
 0xeff   : > { %v3473_v51 = vmul.f32 0.25, %v6563_v62  ;;  %v3478_v11 = vsel %vm985_vm1, %v3470_v63, -inf }
 0xf00   : > { %3479 = vmax.xlane.f32.xlu0 %v3478_v11  ;;  %v3441_v12 = vpop.f32.mrf.mxu0 }
 0xf01   : > { %v3472_v1 = vmul.f32 0.25, %v3441_v12  ;;  %v3487_v60 = vsel %vm985_vm1, %v3473_v51, -inf }
 0xf02   : > { %v6566_v49 = vpop.f32.mrf.mxu0 }
 0xf03   : > { %v3475_v55 = vmul.f32 0.25, %v6566_v49  ;;  %v3484_v56 = vsel %vm985_vm1, %v3472_v1, -inf }
 0xf04   : > { %3488 = vmax.xlane.f32.xlu0 %v3487_v60  ;;  %v3451_v2 = vpop.f32.mrf.mxu0  ;;  %v8917_v60 = vpop.permute.xlu1 %3747 }
 0xf05   : > { %v3493_v22 = vsel %vm985_vm1, %v3475_v55, -inf  ;;  %v3474_v30 = vmul.f32 0.25, %v3451_v2 }
 0xf06   : > { %3494 = vmax.xlane.f32.xlu1 %v3493_v22  ;;  %v6569_v13 = vpop.f32.mrf.mxu0 }
 0xf07   : > { %v3477_v4 = vmul.f32 0.25, %v6569_v13  ;;  %v3490_v12 = vsel %vm985_vm1, %v3474_v30, -inf }
 0xf08   : > { %3485 = vmax.xlane.f32.xlu0 %v3484_v56  ;;  %v3461_v9 = vpop.f32.mrf.mxu0 }
 0xf09   : > { %v3499_v62 = vsel %vm985_vm1, %v3477_v4, -inf  ;;  %v3476_v11 = vmul.f32 0.25, %v3461_v9 }
 0xf0a   : > { %3500 = vmax.xlane.f32.xlu1 %v3499_v62 }
 0xf0b   : > { %v3496_v49 = vsel %vm985_vm1, %v3476_v11, -inf }
 0xf0c   : > { %3491 = vmax.xlane.f32.xlu0 %v3490_v12 }
 0xf10   : > { %3497 = vmax.xlane.f32.xlu0 %v3496_v49 }
 0xf1b   : > { %3743 = vrot.lane.b32.xlu1 %v7750_v42, %s9948_s28 }
 0xf26   : > { %3745 = vrot.lane.b32.xlu0 %v7762_v45, %s9948_s28 }
 0xf87   : > { %v3483_v2 = vpop.xlane.xlu1 %3482 }
 0xf88   : > { %v3503_v22 = vsub.f32 %v3471_v19, %v3483_v2 }
 0xf89   : > { %v3480_v13 = vpop.xlane.xlu0 %3479 }
 0xf8a   : > { %v3512_v56 = vmul.f32 1.442695, %v3503_v22  ;;  %v3502_v62 = vsub.f32 %v3470_v63, %v3480_v13 }
 0xf8c   : > { %7108 = vpow2.f32 %v3512_v56  ;;  %v3510_v9 = vmul.f32 1.442695, %v3502_v62 }
 0xf8d   : > { %v3489_v45 = vpop.xlane.xlu0 %3488 }
 0xf8e   : > { %7110 = vpow2.f32 %v3510_v9  ;;  %v3505_v2 = vsub.f32 %v3473_v51, %v3489_v45 }
 0xf8f   : > { %v3495_v63 = vpop.xlane.xlu1 %3494 }
 0xf90   : > { %v3516_v56 = vmul.f32 1.442695, %v3505_v2  ;;  %v3507_v62 = vsub.f32 %v3475_v55, %v3495_v63 }
 0xf91   : > { %v3486_v19 = vpop.xlane.xlu0 %3485 }
 0xf92   : > { %v3504_v13 = vsub.f32 %v3472_v1, %v3486_v19  ;;  %7112 = vpow2.f32 %v3516_v56 }
 0xf93   : > { %v3501_v9 = vpop.xlane.xlu1 %3500 }
 0xf94   : > { %v3509_v61 = vsub.f32 %v3477_v4, %v3501_v9 }
 0xf95   : > { %v3492_v22 = vpop.xlane.xlu0 %3491 }
 0xf96   : > { %v3506_v6 = vsub.f32 %v3474_v30, %v3492_v22  ;;  %v3524_v17 = vmul.f32 1.442695, %v3509_v61 }
 0xf98   : > { %v3518_v39 = vmul.f32 1.442695, %v3506_v6 }
 0xf99   : > { %v8919_v12 = vpop.eup %7108  ;;  %v3498_v25 = vpop.xlane.xlu0 %3497 }
 0xf9a   : > { %v3529_v49 = vsel %vm985_vm1, %v8919_v12, 0.0 }
 0xf9b   : > { %v8923_v38 = vpop.eup %7110  ;;  %3530 = vadd.xlane.f32.xlu1 %v3529_v49  ;;  %v3514_v49 = vmul.f32 1.442695, %v3504_v13 }
 0xf9c   : > { %v3526_v42 = vsel %vm985_vm1, %v8923_v38, 0.0 }
 0xf9d   : > { %3527 = vadd.xlane.f32.xlu0 %v3526_v42  ;;  %v3520_v42 = vmul.f32 1.442695, %v3507_v62  ;;  %7114 = vpow2.f32 %v3514_v49 }
 0xf9f   : > { %7116 = vpow2.f32 %v3520_v42  ;;  %v8931_v51 = vpop.eup %7112 }
 0xfa0   : > { %7118 = vpow2.f32 %v3518_v39  ;;  %v3535_v55 = vsel %vm985_vm1, %v8931_v51, 0.0 }
 0xfa1   : > { %7120 = vpow2.f32 %v3524_v17 }
 0xfaa   : > { %v8933_v1 = vpop.eup %7114 }
 0xfab   : > { %v3532_v6 = vsel %vm985_vm1, %v8933_v1, 0.0 }
 0xfac   : > { %3739 = vrot.lane.b32.xlu1 %v7729_v32, %s9948_s28  ;;  %v3508_v32 = vsub.f32 %v3476_v11, %v3498_v25  ;;  %v8937_v30 = vpop.eup %7116 }
 0xfad   : > { %v8941_v25 = vpop.eup %7118  ;;  %v3541_v61 = vsel %vm985_vm1, %v8937_v30, 0.0 }
 0xfae   : > { %v8945_v17 = vpop.eup %7120  ;;  %v3538_v39 = vsel %vm985_vm1, %v8941_v25, 0.0 }
 0xfaf   : > { %v3547_v11 = vsel %vm985_vm1, %v8945_v17, 0.0 }
 0xfb3   : > { %3741 = vrot.lane.b32.xlu0 %v7739_v36, %s9948_s28  ;;  %v3522_v36 = vmul.f32 1.442695, %v3508_v32 }
 0xfb5   : > { %7122 = vpow2.f32 %v3522_v36 }
 0xfc2   : > { %v8949_v4 = vpop.eup %7122 }
 0xfc3   : > { %v3544_v45 = vsel %vm985_vm1, %v8949_v4, 0.0 }
 0xfd0   : > { %3536 = vadd.xlane.f32.xlu1 %v3535_v55 }
 0xfd2   : > { %3533 = vadd.xlane.f32.xlu0 %v3532_v6 }
 0xfd4   : > { %3542 = vadd.xlane.f32.xlu1 %v3541_v61 }
 0xfd6   : > { %3539 = vadd.xlane.f32.xlu0 %v3538_v39 }
 0xfd8   : > { %3548 = vadd.xlane.f32.xlu1 %v3547_v11 }
 0xfda   : > { %3545 = vadd.xlane.f32.xlu0 %v3544_v45 }
 0xfe9   : > { %3735 = vrot.lane.b32.xlu1 %v7713_v47, %s9948_s28  ;;  %v3744_v47 = vpop.permute.xlu1 %3743 }
 0xfed   : > { %3721 = vrot.lane.b32.xlu1 %v7715_v21, %s9948_s28  ;;  %v3746_v21 = vpop.permute.xlu0 %3745 }
 0xff0   : > { %3737 = vrot.lane.b32.xlu0 %v7719_v26, %s9948_s28 }
 0xff1   : > { %3725 = vrot.lane.b32.xlu1 %v7735_v34, %s9948_s28 }
 0xff4   : > { %3719 = vrot.lane.b32.xlu0 %v7709_v46, %s9948_s28 }
 0xff5   : > { %3729 = vrot.lane.b32.xlu1 %v7758_v44, %s9948_s28 }
 0xff8   : > { %3723 = vrot.lane.b32.xlu0 %v7725_v28, %s9948_s28 }
 0xff9   : > { %3733 = vrot.lane.b32.xlu1 %v7778_v50, %s9948_s28 }
 0xffc   : > { %3727 = vrot.lane.b32.xlu0 %v7745_v40, %s9948_s28 }
0x1000   : > { %3731 = vrot.lane.b32.xlu0 %v7768_v48, %s9948_s28 }
0x1024   : > { %v3531_v26 = vpop.xlane.xlu1 %3530 }
0x1025   : > { %7124 = vrcp.f32 %v3531_v26 }
0x1026   : > { %v3528_v46 = vpop.xlane.xlu0 %3527 }
0x1027   : > { %7126 = vrcp.f32 %v3528_v46 }
0x1028   : > { %v3740_v48 = vpop.permute.xlu1 %3739 }
0x102a   : > { %v3742_v40 = vpop.permute.xlu0 %3741 }
0x1032   : > { %v7125_v34 = vpop.eup %7124 }
0x1033   : > { %v3559_v28 = vmul.f32 %v7125_v34, %v8919_v12 }
0x1034   : > { %v7127_v44 = vpop.eup %7126 }
0x1035   : > { %v3558_v19 = vmul.f32 %v7127_v44, %v8923_v38 }
0x1037   : > { %6586 = vmatprep.mubr.msk.f32.mxu1 %vm985_vm1, %v3558_v19 }
0x1038   : > { %6587 = vmatmul.mubr.msk.f32.vlgmr.msra.gmra.mxu1 %vm985_vm1, %v3559_v28 }
0x1039   : > { %6599 = vmatpush3.xpose.msk.msra.mxu1 %vm823_vm0, %v8877_v18 }
0x103a   : > { %6600 = vmatprep.subr.msk.mxu1 %vm823_vm0, %v8917_v60 }
0x103d   : > { %6601 = vmatpush3.xpose.msk.msra.mxu1 %vm823_vm0, %v8917_v60 }
0x103e   : > { %6602 = vmatprep.subr.msk.mxu1 %vm823_vm0, %v3746_v21 }
0x1041   : > { %6603 = vmatpush3.xpose.msk.msra.mxu1 %vm823_vm0, %v3746_v21 }
0x1042   : > { %6604 = vmatprep.subr.msk.mxu1 %vm823_vm0, %v3744_v47 }
0x1045   : > { %6605 = vmatpush3.xpose.msk.msra.mxu1 %vm823_vm0, %v3744_v47  ;;  %v9990_v47 = vmov 0.0  }
0x1046   : > { %6606 = vmatprep.subr.msk.mxu1 %vm823_vm0, %v3742_v40 }
0x1049   : > { %6607 = vmatpush3.xpose.msk.msra.mxu1 %vm823_vm0, %v3742_v40 }
0x104a   : > { %6608 = vmatprep.subr.msk.mxu1 %vm823_vm0, %v3740_v48 }
0x104d   : > { %6609 = vmatpush3.xpose.msk.msra.mxu1 %vm823_vm0, %v3740_v48 }
0x1059   : > { %v3537_v50 = vpop.xlane.xlu1 %3536 }
0x105a   : > { %7128 = vrcp.f32 %v3537_v50 }
0x105b   : > { %v3534_v18 = vpop.xlane.xlu0 %3533 }
0x105c   : > { %7130 = vrcp.f32 %v3534_v18 }
0x105d   : > { %v3543_v38 = vpop.xlane.xlu1 %3542 }
0x105e   : > { %7132 = vrcp.f32 %v3543_v38 }
0x105f   : > { %v3540_v60 = vpop.xlane.xlu0 %3539 }
0x1060   : > { %7134 = vrcp.f32 %v3540_v60 }
0x1061   : > { %v3549_v12 = vpop.xlane.xlu1 %3548 }
0x1062   : > { %7136 = vrcp.f32 %v3549_v12 }
0x1063   : > { %v3546_v63 = vpop.xlane.xlu0 %3545 }
0x1064   : > { %7138 = vrcp.f32 %v3546_v63 }
0x1065   : > { %v3736_v56 = vpop.permute.xlu1 %3735 }
0x1067   : > { %v3738_v2 = vpop.permute.xlu0 %3737  ;;  %v7129_v22 = vpop.eup %7128 }
0x1068   : > { %6610 = vmatprep.subr.msk.mxu1 %vm823_vm0, %v3738_v2  ;;  %v3561_v9 = vmul.f32 %v7129_v22, %v8931_v51 }
0x1069   : > { %v7131_v13 = vpop.eup %7130  ;;  %6611 = vmatpush3.xpose.msk.msra.mxu1 %vm823_vm0, %v3738_v2  ;;  %v3722_v51 = vpop.permute.xlu1 %3721 }
0x106a   : > { %6612 = vmatprep.subr.msk.mxu1 %vm823_vm0, %v3736_v56  ;;  %v3560_v62 = vmul.f32 %v7131_v13, %v8933_v1 }
0x106b   : > { %v7133_v49 = vpop.eup %7132  ;;  %v3720_v36 = vpop.permute.xlu0 %3719 }
0x106c   : > { %6589 = vmatprep.mubr.msk.f32.mxu1 %vm985_vm1, %v3560_v62  ;;  %v3563_v55 = vmul.f32 %v7133_v49, %v8937_v30 }
0x106d   : > { %v7135_v42 = vpop.eup %7134  ;;  %6590 = vmatmul.mubr.msk.f32.gmra.mxu1 %vm985_vm1, %v3561_v9 }
0x106e   : > { %6613 = vmatpush3.xpose.msk.msra.mxu1 %vm823_vm0, %v3736_v56  ;;  %v3562_v32 = vmul.f32 %v7135_v42, %v8941_v25  ;;  %v3726_v25 = vpop.permute.xlu1 %3725 }
0x106f   : > { %v7137_v6 = vpop.eup %7136  ;;  %v3724_v11 = vpop.permute.xlu0 %3723 }
0x1070   : > { %6592 = vmatprep.mubr.msk.f32.mxu1 %vm985_vm1, %v3562_v32  ;;  %v3565_v39 = vmul.f32 %v7137_v6, %v8945_v17 }
0x1071   : > { %v7139_v61 = vpop.eup %7138  ;;  %6593 = vmatmul.mubr.msk.f32.gmra.mxu1 %vm985_vm1, %v3563_v55 }
0x1072   : > { %v3564_v1 = vmul.f32 %v7139_v61, %v8949_v4  ;;  %v3730_v45 = vpop.permute.xlu1 %3729 }
0x1073   : > { %v3728_v30 = vpop.permute.xlu0 %3727 }
0x1074   : > { %6595 = vmatprep.mubr.msk.f32.mxu1 %vm985_vm1, %v3564_v1 }
0x1075   : > { %6596 = vmatmul.mubr.msk.f32.gmra.mxu1 %vm985_vm1, %v3565_v39 }
0x1076   : > { %6614 = vmatprep.mubr.msk.f32.mxu1 %vm823_vm0, %v3720_v36  ;;  %v3734_v17 = vpop.permute.xlu1 %3733 }
0x1077   : > { %v3732_v4 = vpop.permute.xlu0 %3731 }
0x1079   : > { %6615 = vmatmul.mubr.msk.f32.vlgmr.msra.gmra.mxu1 %vm823_vm0, %v3722_v51 }
0x107a   : > { %6617 = vmatprep.mubr.msk.f32.mxu1 %vm823_vm0, %v3724_v11 }
0x107d   : > { %6618 = vmatmul.mubr.msk.f32.gmra.mxu1 %vm823_vm0, %v3726_v25 }
0x107e   : > { %6620 = vmatprep.mubr.msk.f32.mxu1 %vm823_vm0, %v3728_v30 }
0x1081   : > { %6621 = vmatmul.mubr.msk.f32.gmra.mxu1 %vm823_vm0, %v3730_v45 }
0x1082   : > { %6623 = vmatprep.mubr.msk.f32.mxu1 %vm823_vm0, %v3732_v4 }
0x1085   : > { %6624 = vmatmul.mubr.msk.f32.gmra.mxu1 %vm823_vm0, %v3734_v17 }
0x1086   : > { %4826 = vmatprep.mubr.f32.mxu1 %v9990_v47 }
0x10f8   : > { %v9018_v21 = vpop.f32.mrf.mxu1 }
0x10fa   : > { %v9020_v26 = vpop.f32.mrf.mxu1 }
0x10fb   : > { %v6785_v46 = vpack.i.bf16 %v9018_v21, %v9020_v26  ;;  %v10012_v21 = vld [vmem:[#allocation21_spill] sm:$0xff] }
0x112d   : > { %v9024_v34 = vpop.f32.mrf.mxu1 }
0x112f   : > { %v9026_v44 = vpop.f32.mrf.mxu1 }
0x1130   : > { %v6815_v19 = vpack.i.bf16 %v9024_v34, %v9026_v44 }
0x1131   : > { %v9030_v28 = vpop.f32.mrf.mxu1 }
0x1133   : > { %v9032_v40 = vpop.f32.mrf.mxu1 }
0x1134   : > { %v6850_v48 = vpack.i.bf16 %v9030_v28, %v9032_v40 }
0x1135   : > { %v9036_v50 = vpop.f32.mrf.mxu1 }
0x1137   : > { %v9038_v18 = vpop.f32.mrf.mxu1 }
0x1138   : > { %v6890_v38 = vpack.i.bf16 %v9036_v50, %v9038_v18 }
0x1139   : > { %v6616_v60 = vpop.f32.mrf.mxu1 }
0x113a   : > { %v3889_v12 = vmul.f32 0.25, %v6616_v60 }
0x113b   : > { %v3849_v63 = vpop.f32.mrf.mxu1 }
0x113c   : > { %v3888_v2 = vmul.f32 0.25, %v3849_v63  ;;  %v3899_v22 = vsel %vm985_vm1, %v3889_v12, -inf }
0x113d   : > { %3900 = vmax.xlane.f32.xlu1 %v3899_v22  ;;  %v6619_v13 = vpop.f32.mrf.mxu1 }
0x113e   : > { %v3891_v56 = vmul.f32 0.25, %v6619_v13  ;;  %v3896_v62 = vsel %vm985_vm1, %v3888_v2, -inf }
0x113f   : > { %3897 = vmax.xlane.f32.xlu0 %v3896_v62  ;;  %v3859_v9 = vpop.f32.mrf.mxu1 }
0x1140   : > { %v3890_v49 = vmul.f32 0.25, %v3859_v9  ;;  %v3905_v42 = vsel %vm985_vm1, %v3891_v56, -inf }
0x1141   : > { %v6622_v36 = vpop.f32.mrf.mxu1 }
0x1142   : > { %v3902_v32 = vsel %vm985_vm1, %v3890_v49, -inf  ;;  %v3893_v6 = vmul.f32 0.25, %v6622_v36 }
0x1143   : > { %3906 = vmax.xlane.f32.xlu0 %v3905_v42  ;;  %v3869_v55 = vpop.f32.mrf.mxu1 }
0x1144   : > { %v3911_v1 = vsel %vm985_vm1, %v3893_v6, -inf  ;;  %v3892_v11 = vmul.f32 0.25, %v3869_v55 }
0x1145   : > { %v6625_v61 = vpop.f32.mrf.mxu1 }
0x1146   : > { %v3895_v51 = vmul.f32 0.25, %v6625_v61  ;;  %v3908_v45 = vsel %vm985_vm1, %v3892_v11, -inf }
0x1147   : > { %3903 = vmax.xlane.f32.xlu0 %v3902_v32  ;;  %v3879_v25 = vpop.f32.mrf.mxu1 }
0x1148   : > { %v3917_v39 = vsel %vm985_vm1, %v3895_v51, -inf  ;;  %v3894_v30 = vmul.f32 0.25, %v3879_v25 }
0x114e   : > { %3996 = vrot.lane.b32.xlu1 %v7752_v43, %s9948_s28  ;;  %v3914_v43 = vsel %vm985_vm1, %v3894_v30, -inf }
0x115d   : > { %3998 = vrot.lane.b32.xlu0 %v7747_v41, %s9948_s28 }
0x1172   : > { %3912 = vmax.xlane.f32.xlu1 %v3911_v1 }
0x1176   : > { %3918 = vmax.xlane.f32.xlu1 %v3917_v39 }
0x117c   : > { %3909 = vmax.xlane.f32.xlu0 %v3908_v45 }
0x1180   : > { %3915 = vmax.xlane.f32.xlu0 %v3914_v43 }
0x1187   : > { %3992 = vrot.lane.b32.xlu1 %v7741_v37, %s9948_s28 }
0x118b   : > { %3990 = vrot.lane.b32.xlu1 %v7727_v29, %s9948_s28 }
0x118f   : > { %3988 = vrot.lane.b32.xlu1 %v7731_v33, %s9948_s28 }
0x1196   : > { %3994 = vrot.lane.b32.xlu0 %v7737_v35, %s9948_s28 }
0x11c6   : > { %v3901_v41 = vpop.xlane.xlu1 %3900 }
0x11c7   : > { %v3921_v4 = vsub.f32 %v3889_v12, %v3901_v41 }
0x11c8   : > { %v3898_v17 = vpop.xlane.xlu0 %3897 }
0x11c9   : > { %v3930_v60 = vmul.f32 1.442695, %v3921_v4  ;;  %v3920_v63 = vsub.f32 %v3888_v2, %v3898_v17 }
0x11ca   : > { %v3997_v33 = vpop.permute.xlu1 %3996 }
0x11cb   : > { %7140 = vpow2.f32 %v3930_v60  ;;  %v3928_v22 = vmul.f32 1.442695, %v3920_v63 }
0x11cc   : > { %v3907_v13 = vpop.xlane.xlu0 %3906 }
0x11cd   : > { %7142 = vpow2.f32 %v3928_v22  ;;  %v3923_v62 = vsub.f32 %v3891_v56, %v3907_v13 }
0x11cf   : > { %v3934_v37 = vmul.f32 1.442695, %v3923_v62 }
0x11d0   : > { %v3904_v9 = vpop.xlane.xlu0 %3903 }
0x11d1   : > { %7144 = vpow2.f32 %v3934_v37  ;;  %v3922_v29 = vsub.f32 %v3890_v49, %v3904_v9 }
0x11d3   : > { %v3932_v42 = vmul.f32 1.442695, %v3922_v29 }
0x11d4   : > { %v3999_v32 = vpop.permute.xlu0 %3998 }
0x11d5   : > { %7146 = vpow2.f32 %v3932_v42  ;;  %6626 = vmatprep.subr.mxu0 %v3999_v32 }
0x11d6   : > { %6627 = vmatpush3.msra.mxu0 %v3999_v32 }
0x11d7   : > { %6628 = vmatprep.subr.mxu0 %v3997_v33 }
0x11d8   : > { %v9062_v35 = vpop.eup %7140  ;;  %6629 = vmatpush3.msra.mxu0 %v3997_v33 }
0x11d9   : > { %v3947_v12 = vsel %vm985_vm1, %v9062_v35, 0.0 }
0x11da   : > { %v9066_v2 = vpop.eup %7142  ;;  %3948 = vadd.xlane.f32.xlu1 %v3947_v12 }
0x11db   : > { %v3944_v56 = vsel %vm985_vm1, %v9066_v2, 0.0 }
0x11dc   : > { %3945 = vadd.xlane.f32.xlu0 %v3944_v56  ;;  %v9991_v56 = vpack.i.bf16 %v8401_v8, %v8403_v20  ;;  %v9998_v8 = vld [vmem:[#allocation24_spill] sm:$0xff]  ;;  %v9999_v20 = vld [vmem:[#allocation25_spill] sm:$0xff] }
0x11de   : > { %v9070_v49 = vpop.eup %7144 }
0x11df   : > { %v3953_v36 = vsel %vm985_vm1, %v9070_v49, 0.0 }
0x11e0   : > { %3954 = vadd.xlane.f32.xlu1 %v3953_v36  ;;  %v9992_v36 = vpack.i.bf16 %v8721_v31, %v8723_v15  ;;  %v10005_v15 = vld [vmem:[#allocation26_spill] sm:$0xff] }
0x11e2   : > { %v9074_v55 = vpop.eup %7146 }
0x11e3   : > { %v3950_v61 = vsel %vm985_vm1, %v9074_v55, 0.0 }
0x11e4   : > { %3951 = vadd.xlane.f32.xlu0 %v3950_v61  ;;  %v9993_v61 = vpack.i.bf16 %v8377_v54, %v8379_v53  ;;  %v9996_v54 = vpack.i.bf16 %v8881_v10, %v8883_v7  ;;  %v9997_v53 = vpack.i.bf16 %v8567_v14, %v8569_v3  ;;  %v10006_v10 = vld [vmem:[#allocation27_spill] sm:$0xff]  ;;  %v10008_v3 = vld [vmem:[#allocation34_spill] sm:$0xff] }
0x11e5   : > { %v10007_v14 = vpack.i.bf16 %v10005_v15, %v10006_v10  ;;  %v10009_v7 = vld [vmem:[#allocation35_spill] sm:$0xff]  ;;  %v10015_v10 = vld [vmem:[#allocation10_spill] sm:$0xff] }
0x11e6   : > { %v10014_v15 = vld [vmem:[#allocation11_spill] sm:$0xff] }
0x11fb   : > { %v3913_v1 = vpop.xlane.xlu1 %3912 }
0x11fc   : > { %v3925_v39 = vsub.f32 %v3893_v6, %v3913_v1 }
0x11fe   : > { %v3938_v25 = vmul.f32 1.442695, %v3925_v39 }
0x11ff   : > { %v3919_v45 = vpop.xlane.xlu1 %3918 }
0x1200   : > { %7148 = vpow2.f32 %v3938_v25  ;;  %v3927_v43 = vsub.f32 %v3895_v51, %v3919_v45 }
0x1202   : > { %v3942_v60 = vmul.f32 1.442695, %v3927_v43 }
0x1203   : > { %v3993_v17 = vpop.permute.xlu1 %3992 }
0x1205   : > { %v3910_v41 = vpop.xlane.xlu0 %3909 }
0x1206   : > { %v3924_v4 = vsub.f32 %v3892_v11, %v3910_v41 }
0x1207   : > { %v3991_v9 = vpop.permute.xlu1 %3990 }
0x1208   : > { %v3936_v63 = vmul.f32 1.442695, %v3924_v4 }
0x1209   : > { %v3916_v22 = vpop.xlane.xlu0 %3915 }
0x120a   : > { %7150 = vpow2.f32 %v3936_v63  ;;  %v3926_v13 = vsub.f32 %v3894_v30, %v3916_v22 }
0x120b   : > { %7152 = vpow2.f32 %v3942_v60  ;;  %v3989_v51 = vpop.permute.xlu1 %3988 }
0x120c   : > { %v3940_v62 = vmul.f32 1.442695, %v3926_v13 }
0x120d   : > { %v9078_v37 = vpop.eup %7148  ;;  %v3995_v29 = vpop.permute.xlu0 %3994 }
0x120e   : > { %7154 = vpow2.f32 %v3940_v62  ;;  %6630 = vmatprep.subr.mxu0 %v3995_v29  ;;  %v3959_v6 = vsel %vm985_vm1, %v9078_v37, 0.0 }
0x120f   : > { %3960 = vadd.xlane.f32.xlu0 %v3959_v6  ;;  %6631 = vmatpush3.msra.mxu0 %v3995_v29 }
0x1210   : > { %6632 = vmatprep.subr.mxu0 %v3993_v17 }
0x1211   : > { %6633 = vmatpush3.msra.mxu0 %v3993_v17 }
0x1212   : > { %6634 = vmatprep.subr.mxu0 %v3991_v9 }
0x1213   : > { %6635 = vmatpush3.msra.mxu0 %v3991_v9 }
0x1214   : > { %6636 = vmatprep.subr.mxu0 %v3989_v51 }
0x1215   : > { %6637 = vmatpush3.msra.mxu0 %v3989_v51  ;;  %v4436_v51 = vld [vmem:[%s9907_s4 + $0x70] sm:$0xff] }
0x1217   : > { %v7151_v11 = vpop.eup %7150 }
0x1218   : > { %v3956_v30 = vsel %vm985_vm1, %v7151_v11, 0.0  ;;  %v9083_v42 = vpop.eup %7152 }
0x1219   : > { %3957 = vadd.xlane.f32.xlu1 %v3956_v30  ;;  %v3965_v33 = vsel %vm985_vm1, %v9083_v42, 0.0  ;;  %v4433_v30 = vld [vmem:[%s9907_s4 + $0x58] sm:$0xff] }
0x121b   : > { %v9085_v32 = vpop.eup %7154 }
0x121c   : > { %v3962_v12 = vsel %vm985_vm1, %v9085_v32, 0.0 }
0x121d   : > { %3966 = vadd.xlane.f32.xlu1 %v3965_v33  ;;  %3963 = vadd.xlane.f32.xlu0 %v3962_v12  ;;  %v4430_v33 = vld [vmem:[%s9907_s4 + $0x40] sm:$0xff]  ;;  %v4429_v12 = vld [vmem:[%s9907_s4 + $0x38] sm:$0xff] }
0x122e   : > { %3984 = vrot.lane.b32.xlu1 %v7721_v27, %s9948_s28  ;;  %v9994_v27 = vpack.i.bf16 %v8561_v59, %v8563_v5  ;;  %v10000_v59 = vpack.i.bf16 %v9998_v8, %v9999_v20  ;;  %v10003_v5 = vld [vmem:[#allocation33_spill] sm:$0xff] }
0x1232   : > { %6766 = vrot.lane.b32.xlu1 %v9991_v56, %s9947_s26  ;;  %v4428_v56 = vld [vmem:[%s9907_s4 + $0x30] sm:$0xff] }
0x1233   : > { %3986 = vrot.lane.b32.xlu0 %v7717_v24, %s9948_s28  ;;  %v9995_v24 = vpack.i.bf16 %v8383_v57, %v8385_v16  ;;  %v10001_v57 = vpack.i.bf16 %v8887_v58, %v8889_v23  ;;  %v10002_v16 = vld [vmem:[#allocation32_spill] sm:$0xff]  ;;  %v10010_v58 = vpack.i.bf16 %v10008_v3, %v10009_v7  ;;  %v10018_v7 = vpack.i.bf16 %v8893_v52, %v8895_v0  ;;  %v10030_v52 = vld [vmem:[#allocation38_spill] sm:$0xff]  ;;  %v10031_v0 = vld [vmem:[#allocation39_spill] sm:$0xff] }
0x1234   : > { %v10004_v31 = vpack.i.bf16 %v10002_v16, %v10003_v5  ;;  %v10011_v23 = vld [vmem:[#allocation20_spill] sm:$0xff] }
0x1235   : > { %v10013_v26 = vpack.i.bf16 %v10011_v23, %v10012_v21  ;;  %v10021_v23 = vld [vmem:[#allocation23_spill] sm:$0xff] }
0x1236   : > { %6776 = vrot.lane.b32.xlu1 %v9992_v36, %s9946_s19  ;;  %v4427_v36 = vld [vmem:[%s9907_s4 + $0x28] sm:$0xff] }
0x1237   : > { %6761 = vrot.lane.b32.xlu0 %v9993_v61, %s9948_s28  ;;  %v4426_v61 = vld [vmem:[%s9907_s4 + $0x20] sm:$0xff] }
0x123a   : > { %6786 = vrot.lane.b32.xlu1 %v6785_v46, %s9945_s15 }
0x123b   : > { %6771 = vrot.lane.b32.xlu0 %v9994_v27, %s7360_s20  ;;  %v4425_v27 = vld [vmem:[%s9907_s4 + $0x18] sm:$0xff] }
0x123e   : > { %6791 = vrot.lane.b32.xlu1 %v9995_v24, %s9948_s28  ;;  %v4424_v24 = vld [vmem:[%s9907_s4 + $0x10] sm:$0xff] }
0x123f   : > { %6781 = vrot.lane.b32.xlu0 %v9996_v54, %s9949_s17  ;;  %v4423_v54 = vld [vmem:[%s9907_s4 + $0x8] sm:$0xff] }
0x1242   : > { %6801 = vrot.lane.b32.xlu1 %v9997_v53, %s7360_s20  ;;  %v4422_v53 = vld [vmem:[%s9907_s4] sm:$0xff] }
0x1243   : > { %6796 = vrot.lane.b32.xlu0 %v10000_v59, %s9947_s26 }
0x1246   : > { %6811 = vrot.lane.b32.xlu1 %v10001_v57, %s9949_s17 }
0x1247   : > { %6806 = vrot.lane.b32.xlu0 %v10004_v31, %s9946_s19 }
0x124a   : > { %6826 = vrot.lane.b32.xlu1 %v10007_v14, %s9947_s26  ;;  %v10016_v14 = vpack.i.bf16 %v10014_v15, %v10015_v10 }
0x124b   : > { %6816 = vrot.lane.b32.xlu0 %v6815_v19, %s9945_s15 }
0x124e   : > { %6841 = vrot.lane.b32.xlu1 %v10010_v58, %s9946_s19  ;;  %v10020_v58 = vld [vmem:[#allocation22_spill] sm:$0xff]  ;;  %s10037_s19 = smov 96  }
0x124f   : > { %6821 = vrot.lane.b32.xlu0 %v10013_v26, %s9948_s28  ;;  %v10022_v21 = vpack.i.bf16 %v10020_v58, %v10021_v23  ;;  %s7363_s28 = smov [#allocation5]  }
0x1252   : > { %6851 = vrot.lane.b32.xlu1 %v6850_v48, %s9945_s15  ;;  %s10023_s15 = smov 32  }
0x1263   : > { %v3949_v44 = vpop.xlane.xlu1 %3948 }
0x1265   : > { %v3946_v46 = vpop.xlane.xlu0 %3945 }
0x1266   : > { %7156 = vrcp.f32 %v3946_v46  ;;  %v10024_v46 = vld [vmem:[#allocation28_spill] sm:$0xff] }
0x1267   : > { %7158 = vrcp.f32 %v3949_v44  ;;  %v10027_v44 = vld [vmem:[#allocation30_spill] sm:$0xff] }
0x1269   : > { %v3955_v39 = vpop.xlane.xlu1 %3954 }
0x126d   : > { %v3952_v19 = vpop.xlane.xlu0 %3951 }
0x126e   : > { %7160 = vrcp.f32 %v3952_v19  ;;  %v10028_v19 = vld [vmem:[#allocation31_spill] sm:$0xff] }
0x126f   : > { %7162 = vrcp.f32 %v3955_v39  ;;  %v10029_v39 = vpack.i.bf16 %v10027_v44, %v10028_v19 }
0x1273   : > { %v7157_v1 = vpop.eup %7156 }
0x1274   : > { %v3976_v34 = vmul.f32 %v7157_v1, %v9066_v2  ;;  %v7159_v40 = vpop.eup %7158  ;;  %v10025_v1 = vld [vmem:[#allocation29_spill] sm:$0xff] }
0x1275   : > { %v3977_v4 = vmul.f32 %v7159_v40, %v9062_v35  ;;  %v10034_v40 = vld [vmem:[#allocation36_spill] sm:$0xff] }
0x1276   : > { %6642 = vmatprep.mubr.msk.f32.mxu0 %vm985_vm1, %v3976_v34  ;;  %v10026_v34 = vpack.i.bf16 %v10024_v46, %v10025_v1 }
0x127b   : > { %v7161_v41 = vpop.eup %7160 }
0x127c   : > { %v7163_v17 = vpop.eup %7162  ;;  %v3978_v60 = vmul.f32 %v7161_v41, %v9074_v55 }
0x127d   : > { %v3979_v22 = vmul.f32 %v7163_v17, %v9070_v49  ;;  %v4437_v49 = vld [vmem:[%s9907_s4 + $0x78] sm:$0xff] }
0x1298   : > { %v3961_v25 = vpop.xlane.xlu0 %3960 }
0x12a2   : > { %v3958_v45 = vpop.xlane.xlu1 %3957 }
0x12a3   : > { %7164 = vrcp.f32 %v3958_v45 }
0x12a4   : > { %7166 = vrcp.f32 %v3961_v25 }
0x12a6   : > { %v3967_v43 = vpop.xlane.xlu1 %3966  ;;  %v3964_v28 = vpop.xlane.xlu0 %3963 }
0x12a7   : > { %7168 = vrcp.f32 %v3964_v28 }
0x12a8   : > { %7170 = vrcp.f32 %v3967_v43  ;;  %v10032_v43 = vpack.i.bf16 %v10030_v52, %v10031_v0 }
0x12aa   : > { %v3987_v48 = vpop.permute.xlu0 %3986  ;;  %v3985_v2 = vpop.permute.xlu1 %3984 }
0x12ab   : > { %6638 = vmatprep.subr.mxu0 %v3987_v48 }
0x12ac   : > { %6639 = vmatpush3.msra.mxu0 %v3987_v48  ;;  %v10035_v48 = vld [vmem:[#allocation37_spill] sm:$0xff] }
0x12ad   : > { %6640 = vmatprep.subr.mxu0 %v3985_v2  ;;  %v10036_v41 = vpack.i.bf16 %v10034_v40, %v10035_v48 }
0x12ae   : > { %6641 = vmatpush3.msra.mxu0 %v3985_v2  ;;  %v6767_v2 = vpop.permute.xlu1 %6766  ;;  %v6762_v17 = vpop.permute.xlu0 %6761 }
0x12af   : > { %6643 = vmatmul.mubr.msk.f32.vlgmr.msra.gmra.mxu0 %vm985_vm1, %v3977_v4  ;;  %6654 = vmatprep.subr.mxu0 %v4437_v49 }
0x12b0   : > { %v7165_v63 = vpop.eup %7164  ;;  %6645 = vmatprep.mubr.msk.f32.mxu0 %vm985_vm1, %v3978_v60  ;;  %6655 = vmatpush3.msra.mxu0 %v4437_v49  ;;  %v6768_v49 = vunpack.i.l.bf16 %v6767_v2 }
0x12b1   : > { %v3980_v13 = vmul.f32 %v7165_v63, %v7151_v11  ;;  %v7167_v62 = vpop.eup %7166  ;;  %6656 = vmatprep.subr.mxu0 %v4436_v51  ;;  %v4434_v11 = vld [vmem:[%s9907_s4 + $0x60] sm:$0xff] }
0x12b2   : > { %v3981_v35 = vmul.f32 %v7167_v62, %v9078_v37  ;;  %v4435_v37 = vld [vmem:[%s9907_s4 + $0x68] sm:$0xff]  ;;  %6657 = vmatpush3.msra.mxu0 %v4436_v51  ;;  %v6777_v4 = vpop.permute.xlu1 %6776  ;;  %v6772_v63 = vpop.permute.xlu0 %6771  ;;  %v6769_v51 = vunpack.i.h.bf16 %v6767_v2 }
0x12b3   : > { %6646 = vmatmul.mubr.msk.f32.gmra.mxu0 %vm985_vm1, %v3979_v22  ;;  %6658 = vmatprep.subr.mxu0 %v4435_v37  ;;  %v6773_v18 = vunpack.i.l.bf16 %v6772_v63 }
0x12b4   : > { %6648 = vmatprep.mubr.msk.f32.mxu0 %vm985_vm1, %v3980_v13  ;;  %v7169_v9 = vpop.eup %7168  ;;  %6659 = vmatpush3.msra.mxu0 %v4435_v37  ;;  %v10038_v37 = vld [vmem:[#allocation13_spill] sm:$0xff] }
0x12b5   : > { %v7171_v29 = vpop.eup %7170  ;;  %v3982_v6 = vmul.f32 %v7169_v9, %v9085_v32  ;;  %6660 = vmatprep.subr.mxu0 %v4434_v11  ;;  %v4431_v32 = vld [vmem:[%s9907_s4 + $0x48] sm:$0xff] }
0x12b6   : > { %v3983_v55 = vmul.f32 %v7171_v29, %v9083_v42  ;;  %6661 = vmatpush3.msra.mxu0 %v4434_v11  ;;  %v4432_v42 = vld [vmem:[%s9907_s4 + $0x50] sm:$0xff]  ;;  %v6787_v60 = vpop.permute.xlu1 %6786  ;;  %v6782_v13 = vpop.permute.xlu0 %6781  ;;  %v6763_v29 = vunpack.i.l.bf16 %v6762_v17 }
0x12b7   : > { %6649 = vmatmul.mubr.msk.f32.gmra.mxu0 %vm985_vm1, %v3981_v35  ;;  %6662 = vmatprep.subr.mxu0 %v4433_v30  ;;  %v6788_v58 = vunpack.i.l.bf16 %v6787_v60 }
0x12b8   : > { %6651 = vmatprep.mubr.msk.f32.mxu0 %vm985_vm1, %v3982_v6  ;;  %6663 = vmatpush3.msra.mxu0 %v4433_v30  ;;  %v6764_v6 = vunpack.i.h.bf16 %v6762_v17  ;;  %v4361_v50 = vsel %vm823_vm0, %v10038_v37, %v6763_v29  ;;  %v6774_v30 = vunpack.i.h.bf16 %v6772_v63 }
0x12b9   : > { %6664 = vmatprep.subr.mxu0 %v4432_v42 }
0x12ba   : > { %6665 = vmatpush3.msra.mxu0 %v4432_v42  ;;  %v6792_v22 = vpop.permute.xlu1 %6791  ;;  %v6797_v9 = vpop.permute.xlu0 %6796 }
0x12bb   : > { %6652 = vmatmul.mubr.msk.f32.gmra.mxu0 %vm985_vm1, %v3983_v55  ;;  %6666 = vmatprep.subr.mxu0 %v4431_v32 }
0x12bc   : > { %6667 = vmatpush3.msra.mxu0 %v4431_v32  ;;  %v6794_v32 = vunpack.i.h.bf16 %v6792_v22 }
0x12bd   : > { %6668 = vmatprep.subr.mxu0 %v4430_v33 }
0x12be   : > { %6669 = vmatpush3.msra.mxu0 %v4430_v33  ;;  %v6802_v62 = vpop.permute.xlu1 %6801  ;;  %v6807_v55 = vpop.permute.xlu0 %6806  ;;  %v6793_v33 = vunpack.i.l.bf16 %v6792_v22 }
0x12bf   : > { %6670 = vmatprep.subr.mxu0 %v4429_v12  ;;  %v6804_v15 = vunpack.i.h.bf16 %v6802_v62  ;;  %v6803_v10 = vunpack.i.l.bf16 %v6802_v62  ;;  %v6809_v1 = vunpack.i.h.bf16 %v6807_v55 }
0x12c0   : > { %6671 = vmatpush3.msra.mxu0 %v4429_v12  ;;  %v6778_v12 = vunpack.i.l.bf16 %v6777_v4 }
0x12c1   : > { %6672 = vmatprep.subr.mxu0 %v4428_v56 }
0x12c2   : > { %6673 = vmatpush3.msra.mxu0 %v4428_v56  ;;  %v9258_v35 = vpop.permute.xlu1 %6811  ;;  %v4370_v56 = vsel %vm4369_vm2, %v4361_v50, %v6768_v49 }
0x12c3   : > { %6674 = vmatprep.subr.mxu0 %v4427_v36  ;;  %v6813_v52 = vunpack.i.l.bf16 %v9258_v35 }
0x12c4   : > { %6675 = vmatpush3.msra.mxu0 %v4427_v36  ;;  %v6817_v36 = vpop.permute.xlu0 %6816 }
0x12c5   : > { %6676 = vmatprep.subr.mxu0 %v4426_v61  ;;  %v6819_v2 = vunpack.i.h.bf16 %v6817_v36 }
0x12c6   : > { %6677 = vmatpush3.msra.mxu0 %v4426_v61  ;;  %v9264_v42 = vpop.permute.xlu1 %6826  ;;  %v6779_v61 = vunpack.i.h.bf16 %v6777_v4  ;;  %v6818_v4 = vunpack.i.l.bf16 %v6817_v36 }
0x12c7   : > { %6678 = vmatprep.subr.mxu0 %v4425_v27  ;;  %v6829_v50 = vunpack.i.h.bf16 %v9264_v42 }
0x12c8   : > { %6679 = vmatpush3.msra.mxu0 %v4425_v27  ;;  %v6822_v44 = vpop.permute.xlu0 %6821 }
0x12c9   : > { %6680 = vmatprep.subr.mxu0 %v4424_v24  ;;  %v6824_v63 = vunpack.i.h.bf16 %v6822_v44  ;;  %v6823_v22 = vunpack.i.l.bf16 %v6822_v44  ;;  %v10045_v44 = vld [vmem:[#allocation19_spill] sm:$0xff] }
0x12ca   : > { %6681 = vmatpush3.msra.mxu0 %v4424_v24  ;;  %v4379_v24 = vsel %vm4378_vm3, %v4370_v56, %v6773_v18  ;;  %v6828_v18 = vunpack.i.l.bf16 %v9264_v42 }
0x12cb   : > { %6682 = vmatprep.subr.mxu0 %v4423_v54 }
0x12cc   : > { %6683 = vmatpush3.msra.mxu0 %v4423_v54  ;;  %v6783_v54 = vunpack.i.l.bf16 %v6782_v13 }
0x12cd   : > { %6684 = vmatprep.subr.mxu0 %v4422_v53 }
0x12ce   : > { %6685 = vmatpush3.msra.mxu0 %v4422_v53 }
0x136f   : > { %v6644_v8 = vpop.f32.mrf.mxu0 }
0x1371   : > { %v4098_v20 = vpop.f32.mrf.mxu0 }
0x1372   : > { %v6830_v59 = vpack.i.bf16 %v6644_v8, %v4098_v20  ;;  %v6784_v8 = vunpack.i.h.bf16 %v6782_v13  ;;  %v6799_v20 = vunpack.i.h.bf16 %v6797_v9 }
0x1373   : > { %v6647_v57 = vpop.f32.mrf.mxu0 }
0x1374   : > { %6831 = vrot.lane.b32.xlu0 %v6830_v59, %s7356_s30  ;;  %v6798_v59 = vunpack.i.l.bf16 %v6797_v9 }
0x1375   : > { %v4108_v16 = vpop.f32.mrf.mxu0 }
0x1376   : > { %v6855_v5 = vpack.i.bf16 %v6647_v57, %v4108_v16  ;;  %v10040_v57 = vld [vmem:[#allocation14_spill] sm:$0xff] }
0x1377   : > { %v6650_v31 = vpop.f32.mrf.mxu0  ;;  %v4364_v16 = vsel %vm823_vm0, %v10040_v57, %v6794_v32 }
0x1378   : > { %6836 = vrot.lane.b32.xlu0 %v10016_v14, %s7360_s20  ;;  %6856 = vrot.lane.b32.xlu1 %v6855_v5, %s7356_s30  ;;  %v10041_v5 = vld [vmem:[#allocation15_spill] sm:$0xff]  ;;  %v9274_v14 = vpop.permute.xlu1 %6841 }
0x1379   : > { %v4118_v3 = vpop.f32.mrf.mxu0  ;;  %v6843_v57 = vunpack.i.l.bf16 %v9274_v14 }
0x137a   : > { %v6875_v25 = vpack.i.bf16 %v6650_v31, %v4118_v3  ;;  %v4363_v31 = vsel %vm823_vm0, %v10041_v5, %v6793_v33  ;;  %v4387_v3 = vsel %vm985_vm1, %v4379_v24, %v6778_v12 }
0x137b   : > { %v6653_v26 = vpop.f32.mrf.mxu0  ;;  %v4372_v46 = vsel %vm4369_vm2, %v4363_v31, %v6798_v59  ;;  %v6844_v59 = vunpack.i.h.bf16 %v9274_v14  ;;  %v10044_v14 = vld [vmem:[#allocation18_spill] sm:$0xff] }
0x137c   : > { %6846 = vrot.lane.b32.xlu0 %v10018_v7, %s10017_s29  ;;  %6861 = vrot.lane.b32.xlu1 %v10022_v21, %s10019_s16  ;;  %v6789_v7 = vunpack.i.h.bf16 %v6787_v60  ;;  %v4396_v21 = vsel %vm4395_vm4, %v4387_v3, %v6783_v54  ;;  %v9289_v40 = vpop.permute.xlu1 %6851  ;;  %s420_s16 = sand.u32 1, %s7342_s22  }
0x137d   : > { %v4128_v45 = vpop.f32.mrf.mxu0  ;;  %v4405_v0 = vsel %vm4404_vm5, %v4396_v21, %v6788_v58  ;;  %s9863_s17 = scalar_lea.sflag [#allocation4], %s420_s16 }
0x137e   : > { %v6895_v28 = vpack.i.bf16 %v6653_v26, %v4128_v45  ;;  %v4373_v26 = vsel %vm4369_vm2, %v4364_v16, %v6799_v20  ;;  %v6814_v45 = vunpack.i.h.bf16 %v9258_v35 }
0x1380   : > { %6866 = vrot.lane.b32.xlu0 %v10026_v34, %s10023_s15  ;;  %6871 = vrot.lane.b32.xlu1 %v10029_v39, %s7360_s20  ;;  %v6808_v34 = vunpack.i.l.bf16 %v6807_v55  ;;  %v4381_v39 = vsel %vm4378_vm3, %v4372_v46, %v6803_v10  ;;  %v6853_v46 = vunpack.i.l.bf16 %v9289_v40  ;;  %s5539_s15 = sshll.u32 %s420_s16, 6 }
0x1384   : > { %6886 = vrot.lane.b32.xlu1 %v10032_v43, %s10017_s29  ;;  %6876 = vrot.lane.b32.xlu0 %v6875_v25, %s7356_s30  ;;  %v4382_v25 = vsel %vm4378_vm3, %v4373_v26, %v6804_v15  ;;  %v4389_v43 = vsel %vm985_vm1, %v4381_v39, %v6808_v34  ;;  %v6854_v26 = vunpack.i.h.bf16 %v9289_v40  ;;  %s7290_s29 = sshll.u32 %s7363_s28, 4  ;;  %s7291_s29 = int_to_ptr.vmem [resolvable:$false] %s7290_s29 }
0x1385   : > { %v4398_v13 = vsel %vm4395_vm4, %v4389_v43, %v6813_v52 }
0x1388   : > { %6881 = vrot.lane.b32.xlu0 %v10036_v41, %s10033_s18  ;;  %6896 = vrot.lane.b32.xlu1 %v6895_v28, %s7356_s30  ;;  %v4390_v28 = vsel %vm985_vm1, %v4382_v25, %v6809_v1  ;;  %s5745_s18 = sshll.u32 %s7452_s25, 10 }
0x1389   : > { %v4399_v62 = vsel %vm4395_vm4, %v4390_v28, %v6814_v45  ;;  %s9855_s26 = scalar_lea.hbm %s9915_s12, %s5745_s18 }
0x138a   : > { %v4408_v37 = vsel %vm4404_vm5, %v4399_v62, %v6819_v2 }
0x138c   : > { %6891 = vrot.lane.b32.xlu0 %v6890_v38, %s10037_s19  ;;  %v10039_v38 = vld [vmem:[#allocation12_spill] sm:$0xff] }
0x138d   : > { %v4362_v11 = vsel %vm823_vm0, %v10039_v38, %v6764_v6  ;;  %v10042_v38 = vld [vmem:[#allocation16_spill] sm:$0xff] }
0x138e   : > { %v4371_v27 = vsel %vm4369_vm2, %v4362_v11, %v6769_v51  ;;  %v4407_v51 = vsel %vm4404_vm5, %v4398_v13, %v6818_v4  ;;  %v4366_v11 = vsel %vm823_vm0, %v10042_v38, %v6824_v63 }
0x138f   : > { %v4380_v53 = vsel %vm4378_vm3, %v4371_v27, %v6774_v30  ;;  %v10043_v30 = vld [vmem:[#allocation17_spill] sm:$0xff]  ;;  %v4375_v42 = vsel %vm4369_vm2, %v4366_v11, %v6829_v50 }
0x1390   : > { %v4388_v23 = vsel %vm985_vm1, %v4380_v53, %v6779_v61  ;;  %v4365_v32 = vsel %vm823_vm0, %v10043_v30, %v6823_v22 }
0x1391   : > { %v4397_v19 = vsel %vm4395_vm4, %v4388_v23, %v6784_v8  ;;  %v4374_v24 = vsel %vm4369_vm2, %v4365_v32, %v6828_v18 }
0x1392   : > { %v4406_v41 = vsel %vm4404_vm5, %v4397_v19, %v6789_v7 }
0x13e6   : > { %v6832_v48 = vpop.permute.xlu0 %6831 }
0x13e7   : > { %v6834_v17 = vunpack.i.h.bf16 %v6832_v48  ;;  %v6833_v60 = vunpack.i.l.bf16 %v6832_v48 }
0x13e9   : > { %v4414_v9 = vsel %vm4413_vm6, %v4405_v0, %v6833_v60  ;;  %v4415_v35 = vsel %vm4413_vm6, %v4406_v41, %v6834_v17 }
0x13ea   : > { %v6857_v29 = vpop.permute.xlu1 %6856  ;;  %v6837_v6 = vpop.permute.xlu0 %6836  ;;  %6686 = vmatprep.mubr.f32.mxu0 %v4414_v9 }
0x13eb   : > { %v6859_v55 = vunpack.i.h.bf16 %v6857_v29  ;;  %v6858_v49 = vunpack.i.l.bf16 %v6857_v29  ;;  %6687 = vmatmul.mubr.f32.vlgmr.msra.gmra.mxu0 %v4415_v35  ;;  %v6839_v33 = vunpack.i.h.bf16 %v6837_v6  ;;  %v6838_v12 = vunpack.i.l.bf16 %v6837_v6 }
0x13ed   : > { %v4416_v56 = vsel %vm4413_vm6, %v4407_v51, %v6858_v49  ;;  %v4417_v36 = vsel %vm4413_vm6, %v4408_v37, %v6859_v55  ;;  %v4383_v54 = vsel %vm4378_vm3, %v4374_v24, %v6838_v12  ;;  %v4384_v53 = vsel %vm4378_vm3, %v4375_v42, %v6839_v33  ;;  %v5736_v33 = vld [vmem:[%s9908_s5] ss:$0 sm:$0xff] }
0x13ee   : > { %v6862_v61 = vpop.permute.xlu1 %6861  ;;  %v6847_v27 = vpop.permute.xlu0 %6846  ;;  %6689 = vmatprep.mubr.f32.mxu0 %v4416_v56  ;;  %v4391_v10 = vsel %vm985_vm1, %v4383_v54, %v6843_v57  ;;  %v4392_v3 = vsel %vm985_vm1, %v4384_v53, %v6844_v59  ;;  %v7253_v54 = vld [vmem:[%s7501_s23] sm:$0xff]  ;;  %v7254_v57 = vld [vmem:[%s7501_s23 + $0x10] sm:$0xff] }
0x13ef   : > { %6690 = vmatmul.mubr.f32.gmra.mxu0 %v4417_v36  ;;  %v6849_v8 = vunpack.i.h.bf16 %v6847_v27  ;;  %v6848_v20 = vunpack.i.l.bf16 %v6847_v27  ;;  %v6864_v31 = vunpack.i.h.bf16 %v6862_v61  ;;  %v6863_v15 = vunpack.i.l.bf16 %v6862_v61  ;;  %v7252_v61 = vld [vmem:[%s7501_s23 + $0x8] sm:$0xff] }
0x13f1   : > { %v4400_v23 = vsel %vm4395_vm4, %v4391_v10, %v6848_v20  ;;  %v4401_v21 = vsel %vm4395_vm4, %v4392_v3, %v6849_v8  ;;  %v4368_v34 = vsel %vm823_vm0, %v10044_v14, %v6864_v31  ;;  %v4367_v19 = vsel %vm823_vm0, %v10045_v44, %v6863_v15 }
0x13f2   : > { %v6872_v16 = vpop.permute.xlu1 %6871  ;;  %v6867_v5 = vpop.permute.xlu0 %6866  ;;  %v4409_v43 = vsel %vm4404_vm5, %v4400_v23, %v6853_v46  ;;  %v4410_v28 = vsel %vm4404_vm5, %v4401_v21, %v6854_v26  ;;  %v7257_v21 = vld [vmem:[%s7501_s23 + $0x20] sm:$0xff] }
0x13f3   : > { %v6869_v7 = vunpack.i.h.bf16 %v6867_v5  ;;  %v6868_v58 = vunpack.i.l.bf16 %v6867_v5  ;;  %v6874_v52 = vunpack.i.h.bf16 %v6872_v16  ;;  %v6873_v0 = vunpack.i.l.bf16 %v6872_v16  ;;  %v7255_v5 = vld [vmem:[%s7501_s23 + $0x18] sm:$0xff] }
0x13f5   : > { %v4377_v48 = vsel %vm4369_vm2, %v4368_v34, %v6869_v7  ;;  %v4376_v40 = vsel %vm4369_vm2, %v4367_v19, %v6868_v58  ;;  %v7256_v7 = vld [vmem:[%s7501_s23 + $0x28] sm:$0xff]  ;;  %v7258_v34 = vld [vmem:[%s7501_s23 + $0x38] sm:$0xff] }
0x13f6   : > { %v6877_v1 = vpop.permute.xlu0 %6876  ;;  %v6887_v39 = vpop.permute.xlu1 %6886  ;;  %v4385_v63 = vsel %vm4378_vm3, %v4376_v40, %v6873_v0  ;;  %v4386_v22 = vsel %vm4378_vm3, %v4377_v48, %v6874_v52  ;;  %v4739_v52 = vld [vmem:[%s9911_s8 + $0x1f8] sm:$0xff]  ;;  %v4736_v0 = vld [vmem:[%s9911_s8 + $0x1e0] sm:$0xff] }
0x13f7   : > { %v6879_v25 = vunpack.i.h.bf16 %v6877_v1  ;;  %v6878_v45 = vunpack.i.l.bf16 %v6877_v1  ;;  %v6889_v35 = vunpack.i.h.bf16 %v6887_v39  ;;  %v6888_v29 = vunpack.i.l.bf16 %v6887_v39  ;;  %v7259_v39 = vld [vmem:[%s7501_s23 + $0x30] sm:$0xff]  ;;  %4875 = vmatprep.subr.mxu0 %v4739_v52  ;;  %v4735_v48 = vld [vmem:[%s9911_s8 + $0x1d8] sm:$0xff]  ;;  %v4732_v40 = vld [vmem:[%s9911_s8 + $0x1c0] sm:$0xff]  ;;  %s9828_s23 = scalar_lea.vmem [#allocation5], %s5539_s15  ;;  %s7292_s15 = scalar_lea.vmem %s7291_s29, 2048 }
0x13f8   : > { %v4708_v52 = vld [vmem:[%s9911_s8 + $0x100] sm:$0xff]  ;;  %s5459_s19 = sshll.u32 %s9828_s23, 4  ;;  %s9857_s19 = int_to_ptr.vmem [resolvable:$true] %s5459_s19 }
0x13f9   : > { %v4418_v41 = vsel %vm4413_vm6, %v4409_v43, %v6878_v45  ;;  %v4419_v2 = vsel %vm4413_vm6, %v4410_v28, %v6879_v25  ;;  %v4737_v45 = vld [vmem:[%s9911_s8 + $0x1e8] sm:$0xff]  ;;  %v4738_v43 = vld [vmem:[%s9911_s8 + $0x1f0] sm:$0xff]  ;;  %s7286_s25 = scalar_lea.vmem %s9857_s19, 1024  ;;  %p7293_p11 = scmp.lt.s32.totalorder %s9857_s19, %s7291_s29 }
0x13fa   : > { %v6882_v4 = vpop.permute.xlu0 %6881  ;;  %6692 = vmatprep.mubr.f32.mxu0 %v4418_v41  ;;  %v6897_v13 = vpop.permute.xlu1 %6896  ;;  %4762 = vmatprep.subr.mxu1 %v4737_v45  ;;  %v4733_v28 = vld [vmem:[%s9911_s8 + $0x1c8] sm:$0xff]  ;;  %v4734_v41 = vld [vmem:[%s9911_s8 + $0x1d0] sm:$0xff]  ;;  %p7287_p6 = scmp.ne.s32.totalorder %s9857_s19, %s7286_s25  ;;  %p7294_p12 = scmp.lt.s32.totalorder %s7292_s15, %s7286_s25 }
0x13fb   : > { %v6884_v17 = vunpack.i.h.bf16 %v6882_v4  ;;  %v6883_v60 = vunpack.i.l.bf16 %v6882_v4  ;;  %6693 = vmatmul.mubr.f32.gmra.mxu0 %v4419_v2  ;;  %v6899_v51 = vunpack.i.h.bf16 %v6897_v13  ;;  %v6898_v37 = vunpack.i.l.bf16 %v6897_v13  ;;  %4763 = vmatpush1.msra.mxu1 %v4736_v0  ;;  %v4729_v2 = vld [vmem:[%s9911_s8 + $0x1a8] sm:$0xff]  ;;  %v4731_v4 = vld [vmem:[%s9911_s8 + $0x1b8] sm:$0xff]  ;;  %v4710_v0 = vld [vmem:[%s9911_s8 + $0x110] sm:$0xff] }
0x13fc   : > { %4876 = vmatpush1.msra.mxu0 %v4738_v43  ;;  %4764 = vmatprep.subr.mxu1 %v4733_v28  ;;  %v4705_v28 = vld [vmem:[%s9911_s8 + $0xe8] sm:$0xff]  ;;  %p7288_p9 = pnand %p7287_p6, %p7469_p5  ;;  %p7295_p13 = por %p7294_p12, %p7293_p11 }
0x13fd   : > { %v4393_v62 = vsel %vm985_vm1, %v4385_v63, %v6883_v60  ;;  %v4394_v9 = vsel %vm985_vm1, %v4386_v22, %v6884_v17  ;;  %4877 = vmatprep.subr.mxu0 %v4735_v48  ;;  %v4728_v17 = vld [vmem:[%s9911_s8 + $0x1a0] sm:$0xff]  ;;  %v4730_v60 = vld [vmem:[%s9911_s8 + $0x1b0] sm:$0xff]  ;;  %4765 = vmatpush1.msra.mxu1 %v4732_v40  ;;  %v4707_v48 = vld [vmem:[%s9911_s8 + $0xf8] sm:$0xff] }
0x13fe   : > { %v6892_v6 = vpop.permute.xlu0 %6891  ;;  %v4402_v50 = vsel %vm4395_vm4, %v4393_v62, %v6888_v29  ;;  %v4403_v18 = vsel %vm4395_vm4, %v4394_v9, %v6889_v35  ;;  %4878 = vmatpush1.msra.mxu0 %v4734_v41  ;;  %4766 = vmatprep.subr.mxu1 %v4729_v2  ;;  %v4704_v2 = vld [vmem:[%s9911_s8 + $0xe0] sm:$0xff]  ;;  %p7289_p10 = pneg %p7288_p9 }
0x13ff   : > { %v6894_v55 = vunpack.i.h.bf16 %v6892_v6  ;;  %v6893_v49 = vunpack.i.l.bf16 %v6892_v6  ;;  %4879 = vmatprep.subr.mxu0 %v4731_v4  ;;  %4767 = vmatpush1.msra.mxu1 %v4728_v17  ;;  %v4706_v4 = vld [vmem:[%s9911_s8 + $0xf0] sm:$0xff]  ;;  %v4701_v17 = vld [vmem:[%s9911_s8 + $0xc8] sm:$0xff] }
0x1400   : > { %4880 = vmatpush1.msra.mxu0 %v4730_v60  ;;  %v4703_v60 = vld [vmem:[%s9911_s8 + $0xd8] sm:$0xff]  ;;  %p7296_p0 = pnand %p7295_p13, %p7289_p10 }
0x1401   : > { %v4411_v38 = vsel %vm4404_vm5, %v4402_v50, %v6893_v49  ;;  %v4412_v11 = vsel %vm4404_vm5, %v4403_v18, %v6894_v55 }
0x1402   : > { %v4420_v30 = vsel %vm4413_vm6, %v4411_v38, %v6898_v37  ;;  %v4421_v32 = vsel %vm4413_vm6, %v4412_v11, %v6899_v51 }
0x1403   : > { %6695 = vmatprep.mubr.f32.mxu0 %v4420_v30 }
0x1404   : > { %6696 = vmatmul.mubr.f32.gmra.mxu0 %v4421_v32 }
0x1405   : > { %4939 = vmatprep.mubr.f32.mxu0 %v9990_v47 }
0x14ab   : > { %v6688_v12 = vpop.f32.mrf.mxu0 }
0x14ac   : > { %v4517_v56 = vadd.f32 %v6688_v12, %v5736_v33  ;;  %v4727_v12 = vld [vmem:[%s9911_s8 + $0x198] sm:$0xff] }
0x14ad   : > { %v4511_v36 = vpop.f32.mrf.mxu0  ;;  %4881 = vmatprep.subr.mxu0 %v4727_v12  ;;  %v4688_v12 = vld [vmem:[%s9911_s8 + $0x60] sm:$0xff] }
0x14ae   : > { %v9343_v27 = vadd.f32 %v7252_v61, %v4517_v56  ;;  %v4512_v24 = vadd.f32 %v5736_v33, %v4511_v36  ;;  %v4724_v36 = vld [vmem:[%s9911_s8 + $0x180] sm:$0xff]  ;;  %v4726_v61 = vld [vmem:[%s9911_s8 + $0x190] sm:$0xff] }
0x14af   : > { %v6691_v42 = vpop.f32.mrf.mxu0  ;;  %4882 = vmatpush1.msra.mxu0 %v4726_v61  ;;  %v4687_v61 = vld [vmem:[%s9911_s8 + $0x58] sm:$0xff] }
0x14b0   : > { %v9346_v53 = vadd.f32 %v7253_v54, %v4512_v24  ;;  %4560 = vadd.xlane.f32.xlu1 %v9343_v27  ;;  %v4527_v59 = vadd.f32 %v6691_v42, %v5736_v33  ;;  %v4721_v54 = vld [vmem:[%s9911_s8 + $0x168] sm:$0xff] }
0x14b1   : > { %v4521_v8 = vpop.f32.mrf.mxu0 }
0x14b2   : > { %v4522_v20 = vadd.f32 %v5736_v33, %v4521_v8  ;;  %4558 = vadd.xlane.f32.xlu0 %v9346_v53  ;;  %v9355_v31 = vadd.f32 %v7255_v5, %v4527_v59  ;;  %v4723_v8 = vld [vmem:[%s9911_s8 + $0x178] sm:$0xff]  ;;  %v4722_v59 = vld [vmem:[%s9911_s8 + $0x170] sm:$0xff] }
0x14b3   : > { %4883 = vmatprep.subr.mxu0 %v4723_v8  ;;  %v4681_v8 = vld [vmem:[%s9911_s8 + $0x28] sm:$0xff] }
0x14b4   : > { %v9351_v16 = vadd.f32 %v7254_v57, %v4522_v20  ;;  %v4720_v20 = vld [vmem:[%s9911_s8 + $0x160] sm:$0xff]  ;;  %4884 = vmatpush1.msra.mxu0 %v4722_v59 }
0x14b5   : > { %v4680_v59 = vld [vmem:[%s9911_s8 + $0x20] sm:$0xff] }
0x14b6   : > { %4562 = vadd.xlane.f32.xlu0 %v9351_v16 }
0x14ba   : > { %4564 = vadd.xlane.f32.xlu0 %v9355_v31 }
0x14bb   : > { %v6694_v15 = vpop.f32.mrf.mxu0 }
0x14bc   : > { %v4537_v10 = vadd.f32 %v6694_v15, %v5736_v33  ;;  %v4717_v15 = vld [vmem:[%s9911_s8 + $0x148] sm:$0xff] }
0x14bd   : > { %v4531_v3 = vpop.f32.mrf.mxu0 }
0x14be   : > { %v9359_v58 = vadd.f32 %v7256_v7, %v4537_v10  ;;  %v4532_v23 = vadd.f32 %v5736_v33, %v4531_v3  ;;  %v4719_v10 = vld [vmem:[%s9911_s8 + $0x158] sm:$0xff]  ;;  %v4716_v3 = vld [vmem:[%s9911_s8 + $0x140] sm:$0xff]  ;;  %v4718_v7 = vld [vmem:[%s9911_s8 + $0x150] sm:$0xff] }
0x14bf   : > { %4885 = vmatprep.subr.mxu0 %v4719_v10  ;;  %v4679_v10 = vld [vmem:[%s9911_s8 + $0x18] sm:$0xff] }
0x14c0   : > { %v9362_v26 = vadd.f32 %v7257_v21, %v4532_v23  ;;  %4568 = vadd.xlane.f32.xlu1 %v9359_v58  ;;  %v4713_v21 = vld [vmem:[%s9911_s8 + $0x128] sm:$0xff]  ;;  %4886 = vmatpush1.msra.mxu0 %v4718_v7  ;;  %v4678_v7 = vld [vmem:[%s9911_s8 + $0x10] sm:$0xff] }
0x14c2   : > { %4566 = vadd.xlane.f32.xlu0 %v9362_v26 }
0x14c4   : > { %v6697_v46 = vpop.f32.mrf.mxu0 }
0x14c5   : > { %v4547_v1 = vadd.f32 %v6697_v46, %v5736_v33  ;;  %v4715_v46 = vld [vmem:[%s9911_s8 + $0x138] sm:$0xff] }
0x14c6   : > { %v4541_v14 = vpop.f32.mrf.mxu0  ;;  %4887 = vmatprep.subr.mxu0 %v4715_v46 }
0x14c7   : > { %v9367_v44 = vadd.f32 %v7258_v34, %v4547_v1  ;;  %v4542_v19 = vadd.f32 %v5736_v33, %v4541_v14  ;;  %v4725_v33 = vld [vmem:[%s9911_s8 + $0x188] sm:$0xff]  ;;  %v4712_v1 = vld [vmem:[%s9911_s8 + $0x120] sm:$0xff]  ;;  %v4714_v14 = vld [vmem:[%s9911_s8 + $0x130] sm:$0xff] }
0x14c8   : > { %4768 = vmatprep.subr.mxu1 %v4725_v33  ;;  %4888 = vmatpush1.msra.mxu0 %v4714_v14  ;;  %v4691_v33 = vld [vmem:[%s9911_s8 + $0x78] sm:$0xff] }
0x14c9   : > { %v9370_v25 = vadd.f32 %v7259_v39, %v4542_v19  ;;  %4572 = vadd.xlane.f32.xlu1 %v9367_v44  ;;  %4769 = vmatpush1.msra.mxu1 %v4724_v36  ;;  %v4709_v19 = vld [vmem:[%s9911_s8 + $0x108] sm:$0xff]  ;;  %v4711_v39 = vld [vmem:[%s9911_s8 + $0x118] sm:$0xff] }
0x14ca   : > { %4770 = vmatprep.subr.mxu1 %v4721_v54  ;;  %4889 = vmatprep.subr.mxu0 %v4711_v39  ;;  %v4685_v36 = vld [vmem:[%s9911_s8 + $0x48] sm:$0xff]  ;;  %v4686_v54 = vld [vmem:[%s9911_s8 + $0x50] sm:$0xff] }
0x14cb   : > { %4570 = vadd.xlane.f32.xlu0 %v9370_v25  ;;  %4771 = vmatpush1.msra.mxu1 %v4720_v20  ;;  %v4683_v20 = vld [vmem:[%s9911_s8 + $0x38] sm:$0xff] }
0x14cc   : > { %4772 = vmatprep.subr.mxu1 %v4717_v15  ;;  %4890 = vmatpush1.msra.mxu0 %v4710_v0  ;;  %v4677_v15 = vld [vmem:[%s9911_s8 + $0x8] sm:$0xff] }
0x14cd   : > { %4773 = vmatpush1.msra.mxu1 %v4716_v3  ;;  %4891 = vmatprep.subr.mxu0 %v4707_v48  ;;  %v4676_v3 = vld [vmem:[%s9911_s8] sm:$0xff] }
0x14ce   : > { %4774 = vmatprep.subr.mxu1 %v4713_v21  ;;  %4892 = vmatpush1.msra.mxu0 %v4706_v4  ;;  %v5211_v21 = vld [vmem:[#allocation2 + $0x1f8] sm:$0xff] }
0x14cf   : > { %4775 = vmatpush1.msra.mxu1 %v4712_v1  ;;  %4893 = vmatprep.subr.mxu0 %v4703_v60 }
0x14d0   : > { %4776 = vmatprep.subr.mxu1 %v4709_v19 }
0x14d1   : > { %4777 = vmatpush1.msra.mxu1 %v4708_v52 }
0x14d2   : > { %4778 = vmatprep.subr.mxu1 %v4705_v28 }
0x14d3   : > { %4779 = vmatpush1.msra.mxu1 %v4704_v2 }
0x14d4   : > { %4780 = vmatprep.subr.mxu1 %v4701_v17 }
0x1539   : > { %v4561_v63 = vpop.xlane.xlu1 %4560 }
0x153a   : > { %v4575_v22 = vmul.f32 0.0078125, %v4561_v63 }
0x153b   : > { %v4559_v13 = vpop.xlane.xlu0 %4558 }
0x153c   : > { %v9411_v62 = vsub.f32 %v9343_v27, %v4575_v22  ;;  %v4574_v9 = vmul.f32 0.0078125, %v4559_v13  ;;  %v4700_v13 = vld [vmem:[%s9911_s8 + $0xc0] sm:$0xff] }
0x153d   : > { %4781 = vmatpush1.msra.mxu1 %v4700_v13 }
0x153e   : > { %v9414_v35 = vsub.f32 %v9346_v53, %v4574_v9  ;;  %v4591_v29 = vmul.f32 %v9411_v62, %v9411_v62  ;;  %v4702_v9 = vld [vmem:[%s9911_s8 + $0xd0] sm:$0xff] }
0x153f   : > { %v4563_v6 = vpop.xlane.xlu0 %4562  ;;  %4894 = vmatpush1.msra.mxu0 %v4702_v9 }
0x1540   : > { %v4576_v55 = vmul.f32 0.0078125, %v4563_v6  ;;  %4600 = vadd.xlane.f32.xlu1 %v4591_v29  ;;  %v4590_v49 = vmul.f32 %v9414_v35, %v9414_v35  ;;  %v4697_v29 = vld [vmem:[%s9911_s8 + $0xa8] sm:$0xff]  ;;  %v4699_v6 = vld [vmem:[%s9911_s8 + $0xb8] sm:$0xff] }
0x1541   : > { %4782 = vmatprep.subr.mxu1 %v4697_v29  ;;  %4895 = vmatprep.subr.mxu0 %v4699_v6 }
0x1542   : > { %v9421_v51 = vsub.f32 %v9351_v16, %v4576_v55  ;;  %4598 = vadd.xlane.f32.xlu0 %v4590_v49  ;;  %v4696_v49 = vld [vmem:[%s9911_s8 + $0xa0] sm:$0xff] }
0x1543   : > { %v4565_v37 = vpop.xlane.xlu0 %4564  ;;  %4783 = vmatpush1.msra.mxu1 %v4696_v49 }
0x1544   : > { %v4577_v50 = vmul.f32 0.0078125, %v4565_v37  ;;  %v4592_v18 = vmul.f32 %v9421_v51, %v9421_v51  ;;  %v4698_v37 = vld [vmem:[%s9911_s8 + $0xb0] sm:$0xff] }
0x1545   : > { %4896 = vmatpush1.msra.mxu0 %v4698_v37 }
0x1546   : > { %v9426_v38 = vsub.f32 %v9355_v31, %v4577_v50  ;;  %4602 = vadd.xlane.f32.xlu0 %v4592_v18  ;;  %v4693_v50 = vld [vmem:[%s9911_s8 + $0x88] sm:$0xff]  ;;  %v4695_v18 = vld [vmem:[%s9911_s8 + $0x98] sm:$0xff] }
0x1547   : > { %4784 = vmatprep.subr.mxu1 %v4693_v50  ;;  %4897 = vmatprep.subr.mxu0 %v4695_v18  ;;  %v9617_v50 = vld [vmem:[%s9910_s7] ss:$0 sm:$0xff] }
0x1548   : > { %v4593_v11 = vmul.f32 %v9426_v38, %v9426_v38 }
0x1549   : > { %v4569_v30 = vpop.xlane.xlu1 %4568 }
0x154a   : > { %v4579_v32 = vmul.f32 0.0078125, %v4569_v30  ;;  %4604 = vadd.xlane.f32.xlu1 %v4593_v11  ;;  %v4692_v11 = vld [vmem:[%s9911_s8 + $0x80] sm:$0xff]  ;;  %v4694_v30 = vld [vmem:[%s9911_s8 + $0x90] sm:$0xff] }
0x154b   : > { %v4567_v56 = vpop.xlane.xlu0 %4566  ;;  %4785 = vmatpush1.msra.mxu1 %v4692_v11  ;;  %4898 = vmatpush1.msra.mxu0 %v4694_v30 }
0x154c   : > { %v9443_v24 = vsub.f32 %v9359_v58, %v4579_v32  ;;  %v4578_v42 = vmul.f32 0.0078125, %v4567_v56  ;;  %v4689_v32 = vld [vmem:[%s9911_s8 + $0x68] sm:$0xff]  ;;  %v4690_v56 = vld [vmem:[%s9911_s8 + $0x70] sm:$0xff]  ;;  %4899 = vmatprep.subr.mxu0 %v4691_v33  ;;  %v5195_v33 = vld [vmem:[#allocation2 + $0x178] sm:$0xff] }
0x154d   : > { %4786 = vmatprep.subr.mxu1 %v4689_v32  ;;  %4900 = vmatpush1.msra.mxu0 %v4690_v56  ;;  %v5163_v32 = vld [vmem:[#allocation2 + $0x78] sm:$0xff]  ;;  %v5178_v56 = vld [vmem:[#allocation2 + $0xf0] sm:$0xff] }
0x154e   : > { %v9458_v57 = vsub.f32 %v9362_v26, %v4578_v42  ;;  %v4595_v5 = vmul.f32 %v9443_v24, %v9443_v24  ;;  %v4684_v42 = vld [vmem:[%s9911_s8 + $0x40] sm:$0xff]  ;;  %4787 = vmatpush1.msra.mxu1 %v4688_v12  ;;  %4901 = vmatprep.subr.mxu0 %v4687_v61 }
0x154f   : > { %4788 = vmatprep.subr.mxu1 %v4685_v36  ;;  %4902 = vmatpush1.msra.mxu0 %v4686_v54  ;;  %v5210_v36 = vld [vmem:[#allocation2 + $0x1f0] sm:$0xff] }
0x1550   : > { %4608 = vadd.xlane.f32.xlu1 %v4595_v5  ;;  %v4594_v23 = vmul.f32 %v9458_v57, %v9458_v57  ;;  %v4682_v5 = vld [vmem:[%s9911_s8 + $0x30] sm:$0xff]  ;;  %4789 = vmatpush1.msra.mxu1 %v4684_v42 }
0x1551   : > { %4790 = vmatprep.subr.mxu1 %v4681_v8  ;;  %4903 = vmatprep.subr.mxu0 %v4683_v20 }
0x1552   : > { %v4573_v34 = vpop.xlane.xlu1 %4572  ;;  %4606 = vadd.xlane.f32.xlu0 %v4594_v23  ;;  %4791 = vmatpush1.msra.mxu1 %v4680_v59  ;;  %v5179_v23 = vld [vmem:[#allocation2 + $0xf8] sm:$0xff] }
0x1553   : > { %v4581_v45 = vmul.f32 0.0078125, %v4573_v34  ;;  %4904 = vmatpush1.msra.mxu0 %v4682_v5  ;;  %4792 = vmatprep.subr.mxu1 %v4677_v15  ;;  %v5162_v5 = vld [vmem:[#allocation2 + $0x70] sm:$0xff] }
0x1554   : > { %v4571_v43 = vpop.xlane.xlu0 %4570  ;;  %4905 = vmatprep.subr.mxu0 %v4679_v10  ;;  %4793 = vmatpush1.msra.mxu1 %v4676_v3  ;;  %v5194_v15 = vld [vmem:[#allocation2 + $0x170] sm:$0xff]  ;;  %v5177_v10 = vld [vmem:[#allocation2 + $0xe8] sm:$0xff] }
0x1555   : > { %v9507_v40 = vsub.f32 %v9367_v44, %v4581_v45  ;;  %v4580_v41 = vmul.f32 0.0078125, %v4571_v43  ;;  %4906 = vmatpush1.msra.mxu0 %v4678_v7  ;;  %6050 = vmatprep.subr.mxu1 %v5179_v23  ;;  %v5209_v3 = vld [vmem:[#allocation2 + $0x1e8] sm:$0xff] }
0x1556   : > { %6106 = vmatprep.subr.mxu0 %v5211_v21  ;;  %v5161_v21 = vld [vmem:[#allocation2 + $0x68] sm:$0xff] }
0x1557   : > { %v9522_v63 = vsub.f32 %v9370_v25, %v4580_v41  ;;  %v4597_v22 = vmul.f32 %v9507_v40, %v9507_v40 }
0x1559   : > { %4612 = vadd.xlane.f32.xlu1 %v4597_v22  ;;  %v4596_v55 = vmul.f32 %v9522_v63, %v9522_v63 }
0x155b   : > { %4610 = vadd.xlane.f32.xlu0 %v4596_v55  ;;  %v9611_v55 = vld [vmem:[%s9909_s6] ss:$0 sm:$0xff] }
0x15c9   : > { %v4601_v46 = vpop.xlane.xlu1 %4600 }
0x15ca   : > { %v4615_v1 = vmul.f32 0.0078125, %v4601_v46  ;;  %v5193_v46 = vld [vmem:[#allocation2 + $0x168] sm:$0xff] }
0x15cb   : > { %v4599_v14 = vpop.xlane.xlu0 %4598 }
0x15cc   : > { %v4623_v34 = vadd.f32 1e-05, %v4615_v1  ;;  %v4614_v19 = vmul.f32 0.0078125, %v4599_v14 }
0x15ce   : > { %7172 = vrsqrt.f32 %v4623_v34  ;;  %v4622_v39 = vadd.f32 1e-05, %v4614_v19 }
0x15cf   : > { %v4603_v45 = vpop.xlane.xlu0 %4602 }
0x15d0   : > { %7174 = vrsqrt.f32 %v4622_v39  ;;  %v4616_v52 = vmul.f32 0.0078125, %v4603_v45 }
0x15d2   : > { %v4624_v0 = vadd.f32 1e-05, %v4616_v52 }
0x15d3   : > { %v4605_v43 = vpop.xlane.xlu1 %4604 }
0x15d4   : > { %7176 = vrsqrt.f32 %v4624_v0  ;;  %v4617_v28 = vmul.f32 0.0078125, %v4605_v43 }
0x15d6   : > { %v4625_v48 = vadd.f32 1e-05, %v4617_v28 }
0x15d8   : > { %7178 = vrsqrt.f32 %v4625_v48 }
0x15d9   : > { %v4609_v41 = vpop.xlane.xlu1 %4608 }
0x15da   : > { %v4619_v2 = vmul.f32 0.0078125, %v4609_v41 }
0x15db   : > { %v7173_v4 = vpop.eup %7172  ;;  %v4607_v17 = vpop.xlane.xlu0 %4606 }
0x15dc   : > { %v4627_v60 = vadd.f32 1e-05, %v4619_v2  ;;  %v4618_v22 = vmul.f32 0.0078125, %v4607_v17  ;;  %v4639_v6 = vmul.f32 %v7173_v4, %v9411_v62  ;;  %v5208_v4 = vld [vmem:[#allocation2 + $0x1e0] sm:$0xff] }
0x15dd   : > { %v7175_v13 = vpop.eup %7174  ;;  %v5160_v17 = vld [vmem:[#allocation2 + $0x60] sm:$0xff] }
0x15de   : > { %v4638_v9 = vmul.f32 %v7175_v13, %v9414_v35  ;;  %7180 = vrsqrt.f32 %v4627_v60  ;;  %v4626_v29 = vadd.f32 1e-05, %v4618_v22  ;;  %v4654_v11 = vmul.f32 %v9611_v55, %v4639_v6  ;;  %v5192_v60 = vld [vmem:[#allocation2 + $0x160] sm:$0xff]  ;;  %v5175_v22 = vld [vmem:[#allocation2 + $0xd8] sm:$0xff]  ;;  %v5206_v6 = vld [vmem:[#allocation2 + $0x1d0] sm:$0xff] }
0x15df   : > { %v5207_v13 = vld [vmem:[#allocation2 + $0x1d8] sm:$0xff] }
0x15e0   : > { %7182 = vrsqrt.f32 %v4626_v29  ;;  %v4653_v49 = vmul.f32 %v9611_v55, %v4638_v9  ;;  %v4669_v8 = vadd.f32 %v9617_v50, %v4654_v11  ;;  %v5159_v9 = vld [vmem:[#allocation2 + $0x58] sm:$0xff]  ;;  %v5172_v11 = vld [vmem:[#allocation2 + $0xc0] sm:$0xff] }
0x15e1   : > { %v7177_v37 = vpop.eup %7176  ;;  %v5191_v29 = vld [vmem:[#allocation2 + $0x158] sm:$0xff] }
0x15e2   : > { %v4613_v18 = vpop.xlane.xlu1 %4612  ;;  %v4668_v35 = vadd.f32 %v9617_v50, %v4653_v49  ;;  %v4640_v62 = vmul.f32 %v7177_v37, %v9421_v51  ;;  %v5190_v49 = vld [vmem:[#allocation2 + $0x150] sm:$0xff]  ;;  %v5173_v37 = vld [vmem:[#allocation2 + $0xc8] sm:$0xff] }
0x15e3   : > { %v4621_v30 = vmul.f32 0.0078125, %v4613_v18  ;;  %v5157_v18 = vld [vmem:[#allocation2 + $0x48] sm:$0xff] }
0x15e4   : > { %4827 = vmatmul.mubr.f32.vlgmr.msra.gmra.mxu1 %v4668_v35  ;;  %4940 = vmatmul.mubr.f32.vlgmr.msra.gmra.mxu0 %v4668_v35  ;;  %v4611_v12 = vpop.xlane.xlu0 %4610  ;;  %v4655_v20 = vmul.f32 %v9611_v55, %v4640_v62  ;;  %v5189_v35 = vld [vmem:[#allocation2 + $0x148] sm:$0xff]  ;;  %v5204_v62 = vld [vmem:[#allocation2 + $0x1c0] sm:$0xff] }
0x15e5   : > { %v7179_v61 = vpop.eup %7178  ;;  %v4629_v42 = vadd.f32 1e-05, %v4621_v30  ;;  %v4620_v54 = vmul.f32 0.0078125, %v4611_v12  ;;  %4832 = vmatprep.mubr.f32.mxu1 %v9990_v47  ;;  %4945 = vmatprep.mubr.f32.mxu0 %v9990_v47  ;;  %v5156_v30 = vld [vmem:[#allocation2 + $0x40] sm:$0xff]  ;;  %v5203_v12 = vld [vmem:[#allocation2 + $0x1b8] sm:$0xff] }
0x15e6   : > { %v4641_v51 = vmul.f32 %v7179_v61, %v9426_v38  ;;  %6051 = vmatpush3.msra.mxu1 %v5163_v32  ;;  %6107 = vmatpush3.msra.mxu0 %v5195_v33  ;;  %v4670_v7 = vadd.f32 %v9617_v50, %v4655_v20  ;;  %v5188_v32 = vld [vmem:[#allocation2 + $0x140] sm:$0xff]  ;;  %v5171_v33 = vld [vmem:[#allocation2 + $0xb8] sm:$0xff]  ;;  %v5170_v61 = vld [vmem:[#allocation2 + $0xb0] sm:$0xff] }
0x15e7   : > { %7184 = vrsqrt.f32 %v4629_v42  ;;  %v4628_v59 = vadd.f32 1e-05, %v4620_v54  ;;  %6052 = vmatprep.subr.mxu1 %v5178_v56  ;;  %6108 = vmatprep.subr.mxu0 %v5210_v36  ;;  %v5155_v56 = vld [vmem:[#allocation2 + $0x38] sm:$0xff]  ;;  %v5202_v42 = vld [vmem:[#allocation2 + $0x1b0] sm:$0xff]  ;;  %v5169_v20 = vld [vmem:[#allocation2 + $0xa8] sm:$0xff] }
0x15e8   : > { %4833 = vmatmul.mubr.f32.gmra.mxu1 %v4669_v8  ;;  %4946 = vmatmul.mubr.f32.gmra.mxu0 %v4669_v8  ;;  %v4656_v38 = vmul.f32 %v9611_v55, %v4641_v51  ;;  %v5187_v36 = vld [vmem:[#allocation2 + $0x138] sm:$0xff]  ;;  %v5154_v54 = vld [vmem:[#allocation2 + $0x30] sm:$0xff]  ;;  %v5201_v51 = vld [vmem:[#allocation2 + $0x1a8] sm:$0xff] }
0x15e9   : > { %7186 = vrsqrt.f32 %v4628_v59  ;;  %4838 = vmatprep.mubr.f32.mxu1 %v9990_v47  ;;  %4951 = vmatprep.mubr.f32.mxu0 %v9990_v47  ;;  %v5186_v8 = vld [vmem:[#allocation2 + $0x130] sm:$0xff]  ;;  %v5153_v59 = vld [vmem:[#allocation2 + $0x28] sm:$0xff] }
0x15ea   : > { %6053 = vmatpush3.msra.mxu1 %v5162_v5  ;;  %6109 = vmatpush3.msra.mxu0 %v5194_v15  ;;  %v4671_v14 = vadd.f32 %v9617_v50, %v4656_v38  ;;  %v5185_v5 = vld [vmem:[#allocation2 + $0x128] sm:$0xff]  ;;  %v5168_v15 = vld [vmem:[#allocation2 + $0xa0] sm:$0xff]  ;;  %v5167_v38 = vld [vmem:[#allocation2 + $0x98] sm:$0xff] }
0x15eb   : > { %v7181_v23 = vpop.eup %7180  ;;  %6054 = vmatprep.subr.mxu1 %v5177_v10  ;;  %6110 = vmatprep.subr.mxu0 %v5209_v3  ;;  %v5200_v10 = vld [vmem:[#allocation2 + $0x1a0] sm:$0xff] }
0x15ec   : > { %4839 = vmatmul.mubr.f32.gmra.mxu1 %v4670_v7  ;;  %4952 = vmatmul.mubr.f32.gmra.mxu0 %v4670_v7  ;;  %v4643_v19 = vmul.f32 %v7181_v23, %v9443_v24  ;;  %v5152_v3 = vld [vmem:[#allocation2 + $0x20] sm:$0xff]  ;;  %v5199_v23 = vld [vmem:[#allocation2 + $0x198] sm:$0xff] }
0x15ed   : > { %v7183_v1 = vpop.eup %7182  ;;  %4844 = vmatprep.mubr.f32.mxu1 %v9990_v47  ;;  %4957 = vmatprep.mubr.f32.mxu0 %v9990_v47  ;;  %v5184_v7 = vld [vmem:[#allocation2 + $0x120] sm:$0xff] }
0x15ee   : > { %v4642_v34 = vmul.f32 %v7183_v1, %v9458_v57  ;;  %6055 = vmatpush3.msra.mxu1 %v5161_v21  ;;  %6111 = vmatpush3.msra.mxu0 %v5193_v46  ;;  %v4658_v52 = vmul.f32 %v9611_v55, %v4643_v19  ;;  %v5151_v21 = vld [vmem:[#allocation2 + $0x18] sm:$0xff]  ;;  %v5166_v1 = vld [vmem:[#allocation2 + $0x90] sm:$0xff] }
0x15ef   : > { %6112 = vmatprep.subr.mxu0 %v5208_v4  ;;  %v5183_v46 = vld [vmem:[#allocation2 + $0x118] sm:$0xff]  ;;  %v5182_v19 = vld [vmem:[#allocation2 + $0x110] sm:$0xff] }
0x15f0   : > { %4845 = vmatmul.mubr.f32.gmra.mxu1 %v4671_v14  ;;  %4958 = vmatmul.mubr.f32.gmra.mxu0 %v4671_v14  ;;  %v4657_v39 = vmul.f32 %v9611_v55, %v4642_v34  ;;  %v4673_v57 = vadd.f32 %v9617_v50, %v4658_v52  ;;  %v5198_v14 = vld [vmem:[#allocation2 + $0x190] sm:$0xff]  ;;  %v5149_v52 = vld [vmem:[#allocation2 + $0x8] sm:$0xff] }
0x15f1   : > { %4850 = vmatprep.mubr.f32.mxu1 %v9990_v47  ;;  %4963 = vmatprep.mubr.f32.mxu0 %v9990_v47  ;;  %v5150_v34 = vld [vmem:[#allocation2 + $0x10] sm:$0xff] }
0x15f2   : > { %v4672_v45 = vadd.f32 %v9617_v50, %v4657_v39  ;;  %6113 = vmatpush3.msra.mxu0 %v5192_v60  ;;  %v5165_v39 = vld [vmem:[#allocation2 + $0x88] sm:$0xff] }
0x15f3   : > { %6114 = vmatprep.subr.mxu0 %v5207_v13 }
0x15f4   : > { %v7185_v0 = vpop.eup %7184  ;;  %4851 = vmatmul.mubr.f32.gmra.mxu1 %v4672_v45  ;;  %4964 = vmatmul.mubr.f32.gmra.mxu0 %v4672_v45  ;;  %v5197_v45 = vld [vmem:[#allocation2 + $0x188] sm:$0xff] }
0x15f5   : > { %4856 = vmatprep.mubr.f32.mxu1 %v9990_v47  ;;  %4969 = vmatprep.mubr.f32.mxu0 %v9990_v47  ;;  %v4645_v28 = vmul.f32 %v7185_v0, %v9507_v40  ;;  %v5181_v0 = vld [vmem:[#allocation2 + $0x108] sm:$0xff] }
0x15f6   : > { %v7187_v24 = vpop.eup %7186  ;;  %6115 = vmatpush3.msra.mxu0 %v5191_v29 }
0x15f7   : > { %v4644_v43 = vmul.f32 %v7187_v24, %v9522_v63  ;;  %v4660_v2 = vmul.f32 %v9611_v55, %v4645_v28  ;;  %v5176_v63 = vld [vmem:[#allocation2 + $0xe0] sm:$0xff]  ;;  %6116 = vmatprep.subr.mxu0 %v5206_v6 }
0x15f8   : > { %4857 = vmatmul.mubr.f32.gmra.mxu1 %v4673_v57  ;;  %4970 = vmatmul.mubr.f32.gmra.mxu0 %v4673_v57  ;;  %v5164_v24 = vld [vmem:[#allocation2 + $0x80] sm:$0xff] }
0x15f9   : > { %4862 = vmatprep.mubr.f32.mxu1 %v9990_v47  ;;  %4975 = vmatprep.mubr.f32.mxu0 %v9990_v47  ;;  %v4659_v48 = vmul.f32 %v9611_v55, %v4644_v43  ;;  %v4675_v40 = vadd.f32 %v9617_v50, %v4660_v2  ;;  %v5158_v55 = vld [vmem:[#allocation2 + $0x50] sm:$0xff]  ;;  %v5196_v57 = vld [vmem:[#allocation2 + $0x180] sm:$0xff] }
0x15fa   : > { %6056 = vmatprep.subr.mxu1 %v5176_v63  ;;  %6117 = vmatpush3.msra.mxu0 %v5190_v49  ;;  %v5148_v43 = vld [vmem:[#allocation2] sm:$0xff] }
0x15fb   : > { %v4674_v41 = vadd.f32 %v9617_v50, %v4659_v48  ;;  %6057 = vmatpush3.msra.mxu1 %v5160_v17  ;;  %v5205_v50 = vld [vmem:[#allocation2 + $0x1c8] sm:$0xff]  ;;  %v5180_v28 = vld [vmem:[#allocation2 + $0x100] sm:$0xff]  ;;  %v4742_v48 = vlaneseq }
0x15fc   : > { %6058 = vmatprep.subr.mxu1 %v5175_v22  ;;  %6118 = vmatprep.subr.mxu0 %v5205_v50 }
0x15fd   : > { %4863 = vmatmul.mubr.f32.gmra.mxu1 %v4674_v41  ;;  %4976 = vmatmul.mubr.f32.gmra.mxu0 %v4674_v41  ;;  %v4743_v41 = vshrl.u32 %v4742_v48, 7 }
0x15fe   : > { %4868 = vmatprep.mubr.f32.mxu1 %v9990_v47  ;;  %4981 = vmatprep.mubr.f32.mxu0 %v9990_v47  ;;  %v5174_v47 = vld [vmem:[#allocation2 + $0xd0] sm:$0xff] }
0x15ff   : > { %6059 = vmatpush3.msra.mxu1 %v5159_v9  ;;  %6119 = vmatpush3.msra.mxu0 %v5189_v35  ;;  %v4744_v2 = vsub.s32 0, %v4743_v41  ;;  %v4752_v63 = vsub.s32 2, %v4743_v41  ;;  %v4748_v4 = vsub.s32 1, %v4743_v41  ;;  %v4756_v17 = vsub.s32 3, %v4743_v41 }
0x1600   : > { %6060 = vmatprep.subr.mxu1 %v5174_v47  ;;  %6120 = vmatprep.subr.mxu0 %v5204_v62 }
0x1601   : > { %4869 = vmatmul.mubr.f32.gmra.mxu1 %v4675_v40  ;;  %4982 = vmatmul.mubr.f32.gmra.mxu0 %v4675_v40  ;;  %v4740_v40 = vld [vmem:[%s9912_s9] sm:$0xf] }
0x1602   : > { %6061 = vmatpush3.msra.mxu1 %v5158_v55  ;;  %6121 = vmatpush3.msra.mxu0 %v5188_v32  ;;  %v9657_v60 = vrot.slane %v4740_v40, %v4744_v2  ;;  %v9659_v22 = vrot.slane %v4740_v40, %v4752_v63  ;;  %v9661_v29 = vrot.slane %v4740_v40, %v4748_v4 }
0x1603   : > { %6062 = vmatprep.subr.mxu1 %v5173_v37  ;;  %6122 = vmatprep.subr.mxu0 %v5203_v12  ;;  %v9663_v47 = vrot.slane %v4740_v40, %v4756_v17 }
0x1604   : > { %6063 = vmatpush3.msra.mxu1 %v5157_v18  ;;  %6123 = vmatpush3.msra.mxu0 %v5187_v36 }
0x1605   : > { %6064 = vmatprep.subr.mxu1 %v5172_v11  ;;  %6124 = vmatprep.subr.mxu0 %v5202_v42 }
0x1606   : > { %6065 = vmatpush3.msra.mxu1 %v5156_v30  ;;  %6125 = vmatpush3.msra.mxu0 %v5186_v8 }
0x1607   : > { %6066 = vmatprep.subr.mxu1 %v5171_v33  ;;  %6126 = vmatprep.subr.mxu0 %v5201_v51 }
0x1608   : > { %6067 = vmatpush3.msra.mxu1 %v5155_v56  ;;  %6127 = vmatpush3.msra.mxu0 %v5185_v5 }
0x1609   : > { %6068 = vmatprep.subr.mxu1 %v5170_v61  ;;  %6128 = vmatprep.subr.mxu0 %v5200_v10 }
0x160a   : > { %6069 = vmatpush3.msra.mxu1 %v5154_v54  ;;  %6129 = vmatpush3.msra.mxu0 %v5184_v7 }
0x160b   : > { %6070 = vmatprep.subr.mxu1 %v5169_v20  ;;  %6130 = vmatprep.subr.mxu0 %v5199_v23 }
0x160c   : > { %6071 = vmatpush3.msra.mxu1 %v5153_v59  ;;  %6131 = vmatpush3.msra.mxu0 %v5183_v46 }
0x160d   : > { %6072 = vmatprep.subr.mxu1 %v5168_v15  ;;  %6132 = vmatprep.subr.mxu0 %v5198_v14 }
0x160e   : > { %6073 = vmatpush3.msra.mxu1 %v5152_v3  ;;  %6133 = vmatpush3.msra.mxu0 %v5182_v19 }
0x160f   : > { %6074 = vmatprep.subr.mxu1 %v5167_v38  ;;  %6134 = vmatprep.subr.mxu0 %v5197_v45 }
0x1610   : > { %6075 = vmatpush3.msra.mxu1 %v5151_v21  ;;  %6135 = vmatpush3.msra.mxu0 %v5181_v0 }
0x1611   : > { %6076 = vmatprep.subr.mxu1 %v5166_v1  ;;  %6136 = vmatprep.subr.mxu0 %v5196_v57 }
0x1612   : > { %6077 = vmatpush3.msra.mxu1 %v5150_v34  ;;  %6137 = vmatpush3.msra.mxu0 %v5180_v28 }
0x1613   : > { %6078 = vmatprep.subr.mxu1 %v5165_v39 }
0x1614   : > { %6079 = vmatpush3.msra.mxu1 %v5149_v52 }
0x1615   : > { %6080 = vmatprep.subr.mxu1 %v5164_v24 }
0x1616   : > { %6081 = vmatpush3.msra.mxu1 %v5148_v43 }
0x16a4   : > { %v4828_v13 = vpop.f32.mrf.mxu1  ;;  %v4941_v9 = vpop.f32.mrf.mxu0 }
0x16a5   : > { %v4829_v6 = vadd.f32 %v4828_v13, %v9657_v60  ;;  %v4942_v55 = vadd.f32 %v4941_v9, %v9659_v22 }
0x16a6   : > { %v4830_v49 = vpop.f32.mrf.mxu1  ;;  %v4943_v37 = vpop.f32.mrf.mxu0 }
0x16a7   : > { %v4831_v50 = vadd.f32 %v4830_v49, %v9661_v29  ;;  %v4944_v18 = vadd.f32 %v4943_v37, %v9663_v47  ;;  %v5020_v62 = vmul.f32 0.70710677, %v4829_v6  ;;  %v5022_v30 = vmul.f32 0.70710677, %v4942_v55 }
0x16a8   : > { %v4834_v35 = vpop.f32.mrf.mxu1  ;;  %v4947_v11 = vpop.f32.mrf.mxu0  ;;  %v9687_v0 = vmul.f32 0.5, %v4829_v6  ;;  %v9697_v2 = vmul.f32 0.5, %v4942_v55 }
0x16a9   : > { %v4835_v32 = vadd.f32 %v4834_v35, %v9657_v60  ;;  %v5021_v56 = vmul.f32 0.70710677, %v4831_v50  ;;  %v4948_v36 = vadd.f32 %v4947_v11, %v9659_v22  ;;  %v5023_v61 = vmul.f32 0.70710677, %v4944_v18 }
0x16aa   : > { %v4836_v33 = vpop.f32.mrf.mxu1  ;;  %v4949_v12 = vpop.f32.mrf.mxu0  ;;  %7188 = verf.f32 %v5020_v62  ;;  %v9703_v13 = vmul.f32 0.5, %v4831_v50  ;;  %v9705_v9 = vmul.f32 0.5, %v4944_v18 }
0x16ab   : > { %v4837_v42 = vadd.f32 %v4836_v33, %v9661_v29  ;;  %v4950_v20 = vadd.f32 %v4949_v12, %v9663_v47  ;;  %7190 = verf.f32 %v5022_v30  ;;  %v5024_v51 = vmul.f32 0.70710677, %v4835_v32 }
0x16ac   : > { %v4840_v54 = vpop.f32.mrf.mxu1  ;;  %v4953_v8 = vpop.f32.mrf.mxu0  ;;  %7192 = verf.f32 %v5021_v56  ;;  %v5026_v10 = vmul.f32 0.70710677, %v4948_v36  ;;  %v9708_v49 = vmul.f32 0.5, %v4835_v32  ;;  %v9710_v37 = vmul.f32 0.5, %v4948_v36 }
0x16ad   : > { %v4841_v59 = vadd.f32 %v4840_v54, %v9657_v60  ;;  %v4954_v3 = vadd.f32 %v4953_v8, %v9659_v22  ;;  %7194 = verf.f32 %v5023_v61  ;;  %v5025_v7 = vmul.f32 0.70710677, %v4837_v42 }
0x16ae   : > { %v4842_v5 = vpop.f32.mrf.mxu1  ;;  %v4955_v15 = vpop.f32.mrf.mxu0  ;;  %v5027_v46 = vmul.f32 0.70710677, %v4950_v20  ;;  %7196 = verf.f32 %v5024_v51  ;;  %v9713_v62 = vmul.f32 0.5, %v4837_v42  ;;  %v9719_v33 = vmul.f32 0.5, %v4950_v20 }
0x16af   : > { %v9676_v38 = vadd.f32 %v4842_v5, %v9661_v29  ;;  %v9679_v1 = vadd.f32 %v4955_v15, %v9663_v47  ;;  %v5028_v14 = vmul.f32 0.70710677, %v4841_v59  ;;  %7198 = verf.f32 %v5026_v10 }
0x16b0   : > { %v4846_v23 = vpop.f32.mrf.mxu1  ;;  %v4959_v21 = vpop.f32.mrf.mxu0  ;;  %v5030_v45 = vmul.f32 0.70710677, %v4954_v3  ;;  %7200 = verf.f32 %v5025_v7  ;;  %v9725_v42 = vmul.f32 0.5, %v4841_v59  ;;  %v9727_v54 = vmul.f32 0.5, %v4954_v3 }
0x16b1   : > { %v9682_v34 = vadd.f32 %v4846_v23, %v9657_v60  ;;  %v9685_v52 = vadd.f32 %v4959_v21, %v9659_v22  ;;  %v5029_v24 = vmul.f32 0.70710677, %v9676_v38  ;;  %7202 = verf.f32 %v5027_v46 }
0x16b2   : > { %v4848_v19 = vpop.f32.mrf.mxu1  ;;  %v4961_v39 = vpop.f32.mrf.mxu0  ;;  %v5031_v28 = vmul.f32 0.70710677, %v9679_v1  ;;  %7204 = verf.f32 %v5028_v14 }
0x16b3   : > { %v9692_v48 = vadd.f32 %v4848_v19, %v9661_v29  ;;  %v9695_v41 = vadd.f32 %v4961_v39, %v9663_v47  ;;  %v5032_v40 = vmul.f32 0.70710677, %v9682_v34  ;;  %7206 = verf.f32 %v5030_v45 }
0x16b4   : > { %v4852_v57 = vpop.f32.mrf.mxu1  ;;  %v4965_v43 = vpop.f32.mrf.mxu0  ;;  %v5034_v6 = vmul.f32 0.70710677, %v9685_v52  ;;  %7208 = verf.f32 %v5029_v24  ;;  %v9745_v19 = vmul.f32 0.5, %v9676_v38 }
0x16b5   : > { %v9701_v63 = vadd.f32 %v4852_v57, %v9657_v60  ;;  %v5033_v55 = vmul.f32 0.70710677, %v9692_v48  ;;  %7210 = verf.f32 %v5031_v28  ;;  %v5035_v50 = vmul.f32 0.70710677, %v9695_v41 }
0x16b6   : > { %v4854_v4 = vpop.f32.mrf.mxu1  ;;  %v4967_v17 = vpop.f32.mrf.mxu0  ;;  %v9717_v18 = vadd.f32 %v4965_v43, %v9659_v22  ;;  %7212 = verf.f32 %v5032_v40 }
0x16b7   : > { %v7189_v30 = vpop.eup %7188  ;;  %v5036_v32 = vmul.f32 0.70710677, %v9701_v63  ;;  %v9723_v12 = vadd.f32 %v4854_v4, %v9661_v29  ;;  %7214 = verf.f32 %v5034_v6  ;;  %v9730_v8 = vadd.f32 %v4967_v17, %v9663_v47 }
0x16b8   : > { %v4858_v35 = vpop.f32.mrf.mxu1  ;;  %v4971_v11 = vpop.f32.mrf.mxu0  ;;  %7216 = verf.f32 %v5033_v55  ;;  %v5038_v59 = vmul.f32 0.70710677, %v9717_v18  ;;  %v5084_v46 = vadd.f32 1.0, %v7189_v30 }
0x16b9   : > { %v7191_v61 = vpop.eup %7190  ;;  %v5037_v20 = vmul.f32 0.70710677, %v9723_v12  ;;  %v9734_v5 = vadd.f32 %v4858_v35, %v9657_v60  ;;  %7218 = verf.f32 %v5035_v50  ;;  %v5039_v3 = vmul.f32 0.70710677, %v9730_v8 }
0x16ba   : > { %v4860_v56 = vpop.f32.mrf.mxu1  ;;  %v4973_v36 = vpop.f32.mrf.mxu0  ;;  %v9742_v7 = vadd.f32 %v4971_v11, %v9659_v22  ;;  %v5086_v14 = vadd.f32 1.0, %v7191_v61  ;;  %7220 = verf.f32 %v5036_v32 }
0x16bb   : > { %v7193_v51 = vpop.eup %7192  ;;  %v9737_v15 = vadd.f32 %v4860_v56, %v9661_v29  ;;  %7222 = verf.f32 %v5037_v20  ;;  %v9749_v24 = vadd.f32 %v4973_v36, %v9663_v47  ;;  %v5040_v4 = vmul.f32 0.70710677, %v9734_v5 }
0x16bc   : > { %v7195_v10 = vpop.eup %7194  ;;  %7224 = verf.f32 %v5039_v3  ;;  %v5085_v17 = vadd.f32 1.0, %v7193_v51  ;;  %v5042_v55 = vmul.f32 0.70710677, %v9742_v7  ;;  %v5116_v56 = vmul.f32 %v5084_v46, %v9687_v0 }
0x16bd   : > { %v4864_v23 = vpop.f32.mrf.mxu1  ;;  %v4977_v21 = vpop.f32.mrf.mxu0  ;;  %v5041_v45 = vmul.f32 0.70710677, %v9737_v15  ;;  %v5087_v38 = vadd.f32 1.0, %v7195_v10  ;;  %7226 = verf.f32 %v5038_v59  ;;  %v5043_v35 = vmul.f32 0.70710677, %v9749_v24 }
0x16be   : > { %v7197_v39 = vpop.eup %7196  ;;  %v9752_v57 = vadd.f32 %v4864_v23, %v9657_v60  ;;  %v9758_v11 = vadd.f32 %v4977_v21, %v9659_v22  ;;  %v5118_v36 = vmul.f32 %v5086_v14, %v9697_v2  ;;  %v5117_v20 = vmul.f32 %v5085_v17, %v9703_v13 }
0x16bf   : > { %v4866_v43 = vpop.f32.mrf.mxu1  ;;  %v4979_v28 = vpop.f32.mrf.mxu0  ;;  %7228 = verf.f32 %v5041_v45  ;;  %v5119_v10 = vmul.f32 %v5087_v38, %v9705_v9  ;;  %v4999_v45 = vmul.f32 0.5, %v9679_v1  ;;  %v5001_v17 = vmul.f32 0.5, %v9692_v48 }
0x16c0   : > { %v7199_v40 = vpop.eup %7198  ;;  %v5044_v61 = vmul.f32 0.70710677, %v9752_v57  ;;  %7230 = verf.f32 %v5043_v35  ;;  %v9766_v59 = vadd.f32 %v4866_v43, %v9661_v29  ;;  %v9769_v23 = vadd.f32 %v4979_v28, %v9663_v47  ;;  %5283 = vmatprep.mubr.f32.mxu1 %v5117_v20 }
0x16c1   : > { %v7201_v6 = vpop.eup %7200  ;;  %v4870_v50 = vpop.f32.mrf.mxu1  ;;  %7232 = verf.f32 %v5040_v4  ;;  %v5046_v13 = vmul.f32 0.70710677, %v9758_v11  ;;  %5388 = vmatprep.mubr.f32.mxu0 %v5119_v10  ;;  %5284 = vmatmul.mubr.f32.vlgmr.msra.gmra.mxu1 %v5116_v56  ;;  %v5088_v35 = vadd.f32 1.0, %v7197_v39  ;;  %v5003_v20 = vmul.f32 0.5, %v9695_v41 }
0x16c2   : > { %v4983_v30 = vpop.f32.mrf.mxu0  ;;  %v7203_v32 = vpop.eup %7202  ;;  %v9772_v0 = vadd.f32 %v4870_v50, %v9657_v60  ;;  %7234 = verf.f32 %v5042_v55  ;;  %v5045_v9 = vmul.f32 0.70710677, %v9766_v59  ;;  %v5089_v46 = vadd.f32 1.0, %v7201_v6  ;;  %5389 = vmatmul.mubr.f32.vlgmr.msra.gmra.mxu0 %v5118_v36 }
0x16c3   : > { %v7205_v51 = vpop.eup %7204  ;;  %v9775_v2 = vadd.f32 %v4983_v30, %v9659_v22  ;;  %7236 = verf.f32 %v5044_v61  ;;  %v5047_v60 = vmul.f32 0.70710677, %v9769_v23  ;;  %v4872_v43 = vpop.f32.mrf.mxu1  ;;  %v5091_v1 = vadd.f32 1.0, %v7203_v32 }
0x16c4   : > { %v7207_v3 = vpop.eup %7206  ;;  %v5048_v22 = vmul.f32 0.70710677, %v9772_v0  ;;  %v4985_v28 = vpop.f32.mrf.mxu0  ;;  %7238 = verf.f32 %v5045_v9  ;;  %v5121_v6 = vmul.f32 %v5089_v46, %v9713_v62  ;;  %v5090_v50 = vadd.f32 1.0, %v7199_v40 }
0x16c5   : > { %v7209_v21 = vpop.eup %7208  ;;  %v5050_v38 = vmul.f32 0.70710677, %v9775_v2  ;;  %7240 = verf.f32 %v5047_v60  ;;  %v9786_v56 = vadd.f32 %v4872_v43, %v9661_v29  ;;  %v9789_v36 = vadd.f32 %v4985_v28, %v9663_v47 }
0x16c6   : > { %v7211_v14 = vpop.eup %7210  ;;  %7242 = verf.f32 %v5046_v13  ;;  %5288 = vmatprep.mubr.f32.mxu1 %v5121_v6  ;;  %v5093_v48 = vadd.f32 1.0, %v7209_v21  ;;  %v5123_v62 = vmul.f32 %v5091_v1, %v9719_v33  ;;  %v5120_v32 = vmul.f32 %v5088_v35, %v9708_v49 }
0x16c7   : > { %v7213_v4 = vpop.eup %7212  ;;  %7244 = verf.f32 %v5048_v22  ;;  %v5122_v40 = vmul.f32 %v5090_v50, %v9710_v37  ;;  %v5049_v10 = vmul.f32 0.70710677, %v9786_v56  ;;  %v5051_v29 = vmul.f32 0.70710677, %v9789_v36 }
0x16c8   : > { %v7215_v55 = vpop.eup %7214  ;;  %7246 = verf.f32 %v5050_v38  ;;  %5393 = vmatprep.mubr.f32.mxu0 %v5123_v62  ;;  %5289 = vmatmul.mubr.f32.gmra.mxu1 %v5120_v32  ;;  %v5125_v47 = vmul.f32 %v5093_v48, %v9745_v19  ;;  %v5095_v21 = vadd.f32 1.0, %v7211_v14  ;;  %v5092_v41 = vadd.f32 1.0, %v7205_v51 }
0x16c9   : > { %v7217_v30 = vpop.eup %7216  ;;  %v5094_v9 = vadd.f32 1.0, %v7207_v3  ;;  %5394 = vmatmul.mubr.f32.gmra.mxu0 %v5122_v40  ;;  %7248 = verf.f32 %v5049_v10  ;;  %v5096_v60 = vadd.f32 1.0, %v7213_v4  ;;  %v5000_v37 = vmul.f32 0.5, %v9682_v34 }
0x16ca   : > { %v7219_v61 = vpop.eup %7218  ;;  %v5097_v49 = vadd.f32 1.0, %v7217_v30  ;;  %7250 = verf.f32 %v5051_v29  ;;  %5293 = vmatprep.mubr.f32.mxu1 %v5125_v47  ;;  %v5127_v43 = vmul.f32 %v5095_v21, %v4999_v45  ;;  %v5124_v28 = vmul.f32 %v5092_v41, %v9725_v42 }
0x16cb   : > { %v7221_v39 = vpop.eup %7220  ;;  %v5099_v33 = vadd.f32 1.0, %v7219_v61  ;;  %v5126_v19 = vmul.f32 %v5094_v9, %v9727_v54  ;;  %v5098_v3 = vadd.f32 1.0, %v7215_v55  ;;  %v5005_v1 = vmul.f32 0.5, %v9723_v12 }
0x16cc   : > { %v7223_v13 = vpop.eup %7222  ;;  %v5129_v14 = vmul.f32 %v5097_v49, %v5001_v17  ;;  %v5007_v35 = vmul.f32 0.5, %v9730_v8  ;;  %5398 = vmatprep.mubr.f32.mxu0 %v5127_v43  ;;  %5294 = vmatmul.mubr.f32.gmra.mxu1 %v5124_v28  ;;  %v5002_v45 = vmul.f32 0.5, %v9685_v52  ;;  %v5128_v42 = vmul.f32 %v5096_v60, %v5000_v37 }
0x16cd   : > { %v7225_v46 = vpop.eup %7224  ;;  %v5131_v51 = vmul.f32 %v5099_v33, %v5003_v20  ;;  %v5101_v4 = vadd.f32 1.0, %v7223_v13  ;;  %5399 = vmatmul.mubr.f32.gmra.mxu0 %v5126_v19  ;;  %v5100_v48 = vadd.f32 1.0, %v7221_v39  ;;  %v5009_v8 = vmul.f32 0.5, %v9737_v15 }
0x16ce   : > { %v7227_v22 = vpop.eup %7226  ;;  %v5103_v34 = vadd.f32 1.0, %v7225_v46  ;;  %5298 = vmatprep.mubr.f32.mxu1 %v5129_v14  ;;  %v5130_v20 = vmul.f32 %v5098_v3, %v5002_v45  ;;  %v5004_v40 = vmul.f32 0.5, %v9701_v63  ;;  %v5011_v52 = vmul.f32 0.5, %v9749_v24 }
0x16cf   : > { %v7229_v38 = vpop.eup %7228  ;;  %5403 = vmatprep.mubr.f32.mxu0 %v5131_v51  ;;  %v5133_v17 = vmul.f32 %v5101_v4, %v5005_v1  ;;  %v5102_v62 = vadd.f32 1.0, %v7227_v22  ;;  %v5006_v29 = vmul.f32 0.5, %v9717_v18  ;;  %v5013_v49 = vmul.f32 0.5, %v9766_v59 }
0x16d0   : > { %v7231_v6 = vpop.eup %7230  ;;  %v5105_v30 = vadd.f32 1.0, %v7229_v38  ;;  %v5135_v55 = vmul.f32 %v5103_v34, %v5007_v35  ;;  %5299 = vmatmul.mubr.f32.gmra.mxu1 %v5128_v42  ;;  %v5132_v21 = vmul.f32 %v5100_v48, %v5004_v40  ;;  %v5008_v60 = vmul.f32 0.5, %v9734_v5 }
0x16d1   : > { %v7233_v50 = vpop.eup %7232  ;;  %v5107_v61 = vadd.f32 1.0, %v7231_v6  ;;  %5404 = vmatmul.mubr.f32.gmra.mxu0 %v5130_v20  ;;  %5303 = vmatprep.mubr.f32.mxu1 %v5133_v17  ;;  %v5134_v63 = vmul.f32 %v5102_v62, %v5006_v29  ;;  %v5015_v18 = vmul.f32 0.5, %v9769_v23  ;;  %v5010_v22 = vmul.f32 0.5, %v9742_v7  ;;  %v9821_v17 = vld [vmem:[%s9914_s11] ss:$0 sm:$0xff] }
0x16d2   : > { %v7235_v54 = vpop.eup %7234  ;;  %v5137_v13 = vmul.f32 %v5105_v30, %v5009_v8  ;;  %5408 = vmatprep.mubr.f32.mxu0 %v5135_v55  ;;  %v5104_v15 = vadd.f32 1.0, %v7233_v50  ;;  %v5017_v59 = vmul.f32 0.5, %v9786_v56  ;;  %v5012_v5 = vmul.f32 0.5, %v9752_v57 }
0x16d3   : > { %v7237_v12 = vpop.eup %7236  ;;  %v5139_v41 = vmul.f32 %v5107_v61, %v5011_v52  ;;  %v5106_v33 = vadd.f32 1.0, %v7235_v54  ;;  %v5019_v23 = vmul.f32 0.5, %v9789_v36  ;;  %v5014_v1 = vmul.f32 0.5, %v9758_v11 }
0x16d4   : > { %v7239_v32 = vpop.eup %7238  ;;  %5304 = vmatmul.mubr.f32.gmra.mxu1 %v5132_v21  ;;  %v5136_v28 = vmul.f32 %v5104_v15, %v5008_v60  ;;  %v5108_v19 = vadd.f32 1.0, %v7237_v12  ;;  %v5016_v42 = vmul.f32 0.5, %v9772_v0  ;;  %v5018_v57 = vmul.f32 0.5, %v9775_v2 }
0x16d5   : > { %v7241_v10 = vpop.eup %7240  ;;  %v5109_v47 = vadd.f32 1.0, %v7239_v32  ;;  %5409 = vmatmul.mubr.f32.gmra.mxu0 %v5134_v63  ;;  %5308 = vmatprep.mubr.f32.mxu1 %v5137_v13  ;;  %v5138_v51 = vmul.f32 %v5106_v33, %v5010_v22 }
0x16d6   : > { %v7243_v39 = vpop.eup %7242  ;;  %v5111_v9 = vadd.f32 1.0, %v7241_v10  ;;  %5413 = vmatprep.mubr.f32.mxu0 %v5139_v41  ;;  %v5140_v4 = vmul.f32 %v5108_v19, %v5012_v5 }
0x16d7   : > { %v7245_v46 = vpop.eup %7244  ;;  %v5141_v37 = vmul.f32 %v5109_v47, %v5013_v49  ;;  %v5110_v3 = vadd.f32 1.0, %v7243_v39 }
0x16d8   : > { %v7247_v24 = vpop.eup %7246  ;;  %v5143_v38 = vmul.f32 %v5111_v9, %v5015_v18  ;;  %5309 = vmatmul.mubr.f32.gmra.mxu1 %v5136_v28  ;;  %v5112_v50 = vadd.f32 1.0, %v7245_v46 }
0x16d9   : > { %v7249_v43 = vpop.eup %7248  ;;  %5414 = vmatmul.mubr.f32.gmra.mxu0 %v5138_v51  ;;  %5313 = vmatprep.mubr.f32.mxu1 %v5141_v37  ;;  %v5142_v45 = vmul.f32 %v5110_v3, %v5014_v1  ;;  %v5114_v56 = vadd.f32 1.0, %v7247_v24 }
0x16da   : > { %v7251_v14 = vpop.eup %7250  ;;  %v5113_v6 = vadd.f32 1.0, %v7249_v43  ;;  %5418 = vmatprep.mubr.f32.mxu0 %v5143_v38  ;;  %v5144_v11 = vmul.f32 %v5112_v50, %v5016_v42 }
0x16db   : > { %v5115_v7 = vadd.f32 1.0, %v7251_v14  ;;  %v5146_v36 = vmul.f32 %v5114_v56, %v5018_v57 }
0x16dc   : > { %v5145_v35 = vmul.f32 %v5113_v6, %v5017_v59  ;;  %5314 = vmatmul.mubr.f32.gmra.mxu1 %v5140_v4 }
0x16dd   : > { %v5147_v34 = vmul.f32 %v5115_v7, %v5019_v23  ;;  %5419 = vmatmul.mubr.f32.gmra.mxu0 %v5142_v45 }
0x16de   : > { %5318 = vmatprep.mubr.f32.mxu1 %v5145_v35 }
0x16df   : > { %5423 = vmatprep.mubr.f32.mxu0 %v5147_v34 }
0x16e0   : > { %5319 = vmatmul.mubr.f32.gmra.mxu1 %v5144_v11 }
0x16e1   : > { %5424 = vmatmul.mubr.f32.gmra.mxu0 %v5146_v36 }
0x1781   : > { %v6082_v30 = vpop.f32.mrf.mxu1 }
0x1782   : > { %v6138_v54 = vpop.f32.mrf.mxu0 }
0x1783   : > { %v6083_v55 = vpop.f32.mrf.mxu1 }
0x1784   : > { %v6139_v0 = vpop.f32.mrf.mxu0  ;;  %v6084_v48 = vadd.f32 %v6083_v55, %v6082_v30 }
0x1785   : > { %v6140_v61 = vadd.f32 %v6139_v0, %v6138_v54 }
0x1786   : > { %v5286_v2 = vadd.f32 %v6084_v48, %v9821_v17 }
0x1788   : > { %v6085_v12 = vpop.f32.mrf.mxu1  ;;  %v5391_v8 = vadd.f32 %v6140_v61, %v5286_v2 }
0x1789   : > { %v6141_v20 = vpop.f32.mrf.mxu0 }
0x178a   : > { %v6086_v62 = vpop.f32.mrf.mxu1  ;;  %v5429_v32 = vadd.f32 %v5391_v8, %v9346_v53 }
0x178b   : > { %v6087_v40 = vadd.f32 %v6086_v62, %v6085_v12  ;;  %v6142_v52 = vpop.f32.mrf.mxu0 }
0x178c   : > { %v6088_v10 = vpop.f32.mrf.mxu1  ;;  %5437 = vst [vmem:[%s9828_s23] sm:$0xff] %v5429_v32  ;;  %v6143_v13 = vadd.f32 %v6142_v52, %v6141_v20 }
0x178d   : > { %v5291_v29 = vadd.f32 %v6087_v40, %v9821_v17  ;;  %v6144_v47 = vpop.f32.mrf.mxu0 }
0x178e   : > { %v6089_v39 = vpop.f32.mrf.mxu1 }
0x178f   : > { %v5396_v21 = vadd.f32 %v6143_v13, %v5291_v29  ;;  %v6090_v41 = vadd.f32 %v6089_v39, %v6088_v10  ;;  %v6145_v15 = vpop.f32.mrf.mxu0 }
0x1790   : > { %v6091_v9 = vpop.f32.mrf.mxu1  ;;  %v6146_v49 = vadd.f32 %v6145_v15, %v6144_v47 }
0x1791   : > { %v5430_v53 = vadd.f32 %v5396_v21, %v9343_v27  ;;  %v5296_v46 = vadd.f32 %v6090_v41, %v9821_v17  ;;  %v6147_v63 = vpop.f32.mrf.mxu0 }
0x1792   : > { %v6092_v33 = vpop.f32.mrf.mxu1 }
0x1793   : > { %5438 = vst [vmem:[%s9828_s23 + $0x8] sm:$0xff] %v5430_v53  ;;  %v5401_v24 = vadd.f32 %v6146_v49, %v5296_v46  ;;  %v6093_v60 = vadd.f32 %v6092_v33, %v6091_v9  ;;  %v6148_v18 = vpop.f32.mrf.mxu0 }
0x1794   : > { %v6094_v22 = vpop.f32.mrf.mxu1  ;;  %v6149_v28 = vadd.f32 %v6148_v18, %v6147_v63 }
0x1795   : > { %v5431_v37 = vadd.f32 %v5401_v24, %v9351_v16  ;;  %v5301_v43 = vadd.f32 %v6093_v60, %v9821_v17  ;;  %v6150_v38 = vpop.f32.mrf.mxu0 }
0x1796   : > { %v6095_v19 = vpop.f32.mrf.mxu1 }
0x1797   : > { %5439 = vst [vmem:[%s9828_s23 + $0x10] sm:$0xff] %v5431_v37  ;;  %v5406_v27 = vadd.f32 %v6149_v28, %v5301_v43  ;;  %v6096_v14 = vadd.f32 %v6095_v19, %v6094_v22  ;;  %v6151_v59 = vpop.f32.mrf.mxu0 }
0x1798   : > { %v6097_v51 = vpop.f32.mrf.mxu1  ;;  %v6152_v5 = vadd.f32 %v6151_v59, %v6150_v38 }
0x1799   : > { %v5432_v3 = vadd.f32 %v5406_v27, %v9355_v31  ;;  %v5306_v6 = vadd.f32 %v6096_v14, %v9821_v17  ;;  %v6153_v23 = vpop.f32.mrf.mxu0 }
0x179a   : > { %v6098_v7 = vpop.f32.mrf.mxu1 }
0x179b   : > { %5440 = vst [vmem:[%s9828_s23 + $0x18] sm:$0xff] %v5432_v3  ;;  %v5411_v16 = vadd.f32 %v6152_v5, %v5306_v6  ;;  %v6099_v1 = vadd.f32 %v6098_v7, %v6097_v51  ;;  %v6154_v35 = vpop.f32.mrf.mxu0 }
0x179c   : > { %v6100_v4 = vpop.f32.mrf.mxu1  ;;  %v6155_v45 = vadd.f32 %v6154_v35, %v6153_v23 }
0x179d   : > { %v5433_v34 = vadd.f32 %v5411_v16, %v9362_v26  ;;  %v5311_v50 = vadd.f32 %v6099_v1, %v9821_v17  ;;  %v6156_v56 = vpop.f32.mrf.mxu0 }
0x179e   : > { %v6101_v42 = vpop.f32.mrf.mxu1 }
0x179f   : > { %5441 = vst [vmem:[%s9828_s23 + $0x20] sm:$0xff] %v5433_v34  ;;  %v5416_v31 = vadd.f32 %v6155_v45, %v5311_v50  ;;  %v6102_v57 = vadd.f32 %v6101_v42, %v6100_v4  ;;  %v6157_v11 = vpop.f32.mrf.mxu0 }
0x17a0   : > { %v6103_v36 = vpop.f32.mrf.mxu1  ;;  %v6158_v55 = vadd.f32 %v6157_v11, %v6156_v56 }
0x17a1   : > { %v5434_v30 = vadd.f32 %v5416_v31, %v9359_v58  ;;  %v5316_v54 = vadd.f32 %v6102_v57, %v9821_v17  ;;  %v6159_v0 = vpop.f32.mrf.mxu0 }
0x17a2   : > { %v6104_v26 = vpop.f32.mrf.mxu1 }
0x17a3   : > { %5442 = vst [vmem:[%s9828_s23 + $0x28] sm:$0xff] %v5434_v30  ;;  %v5421_v48 = vadd.f32 %v6158_v55, %v5316_v54  ;;  %v6105_v2 = vadd.f32 %v6104_v26, %v6103_v36  ;;  %v6160_v61 = vpop.f32.mrf.mxu0 }
0x17a4   : > { %v6161_v20 = vadd.f32 %v6160_v61, %v6159_v0 }
0x17a5   : > { %v5435_v12 = vadd.f32 %v5421_v48, %v9370_v25  ;;  %v5321_v8 = vadd.f32 %v6105_v2, %v9821_v17 }
0x17a7   : > { %5443 = vst [vmem:[%s9828_s23 + $0x30] sm:$0xff] %v5435_v12  ;;  %v5426_v58 = vadd.f32 %v6161_v20, %v5321_v8 }
0x17a9   : > { %v5436_v62 = vadd.f32 %v5426_v58, %v9367_v44 }
0x17ab   : > { %5444 = vst [vmem:[%s9828_s23 + $0x38] sm:$0xff] %v5436_v62 }
0x17ac   : > { %7299 = shalt.err (!%p7296_p0)
}
0x17ad   : > { %s7300_s16 = scalar_lea.hbm %s9855_s26, 1024  ;;  %s7304_s30 = scalar_lea.hbm %s9915_s12, 2048 }
0x17ae   : > { %p7301_p1 = scmp.ne.s32.totalorder %s9855_s26, %s7300_s16  ;;  %p7305_p4 = scmp.lt.s32.totalorder %s9855_s26, %s9915_s12 }
0x17af   : > { %p7306_p7 = scmp.lt.s32.totalorder %s7304_s30, %s7300_s16 }
0x17b0   : > { %p7302_p2 = pnand %p7301_p1, %p7469_p5 }
0x17b1   : > { %p7307_p8 = por %p7306_p7, %p7305_p4 }
0x17b2   : > { %p7303_p3 = pneg %p7302_p2 }
0x17b4   : > { %p7308_p6 = pnand %p7307_p8, %p7303_p3 }
0x17b6   : > { %7311 = shalt.err (!%p7308_p6)
}
0x17b7   : > { %s7364_s25 = smov 128   ;;  %s7365_s29 = smov 8  }
0x17b8   : > { %6702 = dma.vmem_to_hbm [thread:$0]  (%p7469_p5), %s9857_s19, 1024, %s9855_s26, %s9863_s17, %s7364_s25, %s7364_s25, %s7365_s29  }
0x17b9 PF: > { %p6714_p9 = scmp.ge.s32.totalorder %s7350_s24, 2  ;;  %s5474_s15 = sand.u32 1, %s7338_s21  }
0x17ba   : > { %p10046_p10 = scmp.ne.s32.totalorder %s9954_s14, 0  ;;  %s5475_s16 = scalar_lea.sflag [#allocation4], %s5474_s15 }
0x17bc   : > { %p6709_p11 = pnand %p6714_p9, %p10046_p10 }
0x17be   : > { %p6710_p12 = pneg %p6709_p11 }
0x17c0   : > { %7333 = dma.done.wait (%p6710_p12), %s5475_s16, 1024  }
0x17c1   : > { %7335 = vsyncadd (%p6710_p12), %s5475_s16, 4294966272  ;;  %s10047_s23 = sld [smem:[#allocation8_spill]]  ;;  %p23_p13 = scmp.ge.s32.totalorder %s7456_s27, 4  }
0x17c2   : > { %s10048_s18 = sld [smem:[#allocation9_spill]]  ;;  %s10049_s21 = smov %s7342_s22 }
0x17c3   : > { %s10052_s24 = smov %s7456_s27 }
0x17c4   :  { %25 = sbr.rel (!%p23_p13) target bundleno = 4 (0x4), region = 108 }
0x17c7   : > { %s10050_s22 = smov %s10047_s23 }
0x17c8   : > { %s10051_s23 = smov %s10048_s18 }
0x17c9   :  { %5480 = vsyncpa [#allocation3], 1 }
0x17ca   :  { %5482 = vsyncpa [#allocation3 + $0x1], 1 }
0x17cb   :  { %5483 = vsyncpa [#allocation4], 1 }
0x17cc   :  { %5485 = vsyncpa [#allocation4 + $0x1], 1 }

</bundles_post_ra>
